<compile_context>
chip_gen: v5e
topology: v5e:2x2
jax: 0.10.0
libtpu: 0.0.40
codegen_flags: <defaults>
</compile_context>

<pallas_src>
import numpy as np
import jax
import jax.numpy as jnp
from jax.experimental import pallas as pl
from jax.experimental.pallas import tpu as pltpu

B, N, HID, HEADS = 2, 16, 32, 8       # batch, n_nodes, hid_dim, attention heads
HDIM = HID // HEADS                   # per-head dim (concat=True -> HEADS*HDIM == HID)
CIN, COUT = 6, 2                      # coords_dim
CIN_PAD = 8                           # per-batch input channels padded to 8 for the MXU
LANE = B * HID                        # 64: batch folded into the lane dim
NUM_CONV_LAYERS = 4                   # GATv2Model num_layers
LN_EPS = 1e-5
NEG_SLOPE = 0.2                       # GATv2Conv leaky_relu slope


# ----------------------------- fused Pallas kernel -----------------------------

def fused_encoder_kernel(
    x_ref, hx_ref, e_ref, ln_avg_ref,
    in_w1, in_b1, in_g1, in_be1, in_w2, in_b2, in_g2, in_be2,
    w_l_ref, b_l_ref, w_r_ref, b_r_ref, w_edge_ref, amask_ref, cbias_ref,
    w_proj_ref, b_proj_ref, ln_g_ref, ln_b_ref,
    out_w, out_b,
    r_wh, r_wx, r_b, u_wh, u_wx, u_b, c_wh, c_wx, c_b,
    out_ref,
):
    ln_avg = ln_avg_ref[...]                          # (LANE, LANE) block-diag 1/HID matrix

    def layer_norm(y, gamma, beta):
        # One-pass LN over each 32-lane (per-batch) block. Segment means are broadcast back
        # to the block's lanes by a single small MXU matmul instead of XLU reductions.
        mean = jnp.dot(y, ln_avg, preferred_element_type=jnp.float32)
        ex2 = jnp.dot(y * y, ln_avg, preferred_element_type=jnp.float32)
        var = ex2 - mean * mean
        return (y - mean) * jax.lax.rsqrt(var + LN_EPS) * gamma + beta

    hx = hx_ref[...]                                  # (N, LANE)

    # ---- input MLP: Linear -> LayerNorm -> ReLU -> Linear -> LayerNorm ----
    h = jnp.dot(x_ref[...], in_w1[...], preferred_element_type=jnp.float32) + in_b1[...]
    h = layer_norm(h, in_g1[...], in_be1[...])
    h = jnp.maximum(h, 0.0)
    h = jnp.dot(h, in_w2[...], preferred_element_type=jnp.float32) + in_b2[...]
    h = layer_norm(h, in_g2[...], in_be2[...])        # (N, LANE)

    e_flat = e_ref[...]                               # (N*N, HID), row index = tgt*N + src

    # ---- GATv2 conv blocks (statically unrolled, all weights stay in VMEM) ----
    for l in range(NUM_CONV_LAYERS):
        xl = jnp.dot(h, w_l_ref[l], preferred_element_type=jnp.float32) + b_l_ref[l]   # lin_l (src)
        xr = jnp.dot(h, w_r_ref[l], preferred_element_type=jnp.float32) + b_r_ref[l]   # lin_r (tgt)
        # lin_edge, value-duplicated across both 32-lane batch halves -> (N*N, LANE)
        e_proj = jnp.dot(e_flat, w_edge_ref[l], preferred_element_type=jnp.float32)

        z = xr[:, None, :] + xl[None, :, :] + e_proj.reshape(N, N, LANE)   # (tgt, src, LANE)
        z = jnp.where(z > 0.0, z, NEG_SLOPE * z)       # leaky_relu(0.2)
        # per-head attention score broadcast over that head's channels (block-diag 'att')
        s = jnp.dot(z.reshape(N * N, LANE), amask_ref[l],
                    preferred_element_type=jnp.float32).reshape(N, N, LANE)
        # softmax over source nodes (axis 1), per target node / head / batch
        m = jnp.max(s, axis=1, keepdims=True)
        p = jnp.exp(s - m)
        denom = jnp.sum(p, axis=1, keepdims=True)
        alpha = p * pl.reciprocal(denom, approx=True)
        # aggregate: out[t] = sum_s alpha[t,s] * x_l[s]  (+ conv bias)
        attn = jnp.sum(alpha * xl[None, :, :], axis=1) + cbias_ref[l]      # (N, LANE)

        # projection Linear -> LayerNorm -> ReLU -> residual
        y = jnp.dot(attn, w_proj_ref[l], preferred_element_type=jnp.float32) + b_proj_ref[l]
        y = layer_norm(y, ln_g_ref[l], ln_b_ref[l])
        y = jnp.maximum(y, 0.0)
        h = y + h

    # ---- output Linear (zero-padded to 32 cols per batch block) + GRU-style update ----
    out = jnp.dot(h, out_w[...], preferred_element_type=jnp.float32) + out_b[...]      # (N, LANE)
    r = jax.nn.sigmoid(jnp.dot(out, r_wh[...], preferred_element_type=jnp.float32)
                       + jnp.dot(hx, r_wx[...], preferred_element_type=jnp.float32) + r_b[...])
    u = jax.nn.sigmoid(jnp.dot(out, u_wh[...], preferred_element_type=jnp.float32)
                       + jnp.dot(hx, u_wx[...], preferred_element_type=jnp.float32) + u_b[...])
    # NOTE: reset gate applied to hx BEFORE the candidate matmul -- this matches the
    # reference's custom gate candidate_state(cat([h, r*hx])), not torch.nn.GRU.
    c = jnp.tanh(jnp.dot(out, c_wh[...], preferred_element_type=jnp.float32)
                 + jnp.dot(r * hx, c_wx[...], preferred_element_type=jnp.float32) + c_b[...])
    hnew = u * hx + (1.0 - u) * c

    # single lane-dense (N, 128) output slab: [ gat output (padded) | new hidden state ]
    out_ref[...] = jnp.concatenate([out, hnew], axis=-1)


# ----------------------------- wrapper -----------------------------

def build_edge_features(emb, cat_st):
    # cat_st[i, j] = edge category of (source=i, target=j); dense graph.
    e_st = emb[cat_st]                                       # (src, tgt, HID)
    e_ts = jnp.transpose(e_st, (1, 0, 2))                    # (tgt, src, HID)
    eye = jnp.eye(N, dtype=jnp.float32)[:, :, None]
    # PyG GATv2Conv(add_self_loops=True, fill_value='mean'): remove self-loop attrs, then the
    # self-loop attr = mean of the off-diagonal attrs pointing at the same target node.
    loop_mean = jnp.sum(e_ts * (1.0 - eye), axis=1) / (N - 1)
    return e_ts * (1.0 - eye) + eye * loop_mean[:, None, :]


def gatv2_encoder_forward(pp, x, hidden_state):
    # fold the batch into the lane dim (wrapper-side layout plumbing, plain XLA)
    x_pad = jnp.pad(x, ((0, 0), (0, 0), (0, CIN_PAD - CIN)))
    x_lane = jnp.transpose(x_pad, (1, 0, 2)).reshape(N, B * CIN_PAD)         # (N, 16)
    hx_lane = jnp.transpose(hidden_state[0], (1, 0, 2)).reshape(N, LANE)     # (N, 64)
    # edge-category embedding lookup + self-loop 'mean' fill
    e_flat = build_edge_features(pp['edge_emb'], pp['cat_st']).reshape(N * N, HID)

    args = (
        x_lane, hx_lane, e_flat, pp['ln_avg'],
        pp['in_w1'], pp['in_b1'], pp['in_g1'], pp['in_be1'],
        pp['in_w2'], pp['in_b2'], pp['in_g2'], pp['in_be2'],
        pp['w_l'], pp['b_l'], pp['w_r'], pp['b_r'],
        pp['w_edge'], pp['amask'], pp['cbias'],
        pp['w_proj'], pp['b_proj'], pp['ln_g'], pp['ln_b'],
        pp['out_w'], pp['out_b'],
        pp['r_wh'], pp['r_wx'], pp['r_b'],
        pp['u_wh'], pp['u_wx'], pp['u_b'],
        pp['c_wh'], pp['c_wx'], pp['c_b'],
    )
    slab = pl.pallas_call(
        fused_encoder_kernel,
        out_shape=jax.ShapeDtypeStruct((N, 4 * HID), jnp.float32),           # (16, 128) lane-dense
        in_specs=[pl.BlockSpec(memory_space=pltpu.MemorySpace.VMEM) for _ in args],
        out_specs=pl.BlockSpec(memory_space=pltpu.MemorySpace.VMEM),
    )(*args)

    # de-interleave the lane-folded output slab
    slab_r = slab.reshape(N, 2, B, HID)
    out = jnp.transpose(slab_r[:, 0, :, :COUT], (1, 0, 2))                   # (B, N, COUT)
    hnew = jnp.transpose(slab_r[:, 1, :, :], (1, 0, 2))                      # (B, N, HID)
    return out, hnew


# ----------------------------- parameters -----------------------------

def init_params(key):
    # orbits partition the nodes (find_categories/index logic, generalized to N nodes)
    norb = 2
    orbits = [list(range(N // 2)), list(range(N // 2, N))]
    pos = np.zeros(N, dtype=np.int32)
    for a, orb in enumerate(orbits):
        for v in orb:
            pos[v] = a
    num_categories = norb + norb * norb
    cat = np.zeros((N, N), dtype=np.int32)
    for i in range(N):
        for j in range(N):
            if i == j:
                cat[i, j] = norb * norb + pos[i]
            else:
                cat[i, j] = pos[i] * norb + pos[j]

    keys = iter(jax.random.split(key, 128))

    def nrm(shape, scale=0.1):
        return jax.random.normal(next(keys), shape, dtype=jnp.float32) * scale

    params = {
        'cat_st': jnp.asarray(cat),
        'edge_emb': nrm((num_categories, HID), 0.5),            # nn.Embedding weight
        'in_w1': nrm((CIN, HID)), 'in_b1': nrm((1, HID)),
        'in_g1': jnp.ones((1, HID), jnp.float32), 'in_be1': jnp.zeros((1, HID), jnp.float32),
        'in_w2': nrm((HID, HID)), 'in_b2': nrm((1, HID)),
        'in_g2': jnp.ones((1, HID), jnp.float32), 'in_be2': jnp.zeros((1, HID), jnp.float32),
        'out_w': nrm((HID, COUT)), 'out_b': nrm((1, COUT)),
        # GRU gates Linear(COUT+HID, HID) split into [h-part | hx-part]
        'r_wh': nrm((COUT, HID)), 'r_wx': nrm((HID, HID)), 'r_b': nrm((1, HID)),
        'u_wh': nrm((COUT, HID)), 'u_wx': nrm((HID, HID)), 'u_b': nrm((1, HID)),
        'c_wh': nrm((COUT, HID)), 'c_wx': nrm((HID, HID)), 'c_b': nrm((1, HID)),
    }
    layers = []
    for _ in range(NUM_CONV_LAYERS):
        layers.append({
            'w_l': nrm((HID, HID)), 'b_l': nrm((1, HID)),       # GATv2Conv lin_l
            'w_r': nrm((HID, HID)), 'b_r': nrm((1, HID)),       # GATv2Conv lin_r
            'w_edge': nrm((HID, HID)),                          # GATv2Conv lin_edge (no bias)
            'att': nrm((HEADS, HDIM)),                          # GATv2Conv att
            'conv_bias': nrm((1, HID)),                         # GATv2Conv bias (concat)
            'w_proj': nrm((HID, HID)), 'b_proj': nrm((1, HID)), # projection Linear
            'ln_g': jnp.ones((1, HID), jnp.float32), 'ln_b': jnp.zeros((1, HID), jnp.float32),
        })
    params['conv_layers'] = layers
    return params


def build_amask(att):
    # M[h1*HDIM+d, h2*HDIM+e] = att[h1, d] if h1 == h2 else 0  ->  z @ M gives the per-head
    # attention score broadcast over that head's HDIM output channels.
    eyeH = jnp.eye(HEADS, dtype=jnp.float32)
    m4 = att[:, :, None, None] * eyeH[:, None, :, None]         # (HEADS, HDIM, HEADS, 1)
    m4 = jnp.broadcast_to(m4, (HEADS, HDIM, HEADS, HDIM))
    return m4.reshape(HID, HID)


def pack_params(p):
    """One-time host-side packing into the batch-in-lanes layout.

    Node-level weights become block-diagonal (kron with eye(B)); batch-invariant row vectors
    (biases, LN affine) are lane-tiled; lin_edge is value-duplicated across the batch halves
    so the single edge matmul produces identical values for both batches.
    """
    eyeB = jnp.eye(B, dtype=jnp.float32)

    def blk(w):   # (a, b) -> block-diag (B*a, B*b)
        return jnp.kron(eyeB, w)

    def til(v):   # (1, d) -> (1, B*d)
        return jnp.tile(v, (1, B))

    def pad_rows(w):   # GRU h-part: (COUT, HID) -> (HID, HID), zero rows beyond COUT
        return jnp.pad(w, ((0, HID - COUT), (0, 0)))

    layers = p['conv_layers']
    in_w1_pad = jnp.pad(p['in_w1'], ((0, CIN_PAD - CIN), (0, 0)))        # (8, HID)
    out_w_pad = jnp.pad(p['out_w'], ((0, 0), (0, HID - COUT)))           # (HID, HID), zero cols
    out_b_pad = jnp.pad(p['out_b'], ((0, 0), (0, HID - COUT)))           # (1, HID)

    return {
        'cat_st': p['cat_st'], 'edge_emb': p['edge_emb'],
        'ln_avg': blk(jnp.full((HID, HID), 1.0 / HID, jnp.float32)),     # segment-mean matrix
        'in_w1': blk(in_w1_pad), 'in_b1': til(p['in_b1']),
        'in_g1': til(p['in_g1']), 'in_be1': til(p['in_be1']),
        'in_w2': blk(p['in_w2']), 'in_b2': til(p['in_b2']),
        'in_g2': til(p['in_g2']), 'in_be2': til(p['in_be2']),
        # stacked GATv2 block weights (leading L axis, static indexing in-kernel)
        'w_l': jnp.stack([blk(lp['w_l']) for lp in layers]),             # (L, 64, 64)
        'b_l': jnp.stack([til(lp['b_l']) for lp in layers]),             # (L, 1, 64)
        'w_r': jnp.stack([blk(lp['w_r']) for lp in layers]),
        'b_r': jnp.stack([til(lp['b_r']) for lp in layers]),
        'w_edge': jnp.stack([jnp.tile(lp['w_edge'], (1, B)) for lp in layers]),   # (L, 32, 64)
        'amask': jnp.stack([blk(build_amask(lp['att'])) for lp in layers]),       # (L, 64, 64)
        'cbias': jnp.stack([til(lp['conv_bias']) for lp in layers]),
        'w_proj': jnp.stack([blk(lp['w_proj']) for lp in layers]),
        'b_proj': jnp.stack([til(lp['b_proj']) for lp in layers]),
        'ln_g': jnp.stack([til(lp['ln_g']) for lp in layers]),
        'ln_b': jnp.stack([til(lp['ln_b']) for lp in layers]),
        # output layer (zero-padded to 32 lanes per batch block) + GRU gates (kept separate
        # to avoid non-128-aligned lane slices)
        'out_w': blk(out_w_pad), 'out_b': til(out_b_pad),
        'r_wh': blk(pad_rows(p['r_wh'])), 'r_wx': blk(p['r_wx']), 'r_b': til(p['r_b']),
        'u_wh': blk(pad_rows(p['u_wh'])), 'u_wx': blk(p['u_wx']), 'u_b': til(p['u_b']),
        'c_wh': blk(pad_rows(p['c_wh'])), 'c_wx': blk(p['c_wx']), 'c_b': til(p['c_b']),
    }


# TODO(synk): training-mode dropout of GATv2Model is a no-op here (eval semantics, p_dropout=None).

if __name__ == "__main__":
    key = jax.random.PRNGKey(0)
    pk, xk, hk = jax.random.split(key, 3)
    params = init_params(pk)
    packed = pack_params(params)
    x = jax.random.normal(xk, (B, N, CIN), dtype=jnp.float32)
    hidden_state = jax.random.normal(hk, (1, B, N, HID), dtype=jnp.float32)

    out, hnew = jax.jit(gatv2_encoder_forward)(packed, x, hidden_state)
    jax.block_until_ready((out, hnew))
    assert out.shape == (B, N, COUT) and hnew.shape == (B, N, HID)
    assert bool(jnp.all(jnp.isfinite(out))) and bool(jnp.all(jnp.isfinite(hnew)))
    print("KERNEL_OK")
</pallas_src>

<mosaic_0001>
module attributes {stable_mosaic.version = 11 : i64} {
  func.func @fused_encoder_kernel(%arg0: memref<16x16xf32, #tpu.memory_space<vmem>>, %arg1: memref<16x64xf32, #tpu.memory_space<vmem>>, %arg2: memref<256x32xf32, #tpu.memory_space<vmem>>, %arg3: memref<64x64xf32, #tpu.memory_space<vmem>>, %arg4: memref<16x64xf32, #tpu.memory_space<vmem>>, %arg5: memref<1x64xf32, #tpu.memory_space<vmem>>, %arg6: memref<1x64xf32, #tpu.memory_space<vmem>>, %arg7: memref<1x64xf32, #tpu.memory_space<vmem>>, %arg8: memref<64x64xf32, #tpu.memory_space<vmem>>, %arg9: memref<1x64xf32, #tpu.memory_space<vmem>>, %arg10: memref<1x64xf32, #tpu.memory_space<vmem>>, %arg11: memref<1x64xf32, #tpu.memory_space<vmem>>, %arg12: memref<4x64x64xf32, #tpu.memory_space<vmem>>, %arg13: memref<4x1x64xf32, #tpu.memory_space<vmem>>, %arg14: memref<4x64x64xf32, #tpu.memory_space<vmem>>, %arg15: memref<4x1x64xf32, #tpu.memory_space<vmem>>, %arg16: memref<4x32x64xf32, #tpu.memory_space<vmem>>, %arg17: memref<4x64x64xf32, #tpu.memory_space<vmem>>, %arg18: memref<4x1x64xf32, #tpu.memory_space<vmem>>, %arg19: memref<4x64x64xf32, #tpu.memory_space<vmem>>, %arg20: memref<4x1x64xf32, #tpu.memory_space<vmem>>, %arg21: memref<4x1x64xf32, #tpu.memory_space<vmem>>, %arg22: memref<4x1x64xf32, #tpu.memory_space<vmem>>, %arg23: memref<64x64xf32, #tpu.memory_space<vmem>>, %arg24: memref<1x64xf32, #tpu.memory_space<vmem>>, %arg25: memref<64x64xf32, #tpu.memory_space<vmem>>, %arg26: memref<64x64xf32, #tpu.memory_space<vmem>>, %arg27: memref<1x64xf32, #tpu.memory_space<vmem>>, %arg28: memref<64x64xf32, #tpu.memory_space<vmem>>, %arg29: memref<64x64xf32, #tpu.memory_space<vmem>>, %arg30: memref<1x64xf32, #tpu.memory_space<vmem>>, %arg31: memref<64x64xf32, #tpu.memory_space<vmem>>, %arg32: memref<64x64xf32, #tpu.memory_space<vmem>>, %arg33: memref<1x64xf32, #tpu.memory_space<vmem>>, %arg34: memref<16x128xf32, #tpu.memory_space<vmem>>) attributes {dimension_semantics = [], scalar_prefetch = 0 : i64, scratch_operands = 0 : i64, tpu.core_type = #tpu.core_type<tc>} {
    %c0 = arith.constant 0 : index
    %c0_0 = arith.constant 0 : index
    %0 = vector.load %arg3[%c0, %c0_0] : memref<64x64xf32, #tpu.memory_space<vmem>>, vector<64x64xf32>
    %c0_1 = arith.constant 0 : index
    %c0_2 = arith.constant 0 : index
    %1 = vector.load %arg1[%c0_1, %c0_2] : memref<16x64xf32, #tpu.memory_space<vmem>>, vector<16x64xf32>
    %c0_3 = arith.constant 0 : index
    %c0_4 = arith.constant 0 : index
    %2 = vector.load %arg0[%c0_3, %c0_4] : memref<16x16xf32, #tpu.memory_space<vmem>>, vector<16x16xf32>
    %c0_5 = arith.constant 0 : index
    %c0_6 = arith.constant 0 : index
    %3 = vector.load %arg4[%c0_5, %c0_6] : memref<16x64xf32, #tpu.memory_space<vmem>>, vector<16x64xf32>
    %cst = arith.constant dense<0.000000e+00> : vector<16x64xf32>
    %4 = tpu.matmul %2, %3, %cst {dimension_numbers = #tpu.dot_dimension_numbers<[1], [0], [0], [1], [0, 0, 1, 1], [], []>} : vector<16x16xf32>, vector<16x64xf32>, vector<16x64xf32> -> vector<16x64xf32>
    %c0_7 = arith.constant 0 : index
    %c0_8 = arith.constant 0 : index
    %5 = vector.load %arg5[%c0_7, %c0_8] : memref<1x64xf32, #tpu.memory_space<vmem>>, vector<1x64xf32>
    %6 = vector.broadcast %5 : vector<1x64xf32> to vector<16x64xf32>
    %7 = arith.addf %4, %6 : vector<16x64xf32>
    %c0_9 = arith.constant 0 : index
    %c0_10 = arith.constant 0 : index
    %8 = vector.load %arg6[%c0_9, %c0_10] : memref<1x64xf32, #tpu.memory_space<vmem>>, vector<1x64xf32>
    %c0_11 = arith.constant 0 : index
    %c0_12 = arith.constant 0 : index
    %9 = vector.load %arg7[%c0_11, %c0_12] : memref<1x64xf32, #tpu.memory_space<vmem>>, vector<1x64xf32>
    %cst_13 = arith.constant dense<0.000000e+00> : vector<16x64xf32>
    %10 = tpu.matmul %7, %0, %cst_13 {dimension_numbers = #tpu.dot_dimension_numbers<[1], [0], [0], [1], [0, 0, 1, 1], [], []>} : vector<16x64xf32>, vector<64x64xf32>, vector<16x64xf32> -> vector<16x64xf32>
    %11 = arith.mulf %7, %7 : vector<16x64xf32>
    %cst_14 = arith.constant dense<0.000000e+00> : vector<16x64xf32>
    %12 = tpu.matmul %11, %0, %cst_14 {dimension_numbers = #tpu.dot_dimension_numbers<[1], [0], [0], [1], [0, 0, 1, 1], [], []>} : vector<16x64xf32>, vector<64x64xf32>, vector<16x64xf32> -> vector<16x64xf32>
    %13 = arith.mulf %10, %10 : vector<16x64xf32>
    %14 = arith.subf %12, %13 : vector<16x64xf32>
    %15 = arith.subf %7, %10 : vector<16x64xf32>
    %cst_15 = arith.constant 9.99999974E-6 : f32
    %16 = vector.broadcast %cst_15 : f32 to vector<16x64xf32>
    %17 = arith.addf %14, %16 : vector<16x64xf32>
    %18 = math.rsqrt %17 : vector<16x64xf32>
    %19 = arith.mulf %15, %18 : vector<16x64xf32>
    %20 = vector.broadcast %8 : vector<1x64xf32> to vector<16x64xf32>
    %21 = arith.mulf %19, %20 : vector<16x64xf32>
    %22 = vector.broadcast %9 : vector<1x64xf32> to vector<16x64xf32>
    %23 = arith.addf %21, %22 : vector<16x64xf32>
    %cst_16 = arith.constant 0.000000e+00 : f32
    %24 = vector.broadcast %cst_16 : f32 to vector<16x64xf32>
    %25 = arith.maximumf %23, %24 : vector<16x64xf32>
    %c0_17 = arith.constant 0 : index
    %c0_18 = arith.constant 0 : index
    %26 = vector.load %arg8[%c0_17, %c0_18] : memref<64x64xf32, #tpu.memory_space<vmem>>, vector<64x64xf32>
    %cst_19 = arith.constant dense<0.000000e+00> : vector<16x64xf32>
    %27 = tpu.matmul %25, %26, %cst_19 {dimension_numbers = #tpu.dot_dimension_numbers<[1], [0], [0], [1], [0, 0, 1, 1], [], []>} : vector<16x64xf32>, vector<64x64xf32>, vector<16x64xf32> -> vector<16x64xf32>
    %c0_20 = arith.constant 0 : index
    %c0_21 = arith.constant 0 : index
    %28 = vector.load %arg9[%c0_20, %c0_21] : memref<1x64xf32, #tpu.memory_space<vmem>>, vector<1x64xf32>
    %29 = vector.broadcast %28 : vector<1x64xf32> to vector<16x64xf32>
    %30 = arith.addf %27, %29 : vector<16x64xf32>
    %c0_22 = arith.constant 0 : index
    %c0_23 = arith.constant 0 : index
    %31 = vector.load %arg10[%c0_22, %c0_23] : memref<1x64xf32, #tpu.memory_space<vmem>>, vector<1x64xf32>
    %c0_24 = arith.constant 0 : index
    %c0_25 = arith.constant 0 : index
    %32 = vector.load %arg11[%c0_24, %c0_25] : memref<1x64xf32, #tpu.memory_space<vmem>>, vector<1x64xf32>
    %cst_26 = arith.constant dense<0.000000e+00> : vector<16x64xf32>
    %33 = tpu.matmul %30, %0, %cst_26 {dimension_numbers = #tpu.dot_dimension_numbers<[1], [0], [0], [1], [0, 0, 1, 1], [], []>} : vector<16x64xf32>, vector<64x64xf32>, vector<16x64xf32> -> vector<16x64xf32>
    %34 = arith.mulf %30, %30 : vector<16x64xf32>
    %cst_27 = arith.constant dense<0.000000e+00> : vector<16x64xf32>
    %35 = tpu.matmul %34, %0, %cst_27 {dimension_numbers = #tpu.dot_dimension_numbers<[1], [0], [0], [1], [0, 0, 1, 1], [], []>} : vector<16x64xf32>, vector<64x64xf32>, vector<16x64xf32> -> vector<16x64xf32>
    %36 = arith.mulf %33, %33 : vector<16x64xf32>
    %37 = arith.subf %35, %36 : vector<16x64xf32>
    %38 = arith.subf %30, %33 : vector<16x64xf32>
    %cst_28 = arith.constant 9.99999974E-6 : f32
    %39 = vector.broadcast %cst_28 : f32 to vector<16x64xf32>
    %40 = arith.addf %37, %39 : vector<16x64xf32>
    %41 = math.rsqrt %40 : vector<16x64xf32>
    %42 = arith.mulf %38, %41 : vector<16x64xf32>
    %43 = vector.broadcast %31 : vector<1x64xf32> to vector<16x64xf32>
    %44 = arith.mulf %42, %43 : vector<16x64xf32>
    %45 = vector.broadcast %32 : vector<1x64xf32> to vector<16x64xf32>
    %46 = arith.addf %44, %45 : vector<16x64xf32>
    %c0_29 = arith.constant 0 : index
    %c0_30 = arith.constant 0 : index
    %47 = vector.load %arg2[%c0_29, %c0_30] : memref<256x32xf32, #tpu.memory_space<vmem>>, vector<256x32xf32>
    %c0_31 = arith.constant 0 : index
    %c0_32 = arith.constant 0 : index
    %c0_33 = arith.constant 0 : index
    %48 = vector.load %arg12[%c0_31, %c0_32, %c0_33] : memref<4x64x64xf32, #tpu.memory_space<vmem>>, vector<1x64x64xf32>
    %49 = vector.shape_cast %48 : vector<1x64x64xf32> to vector<64x64xf32>
    %cst_34 = arith.constant dense<0.000000e+00> : vector<16x64xf32>
    %50 = tpu.matmul %46, %49, %cst_34 {dimension_numbers = #tpu.dot_dimension_numbers<[1], [0], [0], [1], [0, 0, 1, 1], [], []>} : vector<16x64xf32>, vector<64x64xf32>, vector<16x64xf32> -> vector<16x64xf32>
    %c0_35 = arith.constant 0 : index
    %c0_36 = arith.constant 0 : index
    %c0_37 = arith.constant 0 : index
    %51 = vector.load %arg13[%c0_35, %c0_36, %c0_37] : memref<4x1x64xf32, #tpu.memory_space<vmem>>, vector<1x1x64xf32>
    %52 = vector.shape_cast %51 : vector<1x1x64xf32> to vector<1x64xf32>
    %53 = vector.broadcast %52 : vector<1x64xf32> to vector<16x64xf32>
    %54 = arith.addf %50, %53 : vector<16x64xf32>
    %c0_38 = arith.constant 0 : index
    %c0_39 = arith.constant 0 : index
    %c0_40 = arith.constant 0 : index
    %55 = vector.load %arg14[%c0_38, %c0_39, %c0_40] : memref<4x64x64xf32, #tpu.memory_space<vmem>>, vector<1x64x64xf32>
    %56 = vector.shape_cast %55 : vector<1x64x64xf32> to vector<64x64xf32>
    %cst_41 = arith.constant dense<0.000000e+00> : vector<16x64xf32>
    %57 = tpu.matmul %46, %56, %cst_41 {dimension_numbers = #tpu.dot_dimension_numbers<[1], [0], [0], [1], [0, 0, 1, 1], [], []>} : vector<16x64xf32>, vector<64x64xf32>, vector<16x64xf32> -> vector<16x64xf32>
    %c0_42 = arith.constant 0 : index
    %c0_43 = arith.constant 0 : index
    %c0_44 = arith.constant 0 : index
    %58 = vector.load %arg15[%c0_42, %c0_43, %c0_44] : memref<4x1x64xf32, #tpu.memory_space<vmem>>, vector<1x1x64xf32>
    %59 = vector.shape_cast %58 : vector<1x1x64xf32> to vector<1x64xf32>
    %60 = vector.broadcast %59 : vector<1x64xf32> to vector<16x64xf32>
    %61 = arith.addf %57, %60 : vector<16x64xf32>
    %c0_45 = arith.constant 0 : index
    %c0_46 = arith.constant 0 : index
    %c0_47 = arith.constant 0 : index
    %62 = vector.load %arg16[%c0_45, %c0_46, %c0_47] : memref<4x32x64xf32, #tpu.memory_space<vmem>>, vector<1x32x64xf32>
    %63 = vector.shape_cast %62 : vector<1x32x64xf32> to vector<32x64xf32>
    %cst_48 = arith.constant dense<0.000000e+00> : vector<256x64xf32>
    %64 = tpu.matmul %47, %63, %cst_48 {dimension_numbers = #tpu.dot_dimension_numbers<[1], [0], [0], [1], [0, 0, 1, 1], [], []>} : vector<256x32xf32>, vector<32x64xf32>, vector<256x64xf32> -> vector<256x64xf32>
    %65 = vector.shape_cast %61 : vector<16x64xf32> to vector<16x1x64xf32>
    %66 = vector.shape_cast %54 : vector<16x64xf32> to vector<1x16x64xf32>
    %67 = vector.broadcast %65 : vector<16x1x64xf32> to vector<16x16x64xf32>
    %68 = vector.broadcast %66 : vector<1x16x64xf32> to vector<16x16x64xf32>
    %69 = arith.addf %67, %68 : vector<16x16x64xf32>
    %70 = vector.shape_cast %64 : vector<256x64xf32> to vector<16x16x64xf32>
    %71 = arith.addf %69, %70 : vector<16x16x64xf32>
    %cst_49 = arith.constant 0.000000e+00 : f32
    %72 = vector.broadcast %cst_49 : f32 to vector<16x16x64xf32>
    %73 = arith.cmpf ogt, %71, %72 : vector<16x16x64xf32>
    %cst_50 = arith.constant 2.000000e-01 : f32
    %74 = vector.broadcast %cst_50 : f32 to vector<16x16x64xf32>
    %75 = arith.mulf %74, %71 : vector<16x16x64xf32>
    %76 = arith.select %73, %71, %75 : vector<16x16x64xi1>, vector<16x16x64xf32>
    %77 = vector.shape_cast %76 : vector<16x16x64xf32> to vector<256x64xf32>
    %c0_51 = arith.constant 0 : index
    %c0_52 = arith.constant 0 : index
    %c0_53 = arith.constant 0 : index
    %78 = vector.load %arg17[%c0_51, %c0_52, %c0_53] : memref<4x64x64xf32, #tpu.memory_space<vmem>>, vector<1x64x64xf32>
    %79 = vector.shape_cast %78 : vector<1x64x64xf32> to vector<64x64xf32>
    %cst_54 = arith.constant dense<0.000000e+00> : vector<256x64xf32>
    %80 = tpu.matmul %77, %79, %cst_54 {dimension_numbers = #tpu.dot_dimension_numbers<[1], [0], [0], [1], [0, 0, 1, 1], [], []>} : vector<256x64xf32>, vector<64x64xf32>, vector<256x64xf32> -> vector<256x64xf32>
    %81 = vector.shape_cast %80 : vector<256x64xf32> to vector<16x16x64xf32>
    %cst_55 = arith.constant dense<0xFF800000> : vector<16x64xf32>
    %82 = vector.multi_reduction <maximumf>, %81, %cst_55 [1] : vector<16x16x64xf32> to vector<16x64xf32>
    %83 = vector.shape_cast %82 : vector<16x64xf32> to vector<16x1x64xf32>
    %84 = vector.broadcast %83 : vector<16x1x64xf32> to vector<16x16x64xf32>
    %85 = arith.subf %81, %84 : vector<16x16x64xf32>
    %86 = math.exp %85 : vector<16x16x64xf32>
    %cst_56 = arith.constant dense<0.000000e+00> : vector<16x64xf32>
    %87 = vector.multi_reduction <add>, %86, %cst_56 [1] : vector<16x16x64xf32> to vector<16x64xf32>
    %88 = vector.shape_cast %87 : vector<16x64xf32> to vector<16x1x64xf32>
    %89 = tpu.reciprocal %88 {approx = true} : vector<16x1x64xf32> -> vector<16x1x64xf32>
    %90 = vector.broadcast %89 : vector<16x1x64xf32> to vector<16x16x64xf32>
    %91 = arith.mulf %86, %90 : vector<16x16x64xf32>
    %92 = vector.shape_cast %54 : vector<16x64xf32> to vector<1x16x64xf32>
    %93 = vector.broadcast %92 : vector<1x16x64xf32> to vector<16x16x64xf32>
    %94 = arith.mulf %91, %93 : vector<16x16x64xf32>
    %cst_57 = arith.constant dense<0.000000e+00> : vector<16x64xf32>
    %95 = vector.multi_reduction <add>, %94, %cst_57 [1] : vector<16x16x64xf32> to vector<16x64xf32>
    %c0_58 = arith.constant 0 : index
    %c0_59 = arith.constant 0 : index
    %c0_60 = arith.constant 0 : index
    %96 = vector.load %arg18[%c0_58, %c0_59, %c0_60] : memref<4x1x64xf32, #tpu.memory_space<vmem>>, vector<1x1x64xf32>
    %97 = vector.shape_cast %96 : vector<1x1x64xf32> to vector<1x64xf32>
    %98 = vector.broadcast %97 : vector<1x64xf32> to vector<16x64xf32>
    %99 = arith.addf %95, %98 : vector<16x64xf32>
    %c0_61 = arith.constant 0 : index
    %c0_62 = arith.constant 0 : index
    %c0_63 = arith.constant 0 : index
    %100 = vector.load %arg19[%c0_61, %c0_62, %c0_63] : memref<4x64x64xf32, #tpu.memory_space<vmem>>, vector<1x64x64xf32>
    %101 = vector.shape_cast %100 : vector<1x64x64xf32> to vector<64x64xf32>
    %cst_64 = arith.constant dense<0.000000e+00> : vector<16x64xf32>
    %102 = tpu.matmul %99, %101, %cst_64 {dimension_numbers = #tpu.dot_dimension_numbers<[1], [0], [0], [1], [0, 0, 1, 1], [], []>} : vector<16x64xf32>, vector<64x64xf32>, vector<16x64xf32> -> vector<16x64xf32>
    %c0_65 = arith.constant 0 : index
    %c0_66 = arith.constant 0 : index
    %c0_67 = arith.constant 0 : index
    %103 = vector.load %arg20[%c0_65, %c0_66, %c0_67] : memref<4x1x64xf32, #tpu.memory_space<vmem>>, vector<1x1x64xf32>
    %104 = vector.shape_cast %103 : vector<1x1x64xf32> to vector<1x64xf32>
    %105 = vector.broadcast %104 : vector<1x64xf32> to vector<16x64xf32>
    %106 = arith.addf %102, %105 : vector<16x64xf32>
    %c0_68 = arith.constant 0 : index
    %c0_69 = arith.constant 0 : index
    %c0_70 = arith.constant 0 : index
    %107 = vector.load %arg21[%c0_68, %c0_69, %c0_70] : memref<4x1x64xf32, #tpu.memory_space<vmem>>, vector<1x1x64xf32>
    %108 = vector.shape_cast %107 : vector<1x1x64xf32> to vector<1x64xf32>
    %c0_71 = arith.constant 0 : index
    %c0_72 = arith.constant 0 : index
    %c0_73 = arith.constant 0 : index
    %109 = vector.load %arg22[%c0_71, %c0_72, %c0_73] : memref<4x1x64xf32, #tpu.memory_space<vmem>>, vector<1x1x64xf32>
    %110 = vector.shape_cast %109 : vector<1x1x64xf32> to vector<1x64xf32>
    %cst_74 = arith.constant dense<0.000000e+00> : vector<16x64xf32>
    %111 = tpu.matmul %106, %0, %cst_74 {dimension_numbers = #tpu.dot_dimension_numbers<[1], [0], [0], [1], [0, 0, 1, 1], [], []>} : vector<16x64xf32>, vector<64x64xf32>, vector<16x64xf32> -> vector<16x64xf32>
    %112 = arith.mulf %106, %106 : vector<16x64xf32>
    %cst_75 = arith.constant dense<0.000000e+00> : vector<16x64xf32>
    %113 = tpu.matmul %112, %0, %cst_75 {dimension_numbers = #tpu.dot_dimension_numbers<[1], [0], [0], [1], [0, 0, 1, 1], [], []>} : vector<16x64xf32>, vector<64x64xf32>, vector<16x64xf32> -> vector<16x64xf32>
    %114 = arith.mulf %111, %111 : vector<16x64xf32>
    %115 = arith.subf %113, %114 : vector<16x64xf32>
    %116 = arith.subf %106, %111 : vector<16x64xf32>
    %cst_76 = arith.constant 9.99999974E-6 : f32
    %117 = vector.broadcast %cst_76 : f32 to vector<16x64xf32>
    %118 = arith.addf %115, %117 : vector<16x64xf32>
    %119 = math.rsqrt %118 : vector<16x64xf32>
    %120 = arith.mulf %116, %119 : vector<16x64xf32>
    %121 = vector.broadcast %108 : vector<1x64xf32> to vector<16x64xf32>
    %122 = arith.mulf %120, %121 : vector<16x64xf32>
    %123 = vector.broadcast %110 : vector<1x64xf32> to vector<16x64xf32>
    %124 = arith.addf %122, %123 : vector<16x64xf32>
    %cst_77 = arith.constant 0.000000e+00 : f32
    %125 = vector.broadcast %cst_77 : f32 to vector<16x64xf32>
    %126 = arith.maximumf %124, %125 : vector<16x64xf32>
    %127 = arith.addf %126, %46 : vector<16x64xf32>
    %c1 = arith.constant 1 : index
    %c0_78 = arith.constant 0 : index
    %c0_79 = arith.constant 0 : index
    %128 = vector.load %arg12[%c1, %c0_78, %c0_79] : memref<4x64x64xf32, #tpu.memory_space<vmem>>, vector<1x64x64xf32>
    %129 = vector.shape_cast %128 : vector<1x64x64xf32> to vector<64x64xf32>
    %cst_80 = arith.constant dense<0.000000e+00> : vector<16x64xf32>
    %130 = tpu.matmul %127, %129, %cst_80 {dimension_numbers = #tpu.dot_dimension_numbers<[1], [0], [0], [1], [0, 0, 1, 1], [], []>} : vector<16x64xf32>, vector<64x64xf32>, vector<16x64xf32> -> vector<16x64xf32>
    %c1_81 = arith.constant 1 : index
    %c0_82 = arith.constant 0 : index
    %c0_83 = arith.constant 0 : index
    %131 = vector.load %arg13[%c1_81, %c0_82, %c0_83] : memref<4x1x64xf32, #tpu.memory_space<vmem>>, vector<1x1x64xf32>
    %132 = vector.shape_cast %131 : vector<1x1x64xf32> to vector<1x64xf32>
    %133 = vector.broadcast %132 : vector<1x64xf32> to vector<16x64xf32>
    %134 = arith.addf %130, %133 : vector<16x64xf32>
    %c1_84 = arith.constant 1 : index
    %c0_85 = arith.constant 0 : index
    %c0_86 = arith.constant 0 : index
    %135 = vector.load %arg14[%c1_84, %c0_85, %c0_86] : memref<4x64x64xf32, #tpu.memory_space<vmem>>, vector<1x64x64xf32>
    %136 = vector.shape_cast %135 : vector<1x64x64xf32> to vector<64x64xf32>
    %cst_87 = arith.constant dense<0.000000e+00> : vector<16x64xf32>
    %137 = tpu.matmul %127, %136, %cst_87 {dimension_numbers = #tpu.dot_dimension_numbers<[1], [0], [0], [1], [0, 0, 1, 1], [], []>} : vector<16x64xf32>, vector<64x64xf32>, vector<16x64xf32> -> vector<16x64xf32>
    %c1_88 = arith.constant 1 : index
    %c0_89 = arith.constant 0 : index
    %c0_90 = arith.constant 0 : index
    %138 = vector.load %arg15[%c1_88, %c0_89, %c0_90] : memref<4x1x64xf32, #tpu.memory_space<vmem>>, vector<1x1x64xf32>
    %139 = vector.shape_cast %138 : vector<1x1x64xf32> to vector<1x64xf32>
    %140 = vector.broadcast %139 : vector<1x64xf32> to vector<16x64xf32>
    %141 = arith.addf %137, %140 : vector<16x64xf32>
    %c1_91 = arith.constant 1 : index
    %c0_92 = arith.constant 0 : index
    %c0_93 = arith.constant 0 : index
    %142 = vector.load %arg16[%c1_91, %c0_92, %c0_93] : memref<4x32x64xf32, #tpu.memory_space<vmem>>, vector<1x32x64xf32>
    %143 = vector.shape_cast %142 : vector<1x32x64xf32> to vector<32x64xf32>
    %cst_94 = arith.constant dense<0.000000e+00> : vector<256x64xf32>
    %144 = tpu.matmul %47, %143, %cst_94 {dimension_numbers = #tpu.dot_dimension_numbers<[1], [0], [0], [1], [0, 0, 1, 1], [], []>} : vector<256x32xf32>, vector<32x64xf32>, vector<256x64xf32> -> vector<256x64xf32>
    %145 = vector.shape_cast %141 : vector<16x64xf32> to vector<16x1x64xf32>
    %146 = vector.shape_cast %134 : vector<16x64xf32> to vector<1x16x64xf32>
    %147 = vector.broadcast %145 : vector<16x1x64xf32> to vector<16x16x64xf32>
    %148 = vector.broadcast %146 : vector<1x16x64xf32> to vector<16x16x64xf32>
    %149 = arith.addf %147, %148 : vector<16x16x64xf32>
    %150 = vector.shape_cast %144 : vector<256x64xf32> to vector<16x16x64xf32>
    %151 = arith.addf %149, %150 : vector<16x16x64xf32>
    %cst_95 = arith.constant 0.000000e+00 : f32
    %152 = vector.broadcast %cst_95 : f32 to vector<16x16x64xf32>
    %153 = arith.cmpf ogt, %151, %152 : vector<16x16x64xf32>
    %cst_96 = arith.constant 2.000000e-01 : f32
    %154 = vector.broadcast %cst_96 : f32 to vector<16x16x64xf32>
    %155 = arith.mulf %154, %151 : vector<16x16x64xf32>
    %156 = arith.select %153, %151, %155 : vector<16x16x64xi1>, vector<16x16x64xf32>
    %157 = vector.shape_cast %156 : vector<16x16x64xf32> to vector<256x64xf32>
    %c1_97 = arith.constant 1 : index
    %c0_98 = arith.constant 0 : index
    %c0_99 = arith.constant 0 : index
    %158 = vector.load %arg17[%c1_97, %c0_98, %c0_99] : memref<4x64x64xf32, #tpu.memory_space<vmem>>, vector<1x64x64xf32>
    %159 = vector.shape_cast %158 : vector<1x64x64xf32> to vector<64x64xf32>
    %cst_100 = arith.constant dense<0.000000e+00> : vector<256x64xf32>
    %160 = tpu.matmul %157, %159, %cst_100 {dimension_numbers = #tpu.dot_dimension_numbers<[1], [0], [0], [1], [0, 0, 1, 1], [], []>} : vector<256x64xf32>, vector<64x64xf32>, vector<256x64xf32> -> vector<256x64xf32>
    %161 = vector.shape_cast %160 : vector<256x64xf32> to vector<16x16x64xf32>
    %cst_101 = arith.constant dense<0xFF800000> : vector<16x64xf32>
    %162 = vector.multi_reduction <maximumf>, %161, %cst_101 [1] : vector<16x16x64xf32> to vector<16x64xf32>
    %163 = vector.shape_cast %162 : vector<16x64xf32> to vector<16x1x64xf32>
    %164 = vector.broadcast %163 : vector<16x1x64xf32> to vector<16x16x64xf32>
    %165 = arith.subf %161, %164 : vector<16x16x64xf32>
    %166 = math.exp %165 : vector<16x16x64xf32>
    %cst_102 = arith.constant dense<0.000000e+00> : vector<16x64xf32>
    %167 = vector.multi_reduction <add>, %166, %cst_102 [1] : vector<16x16x64xf32> to vector<16x64xf32>
    %168 = vector.shape_cast %167 : vector<16x64xf32> to vector<16x1x64xf32>
    %169 = tpu.reciprocal %168 {approx = true} : vector<16x1x64xf32> -> vector<16x1x64xf32>
    %170 = vector.broadcast %169 : vector<16x1x64xf32> to vector<16x16x64xf32>
    %171 = arith.mulf %166, %170 : vector<16x16x64xf32>
    %172 = vector.shape_cast %134 : vector<16x64xf32> to vector<1x16x64xf32>
    %173 = vector.broadcast %172 : vector<1x16x64xf32> to vector<16x16x64xf32>
    %174 = arith.mulf %171, %173 : vector<16x16x64xf32>
    %cst_103 = arith.constant dense<0.000000e+00> : vector<16x64xf32>
    %175 = vector.multi_reduction <add>, %174, %cst_103 [1] : vector<16x16x64xf32> to vector<16x64xf32>
    %c1_104 = arith.constant 1 : index
    %c0_105 = arith.constant 0 : index
    %c0_106 = arith.constant 0 : index
    %176 = vector.load %arg18[%c1_104, %c0_105, %c0_106] : memref<4x1x64xf32, #tpu.memory_space<vmem>>, vector<1x1x64xf32>
    %177 = vector.shape_cast %176 : vector<1x1x64xf32> to vector<1x64xf32>
    %178 = vector.broadcast %177 : vector<1x64xf32> to vector<16x64xf32>
    %179 = arith.addf %175, %178 : vector<16x64xf32>
    %c1_107 = arith.constant 1 : index
    %c0_108 = arith.constant 0 : index
    %c0_109 = arith.constant 0 : index
    %180 = vector.load %arg19[%c1_107, %c0_108, %c0_109] : memref<4x64x64xf32, #tpu.memory_space<vmem>>, vector<1x64x64xf32>
    %181 = vector.shape_cast %180 : vector<1x64x64xf32> to vector<64x64xf32>
    %cst_110 = arith.constant dense<0.000000e+00> : vector<16x64xf32>
    %182 = tpu.matmul %179, %181, %cst_110 {dimension_numbers = #tpu.dot_dimension_numbers<[1], [0], [0], [1], [0, 0, 1, 1], [], []>} : vector<16x64xf32>, vector<64x64xf32>, vector<16x64xf32> -> vector<16x64xf32>
    %c1_111 = arith.constant 1 : index
    %c0_112 = arith.constant 0 : index
    %c0_113 = arith.constant 0 : index
    %183 = vector.load %arg20[%c1_111, %c0_112, %c0_113] : memref<4x1x64xf32, #tpu.memory_space<vmem>>, vector<1x1x64xf32>
    %184 = vector.shape_cast %183 : vector<1x1x64xf32> to vector<1x64xf32>
    %185 = vector.broadcast %184 : vector<1x64xf32> to vector<16x64xf32>
    %186 = arith.addf %182, %185 : vector<16x64xf32>
    %c1_114 = arith.constant 1 : index
    %c0_115 = arith.constant 0 : index
    %c0_116 = arith.constant 0 : index
    %187 = vector.load %arg21[%c1_114, %c0_115, %c0_116] : memref<4x1x64xf32, #tpu.memory_space<vmem>>, vector<1x1x64xf32>
    %188 = vector.shape_cast %187 : vector<1x1x64xf32> to vector<1x64xf32>
    %c1_117 = arith.constant 1 : index
    %c0_118 = arith.constant 0 : index
    %c0_119 = arith.constant 0 : index
    %189 = vector.load %arg22[%c1_117, %c0_118, %c0_119] : memref<4x1x64xf32, #tpu.memory_space<vmem>>, vector<1x1x64xf32>
    %190 = vector.shape_cast %189 : vector<1x1x64xf32> to vector<1x64xf32>
    %cst_120 = arith.constant dense<0.000000e+00> : vector<16x64xf32>
    %191 = tpu.matmul %186, %0, %cst_120 {dimension_numbers = #tpu.dot_dimension_numbers<[1], [0], [0], [1], [0, 0, 1, 1], [], []>} : vector<16x64xf32>, vector<64x64xf32>, vector<16x64xf32> -> vector<16x64xf32>
    %192 = arith.mulf %186, %186 : vector<16x64xf32>
    %cst_121 = arith.constant dense<0.000000e+00> : vector<16x64xf32>
    %193 = tpu.matmul %192, %0, %cst_121 {dimension_numbers = #tpu.dot_dimension_numbers<[1], [0], [0], [1], [0, 0, 1, 1], [], []>} : vector<16x64xf32>, vector<64x64xf32>, vector<16x64xf32> -> vector<16x64xf32>
    %194 = arith.mulf %191, %191 : vector<16x64xf32>
    %195 = arith.subf %193, %194 : vector<16x64xf32>
    %196 = arith.subf %186, %191 : vector<16x64xf32>
    %cst_122 = arith.constant 9.99999974E-6 : f32
    %197 = vector.broadcast %cst_122 : f32 to vector<16x64xf32>
    %198 = arith.addf %195, %197 : vector<16x64xf32>
    %199 = math.rsqrt %198 : vector<16x64xf32>
    %200 = arith.mulf %196, %199 : vector<16x64xf32>
    %201 = vector.broadcast %188 : vector<1x64xf32> to vector<16x64xf32>
    %202 = arith.mulf %200, %201 : vector<16x64xf32>
    %203 = vector.broadcast %190 : vector<1x64xf32> to vector<16x64xf32>
    %204 = arith.addf %202, %203 : vector<16x64xf32>
    %cst_123 = arith.constant 0.000000e+00 : f32
    %205 = vector.broadcast %cst_123 : f32 to vector<16x64xf32>
    %206 = arith.maximumf %204, %205 : vector<16x64xf32>
    %207 = arith.addf %206, %127 : vector<16x64xf32>
    %c2 = arith.constant 2 : index
    %c0_124 = arith.constant 0 : index
    %c0_125 = arith.constant 0 : index
    %208 = vector.load %arg12[%c2, %c0_124, %c0_125] : memref<4x64x64xf32, #tpu.memory_space<vmem>>, vector<1x64x64xf32>
    %209 = vector.shape_cast %208 : vector<1x64x64xf32> to vector<64x64xf32>
    %cst_126 = arith.constant dense<0.000000e+00> : vector<16x64xf32>
    %210 = tpu.matmul %207, %209, %cst_126 {dimension_numbers = #tpu.dot_dimension_numbers<[1], [0], [0], [1], [0, 0, 1, 1], [], []>} : vector<16x64xf32>, vector<64x64xf32>, vector<16x64xf32> -> vector<16x64xf32>
    %c2_127 = arith.constant 2 : index
    %c0_128 = arith.constant 0 : index
    %c0_129 = arith.constant 0 : index
    %211 = vector.load %arg13[%c2_127, %c0_128, %c0_129] : memref<4x1x64xf32, #tpu.memory_space<vmem>>, vector<1x1x64xf32>
    %212 = vector.shape_cast %211 : vector<1x1x64xf32> to vector<1x64xf32>
    %213 = vector.broadcast %212 : vector<1x64xf32> to vector<16x64xf32>
    %214 = arith.addf %210, %213 : vector<16x64xf32>
    %c2_130 = arith.constant 2 : index
    %c0_131 = arith.constant 0 : index
    %c0_132 = arith.constant 0 : index
    %215 = vector.load %arg14[%c2_130, %c0_131, %c0_132] : memref<4x64x64xf32, #tpu.memory_space<vmem>>, vector<1x64x64xf32>
    %216 = vector.shape_cast %215 : vector<1x64x64xf32> to vector<64x64xf32>
    %cst_133 = arith.constant dense<0.000000e+00> : vector<16x64xf32>
    %217 = tpu.matmul %207, %216, %cst_133 {dimension_numbers = #tpu.dot_dimension_numbers<[1], [0], [0], [1], [0, 0, 1, 1], [], []>} : vector<16x64xf32>, vector<64x64xf32>, vector<16x64xf32> -> vector<16x64xf32>
    %c2_134 = arith.constant 2 : index
    %c0_135 = arith.constant 0 : index
    %c0_136 = arith.constant 0 : index
    %218 = vector.load %arg15[%c2_134, %c0_135, %c0_136] : memref<4x1x64xf32, #tpu.memory_space<vmem>>, vector<1x1x64xf32>
    %219 = vector.shape_cast %218 : vector<1x1x64xf32> to vector<1x64xf32>
    %220 = vector.broadcast %219 : vector<1x64xf32> to vector<16x64xf32>
    %221 = arith.addf %217, %220 : vector<16x64xf32>
    %c2_137 = arith.constant 2 : index
    %c0_138 = arith.constant 0 : index
    %c0_139 = arith.constant 0 : index
    %222 = vector.load %arg16[%c2_137, %c0_138, %c0_139] : memref<4x32x64xf32, #tpu.memory_space<vmem>>, vector<1x32x64xf32>
    %223 = vector.shape_cast %222 : vector<1x32x64xf32> to vector<32x64xf32>
    %cst_140 = arith.constant dense<0.000000e+00> : vector<256x64xf32>
    %224 = tpu.matmul %47, %223, %cst_140 {dimension_numbers = #tpu.dot_dimension_numbers<[1], [0], [0], [1], [0, 0, 1, 1], [], []>} : vector<256x32xf32>, vector<32x64xf32>, vector<256x64xf32> -> vector<256x64xf32>
    %225 = vector.shape_cast %221 : vector<16x64xf32> to vector<16x1x64xf32>
    %226 = vector.shape_cast %214 : vector<16x64xf32> to vector<1x16x64xf32>
    %227 = vector.broadcast %225 : vector<16x1x64xf32> to vector<16x16x64xf32>
    %228 = vector.broadcast %226 : vector<1x16x64xf32> to vector<16x16x64xf32>
    %229 = arith.addf %227, %228 : vector<16x16x64xf32>
    %230 = vector.shape_cast %224 : vector<256x64xf32> to vector<16x16x64xf32>
    %231 = arith.addf %229, %230 : vector<16x16x64xf32>
    %cst_141 = arith.constant 0.000000e+00 : f32
    %232 = vector.broadcast %cst_141 : f32 to vector<16x16x64xf32>
    %233 = arith.cmpf ogt, %231, %232 : vector<16x16x64xf32>
    %cst_142 = arith.constant 2.000000e-01 : f32
    %234 = vector.broadcast %cst_142 : f32 to vector<16x16x64xf32>
    %235 = arith.mulf %234, %231 : vector<16x16x64xf32>
    %236 = arith.select %233, %231, %235 : vector<16x16x64xi1>, vector<16x16x64xf32>
    %237 = vector.shape_cast %236 : vector<16x16x64xf32> to vector<256x64xf32>
    %c2_143 = arith.constant 2 : index
    %c0_144 = arith.constant 0 : index
    %c0_145 = arith.constant 0 : index
    %238 = vector.load %arg17[%c2_143, %c0_144, %c0_145] : memref<4x64x64xf32, #tpu.memory_space<vmem>>, vector<1x64x64xf32>
    %239 = vector.shape_cast %238 : vector<1x64x64xf32> to vector<64x64xf32>
    %cst_146 = arith.constant dense<0.000000e+00> : vector<256x64xf32>
    %240 = tpu.matmul %237, %239, %cst_146 {dimension_numbers = #tpu.dot_dimension_numbers<[1], [0], [0], [1], [0, 0, 1, 1], [], []>} : vector<256x64xf32>, vector<64x64xf32>, vector<256x64xf32> -> vector<256x64xf32>
    %241 = vector.shape_cast %240 : vector<256x64xf32> to vector<16x16x64xf32>
    %cst_147 = arith.constant dense<0xFF800000> : vector<16x64xf32>
    %242 = vector.multi_reduction <maximumf>, %241, %cst_147 [1] : vector<16x16x64xf32> to vector<16x64xf32>
    %243 = vector.shape_cast %242 : vector<16x64xf32> to vector<16x1x64xf32>
    %244 = vector.broadcast %243 : vector<16x1x64xf32> to vector<16x16x64xf32>
    %245 = arith.subf %241, %244 : vector<16x16x64xf32>
    %246 = math.exp %245 : vector<16x16x64xf32>
    %cst_148 = arith.constant dense<0.000000e+00> : vector<16x64xf32>
    %247 = vector.multi_reduction <add>, %246, %cst_148 [1] : vector<16x16x64xf32> to vector<16x64xf32>
    %248 = vector.shape_cast %247 : vector<16x64xf32> to vector<16x1x64xf32>
    %249 = tpu.reciprocal %248 {approx = true} : vector<16x1x64xf32> -> vector<16x1x64xf32>
    %250 = vector.broadcast %249 : vector<16x1x64xf32> to vector<16x16x64xf32>
    %251 = arith.mulf %246, %250 : vector<16x16x64xf32>
    %252 = vector.shape_cast %214 : vector<16x64xf32> to vector<1x16x64xf32>
    %253 = vector.broadcast %252 : vector<1x16x64xf32> to vector<16x16x64xf32>
    %254 = arith.mulf %251, %253 : vector<16x16x64xf32>
    %cst_149 = arith.constant dense<0.000000e+00> : vector<16x64xf32>
    %255 = vector.multi_reduction <add>, %254, %cst_149 [1] : vector<16x16x64xf32> to vector<16x64xf32>
    %c2_150 = arith.constant 2 : index
    %c0_151 = arith.constant 0 : index
    %c0_152 = arith.constant 0 : index
    %256 = vector.load %arg18[%c2_150, %c0_151, %c0_152] : memref<4x1x64xf32, #tpu.memory_space<vmem>>, vector<1x1x64xf32>
    %257 = vector.shape_cast %256 : vector<1x1x64xf32> to vector<1x64xf32>
    %258 = vector.broadcast %257 : vector<1x64xf32> to vector<16x64xf32>
    %259 = arith.addf %255, %258 : vector<16x64xf32>
    %c2_153 = arith.constant 2 : index
    %c0_154 = arith.constant 0 : index
    %c0_155 = arith.constant 0 : index
    %260 = vector.load %arg19[%c2_153, %c0_154, %c0_155] : memref<4x64x64xf32, #tpu.memory_space<vmem>>, vector<1x64x64xf32>
    %261 = vector.shape_cast %260 : vector<1x64x64xf32> to vector<64x64xf32>
    %cst_156 = arith.constant dense<0.000000e+00> : vector<16x64xf32>
    %262 = tpu.matmul %259, %261, %cst_156 {dimension_numbers = #tpu.dot_dimension_numbers<[1], [0], [0], [1], [0, 0, 1, 1], [], []>} : vector<16x64xf32>, vector<64x64xf32>, vector<16x64xf32> -> vector<16x64xf32>
    %c2_157 = arith.constant 2 : index
    %c0_158 = arith.constant 0 : index
    %c0_159 = arith.constant 0 : index
    %263 = vector.load %arg20[%c2_157, %c0_158, %c0_159] : memref<4x1x64xf32, #tpu.memory_space<vmem>>, vector<1x1x64xf32>
    %264 = vector.shape_cast %263 : vector<1x1x64xf32> to vector<1x64xf32>
    %265 = vector.broadcast %264 : vector<1x64xf32> to vector<16x64xf32>
    %266 = arith.addf %262, %265 : vector<16x64xf32>
    %c2_160 = arith.constant 2 : index
    %c0_161 = arith.constant 0 : index
    %c0_162 = arith.constant 0 : index
    %267 = vector.load %arg21[%c2_160, %c0_161, %c0_162] : memref<4x1x64xf32, #tpu.memory_space<vmem>>, vector<1x1x64xf32>
    %268 = vector.shape_cast %267 : vector<1x1x64xf32> to vector<1x64xf32>
    %c2_163 = arith.constant 2 : index
    %c0_164 = arith.constant 0 : index
    %c0_165 = arith.constant 0 : index
    %269 = vector.load %arg22[%c2_163, %c0_164, %c0_165] : memref<4x1x64xf32, #tpu.memory_space<vmem>>, vector<1x1x64xf32>
    %270 = vector.shape_cast %269 : vector<1x1x64xf32> to vector<1x64xf32>
    %cst_166 = arith.constant dense<0.000000e+00> : vector<16x64xf32>
    %271 = tpu.matmul %266, %0, %cst_166 {dimension_numbers = #tpu.dot_dimension_numbers<[1], [0], [0], [1], [0, 0, 1, 1], [], []>} : vector<16x64xf32>, vector<64x64xf32>, vector<16x64xf32> -> vector<16x64xf32>
    %272 = arith.mulf %266, %266 : vector<16x64xf32>
    %cst_167 = arith.constant dense<0.000000e+00> : vector<16x64xf32>
    %273 = tpu.matmul %272, %0, %cst_167 {dimension_numbers = #tpu.dot_dimension_numbers<[1], [0], [0], [1], [0, 0, 1, 1], [], []>} : vector<16x64xf32>, vector<64x64xf32>, vector<16x64xf32> -> vector<16x64xf32>
    %274 = arith.mulf %271, %271 : vector<16x64xf32>
    %275 = arith.subf %273, %274 : vector<16x64xf32>
    %276 = arith.subf %266, %271 : vector<16x64xf32>
    %cst_168 = arith.constant 9.99999974E-6 : f32
    %277 = vector.broadcast %cst_168 : f32 to vector<16x64xf32>
    %278 = arith.addf %275, %277 : vector<16x64xf32>
    %279 = math.rsqrt %278 : vector<16x64xf32>
    %280 = arith.mulf %276, %279 : vector<16x64xf32>
    %281 = vector.broadcast %268 : vector<1x64xf32> to vector<16x64xf32>
    %282 = arith.mulf %280, %281 : vector<16x64xf32>
    %283 = vector.broadcast %270 : vector<1x64xf32> to vector<16x64xf32>
    %284 = arith.addf %282, %283 : vector<16x64xf32>
    %cst_169 = arith.constant 0.000000e+00 : f32
    %285 = vector.broadcast %cst_169 : f32 to vector<16x64xf32>
    %286 = arith.maximumf %284, %285 : vector<16x64xf32>
    %287 = arith.addf %286, %207 : vector<16x64xf32>
    %c3 = arith.constant 3 : index
    %c0_170 = arith.constant 0 : index
    %c0_171 = arith.constant 0 : index
    %288 = vector.load %arg12[%c3, %c0_170, %c0_171] : memref<4x64x64xf32, #tpu.memory_space<vmem>>, vector<1x64x64xf32>
    %289 = vector.shape_cast %288 : vector<1x64x64xf32> to vector<64x64xf32>
    %cst_172 = arith.constant dense<0.000000e+00> : vector<16x64xf32>
    %290 = tpu.matmul %287, %289, %cst_172 {dimension_numbers = #tpu.dot_dimension_numbers<[1], [0], [0], [1], [0, 0, 1, 1], [], []>} : vector<16x64xf32>, vector<64x64xf32>, vector<16x64xf32> -> vector<16x64xf32>
    %c3_173 = arith.constant 3 : index
    %c0_174 = arith.constant 0 : index
    %c0_175 = arith.constant 0 : index
    %291 = vector.load %arg13[%c3_173, %c0_174, %c0_175] : memref<4x1x64xf32, #tpu.memory_space<vmem>>, vector<1x1x64xf32>
    %292 = vector.shape_cast %291 : vector<1x1x64xf32> to vector<1x64xf32>
    %293 = vector.broadcast %292 : vector<1x64xf32> to vector<16x64xf32>
    %294 = arith.addf %290, %293 : vector<16x64xf32>
    %c3_176 = arith.constant 3 : index
    %c0_177 = arith.constant 0 : index
    %c0_178 = arith.constant 0 : index
    %295 = vector.load %arg14[%c3_176, %c0_177, %c0_178] : memref<4x64x64xf32, #tpu.memory_space<vmem>>, vector<1x64x64xf32>
    %296 = vector.shape_cast %295 : vector<1x64x64xf32> to vector<64x64xf32>
    %cst_179 = arith.constant dense<0.000000e+00> : vector<16x64xf32>
    %297 = tpu.matmul %287, %296, %cst_179 {dimension_numbers = #tpu.dot_dimension_numbers<[1], [0], [0], [1], [0, 0, 1, 1], [], []>} : vector<16x64xf32>, vector<64x64xf32>, vector<16x64xf32> -> vector<16x64xf32>
    %c3_180 = arith.constant 3 : index
    %c0_181 = arith.constant 0 : index
    %c0_182 = arith.constant 0 : index
    %298 = vector.load %arg15[%c3_180, %c0_181, %c0_182] : memref<4x1x64xf32, #tpu.memory_space<vmem>>, vector<1x1x64xf32>
    %299 = vector.shape_cast %298 : vector<1x1x64xf32> to vector<1x64xf32>
    %300 = vector.broadcast %299 : vector<1x64xf32> to vector<16x64xf32>
    %301 = arith.addf %297, %300 : vector<16x64xf32>
    %c3_183 = arith.constant 3 : index
    %c0_184 = arith.constant 0 : index
    %c0_185 = arith.constant 0 : index
    %302 = vector.load %arg16[%c3_183, %c0_184, %c0_185] : memref<4x32x64xf32, #tpu.memory_space<vmem>>, vector<1x32x64xf32>
    %303 = vector.shape_cast %302 : vector<1x32x64xf32> to vector<32x64xf32>
    %cst_186 = arith.constant dense<0.000000e+00> : vector<256x64xf32>
    %304 = tpu.matmul %47, %303, %cst_186 {dimension_numbers = #tpu.dot_dimension_numbers<[1], [0], [0], [1], [0, 0, 1, 1], [], []>} : vector<256x32xf32>, vector<32x64xf32>, vector<256x64xf32> -> vector<256x64xf32>
    %305 = vector.shape_cast %301 : vector<16x64xf32> to vector<16x1x64xf32>
    %306 = vector.shape_cast %294 : vector<16x64xf32> to vector<1x16x64xf32>
    %307 = vector.broadcast %305 : vector<16x1x64xf32> to vector<16x16x64xf32>
    %308 = vector.broadcast %306 : vector<1x16x64xf32> to vector<16x16x64xf32>
    %309 = arith.addf %307, %308 : vector<16x16x64xf32>
    %310 = vector.shape_cast %304 : vector<256x64xf32> to vector<16x16x64xf32>
    %311 = arith.addf %309, %310 : vector<16x16x64xf32>
    %cst_187 = arith.constant 0.000000e+00 : f32
    %312 = vector.broadcast %cst_187 : f32 to vector<16x16x64xf32>
    %313 = arith.cmpf ogt, %311, %312 : vector<16x16x64xf32>
    %cst_188 = arith.constant 2.000000e-01 : f32
    %314 = vector.broadcast %cst_188 : f32 to vector<16x16x64xf32>
    %315 = arith.mulf %314, %311 : vector<16x16x64xf32>
    %316 = arith.select %313, %311, %315 : vector<16x16x64xi1>, vector<16x16x64xf32>
    %317 = vector.shape_cast %316 : vector<16x16x64xf32> to vector<256x64xf32>
    %c3_189 = arith.constant 3 : index
    %c0_190 = arith.constant 0 : index
    %c0_191 = arith.constant 0 : index
    %318 = vector.load %arg17[%c3_189, %c0_190, %c0_191] : memref<4x64x64xf32, #tpu.memory_space<vmem>>, vector<1x64x64xf32>
    %319 = vector.shape_cast %318 : vector<1x64x64xf32> to vector<64x64xf32>
    %cst_192 = arith.constant dense<0.000000e+00> : vector<256x64xf32>
    %320 = tpu.matmul %317, %319, %cst_192 {dimension_numbers = #tpu.dot_dimension_numbers<[1], [0], [0], [1], [0, 0, 1, 1], [], []>} : vector<256x64xf32>, vector<64x64xf32>, vector<256x64xf32> -> vector<256x64xf32>
    %321 = vector.shape_cast %320 : vector<256x64xf32> to vector<16x16x64xf32>
    %cst_193 = arith.constant dense<0xFF800000> : vector<16x64xf32>
    %322 = vector.multi_reduction <maximumf>, %321, %cst_193 [1] : vector<16x16x64xf32> to vector<16x64xf32>
    %323 = vector.shape_cast %322 : vector<16x64xf32> to vector<16x1x64xf32>
    %324 = vector.broadcast %323 : vector<16x1x64xf32> to vector<16x16x64xf32>
    %325 = arith.subf %321, %324 : vector<16x16x64xf32>
    %326 = math.exp %325 : vector<16x16x64xf32>
    %cst_194 = arith.constant dense<0.000000e+00> : vector<16x64xf32>
    %327 = vector.multi_reduction <add>, %326, %cst_194 [1] : vector<16x16x64xf32> to vector<16x64xf32>
    %328 = vector.shape_cast %327 : vector<16x64xf32> to vector<16x1x64xf32>
    %329 = tpu.reciprocal %328 {approx = true} : vector<16x1x64xf32> -> vector<16x1x64xf32>
    %330 = vector.broadcast %329 : vector<16x1x64xf32> to vector<16x16x64xf32>
    %331 = arith.mulf %326, %330 : vector<16x16x64xf32>
    %332 = vector.shape_cast %294 : vector<16x64xf32> to vector<1x16x64xf32>
    %333 = vector.broadcast %332 : vector<1x16x64xf32> to vector<16x16x64xf32>
    %334 = arith.mulf %331, %333 : vector<16x16x64xf32>
    %cst_195 = arith.constant dense<0.000000e+00> : vector<16x64xf32>
    %335 = vector.multi_reduction <add>, %334, %cst_195 [1] : vector<16x16x64xf32> to vector<16x64xf32>
    %c3_196 = arith.constant 3 : index
    %c0_197 = arith.constant 0 : index
    %c0_198 = arith.constant 0 : index
    %336 = vector.load %arg18[%c3_196, %c0_197, %c0_198] : memref<4x1x64xf32, #tpu.memory_space<vmem>>, vector<1x1x64xf32>
    %337 = vector.shape_cast %336 : vector<1x1x64xf32> to vector<1x64xf32>
    %338 = vector.broadcast %337 : vector<1x64xf32> to vector<16x64xf32>
    %339 = arith.addf %335, %338 : vector<16x64xf32>
    %c3_199 = arith.constant 3 : index
    %c0_200 = arith.constant 0 : index
    %c0_201 = arith.constant 0 : index
    %340 = vector.load %arg19[%c3_199, %c0_200, %c0_201] : memref<4x64x64xf32, #tpu.memory_space<vmem>>, vector<1x64x64xf32>
    %341 = vector.shape_cast %340 : vector<1x64x64xf32> to vector<64x64xf32>
    %cst_202 = arith.constant dense<0.000000e+00> : vector<16x64xf32>
    %342 = tpu.matmul %339, %341, %cst_202 {dimension_numbers = #tpu.dot_dimension_numbers<[1], [0], [0], [1], [0, 0, 1, 1], [], []>} : vector<16x64xf32>, vector<64x64xf32>, vector<16x64xf32> -> vector<16x64xf32>
    %c3_203 = arith.constant 3 : index
    %c0_204 = arith.constant 0 : index
    %c0_205 = arith.constant 0 : index
    %343 = vector.load %arg20[%c3_203, %c0_204, %c0_205] : memref<4x1x64xf32, #tpu.memory_space<vmem>>, vector<1x1x64xf32>
    %344 = vector.shape_cast %343 : vector<1x1x64xf32> to vector<1x64xf32>
    %345 = vector.broadcast %344 : vector<1x64xf32> to vector<16x64xf32>
    %346 = arith.addf %342, %345 : vector<16x64xf32>
    %c3_206 = arith.constant 3 : index
    %c0_207 = arith.constant 0 : index
    %c0_208 = arith.constant 0 : index
    %347 = vector.load %arg21[%c3_206, %c0_207, %c0_208] : memref<4x1x64xf32, #tpu.memory_space<vmem>>, vector<1x1x64xf32>
    %348 = vector.shape_cast %347 : vector<1x1x64xf32> to vector<1x64xf32>
    %c3_209 = arith.constant 3 : index
    %c0_210 = arith.constant 0 : index
    %c0_211 = arith.constant 0 : index
    %349 = vector.load %arg22[%c3_209, %c0_210, %c0_211] : memref<4x1x64xf32, #tpu.memory_space<vmem>>, vector<1x1x64xf32>
    %350 = vector.shape_cast %349 : vector<1x1x64xf32> to vector<1x64xf32>
    %cst_212 = arith.constant dense<0.000000e+00> : vector<16x64xf32>
    %351 = tpu.matmul %346, %0, %cst_212 {dimension_numbers = #tpu.dot_dimension_numbers<[1], [0], [0], [1], [0, 0, 1, 1], [], []>} : vector<16x64xf32>, vector<64x64xf32>, vector<16x64xf32> -> vector<16x64xf32>
    %352 = arith.mulf %346, %346 : vector<16x64xf32>
    %cst_213 = arith.constant dense<0.000000e+00> : vector<16x64xf32>
    %353 = tpu.matmul %352, %0, %cst_213 {dimension_numbers = #tpu.dot_dimension_numbers<[1], [0], [0], [1], [0, 0, 1, 1], [], []>} : vector<16x64xf32>, vector<64x64xf32>, vector<16x64xf32> -> vector<16x64xf32>
    %354 = arith.mulf %351, %351 : vector<16x64xf32>
    %355 = arith.subf %353, %354 : vector<16x64xf32>
    %356 = arith.subf %346, %351 : vector<16x64xf32>
    %cst_214 = arith.constant 9.99999974E-6 : f32
    %357 = vector.broadcast %cst_214 : f32 to vector<16x64xf32>
    %358 = arith.addf %355, %357 : vector<16x64xf32>
    %359 = math.rsqrt %358 : vector<16x64xf32>
    %360 = arith.mulf %356, %359 : vector<16x64xf32>
    %361 = vector.broadcast %348 : vector<1x64xf32> to vector<16x64xf32>
    %362 = arith.mulf %360, %361 : vector<16x64xf32>
    %363 = vector.broadcast %350 : vector<1x64xf32> to vector<16x64xf32>
    %364 = arith.addf %362, %363 : vector<16x64xf32>
    %cst_215 = arith.constant 0.000000e+00 : f32
    %365 = vector.broadcast %cst_215 : f32 to vector<16x64xf32>
    %366 = arith.maximumf %364, %365 : vector<16x64xf32>
    %367 = arith.addf %366, %287 : vector<16x64xf32>
    %c0_216 = arith.constant 0 : index
    %c0_217 = arith.constant 0 : index
    %368 = vector.load %arg23[%c0_216, %c0_217] : memref<64x64xf32, #tpu.memory_space<vmem>>, vector<64x64xf32>
    %cst_218 = arith.constant dense<0.000000e+00> : vector<16x64xf32>
    %369 = tpu.matmul %367, %368, %cst_218 {dimension_numbers = #tpu.dot_dimension_numbers<[1], [0], [0], [1], [0, 0, 1, 1], [], []>} : vector<16x64xf32>, vector<64x64xf32>, vector<16x64xf32> -> vector<16x64xf32>
    %c0_219 = arith.constant 0 : index
    %c0_220 = arith.constant 0 : index
    %370 = vector.load %arg24[%c0_219, %c0_220] : memref<1x64xf32, #tpu.memory_space<vmem>>, vector<1x64xf32>
    %371 = vector.broadcast %370 : vector<1x64xf32> to vector<16x64xf32>
    %372 = arith.addf %369, %371 : vector<16x64xf32>
    %c0_221 = arith.constant 0 : index
    %c0_222 = arith.constant 0 : index
    %373 = vector.load %arg25[%c0_221, %c0_222] : memref<64x64xf32, #tpu.memory_space<vmem>>, vector<64x64xf32>
    %cst_223 = arith.constant dense<0.000000e+00> : vector<16x64xf32>
    %374 = tpu.matmul %372, %373, %cst_223 {dimension_numbers = #tpu.dot_dimension_numbers<[1], [0], [0], [1], [0, 0, 1, 1], [], []>} : vector<16x64xf32>, vector<64x64xf32>, vector<16x64xf32> -> vector<16x64xf32>
    %c0_224 = arith.constant 0 : index
    %c0_225 = arith.constant 0 : index
    %375 = vector.load %arg26[%c0_224, %c0_225] : memref<64x64xf32, #tpu.memory_space<vmem>>, vector<64x64xf32>
    %cst_226 = arith.constant dense<0.000000e+00> : vector<16x64xf32>
    %376 = tpu.matmul %1, %375, %cst_226 {dimension_numbers = #tpu.dot_dimension_numbers<[1], [0], [0], [1], [0, 0, 1, 1], [], []>} : vector<16x64xf32>, vector<64x64xf32>, vector<16x64xf32> -> vector<16x64xf32>
    %377 = arith.addf %374, %376 : vector<16x64xf32>
    %c0_227 = arith.constant 0 : index
    %c0_228 = arith.constant 0 : index
    %378 = vector.load %arg27[%c0_227, %c0_228] : memref<1x64xf32, #tpu.memory_space<vmem>>, vector<1x64xf32>
    %379 = vector.broadcast %378 : vector<1x64xf32> to vector<16x64xf32>
    %380 = arith.addf %377, %379 : vector<16x64xf32>
    %381 = arith.negf %380 : vector<16x64xf32>
    %382 = math.exp %381 : vector<16x64xf32>
    %cst_229 = arith.constant 1.000000e+00 : f32
    %383 = vector.broadcast %cst_229 : f32 to vector<16x64xf32>
    %384 = arith.addf %383, %382 : vector<16x64xf32>
    %385 = arith.divf %383, %384 : vector<16x64xf32>
    %c0_230 = arith.constant 0 : index
    %c0_231 = arith.constant 0 : index
    %386 = vector.load %arg28[%c0_230, %c0_231] : memref<64x64xf32, #tpu.memory_space<vmem>>, vector<64x64xf32>
    %cst_232 = arith.constant dense<0.000000e+00> : vector<16x64xf32>
    %387 = tpu.matmul %372, %386, %cst_232 {dimension_numbers = #tpu.dot_dimension_numbers<[1], [0], [0], [1], [0, 0, 1, 1], [], []>} : vector<16x64xf32>, vector<64x64xf32>, vector<16x64xf32> -> vector<16x64xf32>
    %c0_233 = arith.constant 0 : index
    %c0_234 = arith.constant 0 : index
    %388 = vector.load %arg29[%c0_233, %c0_234] : memref<64x64xf32, #tpu.memory_space<vmem>>, vector<64x64xf32>
    %cst_235 = arith.constant dense<0.000000e+00> : vector<16x64xf32>
    %389 = tpu.matmul %1, %388, %cst_235 {dimension_numbers = #tpu.dot_dimension_numbers<[1], [0], [0], [1], [0, 0, 1, 1], [], []>} : vector<16x64xf32>, vector<64x64xf32>, vector<16x64xf32> -> vector<16x64xf32>
    %390 = arith.addf %387, %389 : vector<16x64xf32>
    %c0_236 = arith.constant 0 : index
    %c0_237 = arith.constant 0 : index
    %391 = vector.load %arg30[%c0_236, %c0_237] : memref<1x64xf32, #tpu.memory_space<vmem>>, vector<1x64xf32>
    %392 = vector.broadcast %391 : vector<1x64xf32> to vector<16x64xf32>
    %393 = arith.addf %390, %392 : vector<16x64xf32>
    %394 = arith.negf %393 : vector<16x64xf32>
    %395 = math.exp %394 : vector<16x64xf32>
    %cst_238 = arith.constant 1.000000e+00 : f32
    %396 = vector.broadcast %cst_238 : f32 to vector<16x64xf32>
    %397 = arith.addf %396, %395 : vector<16x64xf32>
    %398 = arith.divf %396, %397 : vector<16x64xf32>
    %c0_239 = arith.constant 0 : index
    %c0_240 = arith.constant 0 : index
    %399 = vector.load %arg31[%c0_239, %c0_240] : memref<64x64xf32, #tpu.memory_space<vmem>>, vector<64x64xf32>
    %cst_241 = arith.constant dense<0.000000e+00> : vector<16x64xf32>
    %400 = tpu.matmul %372, %399, %cst_241 {dimension_numbers = #tpu.dot_dimension_numbers<[1], [0], [0], [1], [0, 0, 1, 1], [], []>} : vector<16x64xf32>, vector<64x64xf32>, vector<16x64xf32> -> vector<16x64xf32>
    %401 = arith.mulf %385, %1 : vector<16x64xf32>
    %c0_242 = arith.constant 0 : index
    %c0_243 = arith.constant 0 : index
    %402 = vector.load %arg32[%c0_242, %c0_243] : memref<64x64xf32, #tpu.memory_space<vmem>>, vector<64x64xf32>
    %cst_244 = arith.constant dense<0.000000e+00> : vector<16x64xf32>
    %403 = tpu.matmul %401, %402, %cst_244 {dimension_numbers = #tpu.dot_dimension_numbers<[1], [0], [0], [1], [0, 0, 1, 1], [], []>} : vector<16x64xf32>, vector<64x64xf32>, vector<16x64xf32> -> vector<16x64xf32>
    %404 = arith.addf %400, %403 : vector<16x64xf32>
    %c0_245 = arith.constant 0 : index
    %c0_246 = arith.constant 0 : index
    %405 = vector.load %arg33[%c0_245, %c0_246] : memref<1x64xf32, #tpu.memory_space<vmem>>, vector<1x64xf32>
    %406 = vector.broadcast %405 : vector<1x64xf32> to vector<16x64xf32>
    %407 = arith.addf %404, %406 : vector<16x64xf32>
    %408 = math.tanh %407 : vector<16x64xf32>
    %409 = arith.mulf %398, %1 : vector<16x64xf32>
    %cst_247 = arith.constant 1.000000e+00 : f32
    %410 = vector.broadcast %cst_247 : f32 to vector<16x64xf32>
    %411 = arith.subf %410, %398 : vector<16x64xf32>
    %412 = arith.mulf %411, %408 : vector<16x64xf32>
    %413 = arith.addf %409, %412 : vector<16x64xf32>
    %414 = tpu.concatenate %372, %413 in 1 : vector<16x64xf32>, vector<16x64xf32> -> vector<16x128xf32>
    %c0_248 = arith.constant 0 : index
    %c0_249 = arith.constant 0 : index
    %415 = vector.load %arg34[%c0_248, %c0_249] : memref<16x128xf32, #tpu.memory_space<vmem>>, vector<16x128xf32>
    tpu.vector_store %arg34[%c0_248, %c0_249], %414 {strides = array<i32>} : memref<16x128xf32, #tpu.memory_space<vmem>>, vector<16x128xf32>,
    return
  }
}

</mosaic_0001>

<bundles_post_ra>
// kernel: gatv2_encoder_forward.1
= control target key start
LH: loop header
LB: loop body
LE: loop exit
PB: predicated region body
PF: predicated region fallthrough
CT: control target
= control target key end

     0   :  { %s7829_s3 = smov 4   ;;  %s7830_s10 = smov 3   ;;  %vm160_vm0 = vcmask 130048   ;;  %vm192_vm1 = vcmask 523264   ;;  %vm550_vm8 = vcmask 261120   ;;  %s10765_s0 = inlined_call_operand.smem [shape: u32[35], index: -1, kind: input, shape index: {}] }
   0x1   :  { %s6717_s6 = sld [smem:[%s10765_s0 + %s7829_s3]]   ;;  %s7831_s14 = smov 5  }
   0x2   :  { %s1_s9 = sld [smem:[%s10765_s0]]   ;;  %s7832_s18 = smov 6  }
   0x3   :  { %s7878_s13 = sld [smem:[%s10765_s0 + %s7830_s10]]   ;;  %s7833_s22 = smov 7  }
   0x4   :  { %s7883_s17 = sld [smem:[%s10765_s0 + %s7831_s14]]   ;;  %s7834_s26 = smov 9  }
   0x5   :  { %s7956_s21 = sld [smem:[%s10765_s0 + %s7832_s18]]   ;;  %s7835_s30 = smov 8  }
   0x6   :  { %s7961_s25 = sld [smem:[%s10765_s0 + %s7833_s22]]   ;;  %s7836_s4 = smov 16  }
   0x7   :  { %v155_v0 = vld [vmem:[%s6717_s6 + $0x8] sm:$0xff]  ;;  %v154_v1 = vld [vmem:[%s6717_s6] sm:$0xff]  ;;  %s7966_s29 = sld [smem:[%s10765_s0 + %s7834_s26]]   ;;  %s7837_s8 = smov 2  }
   0x8   :  { %181 = vmatpush.msra.mxu0 %v155_v0  ;;  %v152_v2 = vld [vmem:[%s1_s9] sm:$0xff]  ;;  %v153_v8 = vld [vmem:[%s1_s9 + $0x8] sm:$0xff]  ;;  %s6721_s3 = sld [smem:[%s10765_s0 + %s7835_s30]]   ;;  %s7838_s12 = smov 10  }
   0x9   :  { %v7886_v3 = vld [vmem:[%s7878_s13 + $0x38] sm:$0xff]  ;;  %v7889_v4 = vld [vmem:[%s7878_s13 + $0x30] sm:$0xff]  ;;  %v7895_v5 = vld [vmem:[%s7878_s13 + $0x28] sm:$0xff]  ;;  %s7979_s7 = sld [smem:[%s10765_s0 + %s7836_s4]]   ;;  %s7845_s14 = smov 18  }
   0xa   :  { %182 = vmatpush.msra.mxu0 %v154_v1  ;;  %207 = vmatpush.msra.mxu1 %v7886_v3  ;;  %v7901_v6 = vld [vmem:[%s7878_s13 + $0x20] sm:$0xff]  ;;  %v7907_v7 = vld [vmem:[%s7878_s13 + $0x18] sm:$0xff]  ;;  %v7913_v9 = vld [vmem:[%s7878_s13 + $0x10] sm:$0xff]  ;;  %s7996_s11 = sld [smem:[%s10765_s0 + %s7837_s8]]   ;;  %s7844_s8 = smov 17  }
   0xb   :  { %6748 = vmatmul.msk.f32.vlgmr.msra.gmra.mxu0 %vm160_vm0, %v152_v2  ;;  %238 = vmatpush.msra.mxu2 %v7886_v3  ;;  %v7924_v10 = vld [vmem:[%s7878_s13 + $0x8] sm:$0xff]  ;;  %v7929_v11 = vld [vmem:[%s7878_s13] sm:$0xff]  ;;  %s8010_s16 = sld [smem:[%s10765_s0 + %s7838_s12]]   ;;  %s7846_s18 = smov 19  }
   0xc   :  { %208 = vmatpush.msra.mxu1 %v7889_v4  ;;  %352 = vmatpush.msrb.mxu0 %v7886_v3  ;;  %v7235_v12 = vld [vmem:[%s7883_s17] ss:$0 sm:$0xff]  ;;  %s7839_s17 = smov 11   ;;  %s8143_s12 = sld [smem:[%s10765_s0 + %s7844_s8]]  }
   0xd   :  { %239 = vmatpush.msra.mxu2 %v7889_v4  ;;  %v7236_v46 = vld [vmem:[%s7956_s21] ss:$0 sm:$0xff]  ;;  %s8015_s20 = sld [smem:[%s10765_s0 + %s7839_s17]]   ;;  %s7840_s21 = smov 14  }
   0xe   :  { %209 = vmatpush.msra.mxu1 %v7895_v5  ;;  %353 = vmatpush.msrb.mxu0 %v7889_v4  ;;  %v302_v19 = vld [vmem:[%s6721_s3 + $0x38] sm:$0xff]  ;;  %v301_v20 = vld [vmem:[%s6721_s3 + $0x30] sm:$0xff]  ;;  %v300_v21 = vld [vmem:[%s6721_s3 + $0x28] sm:$0xff]  ;;  %s8040_s24 = sld [smem:[%s10765_s0 + %s7840_s21]]   ;;  %s7847_s22 = smov 20  }
   0xf   :  { %240 = vmatpush.msra.mxu2 %v7895_v5  ;;  %321 = vmatpush.msra.mxu3 %v302_v19  ;;  %v299_v22 = vld [vmem:[%s6721_s3 + $0x20] sm:$0xff]  ;;  %v298_v23 = vld [vmem:[%s6721_s3 + $0x18] sm:$0xff]  ;;  %v297_v24 = vld [vmem:[%s6721_s3 + $0x10] sm:$0xff]  ;;  %s8227_s17 = sld [smem:[%s10765_s0 + %s7845_s14]]   ;;  %s7848_s27 = smov 21  }
  0x10   :  { %210 = vmatpush.msra.mxu1 %v7901_v6  ;;  %354 = vmatpush.msrb.mxu0 %v7895_v5  ;;  %v296_v25 = vld [vmem:[%s6721_s3 + $0x8] sm:$0xff]  ;;  %v295_v27 = vld [vmem:[%s6721_s3] sm:$0xff]  ;;  %v549_v63 = vld [vmem:[%s7979_s7 + $0x18] sm:$0xff]  ;;  %s7843_s3 = smov 15   ;;  %s8475_s21 = sld [smem:[%s10765_s0 + %s7846_s18]]  }
  0x11   :  { %241 = vmatpush.msra.mxu2 %v7901_v6  ;;  %322 = vmatpush.msra.mxu3 %v301_v20  ;;  %v7237_v50 = vld [vmem:[%s7961_s25] ss:$0 sm:$0xff]  ;;  %v548_v0 = vld [vmem:[%s7979_s7 + $0x10] sm:$0xff]  ;;  %v547_v1 = vld [vmem:[%s7979_s7 + $0x8] sm:$0xff]  ;;  %s7841_s25 = smov 12   ;;  %s8096_s6 = sld [smem:[%s10765_s0 + %s7843_s3]]  }
  0x12   :  { %211 = vmatpush.msra.mxu1 %v7907_v7  ;;  %355 = vmatpush.msrb.mxu0 %v7901_v6  ;;  %v546_v2 = vld [vmem:[%s7979_s7] sm:$0xff]  ;;  %v439_v19 = vld [vmem:[%s7996_s11 + $0x8] sm:$0xff]  ;;  %v440_v20 = vld [vmem:[%s7996_s11 + $0x10] sm:$0xff]  ;;  %s8045_s28 = sld [smem:[%s10765_s0 + %s7841_s25]]   ;;  %s7849_s3 = smov 22  }
  0x13   :  { %6749 = vmatmul.msk.f32.gmra.mxu0 %vm160_vm0, %v153_v8  ;;  %242 = vmatpush.msra.mxu2 %v7907_v7  ;;  %v7238_v8 = vld [vmem:[%s7966_s29] ss:$0 sm:$0xff]  ;;  %s7842_s29 = smov 13   ;;  %s8555_s26 = sld [smem:[%s10765_s0 + %s7847_s22]]  }
  0x14   :  { %212 = vmatpush.msra.mxu1 %v7913_v9  ;;  %356 = vmatpush.msrb.mxu0 %v7907_v7  ;;  %s8091_s2 = sld [smem:[%s10765_s0 + %s7842_s29]]   ;;  %s7852_s10 = smov 26  }
  0x15   :  { %243 = vmatpush.msra.mxu2 %v7913_v9  ;;  %323 = vmatpush.msra.mxu3 %v300_v21  ;;  %v441_v21 = vld [vmem:[%s7996_s11 + $0x18] sm:$0xff]  ;;  %s8734_s1 = sld [smem:[%s10765_s0 + %s7848_s27]]   ;;  %s7855_s25 = smov 25  }
  0x16   :  { %357 = vmatpush.msrb.mxu0 %v7913_v9  ;;  %213 = vmatpush.msra.mxu1 %v7924_v10  ;;  %s8739_s8 = sld [smem:[%s10765_s0 + %s7849_s3]]   ;;  %s7856_s30 = smov 1  }
  0x17   :  { %244 = vmatpush.msra.mxu2 %v7924_v10  ;;  %324 = vmatpush.msra.mxu3 %v299_v22  ;;  %v442_v22 = vld [vmem:[%s7996_s11 + $0x20] sm:$0xff]  ;;  %s10624_s15 = sld [smem:[%s10765_s0 + %s7852_s10]]   ;;  %s7857_s5 = smov 29  }
  0x18   :  { %358 = vmatpush.msrb.mxu0 %v7924_v10  ;;  %214 = vmatpush.msra.mxu1 %v7929_v11  ;;  %s10640_s29 = sld [smem:[%s10765_s0 + %s7855_s25]]   ;;  %s7860_s14 = smov 32  }
  0x19   :  { %245 = vmatpush.msra.mxu2 %v7929_v11  ;;  %325 = vmatpush.msra.mxu3 %v298_v23  ;;  %v443_v23 = vld [vmem:[%s7996_s11 + $0x28] sm:$0xff]  ;;  %s10647_s4 = sld [smem:[%s10765_s0 + %s7856_s30]]   ;;  %s7861_s18 = smov 33  }
  0x1a   :  { %383 = vmatpush.msrb.mxu1 %v7886_v3  ;;  %359 = vmatpush.msrb.mxu0 %v7929_v11  ;;  %s7862_s22 = smov 64  }
  0x1b   :  { %326 = vmatpush.msra.mxu3 %v297_v24  ;;  %v444_v24 = vld [vmem:[%s7996_s11 + $0x30] sm:$0xff] }
  0x1c   :  { %384 = vmatpush.msrb.mxu1 %v7889_v4  ;;  %659 = vmatpush.msra.mxu0 %v549_v63  ;;  %v454_v63 = vld [vmem:[%s7996_s11 + $0x80] sm:$0xff] }
  0x1d   :  { %327 = vmatpush.msra.mxu3 %v296_v25  ;;  %v445_v25 = vld [vmem:[%s7996_s11 + $0x38] sm:$0xff] }
  0x1e   :  { %385 = vmatpush.msrb.mxu1 %v7895_v5  ;;  %660 = vmatpush.msra.mxu0 %v548_v0 }
  0x1f   :  { %328 = vmatpush.msra.mxu3 %v295_v27  ;;  %v447_v27 = vld [vmem:[%s7996_s11 + $0x48] sm:$0xff] }
  0x20   :  { %386 = vmatpush.msrb.mxu1 %v7901_v6  ;;  %661 = vmatpush.msra.mxu0 %v547_v1 }
  0x22   :  { %387 = vmatpush.msrb.mxu1 %v7907_v7  ;;  %662 = vmatpush.msra.mxu0 %v546_v2 }
  0x24   :  { %388 = vmatpush.msrb.mxu1 %v7913_v9 }
  0x26   :  { %389 = vmatpush.msrb.mxu1 %v7924_v10 }
  0x28   :  { %390 = vmatpush.msrb.mxu1 %v7929_v11 }
  0x88   :  { %v184_v13 = vpop.f32.mrf.mxu0 }
  0x89   :  { %v185_v14 = vadd.f32 %v7235_v12, %v184_v13 }
  0x8b   :  { %6750 = vmatmul.msk.f32.vlgmr.msra.gmra.mxu1 %vm192_vm1, %v185_v14  ;;  %v222_v15 = vmul.f32 %v185_v14, %v185_v14 }
  0x8d   :  { %6752 = vmatmul.msk.f32.vlgmr.msra.gmra.mxu2 %vm192_vm1, %v222_v15 }
  0x90   :  { %v187_v16 = vpop.f32.mrf.mxu0 }
  0x91   :  { %v7946_v17 = vadd.f32 %v7235_v12, %v187_v16 }
  0x93   :  { %6751 = vmatmul.msk.f32.gmra.mxu1 %vm192_vm1, %v7946_v17  ;;  %v223_v18 = vmul.f32 %v7946_v17, %v7946_v17 }
  0x95   :  { %6753 = vmatmul.msk.f32.gmra.mxu2 %vm192_vm1, %v223_v18  ;;  %v438_v18 = vld [vmem:[%s7996_s11] sm:$0xff] }
 0x108   :  { %v216_v26 = vpop.f32.mrf.mxu1 }
 0x109   :  { %v253_v28 = vmul.f32 %v216_v26, %v216_v26  ;;  %v257_v45 = vsub.f32 %v185_v14, %v216_v26  ;;  %v446_v26 = vld [vmem:[%s7996_s11 + $0x40] sm:$0xff] }
 0x110   :  { %v247_v29 = vpop.f32.mrf.mxu2  ;;  %v219_v32 = vpop.f32.mrf.mxu1 }
 0x111   :  { %v255_v30 = vsub.f32 %v247_v29, %v253_v28  ;;  %v254_v33 = vmul.f32 %v219_v32, %v219_v32  ;;  %v258_v56 = vsub.f32 %v7946_v17, %v219_v32  ;;  %v448_v28 = vld [vmem:[%s7996_s11 + $0x50] sm:$0xff]  ;;  %v449_v29 = vld [vmem:[%s7996_s11 + $0x58] sm:$0xff]  ;;  %v450_v32 = vld [vmem:[%s7996_s11 + $0x60] sm:$0xff] }
 0x113   :  { %v259_v31 = vadd.f32 1e-05, %v255_v30  ;;  %v518_v30 = vld [vmem:[%s8040_s24 + $0x38] sm:$0xff] }
 0x114   :  { %531 = vmatpush.msrb.mxu3 %v518_v30 }
 0x115   :  { %7269 = vrsqrt.f32 %v259_v31  ;;  %vm267_vm3 = vweird.f32 %v259_v31 }
 0x118   :  { %v250_v34 = vpop.f32.mrf.mxu2 }
 0x119   :  { %v256_v35 = vsub.f32 %v250_v34, %v254_v33  ;;  %v517_v33 = vld [vmem:[%s8040_s24 + $0x30] sm:$0xff] }
 0x11a   :  { %v476_v34 = vld [vmem:[%s8045_s28 + $0x30] sm:$0xff]  ;;  %532 = vmatpush.msrb.mxu3 %v517_v33  ;;  %v459_v33 = vld [vmem:[%s7996_s11 + $0xa8] sm:$0xff] }
 0x11b   :  { %v7270_v36 = vpop.eup %7269  ;;  %v260_v37 = vadd.f32 1e-05, %v256_v35  ;;  %v516_v35 = vld [vmem:[%s8040_s24 + $0x28] sm:$0xff] }
 0x11c   :  { %v262_v38 = vmul.f32 %v7270_v36, %v259_v31  ;;  %vm268_vm2 = vweird.f32 %v7270_v36  ;;  %v477_v31 = vld [vmem:[%s8045_s28 + $0x38] sm:$0xff]  ;;  %533 = vmatpush.msrb.mxu3 %v516_v35 }
 0x11d   :  { %7271 = vrsqrt.f32 %v260_v37  ;;  %vm269_vm4 = vmor %vm267_vm3, %vm268_vm2  ;;  %vm277_vm6 = vweird.f32 %v260_v37  ;;  %496 = vmatpush.msrb.mxu2 %v477_v31 }
 0x11e   :  { %v263_v39 = vmul.f32 %v7270_v36, %v262_v38  ;;  %v474_v38 = vld [vmem:[%s8045_s28 + $0x20] sm:$0xff] }
 0x11f   :  { %497 = vmatpush.msrb.mxu2 %v476_v34  ;;  %v460_v34 = vld [vmem:[%s7996_s11 + $0xb0] sm:$0xff] }
 0x120   :  { %v264_v40 = vmul.f32 0.5, %v263_v39  ;;  %v514_v39 = vld [vmem:[%s8040_s24 + $0x18] sm:$0xff] }
 0x122   :  { %v265_v41 = vsub.f32 1.5, %v264_v40  ;;  %v473_v40 = vld [vmem:[%s8045_s28 + $0x18] sm:$0xff] }
 0x123   :  { %v7272_v42 = vpop.eup %7271 }
 0x124   :  { %v266_v43 = vmul.f32 %v7270_v36, %v265_v41  ;;  %v272_v44 = vmul.f32 %v7272_v42, %v260_v37  ;;  %vm278_vm5 = vweird.f32 %v7272_v42  ;;  %v515_v37 = vld [vmem:[%s8040_s24 + $0x20] sm:$0xff]  ;;  %v451_v41 = vld [vmem:[%s7996_s11 + $0x68] sm:$0xff] }
 0x125   :  { %vm279_vm7 = vmor %vm277_vm6, %vm278_vm5  ;;  %534 = vmatpush.msrb.mxu3 %v515_v37 }
 0x126   :  { %v273_v47 = vmul.f32 %v7272_v42, %v272_v44  ;;  %v270_v48 = vsel %vm269_vm4, %v7270_v36, %v266_v43  ;;  %v475_v36 = vld [vmem:[%s8045_s28 + $0x28] sm:$0xff]  ;;  %v472_v43 = vld [vmem:[%s8045_s28 + $0x10] sm:$0xff] }
 0x127   :  { %v281_v49 = vmul.f32 %v270_v48, %v257_v45  ;;  %498 = vmatpush.msrb.mxu2 %v475_v36  ;;  %535 = vmatpush.msrb.mxu3 %v514_v39  ;;  %v512_v44 = vld [vmem:[%s8040_s24 + $0x8] sm:$0xff]  ;;  %v461_v36 = vld [vmem:[%s7996_s11 + $0xb8] sm:$0xff] }
 0x128   :  { %v274_v51 = vmul.f32 0.5, %v273_v47  ;;  %v471_v45 = vld [vmem:[%s8045_s28 + $0x8] sm:$0xff]  ;;  %v470_v47 = vld [vmem:[%s8045_s28] sm:$0xff] }
 0x129   :  { %v286_v52 = vmul.f32 %v7236_v46, %v281_v49  ;;  %499 = vmatpush.msrb.mxu2 %v474_v38  ;;  %v452_v49 = vld [vmem:[%s7996_s11 + $0x70] sm:$0xff]  ;;  %v462_v38 = vld [vmem:[%s7996_s11 + $0xc0] sm:$0xff]  ;;  %v463_v39 = vld [vmem:[%s7996_s11 + $0xc8] sm:$0xff] }
 0x12a   :  { %v275_v53 = vsub.f32 1.5, %v274_v51 }
 0x12b   :  { %v291_v54 = vadd.f32 %v7237_v50, %v286_v52  ;;  %500 = vmatpush.msrb.mxu2 %v473_v40 }
 0x12c   :  { %v276_v55 = vmul.f32 %v7272_v42, %v275_v53 }
 0x12d   :  { %v293_v57 = vmax.f32 %v291_v54, 0.0  ;;  %501 = vmatpush.msrb.mxu2 %v472_v43  ;;  %v465_v43 = vld [vmem:[%s7996_s11 + $0xd8] sm:$0xff] }
 0x12e   :  { %v280_v58 = vsel %vm279_vm7, %v7272_v42, %v276_v55  ;;  %v513_v42 = vld [vmem:[%s8040_s24 + $0x10] sm:$0xff]  ;;  %v453_v55 = vld [vmem:[%s7996_s11 + $0x78] sm:$0xff] }
 0x12f   :  { %6754 = vmatmul.msk.f32.vlgmr.msra.gmra.mxu3 %vm192_vm1, %v293_v57  ;;  %v282_v59 = vmul.f32 %v280_v58, %v258_v56  ;;  %502 = vmatpush.msrb.mxu2 %v471_v45  ;;  %v466_v45 = vld [vmem:[%s7996_s11 + $0xe0] sm:$0xff] }
 0x130   :  { %536 = vmatpush.msrb.mxu3 %v513_v42 }
 0x131   :  { %v287_v60 = vmul.f32 %v7236_v46, %v282_v59  ;;  %v511_v46 = vld [vmem:[%s8040_s24] sm:$0xff]  ;;  %503 = vmatpush.msrb.mxu2 %v470_v47  ;;  %v467_v47 = vld [vmem:[%s7996_s11 + $0xe8] sm:$0xff] }
 0x132   :  { %537 = vmatpush.msrb.mxu3 %v512_v44 }
 0x133   :  { %v292_v61 = vadd.f32 %v7237_v50, %v287_v60 }
 0x134   :  { %538 = vmatpush.msrb.mxu3 %v511_v46 }
 0x135   :  { %v294_v62 = vmax.f32 %v292_v61, 0.0 }
 0x136   :  { %1919 = vmatpush.msra.mxu3 %v7886_v3 }
 0x137   :  { %6755 = vmatmul.msk.f32.gmra.mxu3 %vm192_vm1, %v294_v62 }
 0x138   :  { %1920 = vmatpush.msra.mxu3 %v7889_v4 }
 0x13a   :  { %1921 = vmatpush.msra.mxu3 %v7895_v5 }
 0x13c   :  { %1922 = vmatpush.msra.mxu3 %v7901_v6 }
 0x13e   :  { %1923 = vmatpush.msra.mxu3 %v7907_v7 }
 0x140   :  { %1924 = vmatpush.msra.mxu3 %v7913_v9 }
 0x142   :  { %1925 = vmatpush.msra.mxu3 %v7924_v10 }
 0x144   :  { %1926 = vmatpush.msra.mxu3 %v7929_v11 }
 0x1b2   :  { %v330_v12 = vpop.f32.mrf.mxu3 }
 0x1b3   :  { %v7986_v13 = vadd.f32 %v7238_v8, %v330_v12 }
 0x1b5   :  { %v367_v14 = vmul.f32 %v7986_v13, %v7986_v13  ;;  %6756 = vmatmul.msk.f32.vlgmr.msrb.gmra.mxu0 %vm192_vm1, %v7986_v13 }
 0x1b7   :  { %6758 = vmatmul.msk.f32.vlgmr.msrb.gmra.mxu1 %vm192_vm1, %v367_v14 }
 0x1ba   :  { %v333_v15 = vpop.f32.mrf.mxu3 }
 0x1bb   :  { %v7998_v16 = vadd.f32 %v7238_v8, %v333_v15  ;;  %v7239_v15 = vld [vmem:[%s8010_s16] ss:$0 sm:$0xff]  ;;  %s7853_s16 = smov 28  }
 0x1bc   :  { %s10629_s19 = sld [smem:[%s10765_s0 + %s7853_s16]]  }
 0x1bd   :  { %6757 = vmatmul.msk.f32.gmra.mxu0 %vm192_vm1, %v7998_v16  ;;  %v368_v17 = vmul.f32 %v7998_v16, %v7998_v16 }
 0x1bf   :  { %6759 = vmatmul.msk.f32.gmra.mxu1 %vm192_vm1, %v368_v17 }
 0x1c5   :  { %6764 = vmatmul.msk.f32.vlgmr.msra.gmra.mxu0 %vm550_vm8, %v438_v18 }
 0x1cd   :  { %6765 = vmatmul.msk.f32.gmra.mxu0 %vm550_vm8, %v439_v19  ;;  %v455_v19 = vld [vmem:[%s7996_s11 + $0x88] sm:$0xff] }
 0x1d5   :  { %6766 = vmatmul.msk.f32.gmra.mxu0 %vm550_vm8, %v440_v20 }
 0x1dd   :  { %6767 = vmatmul.msk.f32.gmra.mxu0 %vm550_vm8, %v441_v21  ;;  %v7240_v21 = vld [vmem:[%s8015_s20] ss:$0 sm:$0xff]  ;;  %s7854_s20 = smov 31  }
 0x1de   :  { %s10634_s23 = sld [smem:[%s10765_s0 + %s7854_s20]]  }
 0x1e5   :  { %6768 = vmatmul.msk.f32.gmra.mxu0 %vm550_vm8, %v442_v22 }
 0x1ed   :  { %6769 = vmatmul.msk.f32.gmra.mxu0 %vm550_vm8, %v443_v23 }
 0x1f5   :  { %6770 = vmatmul.msk.f32.gmra.mxu0 %vm550_vm8, %v444_v24 }
 0x1fd   :  { %6771 = vmatmul.msk.f32.gmra.mxu0 %vm550_vm8, %v445_v25 }
 0x205   :  { %6772 = vmatmul.msk.f32.gmra.mxu0 %vm550_vm8, %v446_v26 }
 0x20d   :  { %6773 = vmatmul.msk.f32.gmra.mxu0 %vm550_vm8, %v447_v27  ;;  %v456_v27 = vld [vmem:[%s7996_s11 + $0x90] sm:$0xff] }
 0x215   :  { %6774 = vmatmul.msk.f32.gmra.mxu0 %vm550_vm8, %v448_v28 }
 0x21d   :  { %6775 = vmatmul.msk.f32.gmra.mxu0 %vm550_vm8, %v449_v29 }
 0x225   :  { %6776 = vmatmul.msk.f32.gmra.mxu0 %vm550_vm8, %v450_v32  ;;  %v458_v32 = vld [vmem:[%s7996_s11 + $0xa0] sm:$0xff] }
 0x22d   :  { %6777 = vmatmul.msk.f32.gmra.mxu0 %vm550_vm8, %v451_v41  ;;  %v464_v41 = vld [vmem:[%s7996_s11 + $0xd0] sm:$0xff] }
 0x232   :  { %v361_v48 = vpop.f32.mrf.mxu0 }
 0x233   :  { %v398_v50 = vmul.f32 %v361_v48, %v361_v48  ;;  %v402_v14 = vsub.f32 %v7986_v13, %v361_v48  ;;  %v975_v48 = vld [vmem:[%s8143_s12 + $0x38] sm:$0xff] }
 0x234   :  { %v392_v51 = vpop.f32.mrf.mxu1  ;;  %1080 = vmatpush.msra.mxu1 %v975_v48 }
 0x235   :  { %v400_v52 = vsub.f32 %v392_v51, %v398_v50  ;;  %6778 = vmatmul.msk.f32.gmra.mxu0 %vm550_vm8, %v452_v49  ;;  %v468_v49 = vld [vmem:[%s7996_s11 + $0xf0] sm:$0xff] }
 0x236   :  { %v974_v50 = vld [vmem:[%s8143_s12 + $0x30] sm:$0xff] }
 0x237   :  { %v404_v53 = vadd.f32 1e-05, %v400_v52  ;;  %1081 = vmatpush.msra.mxu1 %v974_v50  ;;  %v973_v52 = vld [vmem:[%s8143_s12 + $0x28] sm:$0xff] }
 0x239   :  { %7273 = vrsqrt.f32 %v404_v53  ;;  %vm412_vm10 = vweird.f32 %v404_v53  ;;  %1082 = vmatpush.msra.mxu1 %v973_v52 }
 0x23a   :  { %v364_v54 = vpop.f32.mrf.mxu0 }
 0x23b   :  { %v399_v56 = vmul.f32 %v364_v54, %v364_v54  ;;  %v403_v26 = vsub.f32 %v7998_v16, %v364_v54  ;;  %v457_v16 = vld [vmem:[%s7996_s11 + $0x98] sm:$0xff] }
 0x23c   :  { %v395_v57 = vpop.f32.mrf.mxu1  ;;  %v971_v54 = vld [vmem:[%s8143_s12 + $0x18] sm:$0xff] }
 0x23d   :  { %v401_v58 = vsub.f32 %v395_v57, %v399_v56  ;;  %6779 = vmatmul.msk.f32.gmra.mxu0 %vm550_vm8, %v453_v55  ;;  %v469_v55 = vld [vmem:[%s7996_s11 + $0xf8] sm:$0xff]  ;;  %v970_v56 = vld [vmem:[%s8143_s12 + $0x10] sm:$0xff]  ;;  %v969_v57 = vld [vmem:[%s8143_s12 + $0x8] sm:$0xff] }
 0x23f   :  { %v7274_v59 = vpop.eup %7273  ;;  %v405_v60 = vadd.f32 1e-05, %v401_v58 }
 0x240   :  { %v407_v61 = vmul.f32 %v7274_v59, %v404_v53  ;;  %vm413_vm9 = vweird.f32 %v7274_v59  ;;  %v972_v53 = vld [vmem:[%s8143_s12 + $0x20] sm:$0xff] }
 0x241   :  { %7275 = vrsqrt.f32 %v405_v60  ;;  %vm414_vm11 = vmor %vm412_vm10, %vm413_vm9  ;;  %vm422_vm13 = vweird.f32 %v405_v60  ;;  %1083 = vmatpush.msra.mxu1 %v972_v53 }
 0x242   :  { %v408_v62 = vmul.f32 %v7274_v59, %v407_v61  ;;  %v664_v35 = vpop.f32.mrf.mxu0  ;;  %v7241_v61 = vld [vmem:[%s8091_s2] ss:$0 sm:$0xff] }
 0x243   :  { %1084 = vmatpush.msra.mxu1 %v971_v54 }
 0x244   :  { %v409_v0 = vmul.f32 0.5, %v408_v62 }
 0x245   :  { %6780 = vmatmul.msk.f32.gmra.mxu0 %vm550_vm8, %v454_v63  ;;  %1085 = vmatpush.msra.mxu1 %v970_v56 }
 0x246   :  { %v410_v1 = vsub.f32 1.5, %v409_v0 }
 0x247   :  { %v7276_v2 = vpop.eup %7275  ;;  %1086 = vmatpush.msra.mxu1 %v969_v57 }
 0x248   :  { %v411_v8 = vmul.f32 %v7274_v59, %v410_v1  ;;  %v417_v12 = vmul.f32 %v7276_v2, %v405_v60  ;;  %vm423_vm12 = vweird.f32 %v7276_v2  ;;  %v8175_v60 = vld [vmem:[%s8096_s6] ss:$0 sm:$0xff] }
 0x249   :  { %vm424_vm14 = vmor %vm422_vm13, %vm423_vm12 }
 0x24a   :  { %v415_v17 = vsel %vm414_vm11, %v7274_v59, %v411_v8  ;;  %v418_v18 = vmul.f32 %v7276_v2, %v417_v12  ;;  %v8123_v37 = vpop.f32.mrf.mxu0  ;;  %v968_v59 = vld [vmem:[%s8143_s12] sm:$0xff] }
 0x24b   :  { %v426_v20 = vmul.f32 %v415_v17, %v402_v14  ;;  %1087 = vmatpush.msra.mxu1 %v968_v59 }
 0x24c   :  { %v419_v22 = vmul.f32 0.5, %v418_v18 }
 0x24d   :  { %6781 = vmatmul.msk.f32.gmra.mxu0 %vm550_vm8, %v455_v19  ;;  %v431_v23 = vmul.f32 %v7239_v15, %v426_v20  ;;  %3365 = vmatpush.msrb.mxu1 %v7886_v3 }
 0x24e   :  { %v420_v24 = vsub.f32 1.5, %v419_v22 }
 0x24f   :  { %v8098_v13 = vadd.f32 %v7240_v21, %v431_v23  ;;  %3366 = vmatpush.msrb.mxu1 %v7889_v4 }
 0x250   :  { %v421_v25 = vmul.f32 %v7276_v2, %v420_v24 }
 0x251   :  { %6760 = vmatmul.msk.f32.vlgmr.msrb.gmra.mxu2 %vm192_vm1, %v8098_v13  ;;  %6762 = vmatmul.msk.f32.vlgmr.msrb.gmra.mxu3 %vm192_vm1, %v8098_v13 }
 0x252   :  { %v425_v28 = vsel %vm424_vm14, %v7276_v2, %v421_v25  ;;  %v8128_v40 = vpop.f32.mrf.mxu0  ;;  %3367 = vmatpush.msrb.mxu1 %v7895_v5 }
 0x253   :  { %v427_v29 = vmul.f32 %v425_v28, %v403_v26 }
 0x254   :  { %3368 = vmatpush.msrb.mxu1 %v7901_v6 }
 0x255   :  { %6782 = vmatmul.msk.f32.gmra.mxu0 %vm550_vm8, %v456_v27  ;;  %v432_v30 = vmul.f32 %v7239_v15, %v427_v29 }
 0x256   :  { %3369 = vmatpush.msrb.mxu1 %v7907_v7 }
 0x257   :  { %v8107_v31 = vadd.f32 %v7240_v21, %v432_v30 }
 0x258   :  { %3370 = vmatpush.msrb.mxu1 %v7913_v9 }
 0x259   :  { %6761 = vmatmul.msk.f32.gmra.mxu2 %vm192_vm1, %v8107_v31  ;;  %6763 = vmatmul.msk.f32.gmra.mxu3 %vm192_vm1, %v8107_v31 }
 0x25a   :  { %v8132_v42 = vpop.f32.mrf.mxu0  ;;  %3371 = vmatpush.msrb.mxu1 %v7924_v10 }
 0x25c   :  { %3372 = vmatpush.msrb.mxu1 %v7929_v11 }
 0x25d   :  { %6783 = vmatmul.msk.f32.gmra.mxu0 %vm550_vm8, %v457_v16 }
 0x262   :  { %v8137_v44 = vpop.f32.mrf.mxu0 }
 0x265   :  { %6784 = vmatmul.msk.f32.gmra.mxu0 %vm550_vm8, %v458_v32 }
 0x26a   :  { %v8146_v46 = vpop.f32.mrf.mxu0 }
 0x26d   :  { %6785 = vmatmul.msk.f32.gmra.mxu0 %vm550_vm8, %v459_v33 }
 0x272   :  { %v8153_v51 = vpop.f32.mrf.mxu0 }
 0x275   :  { %6786 = vmatmul.msk.f32.gmra.mxu0 %vm550_vm8, %v460_v34 }
 0x27a   :  { %v8162_v58 = vpop.f32.mrf.mxu0 }
 0x27d   :  { %6787 = vmatmul.msk.f32.gmra.mxu0 %vm550_vm8, %v461_v36 }
 0x282   :  { %v688_v17 = vpop.f32.mrf.mxu0 }
 0x285   :  { %6788 = vmatmul.msk.f32.gmra.mxu0 %vm550_vm8, %v462_v38 }
 0x28a   :  { %v691_v23 = vpop.f32.mrf.mxu0 }
 0x28d   :  { %6789 = vmatmul.msk.f32.gmra.mxu0 %vm550_vm8, %v463_v39 }
 0x292   :  { %v694_v16 = vpop.f32.mrf.mxu0 }
 0x295   :  { %6790 = vmatmul.msk.f32.gmra.mxu0 %vm550_vm8, %v464_v41 }
 0x29a   :  { %v697_v38 = vpop.f32.mrf.mxu0 }
 0x29d   :  { %6791 = vmatmul.msk.f32.gmra.mxu0 %vm550_vm8, %v465_v43 }
 0x2a5   :  { %6792 = vmatmul.msk.f32.gmra.mxu0 %vm550_vm8, %v466_v45 }
 0x2ad   :  { %6793 = vmatmul.msk.f32.gmra.mxu0 %vm550_vm8, %v467_v47  ;;  %v700_v47 = vpop.f32.mrf.mxu0 }
 0x2b5   :  { %6794 = vmatmul.msk.f32.gmra.mxu0 %vm550_vm8, %v468_v49 }
 0x2bd   :  { %6795 = vmatmul.msk.f32.gmra.mxu0 %vm550_vm8, %v469_v55 }
 0x2d4   :  { %v505_v62 = vpop.f32.mrf.mxu2  ;;  %v540_v63 = vpop.f32.mrf.mxu3 }
 0x2d5   :  { %v8179_v3 = vadd.f32 %v8175_v60, %v540_v63  ;;  %v8181_v4 = vadd.f32 %v7241_v61, %v505_v62 }
 0x2d7   :  { %v776_v5 = vperm.slane %v8179_v3, 0  ;;  %v762_v9 = vrot.slane %v8179_v3, 1  ;;  %v763_v22 = vrot.slane %v8179_v3, 2  ;;  %v764_v34 = vrot.slane %v8179_v3, 3 }
 0x2d8   :  { %v765_v45 = vrot.slane %v8179_v3, 4  ;;  %v766_v57 = vrot.slane %v8179_v3, 5 }
 0x2d9   :  { %v808_v6 = vadd.f32 %v776_v5, %v8181_v4  ;;  %v777_v8 = vperm.slane %v762_v9, 0  ;;  %v778_v26 = vperm.slane %v763_v22, 0 }
 0x2da   :  { %v780_v49 = vperm.slane %v765_v45, 0 }
 0x2db   :  { %v840_v7 = vadd.f32 %v808_v6, %v664_v35  ;;  %v810_v15 = vadd.f32 %v777_v8, %v8181_v4  ;;  %v812_v28 = vadd.f32 %v778_v26, %v8181_v4 }
 0x2dc   :  { %v508_v10 = vpop.f32.mrf.mxu2  ;;  %v816_v52 = vadd.f32 %v780_v49, %v8181_v4 }
 0x2dd   :  { %v8186_v0 = vadd.f32 %v7241_v61, %v508_v10  ;;  %vm872_vm15 = vcmp.gt.f32.partialorder %v840_v7, 0.0  ;;  %v904_v11 = vmul.f32 0.2, %v840_v7  ;;  %v842_v19 = vadd.f32 %v810_v15, %v8128_v40 }
 0x2de   :  { %v844_v30 = vadd.f32 %v812_v28, %v8137_v44  ;;  %v848_v54 = vadd.f32 %v816_v52, %v688_v17  ;;  %v781_v61 = vperm.slane %v766_v57, 0 }
 0x2df   :  { %v936_v1 = vsel %vm872_vm15, %v840_v7, %v904_v11  ;;  %v809_v2 = vadd.f32 %v776_v5, %v8186_v0  ;;  %v906_v20 = vmul.f32 0.2, %v842_v19  ;;  %v811_v21 = vadd.f32 %v777_v8, %v8186_v0 }
 0x2e0   :  { %6796 = vmatmul.msk.f32.vlgmr.msra.gmra.mxu1 %vm192_vm1, %v936_v1  ;;  %vm874_vm2 = vcmp.gt.f32.partialorder %v842_v19, 0.0  ;;  %v908_v32 = vmul.f32 0.2, %v844_v30  ;;  %v813_v33 = vadd.f32 %v778_v26, %v8186_v0  ;;  %vm876_vm4 = vcmp.gt.f32.partialorder %v844_v30, 0.0 }
 0x2e1   :  { %v841_v12 = vadd.f32 %v809_v2, %v8123_v37  ;;  %v938_v24 = vsel %vm874_vm2, %v842_v19, %v906_v20  ;;  %v843_v25 = vadd.f32 %v811_v21, %v8132_v42  ;;  %v779_v37 = vperm.slane %v764_v34, 0 }
 0x2e2   :  { %v940_v35 = vsel %vm876_vm4, %v844_v30, %v908_v32  ;;  %v845_v36 = vadd.f32 %v813_v33, %v8146_v46  ;;  %v912_v55 = vmul.f32 0.2, %v848_v54  ;;  %v817_v56 = vadd.f32 %v780_v49, %v8186_v0  ;;  %v543_v32 = vpop.f32.mrf.mxu3 }
 0x2e3   :  { %v905_v14 = vmul.f32 0.2, %v841_v12  ;;  %vm873_vm0 = vcmp.gt.f32.partialorder %v841_v12, 0.0  ;;  %v907_v27 = vmul.f32 0.2, %v843_v25  ;;  %vm875_vm3 = vcmp.gt.f32.partialorder %v843_v25, 0.0 }
 0x2e4   :  { %v909_v39 = vmul.f32 0.2, %v845_v36  ;;  %v814_v40 = vadd.f32 %v779_v37, %v8181_v4  ;;  %vm877_vm5 = vcmp.gt.f32.partialorder %v845_v36, 0.0  ;;  %v815_v44 = vadd.f32 %v779_v37, %v8186_v0 }
 0x2e5   :  { %v937_v18 = vsel %vm873_vm0, %v841_v12, %v905_v14  ;;  %v939_v29 = vsel %vm875_vm3, %v843_v25, %v907_v27  ;;  %vm880_vm9 = vcmp.gt.f32.partialorder %v848_v54, 0.0  ;;  %v818_v5 = vadd.f32 %v781_v61, %v8181_v4 }
 0x2e6   :  { %v941_v41 = vsel %vm877_vm5, %v845_v36, %v909_v39  ;;  %v846_v42 = vadd.f32 %v814_v40, %v8153_v51  ;;  %v847_v48 = vadd.f32 %v815_v44, %v8162_v58  ;;  %v703_v51 = vpop.f32.mrf.mxu0  ;;  %v944_v59 = vsel %vm880_vm9, %v848_v54, %v912_v55 }
 0x2e7   :  { %v849_v58 = vadd.f32 %v817_v56, %v691_v23  ;;  %v850_v7 = vadd.f32 %v818_v5, %v694_v16  ;;  %v819_v11 = vadd.f32 %v781_v61, %v8186_v0  ;;  %v767_v1 = vrot.slane %v8179_v3, 6 }
 0x2e8   :  { %6797 = vmatmul.msk.f32.gmra.mxu1 %vm192_vm1, %v937_v18  ;;  %v910_v43 = vmul.f32 0.2, %v846_v42  ;;  %vm878_vm6 = vcmp.gt.f32.partialorder %v846_v42, 0.0  ;;  %v911_v50 = vmul.f32 0.2, %v847_v48  ;;  %vm879_vm7 = vcmp.gt.f32.partialorder %v847_v48, 0.0 }
 0x2e9   :  { %v913_v63 = vmul.f32 0.2, %v849_v58  ;;  %vm881_vm10 = vcmp.gt.f32.partialorder %v849_v58, 0.0  ;;  %v914_v10 = vmul.f32 0.2, %v850_v7  ;;  %vm882_vm11 = vcmp.gt.f32.partialorder %v850_v7, 0.0 }
 0x2ea   :  { %v942_v46 = vsel %vm878_vm6, %v846_v42, %v910_v43  ;;  %v943_v53 = vsel %vm879_vm7, %v847_v48, %v911_v50  ;;  %v851_v8 = vadd.f32 %v819_v11, %v697_v38  ;;  %v782_v12 = vperm.slane %v767_v1, 0 }
 0x2eb   :  { %v945_v6 = vsel %vm881_vm10, %v849_v58, %v913_v63  ;;  %v946_v2 = vsel %vm882_vm11, %v850_v7, %v914_v10  ;;  %v768_v20 = vrot.slane %v8179_v3, 7  ;;  %v8235_v3 = vadd.f32 %v8175_v60, %v543_v32 }
 0x2ec   :  { %v915_v14 = vmul.f32 0.2, %v851_v8  ;;  %v820_v15 = vadd.f32 %v782_v12, %v8181_v4  ;;  %vm883_vm12 = vcmp.gt.f32.partialorder %v851_v8, 0.0  ;;  %v821_v22 = vadd.f32 %v782_v12, %v8186_v0 }
 0x2ed   :  { %v784_v37 = vperm.slane %v8235_v3, 0  ;;  %v769_v44 = vrot.slane %v8235_v3, 1  ;;  %v770_v56 = vrot.slane %v8235_v3, 2 }
 0x2ee   :  { %v706_v62 = vpop.f32.mrf.mxu0  ;;  %v947_v18 = vsel %vm883_vm12, %v851_v8, %v915_v14  ;;  %v852_v19 = vadd.f32 %v820_v15, %v700_v47  ;;  %v853_v26 = vadd.f32 %v821_v22, %v703_v51  ;;  %v771_v8 = vrot.slane %v8235_v3, 3 }
 0x2ef   :  { %v824_v40 = vadd.f32 %v784_v37, %v8181_v4  ;;  %v825_v43 = vadd.f32 %v784_v37, %v8186_v0  ;;  %v785_v49 = vperm.slane %v769_v44, 0  ;;  %v786_v61 = vperm.slane %v770_v56, 0 }
 0x2f0   :  { %6798 = vmatmul.msk.f32.gmra.mxu1 %vm192_vm1, %v938_v24  ;;  %v916_v21 = vmul.f32 0.2, %v852_v19  ;;  %vm884_vm13 = vcmp.gt.f32.partialorder %v852_v19, 0.0  ;;  %v783_v24 = vperm.slane %v768_v20, 0  ;;  %v917_v27 = vmul.f32 0.2, %v853_v26 }
 0x2f1   :  { %vm885_vm14 = vcmp.gt.f32.partialorder %v853_v26, 0.0  ;;  %v826_v52 = vadd.f32 %v785_v49, %v8181_v4  ;;  %v829_v12 = vadd.f32 %v786_v61, %v8186_v0 }
 0x2f2   :  { %v948_v25 = vsel %vm884_vm13, %v852_v19, %v916_v21  ;;  %v822_v28 = vadd.f32 %v783_v24, %v8181_v4  ;;  %v823_v34 = vadd.f32 %v783_v24, %v8186_v0 }
 0x2f4   :  { %v854_v30 = vadd.f32 %v822_v28, %v706_v62  ;;  %v772_v28 = vrot.slane %v8235_v3, 4 }
 0x2f6   :  { %v709_v9 = vpop.f32.mrf.mxu0  ;;  %v918_v33 = vmul.f32 0.2, %v854_v30  ;;  %vm886_vm15 = vcmp.gt.f32.partialorder %v854_v30, 0.0 }
 0x2f7   :  { %v855_v36 = vadd.f32 %v823_v34, %v709_v9 }
 0x2f8   :  { %6799 = vmatmul.msk.f32.gmra.mxu1 %vm192_vm1, %v939_v29  ;;  %v949_v29 = vsel %vm885_vm14, %v853_v26, %v917_v27 }
 0x2f9   :  { %v919_v39 = vmul.f32 0.2, %v855_v36  ;;  %vm887_vm0 = vcmp.gt.f32.partialorder %v855_v36, 0.0 }
 0x2fe   :  { %v712_v17 = vpop.f32.mrf.mxu0 }
 0x2ff   :  { %v856_v42 = vadd.f32 %v824_v40, %v712_v17 }
 0x300   :  { %6800 = vmatmul.msk.f32.gmra.mxu1 %vm192_vm1, %v940_v35  ;;  %v950_v35 = vsel %vm886_vm15, %v854_v30, %v918_v33 }
 0x301   :  { %v920_v60 = vmul.f32 0.2, %v856_v42  ;;  %vm888_vm2 = vcmp.gt.f32.partialorder %v856_v42, 0.0 }
 0x306   :  { %v715_v23 = vpop.f32.mrf.mxu0 }
 0x307   :  { %v857_v48 = vadd.f32 %v825_v43, %v715_v23 }
 0x308   :  { %6801 = vmatmul.msk.f32.gmra.mxu1 %vm192_vm1, %v941_v41  ;;  %v951_v41 = vsel %vm887_vm0, %v855_v36, %v919_v39  ;;  %v788_v39 = vperm.slane %v772_v28, 0 }
 0x309   :  { %v921_v50 = vmul.f32 0.2, %v857_v48  ;;  %vm889_vm3 = vcmp.gt.f32.partialorder %v857_v48, 0.0 }
 0x30a   :  { %v832_v44 = vadd.f32 %v788_v39, %v8181_v4 }
 0x30b   :  { %v953_v54 = vsel %vm889_vm3, %v857_v48, %v921_v50 }
 0x30e   :  { %v718_v16 = vpop.f32.mrf.mxu0 }
 0x30f   :  { %v858_v55 = vadd.f32 %v826_v52, %v718_v16 }
 0x310   :  { %6802 = vmatmul.msk.f32.gmra.mxu1 %vm192_vm1, %v942_v46  ;;  %v952_v46 = vsel %vm888_vm2, %v856_v42, %v920_v60 }
 0x311   :  { %v922_v57 = vmul.f32 0.2, %v858_v55  ;;  %vm890_vm4 = vcmp.gt.f32.partialorder %v858_v55, 0.0 }
 0x313   :  { %v954_v62 = vsel %vm890_vm4, %v858_v55, %v922_v57  ;;  %vm1842_vm4 = vcmask 1041409  }
 0x316   :  { %v721_v38 = vpop.f32.mrf.mxu0 }
 0x318   :  { %6803 = vmatmul.msk.f32.gmra.mxu1 %vm192_vm1, %v943_v53 }
 0x31e   :  { %v724_v45 = vpop.f32.mrf.mxu0 }
 0x320   :  { %6804 = vmatmul.msk.f32.gmra.mxu1 %vm192_vm1, %v944_v59  ;;  %v827_v59 = vadd.f32 %v785_v49, %v8186_v0 }
 0x322   :  { %v859_v63 = vadd.f32 %v827_v59, %v721_v38 }
 0x324   :  { %v923_v7 = vmul.f32 0.2, %v859_v63  ;;  %vm891_vm5 = vcmp.gt.f32.partialorder %v859_v63, 0.0 }
 0x326   :  { %v727_v53 = vpop.f32.mrf.mxu0  ;;  %v955_v11 = vsel %vm891_vm5, %v859_v63, %v923_v7  ;;  %vm1845_vm5 = vcmask 1042434  }
 0x327   :  { %v861_v15 = vadd.f32 %v829_v12, %v727_v53 }
 0x328   :  { %6805 = vmatmul.msk.f32.gmra.mxu1 %vm192_vm1, %v945_v6  ;;  %v828_v6 = vadd.f32 %v786_v61, %v8181_v4 }
 0x329   :  { %v925_v19 = vmul.f32 0.2, %v861_v15  ;;  %vm893_vm7 = vcmp.gt.f32.partialorder %v861_v15, 0.0 }
 0x32a   :  { %v860_v10 = vadd.f32 %v828_v6, %v724_v45  ;;  %v773_v6 = vrot.slane %v8235_v3, 5 }
 0x32b   :  { %v957_v24 = vsel %vm893_vm7, %v861_v15, %v925_v19  ;;  %vm1851_vm7 = vcmask 1044484  }
 0x32c   :  { %vm892_vm6 = vcmp.gt.f32.partialorder %v860_v10, 0.0  ;;  %v789_v15 = vperm.slane %v773_v6, 0 }
 0x32e   :  { %v730_v5 = vpop.f32.mrf.mxu0 }
 0x330   :  { %6806 = vmatmul.msk.f32.gmra.mxu1 %vm192_vm1, %v946_v2  ;;  %v924_v2 = vmul.f32 0.2, %v860_v10 }
 0x332   :  { %v956_v17 = vsel %vm892_vm6, %v860_v10, %v924_v2  ;;  %vm1848_vm6 = vcmask 1043459  }
 0x336   :  { %v733_v1 = vpop.f32.mrf.mxu0 }
 0x338   :  { %6807 = vmatmul.msk.f32.gmra.mxu1 %vm192_vm1, %v947_v18  ;;  %v787_v18 = vperm.slane %v771_v8, 0 }
 0x33a   :  { %v830_v20 = vadd.f32 %v787_v18, %v8181_v4  ;;  %v831_v27 = vadd.f32 %v787_v18, %v8186_v0 }
 0x33c   :  { %v862_v23 = vadd.f32 %v830_v20, %v730_v5  ;;  %v863_v34 = vadd.f32 %v831_v27, %v733_v1  ;;  %v833_v5 = vadd.f32 %v788_v39, %v8186_v0  ;;  %v835_v39 = vadd.f32 %v789_v15, %v8186_v0 }
 0x33e   :  { %v736_v21 = vpop.f32.mrf.mxu0  ;;  %vm894_vm9 = vcmp.gt.f32.partialorder %v862_v23, 0.0  ;;  %v927_v42 = vmul.f32 0.2, %v863_v34  ;;  %vm895_vm10 = vcmp.gt.f32.partialorder %v863_v34, 0.0 }
 0x33f   :  { %v864_v49 = vadd.f32 %v832_v44, %v736_v21 }
 0x340   :  { %6808 = vmatmul.msk.f32.gmra.mxu1 %vm192_vm1, %v948_v25  ;;  %v926_v25 = vmul.f32 0.2, %v862_v23  ;;  %v959_v53 = vsel %vm895_vm10, %v863_v34, %v927_v42  ;;  %vm1857_vm10 = vcmask 1046534  }
 0x341   :  { %v928_v61 = vmul.f32 0.2, %v864_v49  ;;  %vm896_vm11 = vcmp.gt.f32.partialorder %v864_v49, 0.0 }
 0x342   :  { %v958_v33 = vsel %vm894_vm9, %v862_v23, %v926_v25  ;;  %vm1854_vm9 = vcmask 1045509  }
 0x343   :  { %v960_v8 = vsel %vm896_vm11, %v864_v49, %v928_v61  ;;  %vm1860_vm11 = vcmask 1047559  }
 0x346   :  { %v739_v16 = vpop.f32.mrf.mxu0 }
 0x347   :  { %v865_v1 = vadd.f32 %v833_v5, %v739_v16 }
 0x348   :  { %6809 = vmatmul.msk.f32.gmra.mxu1 %vm192_vm1, %v949_v29 }
 0x349   :  { %v929_v20 = vmul.f32 0.2, %v865_v1  ;;  %vm897_vm12 = vcmp.gt.f32.partialorder %v865_v1, 0.0 }
 0x350   :  { %6810 = vmatmul.msk.f32.gmra.mxu1 %vm192_vm1, %v950_v35 }
 0x358   :  { %6811 = vmatmul.msk.f32.gmra.mxu1 %vm192_vm1, %v951_v41 }
 0x35d   :  { %v8244_v47 = vpop.f32.mrf.mxu1 }
 0x35e   :  { %v1185_v32 = vsel %vm192_vm1, %v8244_v47, -inf }
 0x360   :  { %6812 = vmatmul.msk.f32.gmra.mxu1 %vm192_vm1, %v952_v46 }
 0x365   :  { %v8248_v51 = vpop.f32.mrf.mxu1 }
 0x366   :  { %v1186_v26 = vsel %vm192_vm1, %v8248_v51, -inf }
 0x367   :  { %v1187_v35 = vmax.f32 %v1185_v32, %v1186_v26  ;;  %v961_v32 = vsel %vm897_vm12, %v865_v1, %v929_v20 }
 0x368   :  { %6813 = vmatmul.msk.f32.gmra.mxu1 %vm192_vm1, %v953_v54  ;;  %v742_v54 = vpop.f32.mrf.mxu0 }
 0x369   :  { %v1188_v60 = vrot.slane %v1187_v35, 4 }
 0x36b   :  { %v1189_v50 = vmax.f32 %v1187_v35, %v1188_v60  ;;  %v774_v60 = vrot.slane %v8235_v3, 6 }
 0x36d   :  { %v8253_v58 = vpop.f32.mrf.mxu1 }
 0x36e   :  { %v1194_v36 = vsel %vm192_vm1, %v8253_v58, -inf }
 0x370   :  { %6814 = vmatmul.msk.f32.gmra.mxu1 %vm192_vm1, %v954_v62  ;;  %v1190_v62 = vrot.slane %v1189_v50, 2 }
 0x372   :  { %v1191_v2 = vmax.f32 %v1189_v50, %v1190_v62 }
 0x374   :  { %v1192_v21 = vrot.slane %v1191_v2, 1 }
 0x375   :  { %v8257_v9 = vpop.f32.mrf.mxu1 }
 0x376   :  { %v1195_v29 = vsel %vm192_vm1, %v8257_v9, -inf }
 0x377   :  { %v1196_v38 = vmax.f32 %v1194_v36, %v1195_v29  ;;  %v1193_v29 = vmax.f32 %v1191_v2, %v1192_v21 }
 0x378   :  { %6815 = vmatmul.msk.f32.gmra.mxu1 %vm192_vm1, %v955_v11 }
 0x379   :  { %v1197_v43 = vrot.slane %v1196_v38, 4 }
 0x37b   :  { %v1198_v55 = vmax.f32 %v1196_v38, %v1197_v43 }
 0x37d   :  { %v8262_v14 = vpop.f32.mrf.mxu1  ;;  %v1199_v63 = vrot.slane %v1198_v55, 2 }
 0x37e   :  { %v1203_v40 = vsel %vm192_vm1, %v8262_v14, -inf }
 0x37f   :  { %v1200_v12 = vmax.f32 %v1198_v55, %v1199_v63 }
 0x380   :  { %6816 = vmatmul.msk.f32.gmra.mxu1 %vm192_vm1, %v956_v17  ;;  %v745_v17 = vpop.f32.mrf.mxu0 }
 0x381   :  { %v1201_v23 = vrot.slane %v1200_v12, 1  ;;  %v867_v44 = vadd.f32 %v835_v39, %v745_v17 }
 0x383   :  { %vm899_vm14 = vcmp.gt.f32.partialorder %v867_v44, 0.0 }
 0x385   :  { %v8266_v22 = vpop.f32.mrf.mxu1 }
 0x386   :  { %v1204_v37 = vsel %vm192_vm1, %v8266_v22, -inf }
 0x387   :  { %v1205_v41 = vmax.f32 %v1203_v40, %v1204_v37  ;;  %v1329_v40 = vsub.f32 %v8244_v47, %v1193_v29 }
 0x388   :  { %6817 = vmatmul.msk.f32.gmra.mxu1 %vm192_vm1, %v957_v24  ;;  %v834_v24 = vadd.f32 %v789_v15, %v8181_v4  ;;  %v748_v42 = vpop.f32.mrf.mxu0 }
 0x389   :  { %v1206_v46 = vrot.slane %v1205_v41, 4 }
 0x38a   :  { %v866_v28 = vadd.f32 %v834_v24, %v742_v54 }
 0x38b   :  { %v1207_v57 = vmax.f32 %v1205_v41, %v1206_v46 }
 0x38c   :  { %v930_v38 = vmul.f32 0.2, %v866_v28  ;;  %vm898_vm13 = vcmp.gt.f32.partialorder %v866_v28, 0.0 }
 0x38d   :  { %v8275_v30 = vpop.f32.mrf.mxu1  ;;  %v1208_v10 = vrot.slane %v1207_v57, 2 }
 0x38e   :  { %v1212_v52 = vsel %vm192_vm1, %v8275_v30, -inf  ;;  %v962_v55 = vsel %vm898_vm13, %v866_v28, %v930_v38 }
 0x38f   :  { %v1209_v18 = vmax.f32 %v1207_v57, %v1208_v10  ;;  %v1330_v57 = vsub.f32 %v8248_v51, %v1193_v29 }
 0x390   :  { %6818 = vmatmul.msk.f32.gmra.mxu1 %vm192_vm1, %v958_v33  ;;  %v1202_v33 = vmax.f32 %v1200_v12, %v1201_v23 }
 0x391   :  { %v1210_v26 = vrot.slane %v1209_v18, 1  ;;  %v1363_v10 = vmul.f32 1.442695, %v1330_v57 }
 0x392   :  { %v1331_v43 = vsub.f32 %v8253_v58, %v1202_v33  ;;  %v1332_v46 = vsub.f32 %v8257_v9, %v1202_v33  ;;  %v931_v58 = vmul.f32 0.2, %v867_v44 }
 0x393   :  { %v1211_v36 = vmax.f32 %v1209_v18, %v1210_v26 }
 0x394   :  { %v1367_v61 = vmul.f32 1.442695, %v1332_v46  ;;  %v963_v1 = vsel %vm899_vm14, %v867_v44, %v931_v58 }
 0x395   :  { %v8287_v45 = vpop.f32.mrf.mxu1  ;;  %v1333_v50 = vsub.f32 %v8262_v14, %v1211_v36  ;;  %v1334_v54 = vsub.f32 %v8266_v22, %v1211_v36 }
 0x396   :  { %v1213_v48 = vsel %vm192_vm1, %v8287_v45, -inf }
 0x397   :  { %v1214_v56 = vmax.f32 %v1212_v52, %v1213_v48  ;;  %v1369_v62 = vmul.f32 1.442695, %v1333_v50  ;;  %v1371_v14 = vmul.f32 1.442695, %v1334_v54 }
 0x398   :  { %6819 = vmatmul.msk.f32.gmra.mxu1 %vm192_vm1, %v959_v53  ;;  %v1361_v53 = vmul.f32 1.442695, %v1329_v40 }
 0x399   :  { %v1215_v59 = vrot.slane %v1214_v56, 4 }
 0x39a   :  { %7277 = vpow2.f32 %v1361_v53 }
 0x39b   :  { %v1216_v11 = vmax.f32 %v1214_v56, %v1215_v59  ;;  %v790_v56 = vperm.slane %v774_v60, 0  ;;  %v1365_v59 = vmul.f32 1.442695, %v1331_v43 }
 0x39d   :  { %v8296_v7 = vpop.f32.mrf.mxu1  ;;  %v1217_v19 = vrot.slane %v1216_v11, 2  ;;  %v836_v6 = vadd.f32 %v790_v56, %v8181_v4  ;;  %7279 = vpow2.f32 %v1365_v59 }
 0x39e   :  { %v1221_v34 = vsel %vm192_vm1, %v8296_v7, -inf  ;;  %7281 = vpow2.f32 %v1367_v61 }
 0x39f   :  { %v1218_v27 = vmax.f32 %v1216_v11, %v1217_v19  ;;  %v868_v2 = vadd.f32 %v836_v6, %v748_v42  ;;  %7283 = vpow2.f32 %v1369_v62 }
 0x3a0   :  { %6820 = vmatmul.msk.f32.gmra.mxu1 %vm192_vm1, %v960_v8  ;;  %v751_v8 = vpop.f32.mrf.mxu0  ;;  %7285 = vpow2.f32 %v1371_v14  ;;  %v8330_v20 = vpop.eup %7277 }
 0x3a1   :  { %v1219_v37 = vrot.slane %v1218_v27, 1  ;;  %7287 = vpow2.f32 %v1363_v10  ;;  %vm900_vm15 = vcmp.gt.f32.partialorder %v868_v2, 0.0  ;;  %v1425_v46 = vsel %vm192_vm1, %v8330_v20, 0.0 }
 0x3a3   :  { %v1220_v52 = vmax.f32 %v1218_v27, %v1219_v37  ;;  %v8332_v23 = vpop.eup %7279 }
 0x3a4   :  { %v8334_v27 = vpop.eup %7281 }
 0x3a5   :  { %v8300_v25 = vpop.f32.mrf.mxu1  ;;  %v1335_v63 = vsub.f32 %v8275_v30, %v1220_v52  ;;  %v1336_v5 = vsub.f32 %v8287_v45, %v1220_v52  ;;  %v8336_v28 = vpop.eup %7283  ;;  %v1435_v36 = vsel %vm192_vm1, %v8334_v27, 0.0 }
 0x3a6   :  { %v1222_v16 = vsel %vm192_vm1, %v8300_v25, -inf }
 0x3a7   :  { %v1223_v35 = vmax.f32 %v1221_v34, %v1222_v16  ;;  %v1373_v12 = vmul.f32 1.442695, %v1335_v63  ;;  %v1375_v15 = vmul.f32 1.442695, %v1336_v5  ;;  %v837_v16 = vadd.f32 %v790_v56, %v8186_v0 }
 0x3a8   :  { %6821 = vmatmul.msk.f32.gmra.mxu1 %vm192_vm1, %v961_v32  ;;  %v775_v32 = vrot.slane %v8235_v3, 7  ;;  %v1443_v3 = vsel %vm192_vm1, %v8336_v28, 0.0 }
 0x3a9   :  { %v1224_v41 = vrot.slane %v1223_v35, 4  ;;  %7289 = vpow2.f32 %v1373_v12  ;;  %v869_v38 = vadd.f32 %v837_v16, %v751_v8 }
 0x3aa   :  { %7291 = vpow2.f32 %v1375_v15  ;;  %v791_v44 = vperm.slane %v775_v32, 0 }
 0x3ab   :  { %v1225_v48 = vmax.f32 %v1223_v35, %v1224_v41  ;;  %v1434_v35 = vsel %vm192_vm1, %v8332_v23, 0.0  ;;  %v754_v41 = vpop.f32.mrf.mxu0  ;;  %vm901_vm0 = vcmp.gt.f32.partialorder %v869_v38, 0.0 }
 0x3ac   :  { %v1436_v50 = vadd.f32 %v1435_v36, %v1434_v35  ;;  %v838_v59 = vadd.f32 %v791_v44, %v8181_v4 }
 0x3ad   :  { %v8312_v49 = vpop.f32.mrf.mxu1  ;;  %v1226_v47 = vrot.slane %v1225_v48, 2 }
 0x3ae   :  { %v1230_v17 = vsel %vm192_vm1, %v8312_v49, -inf  ;;  %v1437_v58 = vrot.slane %v1436_v50, 4  ;;  %v870_v6 = vadd.f32 %v838_v59, %v754_v41 }
 0x3af   :  { %v1227_v9 = vmax.f32 %v1225_v48, %v1226_v47  ;;  %v933_v47 = vmul.f32 0.2, %v869_v38 }
 0x3b0   :  { %6822 = vmatmul.msk.f32.gmra.mxu1 %vm192_vm1, %v962_v55  ;;  %vm902_vm2 = vcmp.gt.f32.partialorder %v870_v6, 0.0 }
 0x3b1   :  { %v1228_v22 = vrot.slane %v1227_v9, 1 }
 0x3b3   :  { %v1229_v51 = vmax.f32 %v1227_v9, %v1228_v22 }
 0x3b5   :  { %v8321_v11 = vpop.f32.mrf.mxu1  ;;  %v1337_v45 = vsub.f32 %v8296_v7, %v1229_v51  ;;  %v1338_v18 = vsub.f32 %v8300_v25, %v1229_v51  ;;  %v932_v7 = vmul.f32 0.2, %v868_v2  ;;  %v8338_v25 = vpop.eup %7285 }
 0x3b6   :  { %v1231_v30 = vsel %vm192_vm1, %v8321_v11, -inf  ;;  %v8344_v34 = vpop.eup %7287  ;;  %v1444_v42 = vsel %vm192_vm1, %v8338_v25, 0.0 }
 0x3b7   :  { %v1232_v19 = vmax.f32 %v1230_v17, %v1231_v30  ;;  %v1377_v21 = vmul.f32 1.442695, %v1337_v45  ;;  %v1379_v24 = vmul.f32 1.442695, %v1338_v18  ;;  %v964_v39 = vsel %vm900_vm15, %v868_v2, %v932_v7  ;;  %v8350_v40 = vpop.eup %7289 }
 0x3b8   :  { %6823 = vmatmul.msk.f32.gmra.mxu1 %vm192_vm1, %v963_v1  ;;  %v8357_v43 = vpop.eup %7291  ;;  %v1426_v48 = vsel %vm192_vm1, %v8344_v34, 0.0  ;;  %v1445_v55 = vadd.f32 %v1444_v42, %v1443_v3  ;;  %v1452_v61 = vsel %vm192_vm1, %v8350_v40, 0.0  ;;  %v965_v1 = vsel %vm901_vm0, %v869_v38, %v933_v47 }
 0x3b9   :  { %v1233_v26 = vrot.slane %v1232_v19, 4  ;;  %7293 = vpow2.f32 %v1377_v21  ;;  %v1427_v56 = vadd.f32 %v1426_v48, %v1425_v46  ;;  %v1453_v9 = vsel %vm192_vm1, %v8357_v43, 0.0 }
 0x3ba   :  { %7295 = vpow2.f32 %v1379_v24  ;;  %v1446_v10 = vrot.slane %v1445_v55, 4  ;;  %v1454_v8 = vadd.f32 %v1453_v9, %v1452_v61  ;;  %v1438_v18 = vadd.f32 %v1437_v58, %v1436_v50 }
 0x3bb   :  { %v1234_v29 = vmax.f32 %v1232_v19, %v1233_v26  ;;  %v1428_v2 = vrot.slane %v1427_v56, 4  ;;  %v934_v19 = vmul.f32 0.2, %v870_v6 }
 0x3bc   :  { %v1447_v21 = vadd.f32 %v1446_v10, %v1445_v55  ;;  %v1455_v26 = vrot.slane %v1454_v8, 4  ;;  %v1439_v36 = vrot.slane %v1438_v18, 2 }
 0x3bd   :  { %v8342_v33 = vpop.f32.mrf.mxu1  ;;  %v1235_v37 = vrot.slane %v1234_v29, 2 }
 0x3be   :  { %v1239_v12 = vsel %vm192_vm1, %v8342_v33, -inf  ;;  %v1456_v41 = vadd.f32 %v1455_v26, %v1454_v8  ;;  %v1440_v50 = vadd.f32 %v1439_v36, %v1438_v18 }
 0x3bf   :  { %v1236_v60 = vmax.f32 %v1234_v29, %v1235_v37  ;;  %v8363_v52 = vpop.eup %7293  ;;  %v1429_v29 = vadd.f32 %v1428_v2, %v1427_v56  ;;  %v1448_v37 = vrot.slane %v1447_v21, 2 }
 0x3c0   :  { %6824 = vmatmul.msk.f32.gmra.mxu1 %vm192_vm1, %v964_v39  ;;  %v8365_v54 = vpop.eup %7295  ;;  %v1461_v63 = vsel %vm192_vm1, %v8363_v52, 0.0  ;;  %v966_v39 = vsel %vm902_vm2, %v870_v6, %v934_v19 }
 0x3c1   :  { %v1237_v53 = vrot.slane %v1236_v60, 1  ;;  %v1462_v14 = vsel %vm192_vm1, %v8365_v54, 0.0  ;;  %v1449_v47 = vadd.f32 %v1448_v37, %v1447_v21 }
 0x3c2   :  { %v1463_v30 = vadd.f32 %v1462_v14, %v1461_v63 }
 0x3c3   :  { %v1238_v57 = vmax.f32 %v1236_v60, %v1237_v53  ;;  %v1430_v60 = vrot.slane %v1429_v29, 2 }
 0x3c4   :  { %v1464_v16 = vrot.slane %v1463_v30, 4 }
 0x3c5   :  { %v8372_v62 = vpop.f32.mrf.mxu1  ;;  %v1339_v5 = vsub.f32 %v8312_v49, %v1238_v57  ;;  %v1340_v22 = vsub.f32 %v8321_v11, %v1238_v57  ;;  %v757_v49 = vpop.f32.mrf.mxu0  ;;  %v839_v11 = vadd.f32 %v791_v44, %v8186_v0  ;;  %v1457_v57 = vrot.slane %v1456_v41, 2 }
 0x3c6   :  { %v1240_v51 = vsel %vm192_vm1, %v8372_v62, -inf  ;;  %v1465_v44 = vadd.f32 %v1464_v16, %v1463_v30  ;;  %v1431_v58 = vadd.f32 %v1430_v60, %v1429_v29 }
 0x3c7   :  { %v1381_v15 = vmul.f32 1.442695, %v1339_v5  ;;  %v1383_v45 = vmul.f32 1.442695, %v1340_v22  ;;  %v1241_v17 = vmax.f32 %v1239_v12, %v1240_v51  ;;  %v871_v7 = vadd.f32 %v839_v11, %v757_v49 }
 0x3c8   :  { %6825 = vmatmul.msk.f32.gmra.mxu1 %vm192_vm1, %v965_v1  ;;  %v1466_v61 = vrot.slane %v1465_v44, 2  ;;  %v1441_v5 = vrot.slane %v1440_v50, 1  ;;  %v1450_v51 = vrot.slane %v1449_v47, 1  ;;  %v1458_v12 = vadd.f32 %v1457_v57, %v1456_v41 }
 0x3c9   :  { %7297 = vpow2.f32 %v1381_v15  ;;  %v1242_v24 = vrot.slane %v1241_v17, 4  ;;  %v935_v42 = vmul.f32 0.2, %v871_v7  ;;  %vm903_vm3 = vcmp.gt.f32.partialorder %v871_v7, 0.0 }
 0x3ca   :  { %7299 = vpow2.f32 %v1383_v45  ;;  %v1467_v15 = vadd.f32 %v1466_v61, %v1465_v44  ;;  %v1432_v49 = vrot.slane %v1431_v58, 1  ;;  %v1442_v11 = vadd.f32 %v1441_v5, %v1440_v50 }
 0x3cb   :  { %v1243_v32 = vmax.f32 %v1241_v17, %v1242_v24  ;;  %v967_v14 = vsel %vm903_vm3, %v871_v7, %v935_v42  ;;  %v1451_v21 = vadd.f32 %v1450_v51, %v1449_v47  ;;  %v1459_v24 = vrot.slane %v1458_v12, 1 }
 0x3cc   :  { %v1468_v7 = vrot.slane %v1467_v15, 1  ;;  %v1433_v29 = vadd.f32 %v1432_v49, %v1431_v58 }
 0x3cd   :  { %v8386_v35 = vpop.f32.mrf.mxu1  ;;  %v1244_v38 = vrot.slane %v1243_v32, 2  ;;  %v1460_v36 = vadd.f32 %v1459_v24, %v1458_v12 }
 0x3ce   :  { %v1248_v6 = vsel %vm192_vm1, %v8386_v35, -inf }
 0x3cf   :  { %v8389_v3 = vpop.eup %7297  ;;  %v1245_v46 = vmax.f32 %v1243_v32, %v1244_v38 }
 0x3d0   :  { %6826 = vmatmul.msk.f32.gmra.mxu1 %vm192_vm1, %v966_v39  ;;  %v8391_v48 = vpop.eup %7299  ;;  %v1470_v53 = vsel %vm192_vm1, %v8389_v3, 0.0  ;;  %v1469_v39 = vadd.f32 %v1468_v7, %v1467_v15 }
 0x3d1   :  { %v1471_v55 = vsel %vm192_vm1, %v8391_v48, 0.0  ;;  %v1246_v56 = vrot.slane %v1245_v46, 1 }
 0x3d2   :  { %v1472_v59 = vadd.f32 %v1471_v55, %v1470_v53 }
 0x3d3   :  { %v1247_v9 = vmax.f32 %v1245_v46, %v1246_v56 }
 0x3d4   :  { %v1473_v22 = vrot.slane %v1472_v59, 4 }
 0x3d5   :  { %v1134_v63 = vpop.f32.mrf.mxu1  ;;  %v1341_v1 = vsub.f32 %v8342_v33, %v1247_v9  ;;  %v1342_v2 = vsub.f32 %v8372_v62, %v1247_v9 }
 0x3d6   :  { %v1249_v10 = vsel %vm192_vm1, %v1134_v63, -inf  ;;  %v1474_v30 = vadd.f32 %v1473_v22, %v1472_v59 }
 0x3d7   :  { %v1250_v8 = vmax.f32 %v1248_v6, %v1249_v10  ;;  %v1385_v45 = vmul.f32 1.442695, %v1341_v1  ;;  %v1387_v17 = vmul.f32 1.442695, %v1342_v2 }
 0x3d8   :  { %6827 = vmatmul.msk.f32.gmra.mxu1 %vm192_vm1, %v967_v14  ;;  %v1475_v18 = vrot.slane %v1474_v30, 2 }
 0x3d9   :  { %v1251_v19 = vrot.slane %v1250_v8, 4  ;;  %7301 = vpow2.f32 %v1385_v45 }
 0x3da   :  { %v1476_v26 = vadd.f32 %v1475_v18, %v1474_v30  ;;  %7303 = vpow2.f32 %v1387_v17 }
 0x3db   :  { %v1252_v33 = vmax.f32 %v1250_v8, %v1251_v19  ;;  %7305 = vrcp.f32 %v1442_v11 }
 0x3dc   :  { %v1477_v16 = vrot.slane %v1476_v26, 1  ;;  %7307 = vrcp.f32 %v1451_v21 }
 0x3dd   :  { %v8403_v62 = vpop.f32.mrf.mxu1  ;;  %v1253_v32 = vrot.slane %v1252_v33, 2  ;;  %7309 = vrcp.f32 %v1433_v29 }
 0x3de   :  { %v1478_v42 = vadd.f32 %v1477_v16, %v1476_v26  ;;  %7311 = vrcp.f32 %v1460_v36 }
 0x3df   :  { %v1254_v37 = vmax.f32 %v1252_v33, %v1253_v32  ;;  %v8405_v38 = vpop.eup %7301  ;;  %7313 = vrcp.f32 %v1469_v39 }
 0x3e0   :  { %v8407_v41 = vpop.eup %7303  ;;  %v1479_v60 = vsel %vm192_vm1, %v8405_v38, 0.0  ;;  %7315 = vrcp.f32 %v1478_v42 }
 0x3e1   :  { %v1255_v44 = vrot.slane %v1254_v37, 1  ;;  %v1480_v46 = vsel %vm192_vm1, %v8407_v41, 0.0  ;;  %v7306_v50 = vpop.eup %7305 }
 0x3e2   :  { %v1481_v53 = vadd.f32 %v1480_v46, %v1479_v60  ;;  %v7308_v56 = vpop.eup %7307  ;;  %v1587_v61 = vmul.f32 %v7306_v50, %v8332_v23  ;;  %v1588_v14 = vmul.f32 %v7306_v50, %v8334_v27 }
 0x3e3   :  { %v1256_v47 = vmax.f32 %v1254_v37, %v1255_v44  ;;  %v7310_v9 = vpop.eup %7309  ;;  %v1589_v10 = vmul.f32 %v7308_v56, %v8336_v28  ;;  %v1590_v12 = vmul.f32 %v7308_v56, %v8338_v25 }
 0x3e4   :  { %v1482_v57 = vrot.slane %v1481_v53, 4  ;;  %v7312_v51 = vpop.eup %7311  ;;  %v1585_v8 = vmul.f32 %v7310_v9, %v8330_v20  ;;  %v1586_v23 = vmul.f32 %v7310_v9, %v8344_v34  ;;  %v1620_v27 = vmul.f32 %v1588_v14, %v8186_v0 }
 0x3e5   :  { %v8413_v55 = vpop.f32.mrf.mxu1  ;;  %v1343_v59 = vsub.f32 %v8386_v35, %v1256_v47  ;;  %v1344_v58 = vsub.f32 %v1134_v63, %v1256_v47  ;;  %v7314_v2 = vpop.eup %7313  ;;  %v1619_v63 = vmul.f32 %v1587_v61, %v8181_v4  ;;  %v1621_v15 = vmul.f32 %v1589_v10, %v8181_v4 }
 0x3e6   :  { %v1483_v5 = vadd.f32 %v1482_v57, %v1481_v53  ;;  %v7316_v35 = vpop.eup %7315  ;;  %v1591_v28 = vmul.f32 %v7312_v51, %v8350_v40  ;;  %v1592_v45 = vmul.f32 %v7312_v51, %v8357_v43  ;;  %v1593_v20 = vmul.f32 %v7314_v2, %v8363_v52 }
 0x3e7   :  { %v1389_v22 = vmul.f32 1.442695, %v1343_v59  ;;  %v1391_v6 = vmul.f32 1.442695, %v1344_v58  ;;  %v1594_v25 = vmul.f32 %v7314_v2, %v8365_v54  ;;  %v1617_v34 = vmul.f32 %v1585_v8, %v8181_v4 }
 0x3e8   :  { %v1484_v1 = vrot.slane %v1483_v5, 2  ;;  %v1622_v11 = vmul.f32 %v1590_v12, %v8186_v0  ;;  %v1595_v18 = vmul.f32 %v7316_v35, %v8389_v3  ;;  %v1596_v19 = vmul.f32 %v7316_v35, %v8391_v48 }
 0x3e9   :  { %7317 = vpow2.f32 %v1389_v22  ;;  %v1618_v40 = vmul.f32 %v1586_v23, %v8186_v0  ;;  %v1658_v43 = vsel %vm192_vm1, %v1619_v63, 0.0  ;;  %v1659_v24 = vsel %vm192_vm1, %v1620_v27, 0.0 }
 0x3ea   :  { %7319 = vpow2.f32 %v1391_v6  ;;  %v1485_v30 = vadd.f32 %v1484_v1, %v1483_v5  ;;  %v1667_v54 = vsel %vm192_vm1, %v1621_v15, 0.0  ;;  %v1623_v33 = vmul.f32 %v1591_v28, %v8181_v4 }
 0x3eb   :  { %v1624_v7 = vmul.f32 %v1592_v45, %v8186_v0  ;;  %v1625_v48 = vmul.f32 %v1593_v20, %v8181_v4  ;;  %v1626_v29 = vmul.f32 %v1594_v25, %v8186_v0  ;;  %v1668_v32 = vsel %vm192_vm1, %v1622_v11, 0.0 }
 0x3ec   :  { %v1486_v49 = vrot.slane %v1485_v30, 1  ;;  %v1627_v36 = vmul.f32 %v1595_v18, %v8181_v4  ;;  %v1628_v37 = vmul.f32 %v1596_v19, %v8186_v0  ;;  %v1649_v42 = vsel %vm192_vm1, %v1617_v34, 0.0 }
 0x3ed   :  { %v8427_v17 = vpop.f32.mrf.mxu1  ;;  %v1650_v60 = vsel %vm192_vm1, %v1618_v40, 0.0  ;;  %v1660_v44 = vadd.f32 %v1659_v24, %v1658_v43  ;;  %v1676_v46 = vsel %vm192_vm1, %v1623_v33, 0.0  ;;  %v1677_v50 = vsel %vm192_vm1, %v1624_v7, 0.0 }
 0x3ee   :  { %v1487_v52 = vadd.f32 %v1486_v49, %v1485_v30  ;;  %v1669_v56 = vadd.f32 %v1668_v32, %v1667_v54  ;;  %v1685_v57 = vsel %vm192_vm1, %v1625_v48, 0.0  ;;  %v1686_v59 = vsel %vm192_vm1, %v1626_v29, 0.0 }
 0x3ef   :  { %v8435_v21 = vpop.eup %7317  ;;  %v1651_v58 = vadd.f32 %v1650_v60, %v1649_v42  ;;  %v1694_v61 = vsel %vm192_vm1, %v1627_v36, 0.0  ;;  %v1695_v9 = vsel %vm192_vm1, %v1628_v37, 0.0  ;;  %v1661_v22 = vrot.slane %v1660_v44, 4  ;;  %v1820_v37 = vld [vmem:[%s8475_s21 + $0x38] sm:$0xff] }
 0x3f0   :  { %v8440_v26 = vpop.eup %7319  ;;  %v1488_v3 = vsel %vm192_vm1, %v8435_v21, 0.0  ;;  %7321 = vrcp.f32 %v1487_v52  ;;  %v1678_v6 = vadd.f32 %v1677_v50, %v1676_v46  ;;  %v1687_v10 = vadd.f32 %v1686_v59, %v1685_v57  ;;  %1888 = vmatpush.msra.mxu2 %v1820_v37 }
 0x3f1   :  { %v1489_v16 = vsel %vm192_vm1, %v8440_v26, 0.0  ;;  %v1670_v8 = vrot.slane %v1669_v56, 4  ;;  %v1696_v12 = vadd.f32 %v1695_v9, %v1694_v61  ;;  %v1652_v35 = vrot.slane %v1651_v58, 4  ;;  %v1818_v9 = vld [vmem:[%s8475_s21 + $0x28] sm:$0xff] }
 0x3f2   :  { %v1490_v39 = vadd.f32 %v1489_v16, %v1488_v3  ;;  %v1662_v30 = vadd.f32 %v1661_v22, %v1660_v44  ;;  %v1679_v15 = vrot.slane %v1678_v6, 4  ;;  %v1688_v28 = vrot.slane %v1687_v10, 4 }
 0x3f3   :  { %v1697_v49 = vrot.slane %v1696_v12, 4  ;;  %v1653_v11 = vadd.f32 %v1652_v35, %v1651_v58 }
 0x3f4   :  { %v1491_v53 = vrot.slane %v1490_v39, 4  ;;  %v1680_v19 = vadd.f32 %v1679_v15, %v1678_v6  ;;  %v1663_v43 = vrot.slane %v1662_v30, 2  ;;  %v1689_v24 = vadd.f32 %v1688_v28, %v1687_v10 }
 0x3f5   :  { %v8458_v47 = vpop.f32.mrf.mxu1  ;;  %v1698_v54 = vadd.f32 %v1697_v49, %v1696_v12  ;;  %v1654_v33 = vrot.slane %v1653_v11, 2  ;;  %v1258_v10 = vsel %vm192_vm1, %v8413_v55, -inf }
 0x3f6   :  { %v1492_v14 = vadd.f32 %v1491_v53, %v1490_v39  ;;  %v7322_v5 = vpop.eup %7321  ;;  %v1681_v3 = vrot.slane %v1680_v19, 2  ;;  %v1664_v48 = vadd.f32 %v1663_v43, %v1662_v30  ;;  %v1690_v29 = vrot.slane %v1689_v24, 2  ;;  %v1819_v53 = vld [vmem:[%s8475_s21 + $0x30] sm:$0xff] }
 0x3f7   :  { %v1597_v51 = vmul.f32 %v7322_v5, %v8405_v38  ;;  %v1598_v1 = vmul.f32 %v7322_v5, %v8407_v41  ;;  %v1671_v41 = vadd.f32 %v1670_v8, %v1669_v56  ;;  %v1699_v36 = vrot.slane %v1698_v54, 2  ;;  %1889 = vmatpush.msra.mxu2 %v1819_v53 }
 0x3f8   :  { %v1493_v2 = vrot.slane %v1492_v14, 2  ;;  %v1655_v42 = vadd.f32 %v1654_v33, %v1653_v11  ;;  %v1682_v44 = vadd.f32 %v1681_v3, %v1680_v19  ;;  %v1665_v56 = vrot.slane %v1664_v48, 1  ;;  %v1815_v11 = vld [vmem:[%s8475_s21 + $0x10] sm:$0xff] }
 0x3f9   :  { %v1629_v23 = vmul.f32 %v1597_v51, %v8181_v4  ;;  %v1630_v63 = vmul.f32 %v1598_v1, %v8186_v0  ;;  %v1672_v52 = vrot.slane %v1671_v41, 2  ;;  %v1691_v57 = vadd.f32 %v1690_v29, %v1689_v24  ;;  %1890 = vmatpush.msra.mxu2 %v1818_v9  ;;  %v1817_v51 = vld [vmem:[%s8475_s21 + $0x20] sm:$0xff] }
 0x3fa   :  { %v1494_v27 = vadd.f32 %v1493_v2, %v1492_v14  ;;  %v1700_v14 = vadd.f32 %v1699_v36, %v1698_v54  ;;  %v1656_v5 = vrot.slane %v1655_v42, 1  ;;  %v1683_v6 = vrot.slane %v1682_v44, 1  ;;  %v1813_v36 = vld [vmem:[%s8475_s21] sm:$0xff] }
 0x3fb   :  { %v1703_v45 = vsel %vm192_vm1, %v1629_v23, 0.0  ;;  %v1704_v20 = vsel %vm192_vm1, %v1630_v63, 0.0  ;;  %v1673_v32 = vadd.f32 %v1672_v52, %v1671_v41  ;;  %v1666_v1 = vadd.f32 %v1665_v56, %v1664_v48  ;;  %1891 = vmatpush.msra.mxu2 %v1817_v51  ;;  %v1814_v52 = vld [vmem:[%s8475_s21 + $0x8] sm:$0xff] }
 0x3fc   :  { %v1495_v25 = vrot.slane %v1494_v27, 1  ;;  %v1705_v34 = vadd.f32 %v1704_v20, %v1703_v45  ;;  %v1267_v8 = vsel %vm192_vm1, %v8458_v47, -inf  ;;  %v1692_v35 = vrot.slane %v1691_v57, 1 }
 0x3fd   :  { %v8470_v38 = vpop.f32.mrf.mxu1  ;;  %v1674_v59 = vrot.slane %v1673_v32, 1  ;;  %v1257_v63 = vsel %vm192_vm1, %v8403_v62, -inf  ;;  %v1701_v30 = vrot.slane %v1700_v14, 1  ;;  %v1266_v45 = vsel %vm192_vm1, %v8427_v17, -inf }
 0x3fe   :  { %v1496_v18 = vadd.f32 %v1495_v25, %v1494_v27  ;;  %v1706_v40 = vrot.slane %v1705_v34, 4  ;;  %v1816_v27 = vld [vmem:[%s8475_s21 + $0x18] sm:$0xff]  ;;  %v1259_v28 = vmax.f32 %v1257_v63, %v1258_v10  ;;  %v8501_v25 = vld [vmem:[%s8227_s17] ss:$0 sm:$0xff]  ;;  %v1657_v41 = vadd.f32 %v1656_v5, %v1655_v42 }
 0x3ff   :  { %v1675_v23 = vadd.f32 %v1674_v59, %v1673_v32  ;;  %1892 = vmatpush.msra.mxu2 %v1816_v27  ;;  %v1268_v49 = vmax.f32 %v1266_v45, %v1267_v8  ;;  %v1693_v19 = vadd.f32 %v1692_v35, %v1691_v57  ;;  %v1798_v43 = vadd.f32 %v8501_v25, %v1666_v1  ;;  %v7697_v59 = vld [vmem:[%s7878_s13 + $0x38] sm:$0xff]  ;;  %v8528_v35 = vld [vmem:[%s7878_s13 + $0x28] sm:$0xff]  ;;  %v8534_v45 = vld [vmem:[%s7878_s13 + $0x20] sm:$0xff] }
 0x400   :  { %7323 = vrcp.f32 %v1496_v18  ;;  %v1707_v7 = vadd.f32 %v1706_v40, %v1705_v34  ;;  %v1684_v18 = vadd.f32 %v1683_v6, %v1682_v44  ;;  %v1275_v24 = vsel %vm192_vm1, %v8470_v38, -inf }
 0x401   :  { %1893 = vmatpush.msra.mxu2 %v1815_v11  ;;  %v1702_v54 = vadd.f32 %v1701_v30, %v1700_v14  ;;  %v1799_v33 = vadd.f32 %v8501_v25, %v1675_v23  ;;  %v1269_v32 = vrot.slane %v1268_v49, 4  ;;  %v1797_v37 = vadd.f32 %v8501_v25, %v1657_v41 }
 0x402   :  { %v1708_v60 = vrot.slane %v1707_v7, 2  ;;  %v1801_v44 = vadd.f32 %v8501_v25, %v1693_v19 }
 0x403   :  { %1894 = vmatpush.msra.mxu2 %v1814_v52  ;;  %v1802_v56 = vadd.f32 %v8501_v25, %v1702_v54  ;;  %v1844_v57 = vrot.slane %v1799_v33, 6  ;;  %v1270_v5 = vmax.f32 %v1268_v49, %v1269_v32  ;;  %v8548_v54 = vld [vmem:[%s7878_s13 + $0x10] sm:$0xff]  ;;  %v8562_v32 = vld [vmem:[%s7878_s13] sm:$0xff] }
 0x404   :  { %v1709_v22 = vadd.f32 %v1708_v60, %v1707_v7  ;;  %v1260_v7 = vrot.slane %v1259_v28, 4  ;;  %v1850_v51 = vrot.slane %v1801_v44, 4 }
 0x405   :  { %v8477_v16 = vpop.f32.mrf.mxu1  ;;  %1895 = vmatpush.msra.mxu2 %v1813_v36  ;;  %v1853_v8 = vrot.slane %v1802_v56, 3  ;;  %v1271_v30 = vrot.slane %v1270_v5, 2 }
 0x406   :  { %v7324_v39 = vpop.eup %7323  ;;  %v1710_v20 = vrot.slane %v1709_v22, 1  ;;  %v1276_v34 = vsel %vm192_vm1, %v8477_v16, -inf }
 0x407   :  { %v1599_v46 = vmul.f32 %v7324_v39, %v8435_v21  ;;  %v1600_v50 = vmul.f32 %v7324_v39, %v8440_v26  ;;  %v1277_v3 = vmax.f32 %v1275_v24, %v1276_v34  ;;  %v1800_v39 = vadd.f32 %v8501_v25, %v1684_v18  ;;  %1950 = vmatpush.msrb.mxu2 %v7697_v59  ;;  %v8542_v18 = vld [vmem:[%s7878_s13 + $0x18] sm:$0xff] }
 0x408   :  { %v1711_v48 = vadd.f32 %v1710_v20, %v1709_v22  ;;  %v1272_v24 = vmax.f32 %v1270_v5, %v1271_v30 }
 0x409   :  { %v1631_v58 = vmul.f32 %v1599_v46, %v8181_v4  ;;  %v1632_v61 = vmul.f32 %v1600_v50, %v8186_v0  ;;  %v1841_v46 = vrot.slane %v1798_v43, 7  ;;  %v1847_v6 = vrot.slane %v1800_v39, 5 }
 0x40a   :  { %v1803_v14 = vadd.f32 %v8501_v25, %v1711_v48 }
 0x40b   :  { %v1712_v21 = vsel %vm192_vm1, %v1631_v58, 0.0  ;;  %v1713_v26 = vsel %vm192_vm1, %v1632_v61, 0.0  ;;  %v1261_v58 = vmax.f32 %v1259_v28, %v1260_v7  ;;  %v1278_v61 = vrot.slane %v1277_v3, 4  ;;  %v8558_v7 = vld [vmem:[%s7878_s13 + $0x8] sm:$0xff] }
 0x40c   :  { %v1714_v2 = vadd.f32 %v1713_v26, %v1712_v21  ;;  %v7698_v21 = vld [vmem:[%s7878_s13 + $0x30] sm:$0xff]  ;;  %v1843_v10 = vsel %vm1842_vm4, %v1841_v46, %v1797_v37  ;;  %v1856_v27 = vrot.slane %v1803_v14, 2 }
 0x40d   :  { %v8493_v12 = vpop.f32.mrf.mxu1  ;;  %1951 = vmatpush.msrb.mxu2 %v7698_v21  ;;  %v1262_v23 = vrot.slane %v1261_v58, 2  ;;  %v1279_v63 = vmax.f32 %v1277_v3, %v1278_v61 }
 0x40e   :  { %v1715_v15 = vrot.slane %v1714_v2, 4  ;;  %v1284_v50 = vsel %vm192_vm1, %v8493_v12, -inf }
 0x40f   :  { %1952 = vmatpush.msrb.mxu2 %v8528_v35  ;;  %v1263_v19 = vmax.f32 %v1261_v58, %v1262_v23 }
 0x410   :  { %v1716_v40 = vadd.f32 %v1715_v15, %v1714_v2  ;;  %v1846_v2 = vsel %vm1845_vm5, %v1844_v57, %v1843_v10 }
 0x411   :  { %v1849_v28 = vsel %vm1848_vm6, %v1847_v6, %v1846_v2  ;;  %1953 = vmatpush.msrb.mxu2 %v8534_v45  ;;  %v1264_v3 = vrot.slane %v1263_v19, 1 }
 0x412   :  { %v1717_v29 = vrot.slane %v1716_v40, 2  ;;  %v1852_v49 = vsel %vm1851_vm7, %v1850_v51, %v1849_v28 }
 0x413   :  { %v1855_v34 = vsel %vm1854_vm9, %v1853_v8, %v1852_v49  ;;  %1954 = vmatpush.msrb.mxu2 %v8542_v18  ;;  %v1265_v44 = vmax.f32 %v1263_v19, %v1264_v3 }
 0x414   :  { %v1718_v60 = vadd.f32 %v1717_v29, %v1716_v40  ;;  %v1280_v40 = vrot.slane %v1279_v63, 2  ;;  %v1858_v43 = vsel %vm1857_vm10, %v1856_v27, %v1855_v34  ;;  %v1273_v29 = vrot.slane %v1272_v24, 1 }
 0x415   :  { %v8514_v42 = vpop.f32.mrf.mxu1  ;;  %1955 = vmatpush.msrb.mxu2 %v8548_v54  ;;  %v1345_v59 = vsub.f32 %v8403_v62, %v1265_v44  ;;  %v1346_v21 = vsub.f32 %v8413_v55, %v1265_v44 }
 0x416   :  { %v1285_v53 = vsel %vm192_vm1, %v8514_v42, -inf  ;;  %v1719_v22 = vrot.slane %v1718_v60, 1  ;;  %v1281_v48 = vmax.f32 %v1279_v63, %v1280_v40 }
 0x417   :  { %v1286_v9 = vmax.f32 %v1284_v50, %v1285_v53  ;;  %1956 = vmatpush.msrb.mxu2 %v8558_v7  ;;  %v1274_v53 = vmax.f32 %v1272_v24, %v1273_v29 }
 0x418   :  { %v1720_v1 = vadd.f32 %v1719_v22, %v1718_v60  ;;  %v1282_v46 = vrot.slane %v1281_v48, 1 }
 0x419   :  { %v1287_v26 = vrot.slane %v1286_v9, 4  ;;  %1957 = vmatpush.msrb.mxu2 %v8562_v32  ;;  %v1348_v14 = vsub.f32 %v8458_v47, %v1274_v53 }
 0x41a   :  { %v1804_v15 = vadd.f32 %v8501_v25, %v1720_v1  ;;  %v1283_v58 = vmax.f32 %v1281_v48, %v1282_v46 }
 0x41b   :  { %v1288_v20 = vmax.f32 %v1286_v9, %v1287_v26  ;;  %v1347_v9 = vsub.f32 %v8427_v17, %v1274_v53  ;;  %v1393_v26 = vmul.f32 1.442695, %v1345_v59  ;;  %v1399_v62 = vmul.f32 1.442695, %v1348_v14 }
 0x41c   :  { %v1859_v11 = vrot.slane %v1804_v15, 1  ;;  %v1349_v10 = vsub.f32 %v8470_v38, %v1283_v58  ;;  %v1350_v2 = vsub.f32 %v8477_v16, %v1283_v58  ;;  %v1395_v17 = vmul.f32 1.442695, %v1346_v21 }
 0x41d   :  { %v8537_v41 = vpop.f32.mrf.mxu1  ;;  %v1289_v33 = vrot.slane %v1288_v20, 2  ;;  %v1397_v1 = vmul.f32 1.442695, %v1347_v9  ;;  %7325 = vpow2.f32 %v1393_v26 }
 0x41e   :  { %v1861_v52 = vsel %vm1860_vm11, %v1859_v11, %v1858_v43  ;;  %v1293_v39 = vsel %vm192_vm1, %v8537_v41, -inf  ;;  %v1401_v63 = vmul.f32 1.442695, %v1349_v10  ;;  %v1403_v30 = vmul.f32 1.442695, %v1350_v2 }
 0x41f   :  { %6828 = vmatmul.msk.f32.vlgmr.msra.gmra.mxu2 %vm192_vm1, %v1861_v52  ;;  %v1290_v36 = vmax.f32 %v1288_v20, %v1289_v33  ;;  %7327 = vpow2.f32 %v1397_v1 }
 0x420   :  { %7329 = vpow2.f32 %v1399_v62 }
 0x421   :  { %v1291_v56 = vrot.slane %v1290_v36, 1  ;;  %7331 = vpow2.f32 %v1395_v17 }
 0x422   :  { %7333 = vpow2.f32 %v1401_v63 }
 0x423   :  { %v1292_v5 = vmax.f32 %v1290_v36, %v1291_v56  ;;  %7335 = vpow2.f32 %v1403_v30  ;;  %v8582_v11 = vpop.eup %7325 }
 0x424   :  { %v1497_v46 = vsel %vm192_vm1, %v8582_v11, 0.0 }
 0x425   :  { %v1164_v37 = vpop.f32.mrf.mxu1  ;;  %v1351_v8 = vsub.f32 %v8493_v12, %v1292_v5  ;;  %v1352_v47 = vsub.f32 %v8514_v42, %v1292_v5  ;;  %v8584_v19 = vpop.eup %7327 }
 0x426   :  { %v1294_v60 = vsel %vm192_vm1, %v1164_v37, -inf  ;;  %v8586_v40 = vpop.eup %7329  ;;  %v1506_v48 = vsel %vm192_vm1, %v8584_v19, 0.0 }
 0x427   :  { %v1295_v50 = vmax.f32 %v1293_v39, %v1294_v60  ;;  %v1405_v55 = vmul.f32 1.442695, %v1351_v8  ;;  %v1407_v16 = vmul.f32 1.442695, %v1352_v47  ;;  %v8588_v43 = vpop.eup %7331  ;;  %v1507_v29 = vsel %vm192_vm1, %v8586_v40, 0.0 }
 0x428   :  { %v8590_v52 = vpop.eup %7333  ;;  %v1508_v53 = vadd.f32 %v1507_v29, %v1506_v48 }
 0x429   :  { %v1296_v57 = vrot.slane %v1295_v50, 4  ;;  %7337 = vpow2.f32 %v1405_v55  ;;  %v8594_v3 = vpop.eup %7335 }
 0x42a   :  { %7339 = vpow2.f32 %v1407_v16  ;;  %v1516_v59 = vsel %vm192_vm1, %v8594_v3, 0.0 }
 0x42b   :  { %v1297_v61 = vmax.f32 %v1295_v50, %v1296_v57  ;;  %v1498_v50 = vsel %vm192_vm1, %v8588_v43, 0.0  ;;  %v1515_v57 = vsel %vm192_vm1, %v8590_v52, 0.0 }
 0x42c   :  { %v1517_v21 = vadd.f32 %v1516_v59, %v1515_v57 }
 0x42d   :  { %v1298_v22 = vrot.slane %v1297_v61, 2  ;;  %v8571_v6 = vpop.f32.mrf.mxu1 }
 0x42e   :  { %v1302_v42 = vsel %vm192_vm1, %v8571_v6, -inf }
 0x42f   :  { %v1299_v51 = vmax.f32 %v1297_v61, %v1298_v22  ;;  %v1499_v61 = vadd.f32 %v1498_v50, %v1497_v46  ;;  %v1509_v22 = vrot.slane %v1508_v53, 4 }
 0x431   :  { %v1300_v23 = vrot.slane %v1299_v51, 1  ;;  %v1500_v30 = vrot.slane %v1499_v61, 4 }
 0x433   :  { %v1301_v27 = vmax.f32 %v1299_v51, %v1300_v23 }
 0x435   :  { %v1353_v38 = vsub.f32 %v8537_v41, %v1301_v27  ;;  %v1354_v15 = vsub.f32 %v1164_v37, %v1301_v27  ;;  %v1170_v28 = vpop.f32.mrf.mxu1  ;;  %v8600_v37 = vpop.eup %7337 }
 0x436   :  { %v1303_v20 = vsel %vm192_vm1, %v1170_v28, -inf  ;;  %v8602_v39 = vpop.eup %7339  ;;  %v1524_v9 = vsel %vm192_vm1, %v8600_v37, 0.0 }
 0x437   :  { %v1409_v12 = vmul.f32 1.442695, %v1353_v38  ;;  %v1411_v49 = vmul.f32 1.442695, %v1354_v15  ;;  %v1304_v34 = vmax.f32 %v1302_v42, %v1303_v20  ;;  %v1525_v14 = vsel %vm192_vm1, %v8602_v39, 0.0 }
 0x438   :  { %v1526_v23 = vadd.f32 %v1525_v14, %v1524_v9  ;;  %v1510_v38 = vadd.f32 %v1509_v22, %v1508_v53  ;;  %v1518_v15 = vrot.slane %v1517_v21, 4 }
 0x439   :  { %v1305_v41 = vrot.slane %v1304_v34, 4  ;;  %7341 = vpow2.f32 %v1409_v12 }
 0x43a   :  { %7343 = vpow2.f32 %v1411_v49  ;;  %v1527_v16 = vrot.slane %v1526_v23, 4  ;;  %v1511_v49 = vrot.slane %v1510_v38, 2 }
 0x43b   :  { %v1306_v24 = vmax.f32 %v1304_v34, %v1305_v41  ;;  %v1519_v34 = vadd.f32 %v1518_v15, %v1517_v21 }
 0x43c   :  { %v1528_v41 = vadd.f32 %v1527_v16, %v1526_v23  ;;  %v1512_v53 = vadd.f32 %v1511_v49, %v1510_v38 }
 0x43d   :  { %v8592_v33 = vpop.f32.mrf.mxu1  ;;  %v1307_v36 = vrot.slane %v1306_v24, 2  ;;  %v1520_v57 = vrot.slane %v1519_v34, 2 }
 0x43e   :  { %v1311_v62 = vsel %vm192_vm1, %v8592_v33, -inf }
 0x43f   :  { %v1308_v60 = vmax.f32 %v1306_v24, %v1307_v36  ;;  %v8604_v44 = vpop.eup %7341 }
 0x440   :  { %v8610_v56 = vpop.eup %7343  ;;  %v1533_v26 = vsel %vm192_vm1, %v8604_v44, 0.0 }
 0x441   :  { %v1309_v58 = vrot.slane %v1308_v60, 1  ;;  %v1534_v10 = vsel %vm192_vm1, %v8610_v56, 0.0 }
 0x442   :  { %v1535_v47 = vadd.f32 %v1534_v10, %v1533_v26 }
 0x443   :  { %v1310_v5 = vmax.f32 %v1308_v60, %v1309_v58  ;;  %v1529_v58 = vrot.slane %v1528_v41, 2 }
 0x445   :  { %v1176_v51 = vpop.f32.mrf.mxu1  ;;  %v1355_v1 = vsub.f32 %v8571_v6, %v1310_v5  ;;  %v1356_v2 = vsub.f32 %v1170_v28, %v1310_v5  ;;  %v1536_v6 = vrot.slane %v1535_v47, 4  ;;  %v1501_v28 = vadd.f32 %v1500_v30, %v1499_v61 }
 0x446   :  { %v1312_v8 = vsel %vm192_vm1, %v1176_v51, -inf }
 0x447   :  { %v1313_v17 = vmax.f32 %v1311_v62, %v1312_v8  ;;  %v1413_v63 = vmul.f32 1.442695, %v1355_v1  ;;  %v1415_v27 = vmul.f32 1.442695, %v1356_v2  ;;  %v1537_v29 = vadd.f32 %v1536_v6, %v1535_v47 }
 0x448   :  { %v1502_v60 = vrot.slane %v1501_v28, 2  ;;  %v1513_v1 = vrot.slane %v1512_v53, 1  ;;  %v1521_v2 = vadd.f32 %v1520_v57, %v1519_v34  ;;  %v1530_v8 = vadd.f32 %v1529_v58, %v1528_v41 }
 0x449   :  { %v1314_v55 = vrot.slane %v1313_v17, 4  ;;  %7345 = vpow2.f32 %v1413_v63  ;;  %v1538_v14 = vrot.slane %v1537_v29, 2 }
 0x44a   :  { %7347 = vpow2.f32 %v1415_v27  ;;  %v1503_v5 = vadd.f32 %v1502_v60, %v1501_v28  ;;  %v1522_v15 = vrot.slane %v1521_v2, 1  ;;  %v1531_v16 = vrot.slane %v1530_v8, 1 }
 0x44b   :  { %v1315_v20 = vmax.f32 %v1313_v17, %v1314_v55  ;;  %v1539_v63 = vadd.f32 %v1538_v14, %v1537_v29 }
 0x44c   :  { %v1504_v55 = vrot.slane %v1503_v5, 1  ;;  %v1523_v34 = vadd.f32 %v1522_v15, %v1521_v2  ;;  %v1532_v29 = vadd.f32 %v1531_v16, %v1530_v8 }
 0x44d   :  { %v1316_v12 = vrot.slane %v1315_v20, 2  ;;  %v8628_v42 = vpop.f32.mrf.mxu1  ;;  %v1540_v6 = vrot.slane %v1539_v63, 1 }
 0x44e   :  { %v1320_v47 = vsel %vm192_vm1, %v8628_v42, -inf }
 0x44f   :  { %v1317_v24 = vmax.f32 %v1315_v20, %v1316_v12  ;;  %v8630_v48 = vpop.eup %7345  ;;  %v1505_v12 = vadd.f32 %v1504_v55, %v1503_v5 }
 0x450   :  { %v8632_v36 = vpop.eup %7347  ;;  %v1542_v46 = vsel %vm192_vm1, %v8630_v48, 0.0 }
 0x451   :  { %v1318_v50 = vrot.slane %v1317_v24, 1  ;;  %v1543_v59 = vsel %vm192_vm1, %v8632_v36, 0.0 }
 0x452   :  { %v1544_v61 = vadd.f32 %v1543_v59, %v1542_v46  ;;  %v1541_v46 = vadd.f32 %v1540_v6, %v1539_v63 }
 0x453   :  { %v1319_v9 = vmax.f32 %v1317_v24, %v1318_v50 }
 0x454   :  { %v1545_v22 = vrot.slane %v1544_v61, 4 }
 0x455   :  { %v1357_v21 = vsub.f32 %v8592_v33, %v1319_v9  ;;  %v1358_v26 = vsub.f32 %v1176_v51, %v1319_v9  ;;  %v1182_v10 = vpop.f32.mrf.mxu1  ;;  %v1514_v51 = vadd.f32 %v1513_v1, %v1512_v53 }
 0x456   :  { %v1321_v62 = vsel %vm192_vm1, %v1182_v10, -inf  ;;  %v1546_v23 = vadd.f32 %v1545_v22, %v1544_v61 }
 0x457   :  { %v1417_v17 = vmul.f32 1.442695, %v1357_v21  ;;  %v1419_v27 = vmul.f32 1.442695, %v1358_v26  ;;  %v1322_v30 = vmax.f32 %v1320_v47, %v1321_v62 }
 0x458   :  { %v1547_v38 = vrot.slane %v1546_v23, 2 }
 0x459   :  { %7349 = vpow2.f32 %v1417_v17  ;;  %v1323_v33 = vrot.slane %v1322_v30, 4 }
 0x45a   :  { %7351 = vpow2.f32 %v1419_v27  ;;  %v1548_v20 = vadd.f32 %v1547_v38, %v1546_v23 }
 0x45b   :  { %v1324_v28 = vmax.f32 %v1322_v30, %v1323_v33  ;;  %7353 = vrcp.f32 %v1514_v51 }
 0x45c   :  { %v1549_v49 = vrot.slane %v1548_v20, 1  ;;  %7355 = vrcp.f32 %v1505_v12 }
 0x45d   :  { %v1325_v41 = vrot.slane %v1324_v28, 2  ;;  %7357 = vrcp.f32 %v1523_v34 }
 0x45e   :  { %v1550_v53 = vadd.f32 %v1549_v49, %v1548_v20  ;;  %7359 = vrcp.f32 %v1532_v29 }
 0x45f   :  { %v8642_v24 = vpop.eup %7349  ;;  %v1326_v57 = vmax.f32 %v1324_v28, %v1325_v41  ;;  %7361 = vrcp.f32 %v1541_v46 }
 0x460   :  { %v8644_v60 = vpop.eup %7351  ;;  %v1551_v50 = vsel %vm192_vm1, %v8642_v24, 0.0  ;;  %7363 = vrcp.f32 %v1550_v53 }
 0x461   :  { %v1552_v59 = vsel %vm192_vm1, %v8644_v60, 0.0  ;;  %v1327_v61 = vrot.slane %v1326_v57, 1  ;;  %v7354_v5 = vpop.eup %7353 }
 0x462   :  { %v1553_v58 = vadd.f32 %v1552_v59, %v1551_v50  ;;  %v7356_v1 = vpop.eup %7355  ;;  %v1603_v62 = vmul.f32 %v7354_v5, %v8584_v19  ;;  %v1604_v47 = vmul.f32 %v7354_v5, %v8586_v40 }
 0x463   :  { %v1328_v14 = vmax.f32 %v1326_v57, %v1327_v61  ;;  %v7358_v2 = vpop.eup %7357  ;;  %v1601_v38 = vmul.f32 %v7356_v1, %v8582_v11  ;;  %v1602_v11 = vmul.f32 %v7356_v1, %v8588_v43 }
 0x464   :  { %v1554_v9 = vrot.slane %v1553_v58, 4  ;;  %v7360_v17 = vpop.eup %7359  ;;  %v1605_v15 = vmul.f32 %v7358_v2, %v8590_v52  ;;  %v1636_v40 = vmul.f32 %v1604_v47, %v8186_v0 }
 0x465   :  { %v1359_v21 = vsub.f32 %v8628_v42, %v1328_v14  ;;  %v1360_v26 = vsub.f32 %v1182_v10, %v1328_v14  ;;  %v7362_v27 = vpop.eup %7361  ;;  %v1606_v42 = vmul.f32 %v7358_v2, %v8594_v3  ;;  %v1635_v10 = vmul.f32 %v1603_v62, %v8181_v4 }
 0x466   :  { %v1555_v22 = vadd.f32 %v1554_v9, %v1553_v58  ;;  %v7364_v55 = vpop.eup %7363  ;;  %v1607_v19 = vmul.f32 %v7360_v17, %v8600_v37  ;;  %v1608_v33 = vmul.f32 %v7360_v17, %v8602_v39  ;;  %v1609_v16 = vmul.f32 %v7362_v27, %v8604_v44 }
 0x467   :  { %v1421_v23 = vmul.f32 1.442695, %v1359_v21  ;;  %v1423_v63 = vmul.f32 1.442695, %v1360_v26  ;;  %v1610_v20 = vmul.f32 %v7362_v27, %v8610_v56  ;;  %v1611_v52 = vmul.f32 %v7364_v55, %v8630_v48 }
 0x468   :  { %v1556_v8 = vrot.slane %v1555_v22, 2  ;;  %v1612_v3 = vmul.f32 %v7364_v55, %v8632_v36  ;;  %v1633_v28 = vmul.f32 %v1601_v38, %v8181_v4  ;;  %v1637_v37 = vmul.f32 %v1605_v15, %v8181_v4 }
 0x469   :  { %7365 = vpow2.f32 %v1421_v23  ;;  %v1638_v39 = vmul.f32 %v1606_v42, %v8186_v0  ;;  %v1730_v49 = vsel %vm192_vm1, %v1635_v10, 0.0  ;;  %v1639_v44 = vmul.f32 %v1607_v19, %v8181_v4 }
 0x46a   :  { %v1557_v30 = vadd.f32 %v1556_v8, %v1555_v22  ;;  %7367 = vpow2.f32 %v1423_v63  ;;  %v1640_v56 = vmul.f32 %v1608_v33, %v8186_v0  ;;  %v1731_v48 = vsel %vm192_vm1, %v1636_v40, 0.0 }
 0x46b   :  { %v1641_v36 = vmul.f32 %v1609_v16, %v8181_v4  ;;  %v1642_v34 = vmul.f32 %v1610_v20, %v8186_v0  ;;  %v1634_v29 = vmul.f32 %v1602_v11, %v8186_v0  ;;  %v1643_v46 = vmul.f32 %v1611_v52, %v8181_v4 }
 0x46c   :  { %v1558_v51 = vrot.slane %v1557_v30, 1  ;;  %v1644_v50 = vmul.f32 %v1612_v3, %v8186_v0  ;;  %v1739_v53 = vsel %vm192_vm1, %v1637_v37, 0.0  ;;  %v1740_v59 = vsel %vm192_vm1, %v1638_v39, 0.0 }
 0x46d   :  { %v1732_v61 = vadd.f32 %v1731_v48, %v1730_v49  ;;  %v1748_v9 = vsel %vm192_vm1, %v1639_v44, 0.0  ;;  %v1749_v14 = vsel %vm192_vm1, %v1640_v56, 0.0  ;;  %v1721_v5 = vsel %vm192_vm1, %v1633_v28, 0.0 }
 0x46e   :  { %v1559_v6 = vadd.f32 %v1558_v51, %v1557_v30  ;;  %v1757_v22 = vsel %vm192_vm1, %v1641_v36, 0.0  ;;  %v1758_v21 = vsel %vm192_vm1, %v1642_v34, 0.0  ;;  %v1722_v2 = vsel %vm192_vm1, %v1634_v29, 0.0 }
 0x46f   :  { %v8668_v12 = vpop.eup %7365  ;;  %v1741_v62 = vadd.f32 %v1740_v59, %v1739_v53  ;;  %v1766_v8 = vsel %vm192_vm1, %v1643_v46, 0.0  ;;  %v1767_v23 = vsel %vm192_vm1, %v1644_v50, 0.0  ;;  %v1750_v17 = vadd.f32 %v1749_v14, %v1748_v9 }
 0x470   :  { %7369 = vrcp.f32 %v1559_v6  ;;  %v8673_v43 = vpop.eup %7367  ;;  %v1560_v41 = vsel %vm192_vm1, %v8668_v12, 0.0  ;;  %v1733_v30 = vrot.slane %v1732_v61, 4  ;;  %v1759_v55 = vadd.f32 %v1758_v21, %v1757_v22 }
 0x471   :  { %v1561_v57 = vsel %vm192_vm1, %v8673_v43, 0.0  ;;  %v1768_v38 = vadd.f32 %v1767_v23, %v1766_v8  ;;  %v1723_v19 = vadd.f32 %v1722_v2, %v1721_v5  ;;  %v1742_v33 = vrot.slane %v1741_v62, 4 }
 0x472   :  { %v1562_v58 = vadd.f32 %v1561_v57, %v1560_v41  ;;  %v1751_v51 = vrot.slane %v1750_v17, 4 }
 0x473   :  { %v1769_v52 = vrot.slane %v1768_v38, 4  ;;  %v1743_v6 = vadd.f32 %v1742_v33, %v1741_v62  ;;  %v1724_v37 = vrot.slane %v1723_v19, 4 }
 0x474   :  { %v1563_v26 = vrot.slane %v1562_v58, 4  ;;  %v1752_v39 = vadd.f32 %v1751_v51, %v1750_v17 }
 0x475   :  { %v1770_v48 = vadd.f32 %v1769_v52, %v1768_v38  ;;  %v1744_v36 = vrot.slane %v1743_v6, 2  ;;  %v1725_v41 = vadd.f32 %v1724_v37, %v1723_v19 }
 0x476   :  { %v7370_v1 = vpop.eup %7369  ;;  %v1564_v27 = vadd.f32 %v1563_v26, %v1562_v58  ;;  %v1753_v29 = vrot.slane %v1752_v39, 2 }
 0x477   :  { %v1613_v47 = vmul.f32 %v7370_v1, %v8642_v24  ;;  %v1614_v63 = vmul.f32 %v7370_v1, %v8644_v60  ;;  %v1760_v24 = vrot.slane %v1759_v55, 4  ;;  %v1734_v60 = vadd.f32 %v1733_v30, %v1732_v61 }
 0x478   :  { %v1565_v10 = vrot.slane %v1564_v27, 2  ;;  %v1771_v57 = vrot.slane %v1770_v48, 2  ;;  %v1745_v53 = vadd.f32 %v1744_v36, %v1743_v6  ;;  %v1726_v61 = vrot.slane %v1725_v41, 2 }
 0x479   :  { %v1645_v15 = vmul.f32 %v1613_v47, %v8181_v4  ;;  %v1646_v42 = vmul.f32 %v1614_v63, %v8186_v0  ;;  %v1761_v44 = vadd.f32 %v1760_v24, %v1759_v55  ;;  %v1735_v56 = vrot.slane %v1734_v60, 2 }
 0x47a   :  { %v1566_v20 = vadd.f32 %v1565_v10, %v1564_v27  ;;  %v1754_v9 = vadd.f32 %v1753_v29, %v1752_v39  ;;  %v1772_v26 = vadd.f32 %v1771_v57, %v1770_v48  ;;  %v1746_v62 = vrot.slane %v1745_v53, 1 }
 0x47b   :  { %v1775_v40 = vsel %vm192_vm1, %v1645_v15, 0.0  ;;  %v1776_v16 = vsel %vm192_vm1, %v1646_v42, 0.0  ;;  %v1762_v46 = vrot.slane %v1761_v44, 2  ;;  %v1736_v50 = vadd.f32 %v1735_v56, %v1734_v60 }
 0x47c   :  { %v1777_v11 = vadd.f32 %v1776_v16, %v1775_v40  ;;  %v1567_v3 = vrot.slane %v1566_v20, 1  ;;  %v1727_v23 = vadd.f32 %v1726_v61, %v1725_v41  ;;  %v1755_v17 = vrot.slane %v1754_v9, 1  ;;  %v7244_v61 = vld [vmem:[%s8555_s26] ss:$0 sm:$0xff] }
 0x47d   :  { %v1763_v22 = vadd.f32 %v1762_v46, %v1761_v44  ;;  %v1737_v21 = vrot.slane %v1736_v50, 1 }
 0x47e   :  { %v1778_v28 = vrot.slane %v1777_v11, 4  ;;  %v1568_v49 = vadd.f32 %v1567_v3, %v1566_v20  ;;  %v1728_v15 = vrot.slane %v1727_v23, 1  ;;  %v1756_v42 = vadd.f32 %v1755_v17, %v1754_v9 }
 0x47f   :  { %v1764_v63 = vrot.slane %v1763_v22, 1  ;;  %v1738_v30 = vadd.f32 %v1737_v21, %v1736_v50  ;;  %v6841_v21 = vld [vmem:[%s8045_s28 + $0x78] sm:$0xff] }
 0x480   :  { %7371 = vrcp.f32 %v1568_v49  ;;  %v1779_v34 = vadd.f32 %v1778_v28, %v1777_v11  ;;  %v1729_v16 = vadd.f32 %v1728_v15, %v1727_v23  ;;  %v1808_v24 = vadd.f32 %v8501_v25, %v1756_v42  ;;  %2037 = vmatpush.msrb.mxu3 %v6841_v21  ;;  %v6850_v23 = vld [vmem:[%s8040_s24 + $0x68] sm:$0xff]  ;;  %v6847_v15 = vld [vmem:[%s8040_s24 + $0x50] sm:$0xff] }
 0x481   :  { %v1806_v33 = vadd.f32 %v8501_v25, %v1738_v30 }
 0x482   :  { %v1780_v59 = vrot.slane %v1779_v34, 2  ;;  %v1805_v39 = vadd.f32 %v8501_v25, %v1729_v16  ;;  %v1866_v49 = vrot.slane %v1808_v24, 5 }
 0x483   :  { %v1862_v3 = vrot.slane %v1806_v33, 7 }
 0x484   :  { %v1781_v8 = vadd.f32 %v1780_v59, %v1779_v34 }
 0x485   :  { %v1863_v48 = vsel %vm1842_vm4, %v1862_v3, %v1805_v39 }
 0x486   :  { %v7372_v58 = vpop.eup %7371  ;;  %v1782_v38 = vrot.slane %v1781_v8, 1 }
 0x487   :  { %v1615_v14 = vmul.f32 %v7372_v58, %v8668_v12  ;;  %v1616_v5 = vmul.f32 %v7372_v58, %v8673_v43  ;;  %v1773_v12 = vrot.slane %v1772_v26, 1  ;;  %v1747_v43 = vadd.f32 %v1746_v62, %v1745_v53  ;;  %v6851_v62 = vld [vmem:[%s8040_s24 + $0x70] sm:$0xff] }
 0x488   :  { %v1783_v51 = vadd.f32 %v1782_v38, %v1781_v8  ;;  %v6839_v8 = vld [vmem:[%s8045_s28 + $0x68] sm:$0xff]  ;;  %v6836_v38 = vld [vmem:[%s8045_s28 + $0x50] sm:$0xff] }
 0x489   :  { %v1647_v1 = vmul.f32 %v1615_v14, %v8181_v4  ;;  %v1648_v2 = vmul.f32 %v1616_v5, %v8186_v0  ;;  %v1765_v4 = vadd.f32 %v1764_v63, %v1763_v22  ;;  %v1774_v19 = vadd.f32 %v1773_v12, %v1772_v26  ;;  %v6852_v26 = vld [vmem:[%s8040_s24 + $0x78] sm:$0xff]  ;;  %v6849_v63 = vld [vmem:[%s8040_s24 + $0x60] sm:$0xff] }
 0x48a   :  { %v1807_v40 = vadd.f32 %v8501_v25, %v1747_v43  ;;  %v1811_v6 = vadd.f32 %v8501_v25, %v1783_v51  ;;  %2074 = vmatpush.msra.mxu2 %v6852_v26  ;;  %v6837_v12 = vld [vmem:[%s8045_s28 + $0x58] sm:$0xff] }
 0x48b   :  { %v1785_v47 = vsel %vm192_vm1, %v1648_v2, 0.0  ;;  %v1784_v27 = vsel %vm192_vm1, %v1647_v1, 0.0  ;;  %v1809_v11 = vadd.f32 %v8501_v25, %v1765_v4  ;;  %v1810_v52 = vadd.f32 %v8501_v25, %v1774_v19  ;;  %v6840_v2 = vld [vmem:[%s8045_s28 + $0x70] sm:$0xff]  ;;  %v6846_v4 = vld [vmem:[%s8040_s24 + $0x48] sm:$0xff]  ;;  %v6834_v19 = vld [vmem:[%s8045_s28 + $0x40] sm:$0xff] }
 0x48c   :  { %v1786_v55 = vadd.f32 %v1785_v47, %v1784_v27  ;;  %v1864_v28 = vrot.slane %v1807_v40, 6  ;;  %v1872_v41 = vrot.slane %v1811_v6, 2  ;;  %2038 = vmatpush.msrb.mxu3 %v6840_v2  ;;  %2075 = vmatpush.msra.mxu2 %v6851_v62  ;;  %v6838_v47 = vld [vmem:[%s8045_s28 + $0x60] sm:$0xff]  ;;  %v7706_v2 = vld [vmem:[%s7996_s11 + $0x8] sm:$0xff]  ;;  %v7707_v62 = vld [vmem:[%s7996_s11 + $0x10] sm:$0xff] }
 0x48d   :  { %v1868_v44 = vrot.slane %v1809_v11, 4  ;;  %v1870_v36 = vrot.slane %v1810_v52, 3  ;;  %v7246_v6 = vld [vmem:[%s8739_s8] ss:$0 sm:$0xff] }
 0x48e   :  { %v1787_v10 = vrot.slane %v1786_v55, 4  ;;  %v1865_v34 = vsel %vm1845_vm5, %v1864_v28, %v1863_v48  ;;  %2039 = vmatpush.msrb.mxu3 %v6839_v8  ;;  %2076 = vmatpush.msra.mxu2 %v6850_v23  ;;  %v7709_v8 = vld [vmem:[%s7996_s11 + $0x20] sm:$0xff]  ;;  %v7710_v23 = vld [vmem:[%s7996_s11 + $0x28] sm:$0xff] }
 0x48f   :  { %v1867_v46 = vsel %vm1848_vm6, %v1866_v49, %v1865_v34 }
 0x490   :  { %v1788_v0 = vadd.f32 %v1787_v10, %v1786_v55  ;;  %v1869_v50 = vsel %vm1851_vm7, %v1868_v44, %v1867_v46  ;;  %v6848_v55 = vld [vmem:[%s8040_s24 + $0x58] sm:$0xff]  ;;  %2040 = vmatpush.msrb.mxu3 %v6838_v47  ;;  %2077 = vmatpush.msra.mxu2 %v6849_v63  ;;  %v6835_v10 = vld [vmem:[%s8045_s28 + $0x48] sm:$0xff]  ;;  %v7713_v63 = vld [vmem:[%s7996_s11 + $0x40] sm:$0xff] }
 0x491   :  { %v1871_v57 = vsel %vm1854_vm9, %v1870_v36, %v1869_v50  ;;  %v6859_v44 = vld [vmem:[%s7979_s7 + $0x38] sm:$0xff] }
 0x492   :  { %v1789_v20 = vrot.slane %v1788_v0, 2  ;;  %v1873_v59 = vsel %vm1857_vm10, %v1872_v41, %v1871_v57  ;;  %2041 = vmatpush.msrb.mxu3 %v6837_v12  ;;  %2078 = vmatpush.msra.mxu2 %v6848_v55  ;;  %v7712_v47 = vld [vmem:[%s7996_s11 + $0x38] sm:$0xff] }
 0x493   :  { %v7716_v12 = vld [vmem:[%s7996_s11 + $0x58] sm:$0xff] }
 0x494   :  { %v1790_v60 = vadd.f32 %v1789_v20, %v1788_v0  ;;  %2042 = vmatpush.msrb.mxu3 %v6836_v38  ;;  %2079 = vmatpush.msra.mxu2 %v6847_v15  ;;  %v6845_v0 = vld [vmem:[%s8040_s24 + $0x40] sm:$0xff]  ;;  %v6899_v55 = vld [vmem:[%s8143_s12 + $0x78] sm:$0xff]  ;;  %v6897_v38 = vld [vmem:[%s8143_s12 + $0x68] sm:$0xff] }
 0x495   :  { %v6896_v15 = vld [vmem:[%s8143_s12 + $0x60] sm:$0xff] }
 0x496   :  { %v1791_v37 = vrot.slane %v1790_v60, 1  ;;  %2043 = vmatpush.msrb.mxu3 %v6835_v10  ;;  %2080 = vmatpush.msra.mxu2 %v6846_v4  ;;  %v6895_v10 = vld [vmem:[%s8143_s12 + $0x58] sm:$0xff]  ;;  %v6894_v4 = vld [vmem:[%s8143_s12 + $0x50] sm:$0xff] }
 0x498   :  { %v1792_v56 = vadd.f32 %v1791_v37, %v1790_v60  ;;  %2044 = vmatpush.msrb.mxu3 %v6834_v19  ;;  %2081 = vmatpush.msra.mxu2 %v6845_v0  ;;  %v7245_v60 = vld [vmem:[%s8734_s1] ss:$0 sm:$0xff]  ;;  %v6893_v19 = vld [vmem:[%s8143_s12 + $0x48] sm:$0xff] }
 0x499   :  { %v7718_v0 = vld [vmem:[%s7996_s11 + $0x68] sm:$0xff] }
 0x49a   :  { %v1812_v29 = vadd.f32 %v8501_v25, %v1792_v56  ;;  %v6858_v56 = vld [vmem:[%s7979_s7 + $0x30] sm:$0xff] }
 0x49c   :  { %v1874_v53 = vrot.slane %v1812_v29, 1  ;;  %v6857_v29 = vld [vmem:[%s7979_s7 + $0x28] sm:$0xff] }
 0x49e   :  { %v1875_v58 = vsel %vm1860_vm11, %v1874_v53, %v1873_v59 }
 0x49f   :  { %6829 = vmatmul.msk.f32.gmra.mxu2 %vm192_vm1, %v1875_v58 }
 0x4a2   :  { %v1897_v9 = vpop.f32.mrf.mxu2 }
 0x4a3   :  { %v8724_v14 = vadd.f32 %v7244_v61, %v1897_v9 }
 0x4a5   :  { %v1934_v25 = vmul.f32 %v8724_v14, %v8724_v14  ;;  %6830 = vmatmul.msk.f32.vlgmr.msra.gmra.mxu3 %vm192_vm1, %v8724_v14 }
 0x4a6   :  { %2106 = vmatpush.msra.mxu3 %v6859_v44  ;;  %v7724_v44 = vld [vmem:[%s7996_s11 + $0x88] sm:$0xff] }
 0x4a7   :  { %6832 = vmatmul.msk.f32.vlgmr.msrb.gmra.mxu2 %vm192_vm1, %v1934_v25 }
 0x4a8   :  { %2107 = vmatpush.msra.mxu3 %v6858_v56  ;;  %2528 = vmatpush.msrb.mxu2 %v6899_v55 }
 0x4aa   :  { %2108 = vmatpush.msra.mxu3 %v6857_v29 }
 0x522   :  { %v1900_v5 = vpop.f32.mrf.mxu2 }
 0x523   :  { %v8741_v22 = vadd.f32 %v7244_v61, %v1900_v5 }
 0x525   :  { %6831 = vmatmul.msk.f32.gmra.mxu3 %vm192_vm1, %v8741_v22  ;;  %v1935_v1 = vmul.f32 %v8741_v22, %v8741_v22 }
 0x527   :  { %6833 = vmatmul.msk.f32.gmra.mxu2 %vm192_vm1, %v1935_v1 }
 0x528   :  { %v1928_v17 = vpop.f32.mrf.mxu3 }
 0x529   :  { %v1965_v27 = vmul.f32 %v1928_v17, %v1928_v17  ;;  %v1969_v11 = vsub.f32 %v8724_v14, %v1928_v17  ;;  %v7711_v17 = vld [vmem:[%s7996_s11 + $0x30] sm:$0xff] }
 0x52a   :  { %v1959_v30 = vpop.f32.mrf.mxu2 }
 0x52b   :  { %v1967_v43 = vsub.f32 %v1959_v30, %v1965_v27  ;;  %v7714_v27 = vld [vmem:[%s7996_s11 + $0x48] sm:$0xff]  ;;  %v7715_v30 = vld [vmem:[%s7996_s11 + $0x50] sm:$0xff] }
 0x52d   :  { %v1971_v42 = vadd.f32 1e-05, %v1967_v43  ;;  %v6898_v43 = vld [vmem:[%s8143_s12 + $0x70] sm:$0xff] }
 0x52e   :  { %2529 = vmatpush.msrb.mxu2 %v6898_v43 }
 0x52f   :  { %7373 = vrsqrt.f32 %v1971_v42  ;;  %vm1979_vm13 = vweird.f32 %v1971_v42 }
 0x530   :  { %2530 = vmatpush.msrb.mxu2 %v6897_v38  ;;  %v7729_v38 = vld [vmem:[%s7996_s11 + $0xb0] sm:$0xff] }
 0x532   :  { %2531 = vmatpush.msrb.mxu2 %v6896_v15 }
 0x534   :  { %2532 = vmatpush.msrb.mxu2 %v6895_v10 }
 0x535   :  { %v7374_v33 = vpop.eup %7373 }
 0x536   :  { %v1974_v51 = vmul.f32 %v7374_v33, %v1971_v42  ;;  %vm1980_vm12 = vweird.f32 %v7374_v33  ;;  %v7717_v42 = vld [vmem:[%s7996_s11 + $0x60] sm:$0xff]  ;;  %2533 = vmatpush.msrb.mxu2 %v6894_v4 }
 0x537   :  { %vm1981_vm14 = vmor %vm1979_vm13, %vm1980_vm12 }
 0x538   :  { %v1975_v40 = vmul.f32 %v7374_v33, %v1974_v51  ;;  %2534 = vmatpush.msrb.mxu2 %v6893_v19  ;;  %v7719_v51 = vld [vmem:[%s7878_s13 + $0x38] sm:$0xff] }
 0x53a   :  { %v1976_v16 = vmul.f32 0.5, %v1975_v40  ;;  %v7720_v40 = vld [vmem:[%s7878_s13 + $0x30] sm:$0xff] }
 0x53c   :  { %v1977_v20 = vsub.f32 1.5, %v1976_v16  ;;  %v7721_v16 = vld [vmem:[%s7996_s11 + $0x70] sm:$0xff] }
 0x53e   :  { %v1978_v24 = vmul.f32 %v7374_v33, %v1977_v20 }
 0x540   :  { %v1982_v52 = vsel %vm1981_vm14, %v7374_v33, %v1978_v24  ;;  %v6892_v33 = vld [vmem:[%s8143_s12 + $0x40] sm:$0xff] }
 0x541   :  { %v1993_v3 = vmul.f32 %v1982_v52, %v1969_v11  ;;  %2535 = vmatpush.msrb.mxu2 %v6892_v33  ;;  %v8830_v24 = vld [vmem:[%s8096_s6 + $0x1] ss:$0 sm:$0xff] }
 0x543   :  { %v1998_v28 = vmul.f32 %v7245_v60, %v1993_v3 }
 0x545   :  { %v2003_v37 = vadd.f32 %v7246_v6, %v1998_v28 }
 0x547   :  { %v2005_v39 = vmax.f32 %v2003_v37, 0.0 }
 0x549   :  { %v8768_v49 = vadd.f32 %v2005_v39, %v8098_v13  ;;  %v6856_v13 = vld [vmem:[%s7979_s7 + $0x20] sm:$0xff] }
 0x54a   :  { %2109 = vmatpush.msra.mxu3 %v6856_v13 }
 0x54b   :  { %6843 = vmatmul.msk.f32.vlgmr.msrb.gmra.mxu3 %vm192_vm1, %v8768_v49  ;;  %6854 = vmatmul.msk.f32.vlgmr.msra.gmra.mxu2 %vm192_vm1, %v8768_v49 }
 0x54c   :  { %4811 = vmatpush.msra.mxu2 %v7719_v51 }
 0x54e   :  { %4812 = vmatpush.msra.mxu2 %v7720_v40 }
 0x550   :  { %4813 = vmatpush.msra.mxu2 %v8528_v35 }
 0x552   :  { %4814 = vmatpush.msra.mxu2 %v8534_v45  ;;  %v7247_v45 = vld [vmem:[%s8091_s2 + $0x1] ss:$0 sm:$0xff] }
 0x554   :  { %4815 = vmatpush.msra.mxu2 %v8542_v18 }
 0x556   :  { %4816 = vmatpush.msra.mxu2 %v8548_v54 }
 0x558   :  { %4817 = vmatpush.msra.mxu2 %v8558_v7 }
 0x55a   :  { %4818 = vmatpush.msra.mxu2 %v8562_v32 }
 0x5a8   :  { %v1931_v48 = vpop.f32.mrf.mxu3 }
 0x5a9   :  { %v1966_v36 = vmul.f32 %v1931_v48, %v1931_v48  ;;  %v1970_v9 = vsub.f32 %v8741_v22, %v1931_v48  ;;  %v7705_v22 = vld [vmem:[%s7996_s11] sm:$0xff] }
 0x5aa   :  { %v1962_v34 = vpop.f32.mrf.mxu2 }
 0x5ab   :  { %v1968_v41 = vsub.f32 %v1962_v34, %v1966_v36 }
 0x5ad   :  { %v1972_v46 = vadd.f32 1e-05, %v1968_v41 }
 0x5af   :  { %7375 = vrsqrt.f32 %v1972_v46  ;;  %vm1989_vm0 = vweird.f32 %v1972_v46 }
 0x5b5   :  { %v7376_v50 = vpop.eup %7375 }
 0x5b6   :  { %v1984_v57 = vmul.f32 %v7376_v50, %v1972_v46  ;;  %vm1990_vm15 = vweird.f32 %v7376_v50  ;;  %v7725_v46 = vld [vmem:[%s7996_s11 + $0x90] sm:$0xff] }
 0x5b7   :  { %vm1991_vm2 = vmor %vm1989_vm0, %vm1990_vm15 }
 0x5b8   :  { %v1985_v53 = vmul.f32 %v7376_v50, %v1984_v57 }
 0x5ba   :  { %v1986_v59 = vmul.f32 0.5, %v1985_v53 }
 0x5bc   :  { %v1987_v58 = vsub.f32 1.5, %v1986_v59 }
 0x5be   :  { %v1988_v61 = vmul.f32 %v7376_v50, %v1987_v58  ;;  %v7726_v58 = vld [vmem:[%s7996_s11 + $0x98] sm:$0xff] }
 0x5c0   :  { %v1992_v14 = vsel %vm1991_vm2, %v7376_v50, %v1988_v61 }
 0x5c1   :  { %v1994_v25 = vmul.f32 %v1992_v14, %v1970_v9 }
 0x5c3   :  { %v1999_v5 = vmul.f32 %v7245_v60, %v1994_v25  ;;  %v7722_v60 = vld [vmem:[%s7996_s11 + $0x78] sm:$0xff] }
 0x5c5   :  { %v2004_v21 = vadd.f32 %v7246_v6, %v1999_v5  ;;  %v7723_v6 = vld [vmem:[%s7996_s11 + $0x80] sm:$0xff] }
 0x5c7   :  { %v2006_v26 = vmax.f32 %v2004_v21, 0.0 }
 0x5c9   :  { %v8780_v1 = vadd.f32 %v2006_v26, %v8107_v31  ;;  %v7708_v31 = vld [vmem:[%s7996_s11 + $0x18] sm:$0xff] }
 0x5cb   :  { %6844 = vmatmul.msk.f32.gmra.mxu3 %vm192_vm1, %v8780_v1  ;;  %6855 = vmatmul.msk.f32.gmra.mxu2 %vm192_vm1, %v8780_v1 }
 0x5ce   :  { %v2046_v20 = vpop.f32.mrf.mxu3  ;;  %v2083_v11 = vpop.f32.mrf.mxu2 }
 0x5cf   :  { %v8837_v52 = vadd.f32 %v8830_v24, %v2083_v11  ;;  %v8842_v3 = vadd.f32 %v7247_v45, %v2046_v20 }
 0x5d1   :  { %v2223_v18 = vperm.slane %v8837_v52, 0  ;;  %v2209_v48 = vrot.slane %v8837_v52, 1  ;;  %v2210_v14 = vrot.slane %v8837_v52, 2  ;;  %v2212_v40 = vrot.slane %v8837_v52, 4 }
 0x5d3   :  { %6860 = vmatmul.msk.f32.vlgmr.msra.gmra.mxu3 %vm550_vm8, %v7705_v22  ;;  %v2255_v54 = vadd.f32 %v2223_v18, %v8842_v3  ;;  %v2224_v29 = vperm.slane %v2209_v48, 0  ;;  %v2225_v26 = vperm.slane %v2210_v14, 0  ;;  %v7727_v22 = vld [vmem:[%s7996_s11 + $0xa0] sm:$0xff] }
 0x5d5   :  { %v2257_v50 = vadd.f32 %v2224_v29, %v8842_v3 }
 0x5db   :  { %6861 = vmatmul.msk.f32.gmra.mxu3 %vm550_vm8, %v7706_v2 }
 0x5e3   :  { %6862 = vmatmul.msk.f32.gmra.mxu3 %vm550_vm8, %v7707_v62  ;;  %v2259_v62 = vadd.f32 %v2225_v26, %v8842_v3 }
 0x5eb   :  { %6863 = vmatmul.msk.f32.gmra.mxu3 %vm550_vm8, %v7708_v31 }
 0x5f3   :  { %6864 = vmatmul.msk.f32.gmra.mxu3 %vm550_vm8, %v7709_v8 }
 0x5fb   :  { %6865 = vmatmul.msk.f32.gmra.mxu3 %vm550_vm8, %v7710_v23 }
 0x603   :  { %6866 = vmatmul.msk.f32.gmra.mxu3 %vm550_vm8, %v7711_v17  ;;  %v7728_v17 = vld [vmem:[%s7996_s11 + $0xa8] sm:$0xff] }
 0x60b   :  { %6867 = vmatmul.msk.f32.gmra.mxu3 %vm550_vm8, %v7712_v47 }
 0x613   :  { %6868 = vmatmul.msk.f32.gmra.mxu3 %vm550_vm8, %v7713_v63 }
 0x61b   :  { %6869 = vmatmul.msk.f32.gmra.mxu3 %vm550_vm8, %v7714_v27  ;;  %v2211_v27 = vrot.slane %v8837_v52, 3 }
 0x61d   :  { %v2226_v43 = vperm.slane %v2211_v27, 0 }
 0x623   :  { %6870 = vmatmul.msk.f32.gmra.mxu3 %vm550_vm8, %v7715_v30 }
 0x62b   :  { %6871 = vmatmul.msk.f32.gmra.mxu3 %vm550_vm8, %v7716_v12 }
 0x633   :  { %6872 = vmatmul.msk.f32.gmra.mxu3 %vm550_vm8, %v7717_v42  ;;  %v2261_v42 = vadd.f32 %v2226_v43, %v8842_v3 }
 0x63b   :  { %6873 = vmatmul.msk.f32.gmra.mxu3 %vm550_vm8, %v7718_v0  ;;  %v7730_v0 = vld [vmem:[%s7996_s11 + $0xb8] sm:$0xff] }
 0x643   :  { %6874 = vmatmul.msk.f32.gmra.mxu3 %vm550_vm8, %v7721_v16 }
 0x64b   :  { %6875 = vmatmul.msk.f32.gmra.mxu3 %vm550_vm8, %v7722_v60  ;;  %v2227_v60 = vperm.slane %v2212_v40, 0 }
 0x64e   :  { %v2049_v35 = vpop.f32.mrf.mxu3 }
 0x64f   :  { %v8847_v7 = vadd.f32 %v7247_v45, %v2049_v35  ;;  %v7731_v35 = vld [vmem:[%s7996_s11 + $0xc0] sm:$0xff] }
 0x651   :  { %v2256_v56 = vadd.f32 %v2223_v18, %v8847_v7  ;;  %v2258_v9 = vadd.f32 %v2224_v29, %v8847_v7  ;;  %v2260_v63 = vadd.f32 %v2225_v26, %v8847_v7  ;;  %v2262_v51 = vadd.f32 %v2226_v43, %v8847_v7 }
 0x652   :  { %v2263_v18 = vadd.f32 %v2227_v60, %v8842_v3 }
 0x653   :  { %6876 = vmatmul.msk.f32.gmra.mxu3 %vm550_vm8, %v7723_v6 }
 0x656   :  { %v2111_v28 = vpop.f32.mrf.mxu3 }
 0x657   :  { %v2287_v37 = vadd.f32 %v2255_v54, %v2111_v28 }
 0x659   :  { %vm2319_vm3 = vcmp.gt.f32.partialorder %v2287_v37, 0.0  ;;  %v2351_v39 = vmul.f32 0.2, %v2287_v37 }
 0x65b   :  { %6877 = vmatmul.msk.f32.gmra.mxu3 %vm550_vm8, %v7724_v44  ;;  %v2383_v32 = vsel %vm2319_vm3, %v2287_v37, %v2351_v39  ;;  %v7732_v37 = vld [vmem:[%s7996_s11 + $0xc8] sm:$0xff]  ;;  %v2264_v44 = vadd.f32 %v2227_v60, %v8847_v7 }
 0x65c   :  { %6900 = vmatmul.msk.f32.vlgmr.msrb.gmra.mxu2 %vm192_vm1, %v2383_v32  ;;  %v2213_v32 = vrot.slane %v8837_v52, 5 }
 0x65e   :  { %v2114_v36 = vpop.f32.mrf.mxu3 }
 0x65f   :  { %v2288_v34 = vadd.f32 %v2256_v56, %v2114_v36 }
 0x661   :  { %vm2320_vm12 = vcmp.gt.f32.partialorder %v2288_v34, 0.0  ;;  %v2352_v41 = vmul.f32 0.2, %v2288_v34 }
 0x663   :  { %6878 = vmatmul.msk.f32.gmra.mxu3 %vm550_vm8, %v7725_v46  ;;  %v2384_v13 = vsel %vm2320_vm12, %v2288_v34, %v2352_v41  ;;  %v2228_v34 = vperm.slane %v2213_v32, 0  ;;  %v7733_v41 = vld [vmem:[%s7996_s11 + $0xd0] sm:$0xff] }
 0x664   :  { %6901 = vmatmul.msk.f32.gmra.mxu2 %vm192_vm1, %v2384_v13 }
 0x665   :  { %v2265_v46 = vadd.f32 %v2228_v34, %v8842_v3 }
 0x666   :  { %v2117_v57 = vpop.f32.mrf.mxu3 }
 0x667   :  { %v2289_v53 = vadd.f32 %v2257_v50, %v2117_v57 }
 0x669   :  { %vm2321_vm13 = vcmp.gt.f32.partialorder %v2289_v53, 0.0  ;;  %v2353_v59 = vmul.f32 0.2, %v2289_v53 }
 0x66b   :  { %6879 = vmatmul.msk.f32.gmra.mxu3 %vm550_vm8, %v7726_v58  ;;  %v2385_v61 = vsel %vm2321_vm13, %v2289_v53, %v2353_v59  ;;  %v7734_v53 = vld [vmem:[%s7996_s11 + $0xd8] sm:$0xff]  ;;  %v2266_v58 = vadd.f32 %v2228_v34, %v8847_v7 }
 0x66c   :  { %6902 = vmatmul.msk.f32.gmra.mxu2 %vm192_vm1, %v2385_v61  ;;  %v2214_v61 = vrot.slane %v8837_v52, 6 }
 0x66e   :  { %v2120_v25 = vpop.f32.mrf.mxu3 }
 0x66f   :  { %v2290_v5 = vadd.f32 %v2258_v9, %v2120_v25 }
 0x671   :  { %vm2322_vm14 = vcmp.gt.f32.partialorder %v2290_v5, 0.0  ;;  %v2354_v21 = vmul.f32 0.2, %v2290_v5 }
 0x673   :  { %6880 = vmatmul.msk.f32.gmra.mxu3 %vm550_vm8, %v7727_v22  ;;  %v2386_v2 = vsel %vm2322_vm14, %v2290_v5, %v2354_v21  ;;  %v2229_v5 = vperm.slane %v2214_v61, 0  ;;  %v7735_v21 = vld [vmem:[%s7996_s11 + $0xe0] sm:$0xff] }
 0x674   :  { %6903 = vmatmul.msk.f32.gmra.mxu2 %vm192_vm1, %v2386_v2 }
 0x675   :  { %v2267_v22 = vadd.f32 %v2229_v5, %v8842_v3 }
 0x676   :  { %v2123_v31 = vpop.f32.mrf.mxu3 }
 0x677   :  { %v2291_v8 = vadd.f32 %v2259_v62, %v2123_v31 }
 0x679   :  { %vm2323_vm15 = vcmp.gt.f32.partialorder %v2291_v8, 0.0  ;;  %v2355_v23 = vmul.f32 0.2, %v2291_v8 }
 0x67b   :  { %6881 = vmatmul.msk.f32.gmra.mxu3 %vm550_vm8, %v7728_v17  ;;  %v2387_v47 = vsel %vm2323_vm15, %v2291_v8, %v2355_v23  ;;  %v7736_v8 = vld [vmem:[%s7996_s11 + $0xe8] sm:$0xff]  ;;  %v2268_v17 = vadd.f32 %v2229_v5, %v8847_v7 }
 0x67c   :  { %6904 = vmatmul.msk.f32.gmra.mxu2 %vm192_vm1, %v2387_v47  ;;  %v2215_v47 = vrot.slane %v8837_v52, 7  ;;  %v7738_v52 = vld [vmem:[%s7996_s11 + $0xf8] sm:$0xff] }
 0x67e   :  { %v2126_v30 = vpop.f32.mrf.mxu3 }
 0x67f   :  { %v2292_v12 = vadd.f32 %v2260_v63, %v2126_v30 }
 0x681   :  { %vm2324_vm0 = vcmp.gt.f32.partialorder %v2292_v12, 0.0  ;;  %v2356_v55 = vmul.f32 0.2, %v2292_v12 }
 0x683   :  { %6882 = vmatmul.msk.f32.gmra.mxu3 %vm550_vm8, %v7729_v38  ;;  %v2388_v15 = vsel %vm2324_vm0, %v2292_v12, %v2356_v55  ;;  %v2230_v12 = vperm.slane %v2215_v47, 0  ;;  %v7737_v55 = vld [vmem:[%s7996_s11 + $0xf0] sm:$0xff] }
 0x684   :  { %6905 = vmatmul.msk.f32.gmra.mxu2 %vm192_vm1, %v2388_v15 }
 0x685   :  { %v2269_v38 = vadd.f32 %v2230_v12, %v8842_v3 }
 0x686   :  { %v2129_v10 = vpop.f32.mrf.mxu3 }
 0x687   :  { %v2293_v4 = vadd.f32 %v2261_v42, %v2129_v10 }
 0x689   :  { %vm2325_vm2 = vcmp.gt.f32.partialorder %v2293_v4, 0.0  ;;  %v2357_v19 = vmul.f32 0.2, %v2293_v4 }
 0x68b   :  { %6883 = vmatmul.msk.f32.gmra.mxu3 %vm550_vm8, %v7730_v0  ;;  %v2389_v33 = vsel %vm2325_vm2, %v2293_v4, %v2357_v19  ;;  %v2086_v4 = vpop.f32.mrf.mxu2 }
 0x68c   :  { %6906 = vmatmul.msk.f32.gmra.mxu2 %vm192_vm1, %v2389_v33  ;;  %v8916_v0 = vadd.f32 %v8830_v24, %v2086_v4  ;;  %v2270_v33 = vadd.f32 %v2230_v12, %v8847_v7 }
 0x68e   :  { %v2132_v16 = vpop.f32.mrf.mxu3  ;;  %v2217_v61 = vrot.slane %v8916_v0, 2 }
 0x68f   :  { %v2294_v20 = vadd.f32 %v2262_v51, %v2132_v16 }
 0x691   :  { %vm2326_vm3 = vcmp.gt.f32.partialorder %v2294_v20, 0.0  ;;  %v2358_v11 = vmul.f32 0.2, %v2294_v20 }
 0x693   :  { %6884 = vmatmul.msk.f32.gmra.mxu3 %vm550_vm8, %v7731_v35  ;;  %v2390_v45 = vsel %vm2326_vm3, %v2294_v20, %v2358_v11  ;;  %v2231_v20 = vperm.slane %v8916_v0, 0 }
 0x694   :  { %6907 = vmatmul.msk.f32.gmra.mxu2 %vm192_vm1, %v2390_v45 }
 0x695   :  { %v2271_v60 = vadd.f32 %v2231_v20, %v8842_v3  ;;  %v2272_v24 = vadd.f32 %v2231_v20, %v8847_v7 }
 0x696   :  { %v2135_v6 = vpop.f32.mrf.mxu3 }
 0x697   :  { %v2295_v54 = vadd.f32 %v2263_v18, %v2135_v6 }
 0x699   :  { %vm2327_vm12 = vcmp.gt.f32.partialorder %v2295_v54, 0.0  ;;  %v2359_v28 = vmul.f32 0.2, %v2295_v54 }
 0x69b   :  { %6885 = vmatmul.msk.f32.gmra.mxu3 %vm550_vm8, %v7732_v37  ;;  %v2391_v39 = vsel %vm2327_vm12, %v2295_v54, %v2359_v28  ;;  %v2216_v54 = vrot.slane %v8916_v0, 1 }
 0x69c   :  { %6908 = vmatmul.msk.f32.gmra.mxu2 %vm192_vm1, %v2391_v39 }
 0x69d   :  { %v2232_v32 = vperm.slane %v2216_v54, 0 }
 0x69e   :  { %v2138_v56 = vpop.f32.mrf.mxu3 }
 0x69f   :  { %v2296_v48 = vadd.f32 %v2264_v44, %v2138_v56 }
 0x6a1   :  { %vm2328_vm13 = vcmp.gt.f32.partialorder %v2296_v48, 0.0  ;;  %v2360_v36 = vmul.f32 0.2, %v2296_v48 }
 0x6a3   :  { %6886 = vmatmul.msk.f32.gmra.mxu3 %vm550_vm8, %v7733_v41  ;;  %v2392_v29 = vsel %vm2328_vm13, %v2296_v48, %v2360_v36  ;;  %v2273_v48 = vadd.f32 %v2232_v32, %v8842_v3 }
 0x6a4   :  { %6909 = vmatmul.msk.f32.gmra.mxu2 %vm192_vm1, %v2392_v29 }
 0x6a6   :  { %v2141_v13 = vpop.f32.mrf.mxu3 }
 0x6a7   :  { %v2297_v50 = vadd.f32 %v2265_v46, %v2141_v13 }
 0x6a9   :  { %vm2329_vm14 = vcmp.gt.f32.partialorder %v2297_v50, 0.0  ;;  %v2361_v57 = vmul.f32 0.2, %v2297_v50 }
 0x6ab   :  { %6887 = vmatmul.msk.f32.gmra.mxu3 %vm550_vm8, %v7734_v53  ;;  %v2393_v59 = vsel %vm2329_vm14, %v2297_v50, %v2361_v57 }
 0x6ac   :  { %6910 = vmatmul.msk.f32.gmra.mxu2 %vm192_vm1, %v2393_v59 }
 0x6ae   :  { %v2144_v9 = vpop.f32.mrf.mxu3 }
 0x6af   :  { %v2298_v14 = vadd.f32 %v2266_v58, %v2144_v9  ;;  %v2274_v58 = vadd.f32 %v2232_v32, %v8847_v7 }
 0x6b1   :  { %vm2330_vm15 = vcmp.gt.f32.partialorder %v2298_v14, 0.0  ;;  %v2362_v25 = vmul.f32 0.2, %v2298_v14 }
 0x6b3   :  { %6888 = vmatmul.msk.f32.gmra.mxu3 %vm550_vm8, %v7735_v21  ;;  %v2394_v26 = vsel %vm2330_vm15, %v2298_v14, %v2362_v25 }
 0x6b4   :  { %6911 = vmatmul.msk.f32.gmra.mxu2 %vm192_vm1, %v2394_v26 }
 0x6b6   :  { %v2147_v2 = vpop.f32.mrf.mxu3 }
 0x6b7   :  { %v2299_v62 = vadd.f32 %v2267_v22, %v2147_v2  ;;  %v2233_v22 = vperm.slane %v2217_v61, 0 }
 0x6b9   :  { %vm2331_vm0 = vcmp.gt.f32.partialorder %v2299_v62, 0.0  ;;  %v2363_v31 = vmul.f32 0.2, %v2299_v62 }
 0x6bb   :  { %6889 = vmatmul.msk.f32.gmra.mxu3 %vm550_vm8, %v7736_v8  ;;  %v2395_v23 = vsel %vm2331_vm0, %v2299_v62, %v2363_v31  ;;  %v2275_v8 = vadd.f32 %v2233_v22, %v8842_v3 }
 0x6bc   :  { %6912 = vmatmul.msk.f32.gmra.mxu2 %vm192_vm1, %v2395_v23 }
 0x6be   :  { %v2150_v63 = vpop.f32.mrf.mxu3 }
 0x6bf   :  { %v2300_v27 = vadd.f32 %v2268_v17, %v2150_v63 }
 0x6c1   :  { %vm2332_vm2 = vcmp.gt.f32.partialorder %v2300_v27, 0.0  ;;  %v2364_v30 = vmul.f32 0.2, %v2300_v27 }
 0x6c3   :  { %6890 = vmatmul.msk.f32.gmra.mxu3 %vm550_vm8, %v7737_v55  ;;  %v2396_v43 = vsel %vm2332_vm2, %v2300_v27, %v2364_v30 }
 0x6c4   :  { %6913 = vmatmul.msk.f32.gmra.mxu2 %vm192_vm1, %v2396_v43 }
 0x6c6   :  { %v2153_v15 = vpop.f32.mrf.mxu3 }
 0x6c7   :  { %v2301_v42 = vadd.f32 %v2269_v38, %v2153_v15 }
 0x6c9   :  { %v2365_v10 = vmul.f32 0.2, %v2301_v42  ;;  %vm2333_vm3 = vcmp.gt.f32.partialorder %v2301_v42, 0.0 }
 0x6cb   :  { %6891 = vmatmul.msk.f32.gmra.mxu3 %vm550_vm8, %v7738_v52  ;;  %v2397_v19 = vsel %vm2333_vm3, %v2301_v42, %v2365_v10  ;;  %v2276_v52 = vadd.f32 %v2233_v22, %v8847_v7 }
 0x6cc   :  { %6914 = vmatmul.msk.f32.gmra.mxu2 %vm192_vm1, %v2397_v19  ;;  %v2218_v19 = vrot.slane %v8916_v0, 3 }
 0x6ce   :  { %v2156_v51 = vpop.f32.mrf.mxu3 }
 0x6cf   :  { %v2302_v40 = vadd.f32 %v2270_v33, %v2156_v51 }
 0x6d1   :  { %v2366_v16 = vmul.f32 0.2, %v2302_v40  ;;  %vm2334_vm12 = vcmp.gt.f32.partialorder %v2302_v40, 0.0 }
 0x6d3   :  { %v2398_v11 = vsel %vm2334_vm12, %v2302_v40, %v2366_v16 }
 0x6d4   :  { %6915 = vmatmul.msk.f32.gmra.mxu2 %vm192_vm1, %v2398_v11 }
 0x6d6   :  { %v2159_v35 = vpop.f32.mrf.mxu3 }
 0x6d7   :  { %v2303_v45 = vadd.f32 %v2271_v60, %v2159_v35  ;;  %v2234_v35 = vperm.slane %v2218_v19, 0 }
 0x6d9   :  { %v2367_v18 = vmul.f32 0.2, %v2303_v45  ;;  %vm2335_vm13 = vcmp.gt.f32.partialorder %v2303_v45, 0.0 }
 0x6db   :  { %v2399_v6 = vsel %vm2335_vm13, %v2303_v45, %v2367_v18 }
 0x6dc   :  { %6916 = vmatmul.msk.f32.gmra.mxu2 %vm192_vm1, %v2399_v6 }
 0x6de   :  { %v2162_v28 = vpop.f32.mrf.mxu3 }
 0x6df   :  { %v2304_v37 = vadd.f32 %v2272_v24, %v2162_v28  ;;  %v2537_v39 = vpop.f32.mrf.mxu2 }
 0x6e0   :  { %v2633_v29 = vsel %vm192_vm1, %v2537_v39, -inf }
 0x6e1   :  { %v2368_v44 = vmul.f32 0.2, %v2304_v37  ;;  %vm2336_vm14 = vcmp.gt.f32.partialorder %v2304_v37, 0.0 }
 0x6e3   :  { %v2400_v56 = vsel %vm2336_vm14, %v2304_v37, %v2368_v44 }
 0x6e4   :  { %6917 = vmatmul.msk.f32.gmra.mxu2 %vm192_vm1, %v2400_v56 }
 0x6e6   :  { %v2165_v36 = vpop.f32.mrf.mxu3 }
 0x6e7   :  { %v2305_v34 = vadd.f32 %v2273_v48, %v2165_v36  ;;  %v2540_v41 = vpop.f32.mrf.mxu2 }
 0x6e8   :  { %v2634_v46 = vsel %vm192_vm1, %v2540_v41, -inf }
 0x6e9   :  { %v2369_v13 = vmul.f32 0.2, %v2305_v34  ;;  %v2635_v50 = vmax.f32 %v2633_v29, %v2634_v46  ;;  %vm2337_vm15 = vcmp.gt.f32.partialorder %v2305_v34, 0.0 }
 0x6eb   :  { %v2636_v57 = vrot.slane %v2635_v50, 4  ;;  %v2401_v53 = vsel %vm2337_vm15, %v2305_v34, %v2369_v13 }
 0x6ec   :  { %6918 = vmatmul.msk.f32.gmra.mxu2 %vm192_vm1, %v2401_v53 }
 0x6ed   :  { %v2637_v59 = vmax.f32 %v2635_v50, %v2636_v57 }
 0x6ee   :  { %v2168_v9 = vpop.f32.mrf.mxu3 }
 0x6ef   :  { %v2638_v14 = vrot.slane %v2637_v59, 2  ;;  %v2306_v25 = vadd.f32 %v2274_v58, %v2168_v9  ;;  %v2543_v5 = vpop.f32.mrf.mxu2 }
 0x6f0   :  { %v2642_v30 = vsel %vm192_vm1, %v2543_v5, -inf }
 0x6f1   :  { %v2639_v21 = vmax.f32 %v2637_v59, %v2638_v14  ;;  %v2370_v26 = vmul.f32 0.2, %v2306_v25  ;;  %vm2338_vm0 = vcmp.gt.f32.partialorder %v2306_v25, 0.0 }
 0x6f3   :  { %v2640_v2 = vrot.slane %v2639_v21, 1  ;;  %v2402_v62 = vsel %vm2338_vm0, %v2306_v25, %v2370_v26  ;;  %v2278_v25 = vadd.f32 %v2234_v35, %v8847_v7 }
 0x6f4   :  { %6919 = vmatmul.msk.f32.gmra.mxu2 %vm192_vm1, %v2402_v62 }
 0x6f5   :  { %v2641_v31 = vmax.f32 %v2639_v21, %v2640_v2 }
 0x6f6   :  { %v2171_v23 = vpop.f32.mrf.mxu3 }
 0x6f7   :  { %v2777_v17 = vsub.f32 %v2537_v39, %v2641_v31  ;;  %v2778_v47 = vsub.f32 %v2540_v41, %v2641_v31  ;;  %v2307_v63 = vadd.f32 %v2275_v8, %v2171_v23  ;;  %v2546_v27 = vpop.f32.mrf.mxu2  ;;  %v2277_v39 = vadd.f32 %v2234_v35, %v8842_v3 }
 0x6f8   :  { %v2643_v12 = vsel %vm192_vm1, %v2546_v27, -inf }
 0x6f9   :  { %v2809_v55 = vmul.f32 1.442695, %v2777_v17  ;;  %v2811_v43 = vmul.f32 1.442695, %v2778_v47  ;;  %v2371_v38 = vmul.f32 0.2, %v2307_v63  ;;  %v2644_v15 = vmax.f32 %v2642_v30, %v2643_v12 }
 0x6fa   :  { %vm2339_vm2 = vcmp.gt.f32.partialorder %v2307_v63, 0.0 }
 0x6fb   :  { %7377 = vpow2.f32 %v2809_v55  ;;  %v2645_v42 = vrot.slane %v2644_v15, 4  ;;  %v2403_v10 = vsel %vm2339_vm2, %v2307_v63, %v2371_v38 }
 0x6fc   :  { %7379 = vpow2.f32 %v2811_v43  ;;  %6920 = vmatmul.msk.f32.gmra.mxu2 %vm192_vm1, %v2403_v10 }
 0x6fd   :  { %v2646_v4 = vmax.f32 %v2644_v15, %v2645_v42 }
 0x6fe   :  { %v2174_v33 = vpop.f32.mrf.mxu3 }
 0x6ff   :  { %v2647_v51 = vrot.slane %v2646_v4, 2  ;;  %v2308_v40 = vadd.f32 %v2276_v52, %v2174_v33  ;;  %v8939_v16 = vpop.f32.mrf.mxu2 }
 0x700   :  { %v2651_v29 = vsel %vm192_vm1, %v8939_v16, -inf }
 0x701   :  { %v8941_v20 = vpop.eup %7377  ;;  %v2648_v11 = vmax.f32 %v2646_v4, %v2647_v51  ;;  %v2372_v60 = vmul.f32 0.2, %v2308_v40  ;;  %vm2340_vm3 = vcmp.gt.f32.partialorder %v2308_v40, 0.0 }
 0x702   :  { %v8943_v45 = vpop.eup %7379  ;;  %v2873_v18 = vsel %vm192_vm1, %v8941_v20, 0.0 }
 0x703   :  { %v2874_v6 = vsel %vm192_vm1, %v8943_v45, 0.0  ;;  %v2649_v24 = vrot.slane %v2648_v11, 1  ;;  %v2404_v54 = vsel %vm2340_vm3, %v2308_v40, %v2372_v60 }
 0x704   :  { %v2875_v28 = vadd.f32 %v2874_v6, %v2873_v18  ;;  %6921 = vmatmul.msk.f32.gmra.mxu2 %vm192_vm1, %v2404_v54 }
 0x705   :  { %v2650_v37 = vmax.f32 %v2648_v11, %v2649_v24 }
 0x706   :  { %v2876_v44 = vrot.slane %v2875_v28, 4  ;;  %v2177_v32 = vpop.f32.mrf.mxu3 }
 0x707   :  { %v2779_v56 = vsub.f32 %v2543_v5, %v2650_v37  ;;  %v2780_v48 = vsub.f32 %v2546_v27, %v2650_v37  ;;  %v2309_v36 = vadd.f32 %v2277_v39, %v2177_v32  ;;  %v2552_v34 = vpop.f32.mrf.mxu2  ;;  %v2219_v5 = vrot.slane %v8916_v0, 4 }
 0x708   :  { %v2877_v41 = vadd.f32 %v2876_v44, %v2875_v28  ;;  %v2652_v46 = vsel %vm192_vm1, %v2552_v34, -inf }
 0x709   :  { %v2813_v13 = vmul.f32 1.442695, %v2779_v56  ;;  %v2815_v50 = vmul.f32 1.442695, %v2780_v48  ;;  %v2373_v57 = vmul.f32 0.2, %v2309_v36  ;;  %v2653_v53 = vmax.f32 %v2651_v29, %v2652_v46 }
 0x70a   :  { %v2878_v59 = vrot.slane %v2877_v41, 2  ;;  %vm2341_vm12 = vcmp.gt.f32.partialorder %v2309_v36, 0.0  ;;  %v2235_v47 = vperm.slane %v2219_v5, 0 }
 0x70b   :  { %7381 = vpow2.f32 %v2813_v13  ;;  %v2654_v58 = vrot.slane %v2653_v53, 4  ;;  %v2405_v61 = vsel %vm2341_vm12, %v2309_v36, %v2373_v57  ;;  %v2220_v36 = vrot.slane %v8916_v0, 5 }
 0x70c   :  { %v2879_v9 = vadd.f32 %v2878_v59, %v2877_v41  ;;  %7383 = vpow2.f32 %v2815_v50  ;;  %6922 = vmatmul.msk.f32.gmra.mxu2 %vm192_vm1, %v2405_v61  ;;  %v2279_v15 = vadd.f32 %v2235_v47, %v8842_v3 }
 0x70d   :  { %v2655_v14 = vmax.f32 %v2653_v53, %v2654_v58 }
 0x70e   :  { %v2880_v21 = vrot.slane %v2879_v9, 1  ;;  %v2180_v26 = vpop.f32.mrf.mxu3 }
 0x70f   :  { %v2656_v22 = vrot.slane %v2655_v14, 2  ;;  %v2310_v2 = vadd.f32 %v2278_v25, %v2180_v26  ;;  %v8957_v62 = vpop.f32.mrf.mxu2 }
 0x710   :  { %v2881_v31 = vadd.f32 %v2880_v21, %v2879_v9  ;;  %v2660_v11 = vsel %vm192_vm1, %v8957_v62, -inf  ;;  %v2236_v9 = vperm.slane %v2220_v36, 0 }
 0x711   :  { %v8959_v8 = vpop.eup %7381  ;;  %v2657_v23 = vmax.f32 %v2655_v14, %v2656_v22  ;;  %v2374_v17 = vmul.f32 0.2, %v2310_v2  ;;  %vm2342_vm13 = vcmp.gt.f32.partialorder %v2310_v2, 0.0 }
 0x712   :  { %v8961_v63 = vpop.eup %7383  ;;  %7385 = vrcp.f32 %v2881_v31  ;;  %v2882_v27 = vsel %vm192_vm1, %v8959_v8, 0.0 }
 0x713   :  { %v2883_v30 = vsel %vm192_vm1, %v8961_v63, 0.0  ;;  %v2658_v12 = vrot.slane %v2657_v23, 1  ;;  %v2406_v55 = vsel %vm2342_vm13, %v2310_v2, %v2374_v17 }
 0x714   :  { %v2884_v43 = vadd.f32 %v2883_v30, %v2882_v27  ;;  %6923 = vmatmul.msk.f32.gmra.mxu2 %vm192_vm1, %v2406_v55  ;;  %v2282_v55 = vadd.f32 %v2236_v9, %v8847_v7 }
 0x715   :  { %v2659_v38 = vmax.f32 %v2657_v23, %v2658_v12  ;;  %v2281_v23 = vadd.f32 %v2236_v9, %v8842_v3 }
 0x716   :  { %v2885_v42 = vrot.slane %v2884_v43, 4  ;;  %v2183_v10 = vpop.f32.mrf.mxu3 }
 0x717   :  { %v2781_v4 = vsub.f32 %v8939_v16, %v2659_v38  ;;  %v2782_v52 = vsub.f32 %v2552_v34, %v2659_v38  ;;  %v2311_v19 = vadd.f32 %v2279_v15, %v2183_v10  ;;  %v8970_v33 = vpop.f32.mrf.mxu2 }
 0x718   :  { %v7386_v51 = vpop.eup %7385  ;;  %v2886_v40 = vadd.f32 %v2885_v42, %v2884_v43  ;;  %v2661_v60 = vsel %vm192_vm1, %v8970_v33, -inf  ;;  %v2221_v43 = vrot.slane %v8916_v0, 6 }
 0x719   :  { %v3033_v35 = vmul.f32 %v7386_v51, %v8941_v20  ;;  %v3034_v18 = vmul.f32 %v7386_v51, %v8943_v45  ;;  %v2817_v6 = vmul.f32 1.442695, %v2781_v4  ;;  %v2819_v24 = vmul.f32 1.442695, %v2782_v52 }
 0x71a   :  { %v2887_v54 = vrot.slane %v2886_v40, 2  ;;  %v2375_v16 = vmul.f32 0.2, %v2311_v19  ;;  %v2662_v28 = vmax.f32 %v2660_v11, %v2661_v60  ;;  %vm2343_vm14 = vcmp.gt.f32.partialorder %v2311_v19, 0.0 }
 0x71b   :  { %v3065_v37 = vmul.f32 %v3033_v35, %v8842_v3  ;;  %v3066_v39 = vmul.f32 %v3034_v18, %v8847_v7  ;;  %7387 = vpow2.f32 %v2817_v6  ;;  %v2280_v45 = vadd.f32 %v2235_v47, %v8847_v7 }
 0x71c   :  { %v2888_v44 = vadd.f32 %v2887_v54, %v2886_v40  ;;  %7389 = vpow2.f32 %v2819_v24  ;;  %v2663_v32 = vrot.slane %v2662_v28, 4  ;;  %v2407_v56 = vsel %vm2343_vm14, %v2311_v19, %v2375_v16 }
 0x71d   :  { %v3097_v48 = vsel %vm192_vm1, %v3065_v37, 0.0  ;;  %v3098_v20 = vsel %vm192_vm1, %v3066_v39, 0.0  ;;  %6924 = vmatmul.msk.f32.gmra.mxu2 %vm192_vm1, %v2407_v56 }
 0x71e   :  { %v3099_v34 = vadd.f32 %v3098_v20, %v3097_v48  ;;  %v2889_v41 = vrot.slane %v2888_v44, 1  ;;  %v2664_v29 = vmax.f32 %v2662_v28, %v2663_v32  ;;  %v2186_v46 = vpop.f32.mrf.mxu3 }
 0x71f   :  { %v2312_v13 = vadd.f32 %v2280_v45, %v2186_v46  ;;  %v8985_v50 = vpop.f32.mrf.mxu2 }
 0x720   :  { %v3100_v57 = vrot.slane %v3099_v34, 4  ;;  %v2890_v53 = vadd.f32 %v2889_v41, %v2888_v44  ;;  %v2665_v59 = vrot.slane %v2664_v29, 2  ;;  %v2669_v18 = vsel %vm192_vm1, %v8985_v50, -inf }
 0x721   :  { %v8987_v58 = vpop.eup %7387  ;;  %v2376_v61 = vmul.f32 0.2, %v2312_v13  ;;  %vm2344_vm15 = vcmp.gt.f32.partialorder %v2312_v13, 0.0 }
 0x722   :  { %v8989_v14 = vpop.eup %7389  ;;  %7391 = vrcp.f32 %v2890_v53  ;;  %v2891_v25 = vsel %vm192_vm1, %v8987_v58, 0.0  ;;  %v2666_v5 = vmax.f32 %v2664_v29, %v2665_v59  ;;  %v3101_v22 = vadd.f32 %v3100_v57, %v3099_v34 }
 0x723   :  { %v2892_v21 = vsel %vm192_vm1, %v8989_v14, 0.0  ;;  %v2408_v26 = vsel %vm2344_vm15, %v2312_v13, %v2376_v61  ;;  %v2237_v29 = vperm.slane %v2221_v43, 0 }
 0x724   :  { %v2893_v2 = vadd.f32 %v2892_v21, %v2891_v25  ;;  %v2667_v31 = vrot.slane %v2666_v5, 1  ;;  %v3102_v15 = vrot.slane %v3101_v22, 2  ;;  %v9023_v25 = vld [vmem:[%s8227_s17 + $0x1] ss:$0 sm:$0xff] }
 0x725   :  { %6925 = vmatmul.msk.f32.gmra.mxu2 %vm192_vm1, %v2408_v26  ;;  %v2284_v43 = vadd.f32 %v2237_v29, %v8847_v7 }
 0x726   :  { %v2894_v17 = vrot.slane %v2893_v2, 4  ;;  %v2668_v47 = vmax.f32 %v2666_v5, %v2667_v31  ;;  %v2189_v27 = vpop.f32.mrf.mxu3 }
 0x727   :  { %v2313_v30 = vadd.f32 %v2281_v23, %v2189_v27  ;;  %v8997_v12 = vpop.f32.mrf.mxu2 }
 0x728   :  { %v7392_v38 = vpop.eup %7391  ;;  %v2895_v42 = vadd.f32 %v2894_v17, %v2893_v2  ;;  %v2783_v10 = vsub.f32 %v8957_v62, %v2668_v47  ;;  %v2784_v4 = vsub.f32 %v8970_v33, %v2668_v47  ;;  %v2670_v40 = vsel %vm192_vm1, %v8997_v12, -inf }
 0x729   :  { %v3035_v52 = vmul.f32 %v7392_v38, %v8959_v8  ;;  %v3036_v19 = vmul.f32 %v7392_v38, %v8961_v63  ;;  %v2377_v51 = vmul.f32 0.2, %v2313_v30  ;;  %v2671_v24 = vmax.f32 %v2669_v18, %v2670_v40 }
 0x72a   :  { %v2896_v11 = vrot.slane %v2895_v42, 2  ;;  %v2821_v60 = vmul.f32 1.442695, %v2783_v10  ;;  %v2823_v35 = vmul.f32 1.442695, %v2784_v4  ;;  %vm2345_vm0 = vcmp.gt.f32.partialorder %v2313_v30, 0.0 }
 0x72b   :  { %v3067_v6 = vmul.f32 %v3035_v52, %v8842_v3  ;;  %v3068_v62 = vmul.f32 %v3036_v19, %v8847_v7  ;;  %v3103_v33 = vadd.f32 %v3102_v15, %v3101_v22  ;;  %v2409_v63 = vsel %vm2345_vm0, %v2313_v30, %v2377_v51 }
 0x72c   :  { %v2897_v8 = vadd.f32 %v2896_v11, %v2895_v42  ;;  %7393 = vpow2.f32 %v2821_v60  ;;  %v2672_v28 = vrot.slane %v2671_v24, 4  ;;  %v2283_v2 = vadd.f32 %v2237_v29, %v8842_v3 }
 0x72d   :  { %v3106_v54 = vsel %vm192_vm1, %v3067_v6, 0.0  ;;  %v3107_v16 = vsel %vm192_vm1, %v3068_v62, 0.0  ;;  %7395 = vpow2.f32 %v2823_v35  ;;  %6926 = vmatmul.msk.f32.gmra.mxu2 %vm192_vm1, %v2409_v63  ;;  %v3104_v20 = vrot.slane %v3103_v33, 1 }
 0x72e   :  { %v3108_v37 = vadd.f32 %v3107_v16, %v3106_v54  ;;  %v2898_v39 = vrot.slane %v2897_v8, 1  ;;  %v2192_v44 = vpop.f32.mrf.mxu3  ;;  %v2673_v32 = vmax.f32 %v2671_v24, %v2672_v28  ;;  %v2222_v17 = vrot.slane %v8916_v0, 7  ;;  %v6940_v24 = vld [vmem:[%s8475_s21 + $0x78] sm:$0xff] }
 0x72f   :  { %v2314_v56 = vadd.f32 %v2282_v55, %v2192_v44  ;;  %v9014_v48 = vpop.f32.mrf.mxu2  ;;  %v3105_v9 = vadd.f32 %v3104_v20, %v3103_v33  ;;  %3332 = vmatpush.msrb.mxu0 %v6940_v24 }
 0x730   :  { %v3109_v45 = vrot.slane %v3108_v37, 4  ;;  %v2899_v36 = vadd.f32 %v2898_v39, %v2897_v8  ;;  %v2674_v34 = vrot.slane %v2673_v32, 2  ;;  %v2678_v10 = vsel %vm192_vm1, %v9014_v48, -inf }
 0x731   :  { %v2378_v41 = vmul.f32 0.2, %v2314_v56  ;;  %vm2346_vm2 = vcmp.gt.f32.partialorder %v2314_v56, 0.0  ;;  %v3246_v15 = vadd.f32 %v9023_v25, %v3105_v9  ;;  %v2238_v29 = vperm.slane %v2222_v17, 0 }
 0x732   :  { %v9016_v46 = vpop.eup %7393  ;;  %v3110_v13 = vadd.f32 %v3109_v45, %v3108_v37  ;;  %7397 = vrcp.f32 %v2899_v36  ;;  %v2675_v59 = vmax.f32 %v2673_v32, %v2674_v34 }
 0x733   :  { %v9018_v57 = vpop.eup %7395  ;;  %v2900_v53 = vsel %vm192_vm1, %v9016_v46, 0.0  ;;  %v2410_v61 = vsel %vm2346_vm2, %v2314_v56, %v2378_v41 }
 0x734   :  { %v3111_v5 = vrot.slane %v3110_v13, 2  ;;  %v2901_v21 = vsel %vm192_vm1, %v9018_v57, 0.0  ;;  %v2676_v22 = vrot.slane %v2675_v59, 1 }
 0x735   :  { %v2902_v26 = vadd.f32 %v2901_v21, %v2900_v53  ;;  %6927 = vmatmul.msk.f32.gmra.mxu2 %vm192_vm1, %v2410_v61 }
 0x736   :  { %v3112_v31 = vadd.f32 %v3111_v5, %v3110_v13  ;;  %v2195_v23 = vpop.f32.mrf.mxu3  ;;  %v2677_v27 = vmax.f32 %v2675_v59, %v2676_v22 }
 0x737   :  { %v2903_v47 = vrot.slane %v2902_v26, 4  ;;  %v2315_v30 = vadd.f32 %v2283_v2, %v2195_v23  ;;  %v9030_v55 = vpop.f32.mrf.mxu2 }
 0x738   :  { %v7398_v38 = vpop.eup %7397  ;;  %v3113_v42 = vrot.slane %v3112_v31, 1  ;;  %v2679_v4 = vsel %vm192_vm1, %v9030_v55, -inf  ;;  %v2785_v51 = vsub.f32 %v8985_v50, %v2677_v27  ;;  %v2786_v11 = vsub.f32 %v8997_v12, %v2677_v27 }
 0x739   :  { %v3037_v0 = vmul.f32 %v7398_v38, %v8987_v58  ;;  %v3038_v52 = vmul.f32 %v7398_v38, %v8989_v14  ;;  %v2904_v19 = vadd.f32 %v2903_v47, %v2902_v26  ;;  %v2379_v60 = vmul.f32 0.2, %v2315_v30 }
 0x73a   :  { %v3114_v40 = vadd.f32 %v3113_v42, %v3112_v31  ;;  %v2680_v35 = vmax.f32 %v2678_v10, %v2679_v4  ;;  %v2825_v33 = vmul.f32 1.442695, %v2785_v51  ;;  %v2827_v58 = vmul.f32 1.442695, %v2786_v11 }
 0x73b   :  { %v3069_v18 = vmul.f32 %v3037_v0, %v8842_v3  ;;  %v3070_v6 = vmul.f32 %v3038_v52, %v8847_v7  ;;  %v2905_v62 = vrot.slane %v2904_v19, 2  ;;  %vm2347_vm3 = vcmp.gt.f32.partialorder %v2315_v30, 0.0 }
 0x73c   :  { %v3247_v8 = vadd.f32 %v9023_v25, %v3114_v40  ;;  %v2681_v14 = vrot.slane %v2680_v35, 4  ;;  %7399 = vpow2.f32 %v2825_v33  ;;  %v2411_v44 = vsel %vm2347_vm3, %v2315_v30, %v2379_v60 }
 0x73d   :  { %v3115_v50 = vsel %vm192_vm1, %v3069_v18, 0.0  ;;  %v3116_v63 = vsel %vm192_vm1, %v3070_v6, 0.0  ;;  %v2906_v12 = vadd.f32 %v2905_v62, %v2904_v19  ;;  %7401 = vpow2.f32 %v2827_v58  ;;  %6928 = vmatmul.msk.f32.gmra.mxu2 %vm192_vm1, %v2411_v44 }
 0x73e   :  { %v3292_v54 = vrot.slane %v3247_v8, 7  ;;  %v3117_v16 = vadd.f32 %v3116_v63, %v3115_v50  ;;  %v2682_v28 = vmax.f32 %v2680_v35, %v2681_v14  ;;  %v2198_v37 = vpop.f32.mrf.mxu3  ;;  %v2285_v26 = vadd.f32 %v2238_v29, %v8842_v3 }
 0x73f   :  { %v2907_v39 = vrot.slane %v2906_v12, 1  ;;  %v2316_v32 = vadd.f32 %v2284_v43, %v2198_v37  ;;  %v9048_v56 = vpop.f32.mrf.mxu2  ;;  %v2286_v62 = vadd.f32 %v2238_v29, %v8847_v7 }
 0x740   :  { %v3118_v20 = vrot.slane %v3117_v16, 4  ;;  %v2683_v45 = vrot.slane %v2682_v28, 2  ;;  %v3293_v36 = vsel %vm1842_vm4, %v3292_v54, %v3246_v15  ;;  %v2687_v10 = vsel %vm192_vm1, %v9048_v56, -inf }
 0x741   :  { %v2908_v34 = vadd.f32 %v2907_v39, %v2906_v12  ;;  %v2380_v41 = vmul.f32 0.2, %v2316_v32  ;;  %vm2348_vm12 = vcmp.gt.f32.partialorder %v2316_v32, 0.0 }
 0x742   :  { %v3119_v13 = vadd.f32 %v3118_v20, %v3117_v16  ;;  %v2684_v53 = vmax.f32 %v2682_v28, %v2683_v45  ;;  %v9052_v59 = vpop.eup %7399 }
 0x743   :  { %7403 = vrcp.f32 %v2908_v34  ;;  %v9054_v61 = vpop.eup %7401  ;;  %v2412_v21 = vsel %vm2348_vm12, %v2316_v32, %v2380_v41  ;;  %v2909_v2 = vsel %vm192_vm1, %v9052_v59, 0.0 }
 0x744   :  { %v3120_v9 = vrot.slane %v3119_v13, 2  ;;  %v2685_v5 = vrot.slane %v2684_v53, 1  ;;  %v2910_v31 = vsel %vm192_vm1, %v9054_v61, 0.0 }
 0x745   :  { %6929 = vmatmul.msk.f32.gmra.mxu2 %vm192_vm1, %v2412_v21  ;;  %v2911_v42 = vadd.f32 %v2910_v31, %v2909_v2 }
 0x746   :  { %v3121_v22 = vadd.f32 %v3120_v9, %v3119_v13  ;;  %v2686_v23 = vmax.f32 %v2684_v53, %v2685_v5  ;;  %v2201_v17 = vpop.f32.mrf.mxu3 }
 0x747   :  { %v2317_v47 = vadd.f32 %v2285_v26, %v2201_v17  ;;  %v9061_v27 = vpop.f32.mrf.mxu2 }
 0x748   :  { %v3122_v30 = vrot.slane %v3121_v22, 1  ;;  %v2787_v43 = vsub.f32 %v9014_v48, %v2686_v23  ;;  %v2788_v38 = vsub.f32 %v9030_v55, %v2686_v23  ;;  %v2688_v0 = vsel %vm192_vm1, %v9061_v27, -inf }
 0x749   :  { %v7404_v15 = vpop.eup %7403  ;;  %v2381_v4 = vmul.f32 0.2, %v2317_v47  ;;  %vm2349_vm13 = vcmp.gt.f32.partialorder %v2317_v47, 0.0  ;;  %v2689_v55 = vmax.f32 %v2687_v10, %v2688_v0 }
 0x74a   :  { %v3123_v52 = vadd.f32 %v3122_v30, %v3121_v22  ;;  %v3039_v19 = vmul.f32 %v7404_v15, %v9016_v46  ;;  %v3040_v51 = vmul.f32 %v7404_v15, %v9018_v57  ;;  %v2829_v48 = vmul.f32 1.442695, %v2787_v43  ;;  %v6939_v22 = vld [vmem:[%s8475_s21 + $0x70] sm:$0xff] }
 0x74b   :  { %v2831_v40 = vmul.f32 1.442695, %v2788_v38  ;;  %v2690_v18 = vrot.slane %v2689_v55, 4  ;;  %v2413_v6 = vsel %vm2349_vm13, %v2317_v47, %v2381_v4  ;;  %v2912_v57 = vrot.slane %v2911_v42, 4  ;;  %3333 = vmatpush.msrb.mxu0 %v6939_v22 }
 0x74c   :  { %v3248_v11 = vadd.f32 %v9023_v25, %v3123_v52  ;;  %v3071_v60 = vmul.f32 %v3039_v19, %v8842_v3  ;;  %v3072_v35 = vmul.f32 %v3040_v51, %v8847_v7  ;;  %7405 = vpow2.f32 %v2829_v48 }
 0x74d   :  { %7407 = vpow2.f32 %v2831_v40  ;;  %v2691_v58 = vmax.f32 %v2689_v55, %v2690_v18  ;;  %6930 = vmatmul.msk.f32.gmra.mxu2 %vm192_vm1, %v2413_v6  ;;  %v2913_v44 = vadd.f32 %v2912_v57, %v2911_v42 }
 0x74e   :  { %v3124_v24 = vsel %vm192_vm1, %v3071_v60, 0.0  ;;  %v3125_v46 = vsel %vm192_vm1, %v3072_v35, 0.0  ;;  %v2204_v33 = vpop.f32.mrf.mxu3  ;;  %v3294_v63 = vrot.slane %v3248_v11, 6 }
 0x74f   :  { %v3126_v8 = vadd.f32 %v3125_v46, %v3124_v24  ;;  %v2318_v14 = vadd.f32 %v2286_v62, %v2204_v33  ;;  %v9078_v50 = vpop.f32.mrf.mxu2  ;;  %v2692_v54 = vrot.slane %v2691_v58, 2 }
 0x750   :  { %v3295_v28 = vsel %vm1845_vm5, %v3294_v63, %v3293_v36  ;;  %v2914_v36 = vrot.slane %v2913_v44, 2  ;;  %v2696_v2 = vsel %vm192_vm1, %v9078_v50, -inf }
 0x751   :  { %v3127_v12 = vrot.slane %v3126_v8, 4  ;;  %v2382_v16 = vmul.f32 0.2, %v2318_v14  ;;  %vm2350_vm14 = vcmp.gt.f32.partialorder %v2318_v14, 0.0  ;;  %v2693_v32 = vmax.f32 %v2691_v58, %v2692_v54 }
 0x752   :  { %v9082_v37 = vpop.eup %7405  ;;  %v2915_v15 = vadd.f32 %v2914_v36, %v2913_v44 }
 0x753   :  { %v3128_v39 = vadd.f32 %v3127_v12, %v3126_v8  ;;  %v9084_v20 = vpop.eup %7407  ;;  %v2918_v45 = vsel %vm192_vm1, %v9082_v37, 0.0  ;;  %v2694_v29 = vrot.slane %v2693_v32, 1  ;;  %v2414_v13 = vsel %vm2350_vm14, %v2318_v14, %v2382_v16 }
 0x754   :  { %v2919_v41 = vsel %vm192_vm1, %v9084_v20, 0.0  ;;  %v2916_v48 = vrot.slane %v2915_v15, 1 }
 0x755   :  { %v3129_v34 = vrot.slane %v3128_v39, 2  ;;  %v2920_v53 = vadd.f32 %v2919_v41, %v2918_v45  ;;  %v2695_v5 = vmax.f32 %v2693_v32, %v2694_v29  ;;  %6931 = vmatmul.msk.f32.gmra.mxu2 %vm192_vm1, %v2414_v13 }
 0x756   :  { %v2917_v18 = vadd.f32 %v2916_v48, %v2915_v15 }
 0x757   :  { %v3130_v9 = vadd.f32 %v3129_v34, %v3128_v39  ;;  %v2582_v21 = vpop.f32.mrf.mxu2  ;;  %v2921_v26 = vrot.slane %v2920_v53, 4  ;;  %v2789_v17 = vsub.f32 %v9048_v56, %v2695_v5  ;;  %v2790_v47 = vsub.f32 %v9061_v27, %v2695_v5 }
 0x758   :  { %v2697_v31 = vsel %vm192_vm1, %v2582_v21, -inf }
 0x759   :  { %v3131_v23 = vrot.slane %v3130_v9, 1  ;;  %v2698_v30 = vmax.f32 %v2696_v2, %v2697_v31  ;;  %v2922_v43 = vadd.f32 %v2921_v26, %v2920_v53  ;;  %v2833_v42 = vmul.f32 1.442695, %v2789_v17  ;;  %v6938_v26 = vld [vmem:[%s8475_s21 + $0x68] sm:$0xff] }
 0x75a   :  { %v2835_v4 = vmul.f32 1.442695, %v2790_v47  ;;  %3334 = vmatpush.msrb.mxu0 %v6938_v26 }
 0x75b   :  { %v3132_v38 = vadd.f32 %v3131_v23, %v3130_v9  ;;  %v2923_v10 = vrot.slane %v2922_v43, 2  ;;  %v2699_v0 = vrot.slane %v2698_v30, 4  ;;  %7409 = vpow2.f32 %v2833_v42 }
 0x75c   :  { %7411 = vpow2.f32 %v2835_v4 }
 0x75d   :  { %v3249_v52 = vadd.f32 %v9023_v25, %v3132_v38  ;;  %v2924_v19 = vadd.f32 %v2923_v10, %v2922_v43  ;;  %v2700_v51 = vmax.f32 %v2698_v30, %v2699_v0  ;;  %7413 = vrcp.f32 %v2917_v18 }
 0x75f   :  { %v9098_v40 = vpop.f32.mrf.mxu2  ;;  %v3296_v56 = vrot.slane %v3249_v52, 5  ;;  %v2925_v55 = vrot.slane %v2924_v19, 1  ;;  %v2701_v27 = vrot.slane %v2700_v51, 2 }
 0x761   :  { %v9101_v11 = vsel %vm1848_vm6, %v3296_v56, %v3295_v28  ;;  %v2702_v60 = vmax.f32 %v2700_v51, %v2701_v27  ;;  %v7410_v35 = vpop.eup %7409  ;;  %v2926_v62 = vadd.f32 %v2925_v55, %v2924_v19 }
 0x762   :  { %v7412_v6 = vpop.eup %7411  ;;  %v2927_v24 = vsel %vm192_vm1, %v7410_v35, 0.0 }
 0x763   :  { %v2703_v46 = vrot.slane %v2702_v60, 1  ;;  %v2928_v57 = vsel %vm192_vm1, %v7412_v6, 0.0  ;;  %7415 = vrcp.f32 %v2926_v62  ;;  %v7414_v44 = vpop.eup %7413 }
 0x764   :  { %v2929_v33 = vadd.f32 %v2928_v57, %v2927_v24  ;;  %v3041_v41 = vmul.f32 %v7414_v44, %v9052_v59  ;;  %v3042_v29 = vmul.f32 %v7414_v44, %v9054_v61 }
 0x765   :  { %v2704_v8 = vmax.f32 %v2702_v60, %v2703_v46 }
 0x766   :  { %v2930_v14 = vrot.slane %v2929_v33, 4  ;;  %v3073_v22 = vmul.f32 %v3041_v41, %v8842_v3  ;;  %v3074_v2 = vmul.f32 %v3042_v29, %v8847_v7  ;;  %v6937_v41 = vld [vmem:[%s8475_s21 + $0x60] sm:$0xff] }
 0x767   :  { %v9105_v58 = vpop.f32.mrf.mxu2  ;;  %v2791_v63 = vsub.f32 %v9078_v50, %v2704_v8  ;;  %v2792_v12 = vsub.f32 %v2582_v21, %v2704_v8  ;;  %3335 = vmatpush.msrb.mxu0 %v6937_v41 }
 0x768   :  { %v2931_v54 = vadd.f32 %v2930_v14, %v2929_v33  ;;  %v3133_v17 = vsel %vm192_vm1, %v3073_v22, 0.0  ;;  %v3134_v47 = vsel %vm192_vm1, %v3074_v2, 0.0 }
 0x769   :  { %v2837_v16 = vmul.f32 1.442695, %v2791_v63  ;;  %v2839_v28 = vmul.f32 1.442695, %v2792_v12  ;;  %v7416_v32 = vpop.eup %7415  ;;  %v3135_v42 = vadd.f32 %v3134_v47, %v3133_v17  ;;  %v2705_v17 = vsel %vm192_vm1, %v9098_v40, -inf  ;;  %v6933_v47 = vld [vmem:[%s8475_s21 + $0x40] sm:$0xff] }
 0x76a   :  { %v2932_v39 = vrot.slane %v2931_v54, 2  ;;  %v3043_v50 = vmul.f32 %v7416_v32, %v9082_v37  ;;  %v3044_v53 = vmul.f32 %v7416_v32, %v9084_v20 }
 0x76b   :  { %7417 = vpow2.f32 %v2837_v16  ;;  %v3136_v56 = vrot.slane %v3135_v42, 4 }
 0x76c   :  { %7419 = vpow2.f32 %v2839_v28  ;;  %v2933_v45 = vadd.f32 %v2932_v39, %v2931_v54  ;;  %v3075_v61 = vmul.f32 %v3043_v50, %v8842_v3  ;;  %v3076_v37 = vmul.f32 %v3044_v53, %v8847_v7  ;;  %v6936_v53 = vld [vmem:[%s8475_s21 + $0x58] sm:$0xff] }
 0x76d   :  { %3336 = vmatpush.msrb.mxu0 %v6936_v53 }
 0x76e   :  { %v2934_v13 = vrot.slane %v2933_v45, 1  ;;  %v3142_v30 = vsel %vm192_vm1, %v3075_v61, 0.0  ;;  %v3143_v43 = vsel %vm192_vm1, %v3076_v37, 0.0  ;;  %v6934_v61 = vld [vmem:[%s8475_s21 + $0x48] sm:$0xff] }
 0x76f   :  { %v9108_v34 = vpop.f32.mrf.mxu2  ;;  %v3144_v52 = vadd.f32 %v3143_v43, %v3142_v30 }
 0x770   :  { %v2935_v36 = vadd.f32 %v2934_v13, %v2933_v45 }
 0x771   :  { %v7418_v9 = vpop.eup %7417  ;;  %v3145_v62 = vrot.slane %v3144_v52, 4 }
 0x772   :  { %v7420_v5 = vpop.eup %7419  ;;  %v2936_v21 = vsel %vm192_vm1, %v7418_v9, 0.0  ;;  %7421 = vrcp.f32 %v2935_v36 }
 0x773   :  { %v2937_v59 = vsel %vm192_vm1, %v7420_v5, 0.0  ;;  %v3146_v57 = vadd.f32 %v3145_v62, %v3144_v52 }
 0x774   :  { %v2938_v31 = vadd.f32 %v2937_v59, %v2936_v21  ;;  %v2706_v59 = vsel %vm192_vm1, %v9105_v58, -inf }
 0x775   :  { %v3147_v63 = vrot.slane %v3146_v57, 2  ;;  %v2707_v43 = vmax.f32 %v2705_v17, %v2706_v59  ;;  %v9205_v59 = vld [vmem:[%s7878_s13] sm:$0xff] }
 0x776   :  { %v2939_v20 = vrot.slane %v2938_v31, 4 }
 0x777   :  { %v9121_v23 = vpop.f32.mrf.mxu2  ;;  %v3148_v44 = vadd.f32 %v3147_v63, %v3146_v57  ;;  %v9176_v57 = vld [vmem:[%s7878_s13 + $0x28] sm:$0xff] }
 0x778   :  { %v2940_v38 = vadd.f32 %v2939_v20, %v2938_v31  ;;  %v7422_v15 = vpop.eup %7421  ;;  %v2715_v31 = vsel %vm192_vm1, %v9121_v23, -inf }
 0x779   :  { %v3045_v10 = vmul.f32 %v7422_v15, %v7410_v35  ;;  %v3046_v4 = vmul.f32 %v7422_v15, %v7412_v6  ;;  %v3137_v6 = vadd.f32 %v3136_v56, %v3135_v42  ;;  %v3149_v26 = vrot.slane %v3148_v44, 1 }
 0x77a   :  { %v2941_v0 = vrot.slane %v2940_v38, 2 }
 0x77b   :  { %v3077_v19 = vmul.f32 %v3045_v10, %v8842_v3  ;;  %v3078_v51 = vmul.f32 %v3046_v4, %v8847_v7  ;;  %v3138_v8 = vrot.slane %v3137_v6, 2  ;;  %v3150_v30 = vadd.f32 %v3149_v26, %v3148_v44 }
 0x77c   :  { %v2942_v48 = vadd.f32 %v2941_v0, %v2940_v38  ;;  %v2714_v38 = vsel %vm192_vm1, %v9108_v34, -inf  ;;  %v9157_v0 = vld [vmem:[%s7878_s13 + $0x38] sm:$0xff] }
 0x77d   :  { %v3151_v55 = vsel %vm192_vm1, %v3077_v19, 0.0  ;;  %v3152_v27 = vsel %vm192_vm1, %v3078_v51, 0.0  ;;  %v3139_v39 = vadd.f32 %v3138_v8, %v3137_v6  ;;  %v2716_v10 = vmax.f32 %v2714_v38, %v2715_v31 }
 0x77e   :  { %v2943_v60 = vrot.slane %v2942_v48, 1  ;;  %v3153_v24 = vadd.f32 %v3152_v27, %v3151_v55  ;;  %v3251_v55 = vadd.f32 %v9023_v25, %v3150_v30  ;;  %v9169_v27 = vld [vmem:[%s7878_s13 + $0x30] sm:$0xff] }
 0x77f   :  { %v9131_v18 = vpop.f32.mrf.mxu2  ;;  %v3140_v36 = vrot.slane %v3139_v39, 1 }
 0x780   :  { %v2944_v46 = vadd.f32 %v2943_v60, %v2942_v48  ;;  %v3154_v35 = vrot.slane %v3153_v24, 4  ;;  %v2723_v48 = vsel %vm192_vm1, %v9131_v18, -inf  ;;  %v2708_v60 = vrot.slane %v2707_v43, 4 }
 0x781   :  { %v3141_v20 = vadd.f32 %v3140_v36, %v3139_v39  ;;  %v9194_v36 = vld [vmem:[%s7878_s13 + $0x10] sm:$0xff] }
 0x782   :  { %7423 = vrcp.f32 %v2944_v46  ;;  %v3155_v33 = vadd.f32 %v3154_v35, %v3153_v24  ;;  %v2717_v46 = vrot.slane %v2716_v10, 4 }
 0x783   :  { %v3250_v51 = vadd.f32 %v9023_v25, %v3141_v20 }
 0x784   :  { %v3156_v54 = vrot.slane %v3155_v33, 2  ;;  %v2718_v44 = vmax.f32 %v2716_v10, %v2717_v46 }
 0x785   :  { %v3298_v8 = vrot.slane %v3250_v51, 4 }
 0x786   :  { %v3157_v29 = vadd.f32 %v3156_v54, %v3155_v33  ;;  %v9180_v54 = vld [vmem:[%s7878_s13 + $0x20] sm:$0xff]  ;;  %v2719_v26 = vrot.slane %v2718_v44, 2 }
 0x787   :  { %v9133_v14 = vpop.f32.mrf.mxu2 }
 0x788   :  { %v7424_v12 = vpop.eup %7423  ;;  %v3158_v2 = vrot.slane %v3157_v29, 1  ;;  %v2724_v4 = vsel %vm192_vm1, %v9133_v14, -inf  ;;  %v2720_v31 = vmax.f32 %v2718_v44, %v2719_v26 }
 0x789   :  { %v3047_v16 = vmul.f32 %v7424_v12, %v7418_v9  ;;  %v3048_v28 = vmul.f32 %v7424_v12, %v7420_v5  ;;  %v6935_v5 = vld [vmem:[%s8475_s21 + $0x50] sm:$0xff]  ;;  %v2725_v62 = vmax.f32 %v2723_v48, %v2724_v4  ;;  %v3300_v12 = vrot.slane %v3251_v55, 3 }
 0x78a   :  { %3337 = vmatpush.msrb.mxu0 %v6935_v5  ;;  %v3159_v15 = vadd.f32 %v3158_v2, %v3157_v29  ;;  %v3299_v29 = vsel %vm1851_vm7, %v3298_v8, %v9101_v11  ;;  %v9200_v2 = vld [vmem:[%s7878_s13 + $0x8] sm:$0xff]  ;;  %v2721_v38 = vrot.slane %v2720_v31, 1 }
 0x78b   :  { %v3079_v32 = vmul.f32 %v3047_v16, %v8842_v3  ;;  %v3080_v45 = vmul.f32 %v3048_v28, %v8847_v7  ;;  %v2709_v16 = vmax.f32 %v2707_v43, %v2708_v60  ;;  %v2726_v28 = vrot.slane %v2725_v62, 4 }
 0x78c   :  { %3338 = vmatpush.msrb.mxu0 %v6934_v61  ;;  %v3252_v24 = vadd.f32 %v9023_v25, %v3159_v15  ;;  %v2722_v48 = vmax.f32 %v2720_v31, %v2721_v38 }
 0x78d   :  { %v3160_v13 = vsel %vm192_vm1, %v3079_v32, 0.0  ;;  %v3161_v50 = vsel %vm192_vm1, %v3080_v45, 0.0  ;;  %v9185_v45 = vld [vmem:[%s7878_s13 + $0x18] sm:$0xff] }
 0x78e   :  { %v3162_v9 = vadd.f32 %v3161_v50, %v3160_v13  ;;  %3339 = vmatpush.msrb.mxu0 %v6933_v47  ;;  %v3302_v39 = vrot.slane %v3252_v24, 2  ;;  %v3301_v50 = vsel %vm1854_vm9, %v3300_v12, %v3299_v29 }
 0x78f   :  { %v9141_v21 = vpop.f32.mrf.mxu2 }
 0x790   :  { %v3163_v22 = vrot.slane %v3162_v9, 4  ;;  %3396 = vmatpush.msra.mxu0 %v9157_v0  ;;  %v2732_v35 = vsel %vm192_vm1, %v9141_v21, -inf  ;;  %v3303_v5 = vsel %vm1857_vm10, %v3302_v39, %v3301_v50 }
 0x792   :  { %v3164_v37 = vadd.f32 %v3163_v22, %v3162_v9  ;;  %3397 = vmatpush.msra.mxu0 %v9169_v27  ;;  %v2710_v9 = vrot.slane %v2709_v16, 2 }
 0x794   :  { %v3165_v42 = vrot.slane %v3164_v37, 2  ;;  %3398 = vmatpush.msra.mxu0 %v9176_v57  ;;  %v2711_v61 = vmax.f32 %v2709_v16, %v2710_v9 }
 0x796   :  { %v3166_v19 = vadd.f32 %v3165_v42, %v3164_v37  ;;  %3399 = vmatpush.msra.mxu0 %v9180_v54  ;;  %v2712_v47 = vrot.slane %v2711_v61, 1 }
 0x797   :  { %v9160_v52 = vpop.f32.mrf.mxu2 }
 0x798   :  { %v2733_v56 = vsel %vm192_vm1, %v9160_v52, -inf  ;;  %v3167_v6 = vrot.slane %v3166_v19, 1  ;;  %3400 = vmatpush.msra.mxu0 %v9185_v45  ;;  %v2713_v4 = vmax.f32 %v2711_v61, %v2712_v47 }
 0x799   :  { %v2734_v33 = vmax.f32 %v2732_v35, %v2733_v56  ;;  %v2795_v35 = vsub.f32 %v9108_v34, %v2722_v48 }
 0x79a   :  { %v3168_v63 = vadd.f32 %v3167_v6, %v3166_v19  ;;  %3401 = vmatpush.msra.mxu0 %v9194_v36  ;;  %v2796_v6 = vsub.f32 %v9121_v23, %v2722_v48 }
 0x79b   :  { %v2735_v41 = vrot.slane %v2734_v33, 4  ;;  %v2845_v39 = vmul.f32 1.442695, %v2795_v35 }
 0x79c   :  { %v3253_v32 = vadd.f32 %v9023_v25, %v3168_v63  ;;  %v2727_v25 = vmax.f32 %v2725_v62, %v2726_v28  ;;  %3402 = vmatpush.msra.mxu0 %v9200_v2  ;;  %v2793_v62 = vsub.f32 %v9098_v40, %v2713_v4  ;;  %v2794_v63 = vsub.f32 %v9105_v58, %v2713_v4 }
 0x79d   :  { %v2736_v11 = vmax.f32 %v2734_v33, %v2735_v41 }
 0x79e   :  { %v3304_v53 = vrot.slane %v3253_v32, 1  ;;  %3403 = vmatpush.msra.mxu0 %v9205_v59  ;;  %v2728_v37 = vrot.slane %v2727_v25, 2  ;;  %v2841_v12 = vmul.f32 1.442695, %v2793_v62  ;;  %v2847_v32 = vmul.f32 1.442695, %v2796_v6 }
 0x79f   :  { %v2737_v20 = vrot.slane %v2736_v11, 2  ;;  %v2843_v29 = vmul.f32 1.442695, %v2794_v63 }
 0x7a0   :  { %v9190_v13 = vpop.f32.mrf.mxu2  ;;  %v3305_v22 = vsel %vm1860_vm11, %v3304_v53, %v3303_v5  ;;  %v2729_v30 = vmax.f32 %v2727_v25, %v2728_v37  ;;  %7425 = vpow2.f32 %v2841_v12 }
 0x7a1   :  { %6942 = vmatmul.msk.f32.vlgmr.msrb.gmra.mxu0 %vm192_vm1, %v3305_v22  ;;  %v2741_v15 = vsel %vm192_vm1, %v9190_v13, -inf  ;;  %v2738_v42 = vmax.f32 %v2736_v11, %v2737_v20  ;;  %7427 = vpow2.f32 %v2845_v39 }
 0x7a2   :  { %v2730_v19 = vrot.slane %v2729_v30, 1  ;;  %7429 = vpow2.f32 %v2847_v32 }
 0x7a3   :  { %v2739_v56 = vrot.slane %v2738_v42, 1  ;;  %7431 = vpow2.f32 %v2843_v29 }
 0x7a4   :  { %v2731_v24 = vmax.f32 %v2729_v30, %v2730_v19 }
 0x7a5   :  { %v2740_v33 = vmax.f32 %v2738_v42, %v2739_v56 }
 0x7a6   :  { %v2797_v16 = vsub.f32 %v9131_v18, %v2731_v24  ;;  %v2798_v44 = vsub.f32 %v9133_v14, %v2731_v24  ;;  %v9225_v11 = vpop.eup %7425 }
 0x7a7   :  { %v2799_v40 = vsub.f32 %v9141_v21, %v2740_v33  ;;  %v2800_v34 = vsub.f32 %v9160_v52, %v2740_v33  ;;  %v2945_v4 = vsel %vm192_vm1, %v9225_v11, 0.0 }
 0x7a8   :  { %v2612_v17 = vpop.f32.mrf.mxu2  ;;  %v2849_v23 = vmul.f32 1.442695, %v2797_v16  ;;  %v2851_v58 = vmul.f32 1.442695, %v2798_v44 }
 0x7a9   :  { %v2742_v43 = vsel %vm192_vm1, %v2612_v17, -inf  ;;  %v2853_v25 = vmul.f32 1.442695, %v2799_v40  ;;  %v2855_v21 = vmul.f32 1.442695, %v2800_v34 }
 0x7aa   :  { %v2743_v10 = vmax.f32 %v2741_v15, %v2742_v43  ;;  %7433 = vpow2.f32 %v2849_v23 }
 0x7ab   :  { %7435 = vpow2.f32 %v2851_v58 }
 0x7ac   :  { %v2744_v51 = vrot.slane %v2743_v10, 4  ;;  %7437 = vpow2.f32 %v2853_v25 }
 0x7ad   :  { %7439 = vpow2.f32 %v2855_v21 }
 0x7ae   :  { %v2745_v55 = vmax.f32 %v2743_v10, %v2744_v51 }
 0x7b0   :  { %v9211_v60 = vpop.f32.mrf.mxu2  ;;  %v2746_v46 = vrot.slane %v2745_v55, 2 }
 0x7b1   :  { %v2750_v14 = vsel %vm192_vm1, %v9211_v60, -inf }
 0x7b2   :  { %v2747_v8 = vmax.f32 %v2745_v55, %v2746_v46 }
 0x7b4   :  { %v2748_v28 = vrot.slane %v2747_v8, 1 }
 0x7b6   :  { %v2749_v41 = vmax.f32 %v2747_v8, %v2748_v28 }
 0x7b8   :  { %v2618_v50 = vpop.f32.mrf.mxu2  ;;  %v2801_v53 = vsub.f32 %v9190_v13, %v2749_v41  ;;  %v2802_v9 = vsub.f32 %v2612_v17, %v2749_v41  ;;  %v9227_v13 = vpop.eup %7427 }
 0x7b9   :  { %v2751_v18 = vsel %vm192_vm1, %v2618_v50, -inf  ;;  %v9229_v37 = vpop.eup %7429  ;;  %v2954_v43 = vsel %vm192_vm1, %v9227_v13, 0.0 }
 0x7ba   :  { %v2752_v5 = vmax.f32 %v2750_v14, %v2751_v18  ;;  %v2857_v52 = vmul.f32 1.442695, %v2801_v53  ;;  %v2859_v26 = vmul.f32 1.442695, %v2802_v9  ;;  %v9231_v31 = vpop.eup %7431  ;;  %v2955_v38 = vsel %vm192_vm1, %v9229_v37, 0.0 }
 0x7bb   :  { %v9233_v17 = vpop.eup %7433  ;;  %v2946_v19 = vsel %vm192_vm1, %v9231_v31, 0.0  ;;  %v2956_v56 = vadd.f32 %v2955_v38, %v2954_v43 }
 0x7bc   :  { %v2753_v22 = vrot.slane %v2752_v5, 4  ;;  %7441 = vpow2.f32 %v2857_v52  ;;  %v9237_v30 = vpop.eup %7435  ;;  %v2963_v62 = vsel %vm192_vm1, %v9233_v17, 0.0  ;;  %v2947_v35 = vadd.f32 %v2946_v19, %v2945_v4 }
 0x7bd   :  { %7443 = vpow2.f32 %v2859_v26  ;;  %v9243_v42 = vpop.eup %7437  ;;  %v2964_v24 = vsel %vm192_vm1, %v9237_v30, 0.0  ;;  %v2957_v12 = vrot.slane %v2956_v56, 4 }
 0x7be   :  { %v2754_v61 = vmax.f32 %v2752_v5, %v2753_v22  ;;  %v9245_v10 = vpop.eup %7439  ;;  %v2972_v6 = vsel %vm192_vm1, %v9243_v42, 0.0  ;;  %v2965_v16 = vadd.f32 %v2964_v24, %v2963_v62 }
 0x7bf   :  { %v2973_v33 = vsel %vm192_vm1, %v9245_v10, 0.0  ;;  %v2958_v58 = vadd.f32 %v2957_v12, %v2956_v56 }
 0x7c0   :  { %v2755_v20 = vrot.slane %v2754_v61, 2  ;;  %v9235_v47 = vpop.f32.mrf.mxu2  ;;  %v2974_v34 = vadd.f32 %v2973_v33, %v2972_v6  ;;  %v2966_v9 = vrot.slane %v2965_v16, 4 }
 0x7c1   :  { %v2759_v41 = vsel %vm192_vm1, %v9235_v47, -inf  ;;  %v2959_v22 = vrot.slane %v2958_v58, 2 }
 0x7c2   :  { %v2756_v15 = vmax.f32 %v2754_v61, %v2755_v20  ;;  %v9251_v48 = vpop.eup %7441  ;;  %v2975_v18 = vrot.slane %v2974_v34, 4  ;;  %v2967_v61 = vadd.f32 %v2966_v9, %v2965_v16 }
 0x7c3   :  { %v9253_v55 = vpop.eup %7443  ;;  %v2981_v28 = vsel %vm192_vm1, %v9251_v48, 0.0  ;;  %v2960_v24 = vadd.f32 %v2959_v22, %v2958_v58 }
 0x7c4   :  { %v2757_v51 = vrot.slane %v2756_v15, 1  ;;  %v2982_v39 = vsel %vm192_vm1, %v9253_v55, 0.0  ;;  %v2976_v43 = vadd.f32 %v2975_v18, %v2974_v34 }
 0x7c6   :  { %v2758_v46 = vmax.f32 %v2756_v15, %v2757_v51 }
 0x7c8   :  { %v2803_v8 = vsub.f32 %v9211_v60, %v2758_v46  ;;  %v2804_v63 = vsub.f32 %v2618_v50, %v2758_v46  ;;  %v2624_v44 = vpop.f32.mrf.mxu2  ;;  %v2983_v60 = vadd.f32 %v2982_v39, %v2981_v28  ;;  %v2948_v50 = vrot.slane %v2947_v35, 4 }
 0x7c9   :  { %v2760_v29 = vsel %vm192_vm1, %v2624_v44, -inf  ;;  %v2968_v46 = vrot.slane %v2967_v61, 2  ;;  %v2961_v39 = vrot.slane %v2960_v24, 1 }
 0x7ca   :  { %v2861_v32 = vmul.f32 1.442695, %v2803_v8  ;;  %v2863_v40 = vmul.f32 1.442695, %v2804_v63  ;;  %v2761_v23 = vmax.f32 %v2759_v41, %v2760_v29  ;;  %v2984_v14 = vrot.slane %v2983_v60, 4 }
 0x7cb   :  { %v2949_v21 = vadd.f32 %v2948_v50, %v2947_v35  ;;  %v2977_v35 = vrot.slane %v2976_v43, 2 }
 0x7cc   :  { %7445 = vpow2.f32 %v2861_v32  ;;  %v2762_v53 = vrot.slane %v2761_v23, 4  ;;  %v2985_v4 = vadd.f32 %v2984_v14, %v2983_v60  ;;  %v2969_v32 = vadd.f32 %v2968_v46, %v2967_v61 }
 0x7cd   :  { %7447 = vpow2.f32 %v2863_v40  ;;  %v2950_v51 = vrot.slane %v2949_v21, 2  ;;  %v2978_v29 = vadd.f32 %v2977_v35, %v2976_v43  ;;  %v2962_v14 = vadd.f32 %v2961_v39, %v2960_v24 }
 0x7ce   :  { %v2763_v25 = vmax.f32 %v2761_v23, %v2762_v53  ;;  %v2986_v8 = vrot.slane %v2985_v4, 2 }
 0x7cf   :  { %v2951_v63 = vadd.f32 %v2950_v51, %v2949_v21  ;;  %v2979_v21 = vrot.slane %v2978_v29, 1 }
 0x7d0   :  { %v2764_v5 = vrot.slane %v2763_v25, 2  ;;  %v9271_v52 = vpop.f32.mrf.mxu2  ;;  %v2987_v50 = vadd.f32 %v2986_v8, %v2985_v4 }
 0x7d1   :  { %v2768_v60 = vsel %vm192_vm1, %v9271_v52, -inf  ;;  %v2952_v9 = vrot.slane %v2951_v63, 1  ;;  %v2980_v4 = vadd.f32 %v2979_v21, %v2978_v29 }
 0x7d2   :  { %v9273_v26 = vpop.eup %7445  ;;  %v2765_v15 = vmax.f32 %v2763_v25, %v2764_v5  ;;  %v2970_v25 = vrot.slane %v2969_v32, 1 }
 0x7d3   :  { %v9275_v20 = vpop.eup %7447  ;;  %v2990_v38 = vsel %vm192_vm1, %v9273_v26, 0.0  ;;  %v2953_v22 = vadd.f32 %v2952_v9, %v2951_v63 }
 0x7d4   :  { %v2991_v19 = vsel %vm192_vm1, %v9275_v20, 0.0  ;;  %v2766_v62 = vrot.slane %v2765_v15, 1  ;;  %v2971_v43 = vadd.f32 %v2970_v25, %v2969_v32 }
 0x7d5   :  { %v2992_v56 = vadd.f32 %v2991_v19, %v2990_v38 }
 0x7d6   :  { %v2767_v33 = vmax.f32 %v2765_v15, %v2766_v62 }
 0x7d7   :  { %v2993_v6 = vrot.slane %v2992_v56, 4 }
 0x7d8   :  { %v2805_v16 = vsub.f32 %v9235_v47, %v2767_v33  ;;  %v2630_v28 = vpop.f32.mrf.mxu2  ;;  %v2806_v40 = vsub.f32 %v2624_v44, %v2767_v33  ;;  %v2988_v44 = vrot.slane %v2987_v50, 1 }
 0x7d9   :  { %v2994_v12 = vadd.f32 %v2993_v6, %v2992_v56  ;;  %v2769_v41 = vsel %vm192_vm1, %v2630_v28, -inf }
 0x7da   :  { %v2865_v23 = vmul.f32 1.442695, %v2805_v16  ;;  %v2867_v53 = vmul.f32 1.442695, %v2806_v40  ;;  %v2770_v58 = vmax.f32 %v2768_v60, %v2769_v41  ;;  %v2989_v51 = vadd.f32 %v2988_v44, %v2987_v50 }
 0x7db   :  { %v2995_v34 = vrot.slane %v2994_v12, 2 }
 0x7dc   :  { %7449 = vpow2.f32 %v2865_v23  ;;  %v2771_v47 = vrot.slane %v2770_v58, 4 }
 0x7dd   :  { %v2996_v18 = vadd.f32 %v2995_v34, %v2994_v12  ;;  %7451 = vpow2.f32 %v2867_v53 }
 0x7de   :  { %v2772_v5 = vmax.f32 %v2770_v58, %v2771_v47  ;;  %7453 = vrcp.f32 %v2962_v14 }
 0x7df   :  { %v2997_v61 = vrot.slane %v2996_v18, 1  ;;  %7455 = vrcp.f32 %v2953_v22 }
 0x7e0   :  { %v2773_v38 = vrot.slane %v2772_v5, 2  ;;  %7457 = vrcp.f32 %v2971_v43 }
 0x7e1   :  { %v2998_v24 = vadd.f32 %v2997_v61, %v2996_v18  ;;  %7459 = vrcp.f32 %v2980_v4 }
 0x7e2   :  { %v9285_v15 = vpop.eup %7449  ;;  %v2774_v62 = vmax.f32 %v2772_v5, %v2773_v38  ;;  %7461 = vrcp.f32 %v2989_v51 }
 0x7e3   :  { %v9287_v19 = vpop.eup %7451  ;;  %v2999_v56 = vsel %vm192_vm1, %v9285_v15, 0.0  ;;  %7463 = vrcp.f32 %v2998_v24 }
 0x7e4   :  { %v3000_v46 = vsel %vm192_vm1, %v9287_v19, 0.0  ;;  %v2775_v6 = vrot.slane %v2774_v62, 1  ;;  %v7454_v63 = vpop.eup %7453 }
 0x7e5   :  { %v3001_v35 = vadd.f32 %v3000_v46, %v2999_v56  ;;  %v7456_v39 = vpop.eup %7455  ;;  %v3051_v41 = vmul.f32 %v7454_v63, %v9227_v13  ;;  %v3052_v60 = vmul.f32 %v7454_v63, %v9229_v37 }
 0x7e6   :  { %v2776_v8 = vmax.f32 %v2774_v62, %v2775_v6  ;;  %v7458_v40 = vpop.eup %7457  ;;  %v3049_v18 = vmul.f32 %v7456_v39, %v9225_v11  ;;  %v3050_v11 = vmul.f32 %v7456_v39, %v9231_v31 }
 0x7e7   :  { %v3002_v33 = vrot.slane %v3001_v35, 4  ;;  %v7460_v23 = vpop.eup %7459  ;;  %v3053_v25 = vmul.f32 %v7458_v40, %v9233_v17  ;;  %v3084_v37 = vmul.f32 %v3052_v60, %v8847_v7 }
 0x7e8   :  { %v2807_v16 = vsub.f32 %v9271_v52, %v2776_v8  ;;  %v2808_v32 = vsub.f32 %v2630_v28, %v2776_v8  ;;  %v7462_v53 = vpop.eup %7461  ;;  %v3054_v52 = vmul.f32 %v7458_v40, %v9237_v30  ;;  %v3083_v28 = vmul.f32 %v3051_v41, %v8842_v3 }
 0x7e9   :  { %v3003_v12 = vadd.f32 %v3002_v33, %v3001_v35  ;;  %v7464_v9 = vpop.eup %7463  ;;  %v3055_v13 = vmul.f32 %v7460_v23, %v9243_v42  ;;  %v3056_v47 = vmul.f32 %v7460_v23, %v9245_v10  ;;  %v3057_v21 = vmul.f32 %v7462_v53, %v9251_v48 }
 0x7ea   :  { %v2869_v34 = vmul.f32 1.442695, %v2807_v16  ;;  %v2871_v50 = vmul.f32 1.442695, %v2808_v32  ;;  %v3058_v44 = vmul.f32 %v7462_v53, %v9253_v55  ;;  %v3059_v17 = vmul.f32 %v7464_v9, %v9273_v26 }
 0x7eb   :  { %v3004_v29 = vrot.slane %v3003_v12, 2  ;;  %v3060_v30 = vmul.f32 %v7464_v9, %v9275_v20  ;;  %v3081_v22 = vmul.f32 %v3049_v18, %v8842_v3  ;;  %v3085_v42 = vmul.f32 %v3053_v25, %v8842_v3 }
 0x7ec   :  { %7465 = vpow2.f32 %v2869_v34  ;;  %v3086_v10 = vmul.f32 %v3054_v52, %v8847_v7  ;;  %v3178_v43 = vsel %vm192_vm1, %v3083_v28, 0.0  ;;  %v3087_v48 = vmul.f32 %v3055_v13, %v8842_v3 }
 0x7ed   :  { %v3005_v58 = vadd.f32 %v3004_v29, %v3003_v12  ;;  %7467 = vpow2.f32 %v2871_v50  ;;  %v3088_v55 = vmul.f32 %v3056_v47, %v8847_v7  ;;  %v3179_v26 = vsel %vm192_vm1, %v3084_v37, 0.0 }
 0x7ee   :  { %v3089_v20 = vmul.f32 %v3057_v21, %v8842_v3  ;;  %v3090_v38 = vmul.f32 %v3058_v44, %v8847_v7  ;;  %v3082_v51 = vmul.f32 %v3050_v11, %v8847_v7  ;;  %v3091_v56 = vmul.f32 %v3059_v17, %v8842_v3 }
 0x7ef   :  { %v3006_v14 = vrot.slane %v3005_v58, 1  ;;  %v3092_v62 = vmul.f32 %v3060_v30, %v8847_v7  ;;  %v3187_v46 = vsel %vm192_vm1, %v3085_v42, 0.0  ;;  %v3188_v35 = vsel %vm192_vm1, %v3086_v10, 0.0 }
 0x7f0   :  { %v3180_v33 = vadd.f32 %v3179_v26, %v3178_v43  ;;  %v3196_v8 = vsel %vm192_vm1, %v3087_v48, 0.0  ;;  %v3197_v63 = vsel %vm192_vm1, %v3088_v55, 0.0  ;;  %v3169_v12 = vsel %vm192_vm1, %v3081_v22, 0.0 }
 0x7f1   :  { %v3007_v5 = vadd.f32 %v3006_v14, %v3005_v58  ;;  %v3205_v16 = vsel %vm192_vm1, %v3089_v20, 0.0  ;;  %v3206_v39 = vsel %vm192_vm1, %v3090_v38, 0.0  ;;  %v3170_v41 = vsel %vm192_vm1, %v3082_v51, 0.0 }
 0x7f2   :  { %v9311_v61 = vpop.eup %7465  ;;  %v3189_v29 = vadd.f32 %v3188_v35, %v3187_v46  ;;  %v3214_v34 = vsel %vm192_vm1, %v3091_v56, 0.0  ;;  %v3215_v23 = vsel %vm192_vm1, %v3092_v62, 0.0  ;;  %v3198_v60 = vadd.f32 %v3197_v63, %v3196_v8 }
 0x7f3   :  { %7469 = vrcp.f32 %v3007_v5  ;;  %v9316_v31 = vpop.eup %7467  ;;  %v3008_v4 = vsel %vm192_vm1, %v9311_v61, 0.0  ;;  %v3181_v9 = vrot.slane %v3180_v33, 4  ;;  %v3207_v18 = vadd.f32 %v3206_v39, %v3205_v16 }
 0x7f4   :  { %v3009_v24 = vsel %vm192_vm1, %v9316_v31, 0.0  ;;  %v3216_v25 = vadd.f32 %v3215_v23, %v3214_v34  ;;  %v3171_v47 = vadd.f32 %v3170_v41, %v3169_v12  ;;  %v3190_v14 = vrot.slane %v3189_v29, 4 }
 0x7f5   :  { %v3010_v6 = vadd.f32 %v3009_v24, %v3008_v4  ;;  %v3199_v37 = vrot.slane %v3198_v60, 4 }
 0x7f6   :  { %v3217_v30 = vrot.slane %v3216_v25, 4  ;;  %v3191_v22 = vadd.f32 %v3190_v14, %v3189_v29  ;;  %v3172_v10 = vrot.slane %v3171_v47, 4 }
 0x7f7   :  { %v3011_v32 = vrot.slane %v3010_v6, 4  ;;  %v3200_v43 = vadd.f32 %v3199_v37, %v3198_v60  ;;  %v7747_v37 = vld [vmem:[%s8227_s17 + $0x1] ss:$0 sm:$0xff] }
 0x7f8   :  { %v3218_v20 = vadd.f32 %v3217_v30, %v3216_v25  ;;  %v3192_v38 = vrot.slane %v3191_v22, 2  ;;  %v3173_v51 = vadd.f32 %v3172_v10, %v3171_v47 }
 0x7f9   :  { %v7470_v40 = vpop.eup %7469  ;;  %v3012_v58 = vadd.f32 %v3011_v32, %v3010_v6  ;;  %v3201_v56 = vrot.slane %v3200_v43, 2 }
 0x7fa   :  { %v3061_v50 = vmul.f32 %v7470_v40, %v9285_v15  ;;  %v3062_v53 = vmul.f32 %v7470_v40, %v9287_v19  ;;  %v3208_v15 = vrot.slane %v3207_v18, 4  ;;  %v3182_v19 = vadd.f32 %v3181_v9, %v3180_v33 }
 0x7fb   :  { %v3013_v13 = vrot.slane %v3012_v58, 2  ;;  %v3219_v46 = vrot.slane %v3218_v20, 2  ;;  %v3193_v35 = vadd.f32 %v3192_v38, %v3191_v22  ;;  %v3174_v8 = vrot.slane %v3173_v51, 2 }
 0x7fc   :  { %v3093_v52 = vmul.f32 %v3061_v50, %v8842_v3  ;;  %v3094_v28 = vmul.f32 %v3062_v53, %v8847_v7  ;;  %v3209_v55 = vadd.f32 %v3208_v15, %v3207_v18  ;;  %v3183_v26 = vrot.slane %v3182_v19, 2 }
 0x7fd   :  { %v3014_v11 = vadd.f32 %v3013_v13, %v3012_v58  ;;  %v3202_v63 = vadd.f32 %v3201_v56, %v3200_v43  ;;  %v3220_v40 = vadd.f32 %v3219_v46, %v3218_v20  ;;  %v3194_v41 = vrot.slane %v3193_v35, 1 }
 0x7fe   :  { %v3223_v21 = vsel %vm192_vm1, %v3093_v52, 0.0  ;;  %v3224_v44 = vsel %vm192_vm1, %v3094_v28, 0.0  ;;  %v3210_v62 = vrot.slane %v3209_v55, 2  ;;  %v3184_v24 = vadd.f32 %v3183_v26, %v3182_v19 }
 0x7ff   :  { %v3225_v17 = vadd.f32 %v3224_v44, %v3223_v21  ;;  %v3015_v5 = vrot.slane %v3014_v11, 1  ;;  %v3175_v60 = vadd.f32 %v3174_v8, %v3173_v51  ;;  %v3203_v50 = vrot.slane %v3202_v63, 1 }
 0x800   :  { %v3211_v39 = vadd.f32 %v3210_v62, %v3209_v55  ;;  %v3185_v32 = vrot.slane %v3184_v24, 1  ;;  %v3221_v18 = vrot.slane %v3220_v40, 1  ;;  %v3195_v25 = vadd.f32 %v3194_v41, %v3193_v35 }
 0x801   :  { %v3226_v42 = vrot.slane %v3225_v17, 4  ;;  %v3016_v48 = vadd.f32 %v3015_v5, %v3014_v11  ;;  %v3176_v28 = vrot.slane %v3175_v60, 1  ;;  %v3204_v13 = vadd.f32 %v3203_v50, %v3202_v63  ;;  %v6956_v50 = vld [vmem:[%s8045_s28 + $0xb0] sm:$0xff] }
 0x802   :  { %v3212_v58 = vrot.slane %v3211_v39, 1  ;;  %v3256_v11 = vadd.f32 %v7747_v37, %v3195_v25  ;;  %v6954_v25 = vld [vmem:[%s8045_s28 + $0xa0] sm:$0xff] }
 0x803   :  { %7471 = vrcp.f32 %v3016_v48  ;;  %v3227_v4 = vadd.f32 %v3226_v42, %v3225_v17  ;;  %v3177_v15 = vadd.f32 %v3176_v28, %v3175_v60  ;;  %v3257_v19 = vadd.f32 %v7747_v37, %v3204_v13  ;;  %v7250_v48 = vld [vmem:[%s8555_s26 + $0x1] ss:$0 sm:$0xff]  ;;  %v6968_v60 = vld [vmem:[%s8040_s24 + $0xb8] sm:$0xff]  ;;  %v7014_v13 = vld [vmem:[%s8143_s12 + $0xb0] sm:$0xff] }
 0x804   :  { %v3308_v43 = vrot.slane %v3256_v11, 6  ;;  %3520 = vmatpush.msrb.mxu0 %v6968_v60  ;;  %v7015_v28 = vld [vmem:[%s8143_s12 + $0xb8] sm:$0xff]  ;;  %v6962_v11 = vld [vmem:[%s8040_s24 + $0x88] sm:$0xff] }
 0x805   :  { %v3228_v6 = vrot.slane %v3227_v4, 2  ;;  %v3254_v26 = vadd.f32 %v7747_v37, %v3177_v15  ;;  %v3310_v20 = vrot.slane %v3257_v19, 5  ;;  %3974 = vmatpush.msrb.mxu3 %v7015_v28  ;;  %v6950_v15 = vld [vmem:[%s8045_s28 + $0x80] sm:$0xff] }
 0x806   :  { %v7752_v28 = vld [vmem:[%s7996_s11 + $0x20] sm:$0xff] }
 0x807   :  { %v3229_v23 = vadd.f32 %v3228_v6, %v3227_v4  ;;  %3975 = vmatpush.msrb.mxu3 %v7014_v13  ;;  %v7009_v13 = vld [vmem:[%s8143_s12 + $0x88] sm:$0xff] }
 0x809   :  { %v7472_v33 = vpop.eup %7471  ;;  %v3230_v52 = vrot.slane %v3229_v23, 1 }
 0x80a   :  { %v3063_v12 = vmul.f32 %v7472_v33, %v9311_v61  ;;  %v3064_v16 = vmul.f32 %v7472_v33, %v9316_v31  ;;  %v3186_v61 = vadd.f32 %v3185_v32, %v3184_v24 }
 0x80b   :  { %v3231_v44 = vadd.f32 %v3230_v52, %v3229_v23  ;;  %v6957_v23 = vld [vmem:[%s8045_s28 + $0xb8] sm:$0xff]  ;;  %v6965_v52 = vld [vmem:[%s8040_s24 + $0xa0] sm:$0xff] }
 0x80c   :  { %v3095_v29 = vmul.f32 %v3063_v12, %v8842_v3  ;;  %v3096_v34 = vmul.f32 %v3064_v16, %v8847_v7  ;;  %v3213_v3 = vadd.f32 %v3212_v58, %v3211_v39  ;;  %v3222_v7 = vadd.f32 %v3221_v18, %v3220_v40  ;;  %3483 = vmatpush.msra.mxu1 %v6957_v23 }
 0x80d   :  { %v3255_v21 = vadd.f32 %v7747_v37, %v3186_v61  ;;  %v3260_v10 = vadd.f32 %v7747_v37, %v3231_v44  ;;  %v6966_v61 = vld [vmem:[%s8040_s24 + $0xa8] sm:$0xff] }
 0x80e   :  { %v3233_v53 = vsel %vm192_vm1, %v3096_v34, 0.0  ;;  %v3232_v9 = vsel %vm192_vm1, %v3095_v29, 0.0  ;;  %v3258_v30 = vadd.f32 %v7747_v37, %v3213_v3  ;;  %v3259_v22 = vadd.f32 %v7747_v37, %v3222_v7  ;;  %3484 = vmatpush.msra.mxu1 %v6956_v50  ;;  %v6953_v3 = vld [vmem:[%s8045_s28 + $0x98] sm:$0xff]  ;;  %v6951_v44 = vld [vmem:[%s8045_s28 + $0x88] sm:$0xff] }
 0x80f   :  { %v3234_v31 = vadd.f32 %v3233_v53, %v3232_v9  ;;  %v3306_v42 = vrot.slane %v3255_v21, 7  ;;  %v3316_v46 = vrot.slane %v3260_v10, 2  ;;  %v6967_v53 = vld [vmem:[%s8040_s24 + $0xb0] sm:$0xff]  ;;  %v6955_v9 = vld [vmem:[%s8045_s28 + $0xa8] sm:$0xff]  ;;  %v6964_v7 = vld [vmem:[%s8040_s24 + $0x98] sm:$0xff] }
 0x810   :  { %v3312_v38 = vrot.slane %v3258_v30, 4  ;;  %v3314_v56 = vrot.slane %v3259_v22, 3  ;;  %3521 = vmatpush.msrb.mxu0 %v6967_v53  ;;  %3485 = vmatpush.msra.mxu1 %v6955_v9  ;;  %v6963_v21 = vld [vmem:[%s8040_s24 + $0x90] sm:$0xff] }
 0x811   :  { %v3235_v47 = vrot.slane %v3234_v31, 4  ;;  %v3307_v51 = vsel %vm1842_vm4, %v3306_v42, %v3254_v26 }
 0x812   :  { %v3309_v24 = vsel %vm1845_vm5, %v3308_v43, %v3307_v51  ;;  %3522 = vmatpush.msrb.mxu0 %v6966_v61  ;;  %3486 = vmatpush.msra.mxu1 %v6954_v25  ;;  %v7749_v25 = vld [vmem:[%s7996_s11 + $0x8] sm:$0xff] }
 0x813   :  { %v3236_v14 = vadd.f32 %v3235_v47, %v3234_v31  ;;  %v3311_v33 = vsel %vm1848_vm6, %v3310_v20, %v3309_v24  ;;  %v7252_v20 = vld [vmem:[%s8739_s8 + $0x1] ss:$0 sm:$0xff]  ;;  %v6975_v24 = vld [vmem:[%s7979_s7 + $0x58] sm:$0xff] }
 0x814   :  { %v3313_v8 = vsel %vm1851_vm7, %v3312_v38, %v3311_v33  ;;  %3523 = vmatpush.msrb.mxu0 %v6965_v52  ;;  %3487 = vmatpush.msra.mxu1 %v6953_v3  ;;  %v7751_v52 = vld [vmem:[%s7996_s11 + $0x18] sm:$0xff]  ;;  %v7754_v3 = vld [vmem:[%s7996_s11 + $0x30] sm:$0xff] }
 0x815   :  { %v3237_v17 = vrot.slane %v3236_v14, 2  ;;  %v3315_v63 = vsel %vm1854_vm9, %v3314_v56, %v3313_v8 }
 0x816   :  { %v3317_v16 = vsel %vm1857_vm10, %v3316_v46, %v3315_v63  ;;  %3524 = vmatpush.msrb.mxu0 %v6964_v7  ;;  %v6974_v46 = vld [vmem:[%s7979_s7 + $0x50] sm:$0xff]  ;;  %v7755_v7 = vld [vmem:[%s7996_s11 + $0x38] sm:$0xff] }
 0x817   :  { %v3238_v5 = vadd.f32 %v3237_v17, %v3236_v14  ;;  %v7013_v14 = vld [vmem:[%s8143_s12 + $0xa8] sm:$0xff]  ;;  %v6961_v17 = vld [vmem:[%s8040_s24 + $0x80] sm:$0xff] }
 0x818   :  { %3976 = vmatpush.msrb.mxu3 %v7013_v14  ;;  %3525 = vmatpush.msrb.mxu0 %v6963_v21  ;;  %v7756_v14 = vld [vmem:[%s7996_s11 + $0x40] sm:$0xff]  ;;  %v7757_v21 = vld [vmem:[%s7996_s11 + $0x48] sm:$0xff] }
 0x819   :  { %v3239_v55 = vrot.slane %v3238_v5, 1 }
 0x81a   :  { %3526 = vmatpush.msrb.mxu0 %v6962_v11 }
 0x81b   :  { %v3240_v4 = vadd.f32 %v3239_v55, %v3238_v5 }
 0x81c   :  { %3527 = vmatpush.msrb.mxu0 %v6961_v17  ;;  %v7763_v17 = vld [vmem:[%s7996_s11 + $0x78] sm:$0xff] }
 0x81d   :  { %v3261_v6 = vadd.f32 %v7747_v37, %v3240_v4  ;;  %v6952_v37 = vld [vmem:[%s8045_s28 + $0x90] sm:$0xff] }
 0x81e   :  { %v3341_v62 = vpop.f32.mrf.mxu0  ;;  %3488 = vmatpush.msra.mxu1 %v6952_v37  ;;  %v7008_v37 = vld [vmem:[%s8143_s12 + $0x80] sm:$0xff] }
 0x81f   :  { %v9354_v35 = vadd.f32 %v7250_v48, %v3341_v62  ;;  %v3318_v12 = vrot.slane %v3261_v6, 1  ;;  %v7012_v62 = vld [vmem:[%s8143_s12 + $0xa0] sm:$0xff] }
 0x820   :  { %3489 = vmatpush.msra.mxu1 %v6951_v44  ;;  %3977 = vmatpush.msrb.mxu3 %v7012_v62  ;;  %v7758_v44 = vld [vmem:[%s7996_s11 + $0x50] sm:$0xff]  ;;  %v7765_v62 = vld [vmem:[%s7996_s11 + $0x88] sm:$0xff] }
 0x821   :  { %6946 = vmatmul.msk.f32.vlgmr.msrb.gmra.mxu1 %vm192_vm1, %v9354_v35  ;;  %v3319_v39 = vsel %vm1860_vm11, %v3318_v12, %v3317_v16  ;;  %v3380_v32 = vmul.f32 %v9354_v35, %v9354_v35  ;;  %v6972_v12 = vld [vmem:[%s7979_s7 + $0x40] sm:$0xff]  ;;  %v7011_v16 = vld [vmem:[%s8143_s12 + $0x98] sm:$0xff] }
 0x822   :  { %6943 = vmatmul.msk.f32.gmra.mxu0 %vm192_vm1, %v3319_v39  ;;  %3490 = vmatpush.msra.mxu1 %v6950_v15  ;;  %v7253_v15 = vld [vmem:[%s8091_s2 + $0x2] ss:$0 sm:$0xff] }
 0x823   :  { %3978 = vmatpush.msrb.mxu3 %v7011_v16 }
 0x824   :  { %3552 = vmatpush.msrb.mxu1 %v6975_v24 }
 0x826   :  { %3553 = vmatpush.msrb.mxu1 %v6974_v46 }
 0x82a   :  { %6948 = vmatmul.msk.f32.vlgmr.msra.gmra.mxu0 %vm192_vm1, %v3380_v32 }
 0x89e   :  { %v3374_v34 = vpop.f32.mrf.mxu1 }
 0x89f   :  { %v3344_v40 = vpop.f32.mrf.mxu0  ;;  %v3411_v58 = vmul.f32 %v3374_v34, %v3374_v34  ;;  %v3415_v43 = vsub.f32 %v9354_v35, %v3374_v34 }
 0x8a0   :  { %v9367_v41 = vadd.f32 %v7250_v48, %v3344_v40  ;;  %v7251_v48 = vld [vmem:[%s8734_s1 + $0x1] ss:$0 sm:$0xff] }
 0x8a2   :  { %v3381_v29 = vmul.f32 %v9367_v41, %v9367_v41  ;;  %6947 = vmatmul.msk.f32.gmra.mxu1 %vm192_vm1, %v9367_v41 }
 0x8a4   :  { %6949 = vmatmul.msk.f32.gmra.mxu0 %vm192_vm1, %v3381_v29 }
 0x8a7   :  { %v3405_v18 = vpop.f32.mrf.mxu0 }
 0x8a8   :  { %v3413_v31 = vsub.f32 %v3405_v18, %v3411_v58 }
 0x8aa   :  { %v3417_v47 = vadd.f32 1e-05, %v3413_v31  ;;  %v7010_v31 = vld [vmem:[%s8143_s12 + $0x90] sm:$0xff] }
 0x8ab   :  { %3979 = vmatpush.msrb.mxu3 %v7010_v31 }
 0x8ac   :  { %7473 = vrsqrt.f32 %v3417_v47  ;;  %vm3425_vm0 = vweird.f32 %v3417_v47 }
 0x8ad   :  { %3980 = vmatpush.msrb.mxu3 %v7009_v13 }
 0x8af   :  { %3981 = vmatpush.msrb.mxu3 %v7008_v37 }
 0x8b1   :  { %6257 = vmatpush.msra.mxu3 %v9157_v0  ;;  %v7759_v0 = vld [vmem:[%s7996_s11 + $0x58] sm:$0xff] }
 0x8b2   :  { %v7474_v19 = vpop.eup %7473 }
 0x8b3   :  { %v3420_v30 = vmul.f32 %v7474_v19, %v3417_v47  ;;  %vm3426_vm15 = vweird.f32 %v7474_v19  ;;  %v7753_v47 = vld [vmem:[%s7996_s11 + $0x28] sm:$0xff]  ;;  %6258 = vmatpush.msra.mxu3 %v9169_v27  ;;  %v7760_v27 = vld [vmem:[%s7996_s11 + $0x60] sm:$0xff] }
 0x8b4   :  { %vm3427_vm2 = vmor %vm3425_vm0, %vm3426_vm15 }
 0x8b5   :  { %v3421_v5 = vmul.f32 %v7474_v19, %v3420_v30  ;;  %6259 = vmatpush.msra.mxu3 %v9176_v57  ;;  %v7761_v57 = vld [vmem:[%s7996_s11 + $0x68] sm:$0xff] }
 0x8b7   :  { %v3422_v22 = vmul.f32 0.5, %v3421_v5  ;;  %6260 = vmatpush.msra.mxu3 %v9180_v54 }
 0x8b9   :  { %v3423_v42 = vsub.f32 1.5, %v3422_v22  ;;  %6261 = vmatpush.msra.mxu3 %v9185_v45  ;;  %v9457_v45 = vld [vmem:[%s8096_s6 + $0x2] ss:$0 sm:$0xff] }
 0x8bb   :  { %v3424_v10 = vmul.f32 %v7474_v19, %v3423_v42  ;;  %6262 = vmatpush.msra.mxu3 %v9194_v36  ;;  %v7762_v36 = vld [vmem:[%s7996_s11 + $0x70] sm:$0xff] }
 0x8bd   :  { %v3428_v55 = vsel %vm3427_vm2, %v7474_v19, %v3424_v10  ;;  %6263 = vmatpush.msra.mxu3 %v9200_v2 }
 0x8be   :  { %v3439_v26 = vmul.f32 %v3428_v55, %v3415_v43 }
 0x8bf   :  { %6264 = vmatpush.msra.mxu3 %v9205_v59 }
 0x8c0   :  { %v3444_v38 = vmul.f32 %v7251_v48, %v3439_v26 }
 0x8c2   :  { %v3449_v4 = vadd.f32 %v7252_v20, %v3444_v38 }
 0x8c4   :  { %v3451_v51 = vmax.f32 %v3449_v4, 0.0 }
 0x8c6   :  { %v9397_v56 = vadd.f32 %v3451_v51, %v8768_v49  ;;  %v6973_v49 = vld [vmem:[%s7979_s7 + $0x48] sm:$0xff] }
 0x8c7   :  { %3554 = vmatpush.msrb.mxu1 %v6973_v49  ;;  %v7766_v49 = vld [vmem:[%s7996_s11 + $0x90] sm:$0xff] }
 0x8c8   :  { %6959 = vmatmul.msk.f32.vlgmr.msra.gmra.mxu1 %vm192_vm1, %v9397_v56  ;;  %6970 = vmatmul.msk.f32.vlgmr.msrb.gmra.mxu0 %vm192_vm1, %v9397_v56 }
 0x8c9   :  { %3555 = vmatpush.msrb.mxu1 %v6972_v12 }
 0x91f   :  { %v3377_v35 = vpop.f32.mrf.mxu1 }
 0x920   :  { %v3412_v6 = vmul.f32 %v3377_v35, %v3377_v35  ;;  %v3416_v60 = vsub.f32 %v9367_v41, %v3377_v35  ;;  %v7748_v41 = vld [vmem:[%s7996_s11] sm:$0xff] }
 0x921   :  { %v3408_v33 = vpop.f32.mrf.mxu0 }
 0x922   :  { %v3414_v8 = vsub.f32 %v3408_v33, %v3412_v6 }
 0x924   :  { %v3418_v63 = vadd.f32 1e-05, %v3414_v8 }
 0x926   :  { %7475 = vrsqrt.f32 %v3418_v63  ;;  %vm3435_vm12 = vweird.f32 %v3418_v63 }
 0x92c   :  { %v7476_v39 = vpop.eup %7475 }
 0x92d   :  { %v3430_v32 = vmul.f32 %v7476_v39, %v3418_v63  ;;  %vm3436_vm3 = vweird.f32 %v7476_v39 }
 0x92e   :  { %vm3437_vm13 = vmor %vm3435_vm12, %vm3436_vm3 }
 0x92f   :  { %v3431_v40 = vmul.f32 %v7476_v39, %v3430_v32 }
 0x931   :  { %v3432_v29 = vmul.f32 0.5, %v3431_v40 }
 0x933   :  { %v3433_v34 = vsub.f32 1.5, %v3432_v29  ;;  %v7767_v29 = vld [vmem:[%s7996_s11 + $0x98] sm:$0xff] }
 0x935   :  { %v3434_v23 = vmul.f32 %v7476_v39, %v3433_v34 }
 0x937   :  { %v3438_v50 = vsel %vm3437_vm13, %v7476_v39, %v3434_v23 }
 0x938   :  { %v3440_v53 = vmul.f32 %v3438_v50, %v3416_v60 }
 0x93a   :  { %v3445_v58 = vmul.f32 %v7251_v48, %v3440_v53  ;;  %v7764_v48 = vld [vmem:[%s7996_s11 + $0x80] sm:$0xff] }
 0x93c   :  { %v3450_v9 = vadd.f32 %v7252_v20, %v3445_v58 }
 0x93e   :  { %v3452_v61 = vmax.f32 %v3450_v9, 0.0  ;;  %v7768_v9 = vld [vmem:[%s7996_s11 + $0xa0] sm:$0xff] }
 0x940   :  { %v9411_v18 = vadd.f32 %v3452_v61, %v8780_v1  ;;  %v7750_v1 = vld [vmem:[%s7996_s11 + $0x10] sm:$0xff] }
 0x942   :  { %6960 = vmatmul.msk.f32.gmra.mxu1 %vm192_vm1, %v9411_v18  ;;  %6971 = vmatmul.msk.f32.gmra.mxu0 %vm192_vm1, %v9411_v18 }
 0x945   :  { %v3492_v54 = vpop.f32.mrf.mxu1  ;;  %v3529_v2 = vpop.f32.mrf.mxu0 }
 0x946   :  { %v9462_v11 = vadd.f32 %v9457_v45, %v3529_v2  ;;  %v9468_v30 = vadd.f32 %v7253_v15, %v3492_v54  ;;  %v7771_v2 = vld [vmem:[%s7996_s11 + $0xb8] sm:$0xff] }
 0x948   :  { %v3669_v19 = vperm.slane %v9462_v11, 0  ;;  %v3655_v20 = vrot.slane %v9462_v11, 1  ;;  %v3656_v16 = vrot.slane %v9462_v11, 2  ;;  %v3657_v31 = vrot.slane %v9462_v11, 3 }
 0x94a   :  { %6976 = vmatmul.msk.f32.vlgmr.msrb.gmra.mxu1 %vm550_vm8, %v7748_v41  ;;  %v3701_v5 = vadd.f32 %v3669_v19, %v9468_v30  ;;  %v3670_v24 = vperm.slane %v3655_v20, 0  ;;  %v3671_v34 = vperm.slane %v3656_v16, 0  ;;  %v3672_v13 = vperm.slane %v3657_v31, 0 }
 0x94c   :  { %v3703_v35 = vadd.f32 %v3670_v24, %v9468_v30  ;;  %v3705_v60 = vadd.f32 %v3671_v34, %v9468_v30 }
 0x952   :  { %6977 = vmatmul.msk.f32.gmra.mxu1 %vm550_vm8, %v7749_v25 }
 0x95a   :  { %6978 = vmatmul.msk.f32.gmra.mxu1 %vm550_vm8, %v7750_v1 }
 0x962   :  { %6979 = vmatmul.msk.f32.gmra.mxu1 %vm550_vm8, %v7751_v52 }
 0x96a   :  { %6980 = vmatmul.msk.f32.gmra.mxu1 %vm550_vm8, %v7752_v28  ;;  %v7769_v28 = vld [vmem:[%s7996_s11 + $0xa8] sm:$0xff] }
 0x972   :  { %6981 = vmatmul.msk.f32.gmra.mxu1 %vm550_vm8, %v7753_v47 }
 0x97a   :  { %6982 = vmatmul.msk.f32.gmra.mxu1 %vm550_vm8, %v7754_v3  ;;  %v3707_v3 = vadd.f32 %v3672_v13, %v9468_v30 }
 0x982   :  { %6983 = vmatmul.msk.f32.gmra.mxu1 %vm550_vm8, %v7755_v7 }
 0x98a   :  { %6984 = vmatmul.msk.f32.gmra.mxu1 %vm550_vm8, %v7756_v14 }
 0x992   :  { %6985 = vmatmul.msk.f32.gmra.mxu1 %vm550_vm8, %v7757_v21  ;;  %v7770_v21 = vld [vmem:[%s7996_s11 + $0xb0] sm:$0xff] }
 0x99a   :  { %6986 = vmatmul.msk.f32.gmra.mxu1 %vm550_vm8, %v7758_v44 }
 0x9a2   :  { %6987 = vmatmul.msk.f32.gmra.mxu1 %vm550_vm8, %v7759_v0 }
 0x9aa   :  { %6988 = vmatmul.msk.f32.gmra.mxu1 %vm550_vm8, %v7760_v27  ;;  %v3658_v27 = vrot.slane %v9462_v11, 4 }
 0x9b2   :  { %6989 = vmatmul.msk.f32.gmra.mxu1 %vm550_vm8, %v7761_v57 }
 0x9ba   :  { %6990 = vmatmul.msk.f32.gmra.mxu1 %vm550_vm8, %v7762_v36 }
 0x9bf   :  { %v3495_v59 = vpop.f32.mrf.mxu1 }
 0x9c0   :  { %v9471_v10 = vadd.f32 %v7253_v15, %v3495_v59  ;;  %v3673_v59 = vperm.slane %v3658_v27, 0 }
 0x9c2   :  { %6991 = vmatmul.msk.f32.gmra.mxu1 %vm550_vm8, %v7763_v17  ;;  %v3702_v26 = vadd.f32 %v3669_v19, %v9471_v10  ;;  %v3704_v12 = vadd.f32 %v3670_v24, %v9471_v10  ;;  %v3706_v41 = vadd.f32 %v3671_v34, %v9471_v10  ;;  %v3708_v0 = vadd.f32 %v3672_v13, %v9471_v10 }
 0x9c3   :  { %v3709_v17 = vadd.f32 %v3673_v59, %v9468_v30 }
 0x9c7   :  { %v3557_v22 = vpop.f32.mrf.mxu1 }
 0x9c8   :  { %v3733_v42 = vadd.f32 %v3701_v5, %v3557_v22 }
 0x9ca   :  { %vm3765_vm14 = vcmp.gt.f32.partialorder %v3733_v42, 0.0  ;;  %v3797_v43 = vmul.f32 0.2, %v3733_v42  ;;  %6992 = vmatmul.msk.f32.gmra.mxu1 %vm550_vm8, %v7764_v48  ;;  %v3710_v48 = vadd.f32 %v3673_v59, %v9471_v10 }
 0x9cc   :  { %v3829_v55 = vsel %vm3765_vm14, %v3733_v42, %v3797_v43  ;;  %v7772_v42 = vld [vmem:[%s7996_s11 + $0xc0] sm:$0xff] }
 0x9cd   :  { %7016 = vmatmul.msk.f32.vlgmr.msrb.gmra.mxu3 %vm192_vm1, %v3829_v55  ;;  %v3659_v55 = vrot.slane %v9462_v11, 5 }
 0x9cf   :  { %v3560_v38 = vpop.f32.mrf.mxu1 }
 0x9d0   :  { %v3734_v4 = vadd.f32 %v3702_v26, %v3560_v38 }
 0x9d2   :  { %v3798_v51 = vmul.f32 0.2, %v3734_v4  ;;  %6993 = vmatmul.msk.f32.gmra.mxu1 %vm550_vm8, %v7765_v62  ;;  %vm3766_vm15 = vcmp.gt.f32.partialorder %v3734_v4, 0.0 }
 0x9d4   :  { %v3830_v46 = vsel %vm3766_vm15, %v3734_v4, %v3798_v51  ;;  %v7773_v4 = vld [vmem:[%s7996_s11 + $0xc8] sm:$0xff]  ;;  %v3674_v51 = vperm.slane %v3659_v55, 0 }
 0x9d5   :  { %7017 = vmatmul.msk.f32.gmra.mxu3 %vm192_vm1, %v3830_v46 }
 0x9d6   :  { %v3711_v24 = vadd.f32 %v3674_v51, %v9468_v30 }
 0x9d7   :  { %v3563_v6 = vpop.f32.mrf.mxu1 }
 0x9d8   :  { %v3735_v33 = vadd.f32 %v3703_v35, %v3563_v6 }
 0x9da   :  { %v3799_v8 = vmul.f32 0.2, %v3735_v33  ;;  %6994 = vmatmul.msk.f32.gmra.mxu1 %vm550_vm8, %v7766_v49  ;;  %vm3767_vm0 = vcmp.gt.f32.partialorder %v3735_v33, 0.0  ;;  %v3712_v49 = vadd.f32 %v3674_v51, %v9471_v10 }
 0x9dc   :  { %v3831_v63 = vsel %vm3767_vm0, %v3735_v33, %v3799_v8  ;;  %v7774_v33 = vld [vmem:[%s7996_s11 + $0xd0] sm:$0xff] }
 0x9dd   :  { %7018 = vmatmul.msk.f32.gmra.mxu3 %vm192_vm1, %v3831_v63  ;;  %v3660_v63 = vrot.slane %v9462_v11, 6 }
 0x9df   :  { %v3566_v39 = vpop.f32.mrf.mxu1 }
 0x9e0   :  { %v3736_v32 = vadd.f32 %v3704_v12, %v3566_v39 }
 0x9e2   :  { %v3800_v40 = vmul.f32 0.2, %v3736_v32  ;;  %6995 = vmatmul.msk.f32.gmra.mxu1 %vm550_vm8, %v7767_v29  ;;  %vm3768_vm2 = vcmp.gt.f32.partialorder %v3736_v32, 0.0 }
 0x9e4   :  { %v3832_v23 = vsel %vm3768_vm2, %v3736_v32, %v3800_v40  ;;  %v7775_v32 = vld [vmem:[%s7996_s11 + $0xd8] sm:$0xff]  ;;  %v3675_v40 = vperm.slane %v3660_v63, 0 }
 0x9e5   :  { %7019 = vmatmul.msk.f32.gmra.mxu3 %vm192_vm1, %v3832_v23 }
 0x9e6   :  { %v3713_v34 = vadd.f32 %v3675_v40, %v9468_v30 }
 0x9e7   :  { %v3569_v50 = vpop.f32.mrf.mxu1 }
 0x9e8   :  { %v3737_v53 = vadd.f32 %v3705_v60, %v3569_v50 }
 0x9ea   :  { %v3801_v58 = vmul.f32 0.2, %v3737_v53  ;;  %6996 = vmatmul.msk.f32.gmra.mxu1 %vm550_vm8, %v7768_v9  ;;  %vm3769_vm3 = vcmp.gt.f32.partialorder %v3737_v53, 0.0  ;;  %v3714_v9 = vadd.f32 %v3675_v40, %v9471_v10 }
 0x9ec   :  { %v3833_v61 = vsel %vm3769_vm3, %v3737_v53, %v3801_v58  ;;  %v7776_v53 = vld [vmem:[%s7996_s11 + $0xe0] sm:$0xff] }
 0x9ed   :  { %7020 = vmatmul.msk.f32.gmra.mxu3 %vm192_vm1, %v3833_v61  ;;  %v3661_v61 = vrot.slane %v9462_v11, 7  ;;  %v3532_v11 = vpop.f32.mrf.mxu0 }
 0x9ef   :  { %v3572_v25 = vpop.f32.mrf.mxu1 }
 0x9f0   :  { %v3738_v1 = vadd.f32 %v3706_v41, %v3572_v25 }
 0x9f2   :  { %v3802_v52 = vmul.f32 0.2, %v3738_v1  ;;  %6997 = vmatmul.msk.f32.gmra.mxu1 %vm550_vm8, %v7769_v28  ;;  %vm3770_vm12 = vcmp.gt.f32.partialorder %v3738_v1, 0.0 }
 0x9f4   :  { %v3834_v47 = vsel %vm3770_vm12, %v3738_v1, %v3802_v52  ;;  %v7777_v1 = vld [vmem:[%s7996_s11 + $0xe8] sm:$0xff]  ;;  %v3676_v52 = vperm.slane %v3661_v61, 0 }
 0x9f5   :  { %7021 = vmatmul.msk.f32.gmra.mxu3 %vm192_vm1, %v3834_v47 }
 0x9f6   :  { %v3715_v13 = vadd.f32 %v3676_v52, %v9468_v30 }
 0x9f7   :  { %v3575_v7 = vpop.f32.mrf.mxu1 }
 0x9f8   :  { %v3739_v14 = vadd.f32 %v3707_v3, %v3575_v7 }
 0x9fa   :  { %v3803_v37 = vmul.f32 0.2, %v3739_v14  ;;  %6998 = vmatmul.msk.f32.gmra.mxu1 %vm550_vm8, %v7770_v21  ;;  %vm3771_vm13 = vcmp.gt.f32.partialorder %v3739_v14, 0.0  ;;  %v9540_v21 = vadd.f32 %v9457_v45, %v3532_v11 }
 0x9fc   :  { %v3835_v44 = vsel %vm3771_vm13, %v3739_v14, %v3803_v37  ;;  %v7778_v14 = vld [vmem:[%s7996_s11 + $0xf0] sm:$0xff] }
 0x9fd   :  { %7022 = vmatmul.msk.f32.gmra.mxu3 %vm192_vm1, %v3835_v44  ;;  %v3716_v44 = vadd.f32 %v3676_v52, %v9471_v10 }
 0x9ff   :  { %v3578_v57 = vpop.f32.mrf.mxu1 }
 0xa00   :  { %v3740_v54 = vadd.f32 %v3708_v0, %v3578_v57 }
 0xa02   :  { %v3804_v36 = vmul.f32 0.2, %v3740_v54  ;;  %6999 = vmatmul.msk.f32.gmra.mxu1 %vm550_vm8, %v7771_v2  ;;  %vm3772_vm14 = vcmp.gt.f32.partialorder %v3740_v54, 0.0 }
 0xa04   :  { %v3836_v15 = vsel %vm3772_vm14, %v3740_v54, %v3804_v36  ;;  %v7779_v54 = vld [vmem:[%s7996_s11 + $0xf8] sm:$0xff]  ;;  %v3677_v36 = vperm.slane %v9540_v21, 0 }
 0xa05   :  { %7023 = vmatmul.msk.f32.gmra.mxu3 %vm192_vm1, %v3836_v15 }
 0xa06   :  { %v3717_v59 = vadd.f32 %v3677_v36, %v9468_v30 }
 0xa07   :  { %v3581_v19 = vpop.f32.mrf.mxu1 }
 0xa08   :  { %v3741_v5 = vadd.f32 %v3709_v17, %v3581_v19 }
 0xa0a   :  { %v3805_v22 = vmul.f32 0.2, %v3741_v5  ;;  %7000 = vmatmul.msk.f32.gmra.mxu1 %vm550_vm8, %v7772_v42  ;;  %vm3773_vm15 = vcmp.gt.f32.partialorder %v3741_v5, 0.0 }
 0xa0c   :  { %v3837_v43 = vsel %vm3773_vm15, %v3741_v5, %v3805_v22  ;;  %v3718_v5 = vadd.f32 %v3677_v36, %v9471_v10  ;;  %v3662_v22 = vrot.slane %v9540_v21, 1 }
 0xa0d   :  { %7024 = vmatmul.msk.f32.gmra.mxu3 %vm192_vm1, %v3837_v43 }
 0xa0f   :  { %v3584_v26 = vpop.f32.mrf.mxu1 }
 0xa10   :  { %v3742_v20 = vadd.f32 %v3710_v48, %v3584_v26  ;;  %v3678_v26 = vperm.slane %v3662_v22, 0 }
 0xa12   :  { %v3806_v38 = vmul.f32 0.2, %v3742_v20  ;;  %7001 = vmatmul.msk.f32.gmra.mxu1 %vm550_vm8, %v7773_v4  ;;  %vm3774_vm0 = vcmp.gt.f32.partialorder %v3742_v20, 0.0  ;;  %v3720_v63 = vadd.f32 %v3678_v26, %v9471_v10 }
 0xa14   :  { %v3838_v62 = vsel %vm3774_vm0, %v3742_v20, %v3806_v38  ;;  %v3719_v38 = vadd.f32 %v3678_v26, %v9468_v30 }
 0xa15   :  { %7025 = vmatmul.msk.f32.gmra.mxu3 %vm192_vm1, %v3838_v62 }
 0xa17   :  { %v3587_v46 = vpop.f32.mrf.mxu1 }
 0xa18   :  { %v3743_v35 = vadd.f32 %v3711_v24, %v3587_v46 }
 0xa1a   :  { %v3807_v6 = vmul.f32 0.2, %v3743_v35  ;;  %7002 = vmatmul.msk.f32.gmra.mxu1 %vm550_vm8, %v7774_v33  ;;  %vm3775_vm2 = vcmp.gt.f32.partialorder %v3743_v35, 0.0 }
 0xa1c   :  { %v3839_v8 = vsel %vm3775_vm2, %v3743_v35, %v3807_v6 }
 0xa1d   :  { %7026 = vmatmul.msk.f32.gmra.mxu3 %vm192_vm1, %v3839_v8 }
 0xa1f   :  { %v3590_v12 = vpop.f32.mrf.mxu1 }
 0xa20   :  { %v3744_v16 = vadd.f32 %v3712_v49, %v3590_v12  ;;  %v3663_v12 = vrot.slane %v9540_v21, 2 }
 0xa22   :  { %v3808_v39 = vmul.f32 0.2, %v3744_v16  ;;  %7003 = vmatmul.msk.f32.gmra.mxu1 %vm550_vm8, %v7775_v32  ;;  %vm3776_vm3 = vcmp.gt.f32.partialorder %v3744_v16, 0.0 }
 0xa24   :  { %v3840_v29 = vsel %vm3776_vm3, %v3744_v16, %v3808_v39 }
 0xa25   :  { %7027 = vmatmul.msk.f32.gmra.mxu3 %vm192_vm1, %v3840_v29 }
 0xa27   :  { %v3593_v23 = vpop.f32.mrf.mxu1 }
 0xa28   :  { %v3745_v60 = vadd.f32 %v3713_v34, %v3593_v23  ;;  %v3679_v23 = vperm.slane %v3663_v12, 0 }
 0xa2a   :  { %v3809_v50 = vmul.f32 0.2, %v3745_v60  ;;  %7004 = vmatmul.msk.f32.gmra.mxu1 %vm550_vm8, %v7776_v53  ;;  %vm3777_vm12 = vcmp.gt.f32.partialorder %v3745_v60, 0.0 }
 0xa2c   :  { %v3841_v58 = vsel %vm3777_vm12, %v3745_v60, %v3809_v50 }
 0xa2d   :  { %7028 = vmatmul.msk.f32.gmra.mxu3 %vm192_vm1, %v3841_v58  ;;  %v3721_v58 = vadd.f32 %v3679_v23, %v9468_v30 }
 0xa2f   :  { %v3596_v41 = vpop.f32.mrf.mxu1 }
 0xa30   :  { %v3746_v31 = vadd.f32 %v3714_v9, %v3596_v41 }
 0xa32   :  { %v3810_v25 = vmul.f32 0.2, %v3746_v31  ;;  %7005 = vmatmul.msk.f32.gmra.mxu1 %vm550_vm8, %v7777_v1  ;;  %vm3778_vm13 = vcmp.gt.f32.partialorder %v3746_v31, 0.0 }
 0xa34   :  { %v3842_v28 = vsel %vm3778_vm13, %v3746_v31, %v3810_v25 }
 0xa35   :  { %7029 = vmatmul.msk.f32.gmra.mxu3 %vm192_vm1, %v3842_v28 }
 0xa37   :  { %v3599_v47 = vpop.f32.mrf.mxu1 }
 0xa38   :  { %v3747_v3 = vadd.f32 %v3715_v13, %v3599_v47 }
 0xa3a   :  { %v3811_v7 = vmul.f32 0.2, %v3747_v3  ;;  %7006 = vmatmul.msk.f32.gmra.mxu1 %vm550_vm8, %v7778_v14  ;;  %vm3779_vm14 = vcmp.gt.f32.partialorder %v3747_v3, 0.0 }
 0xa3c   :  { %v3843_v37 = vsel %vm3779_vm14, %v3747_v3, %v3811_v7 }
 0xa3d   :  { %7030 = vmatmul.msk.f32.gmra.mxu3 %vm192_vm1, %v3843_v37  ;;  %v3722_v37 = vadd.f32 %v3679_v23, %v9471_v10 }
 0xa3f   :  { %v3602_v0 = vpop.f32.mrf.mxu1 }
 0xa40   :  { %v3748_v27 = vadd.f32 %v3716_v44, %v3602_v0  ;;  %v3664_v44 = vrot.slane %v9540_v21, 3 }
 0xa42   :  { %v3812_v57 = vmul.f32 0.2, %v3748_v27  ;;  %7007 = vmatmul.msk.f32.gmra.mxu1 %vm550_vm8, %v7779_v54  ;;  %vm3780_vm15 = vcmp.gt.f32.partialorder %v3748_v27, 0.0 }
 0xa44   :  { %v3844_v2 = vsel %vm3780_vm15, %v3748_v27, %v3812_v57 }
 0xa45   :  { %7031 = vmatmul.msk.f32.gmra.mxu3 %vm192_vm1, %v3844_v2 }
 0xa47   :  { %v3605_v15 = vpop.f32.mrf.mxu1 }
 0xa48   :  { %v3749_v17 = vadd.f32 %v3717_v59, %v3605_v15  ;;  %v3680_v15 = vperm.slane %v3664_v44, 0 }
 0xa4a   :  { %vm3781_vm0 = vcmp.gt.f32.partialorder %v3749_v17, 0.0  ;;  %v3813_v45 = vmul.f32 0.2, %v3749_v17 }
 0xa4c   :  { %v3845_v19 = vsel %vm3781_vm0, %v3749_v17, %v3813_v45 }
 0xa4d   :  { %7032 = vmatmul.msk.f32.gmra.mxu3 %vm192_vm1, %v3845_v19 }
 0xa4f   :  { %v3608_v42 = vpop.f32.mrf.mxu1 }
 0xa50   :  { %v3750_v43 = vadd.f32 %v3718_v5, %v3608_v42  ;;  %v3983_v48 = vpop.f32.mrf.mxu3 }
 0xa51   :  { %v4079_v24 = vsel %vm192_vm1, %v3983_v48, -inf }
 0xa52   :  { %vm3782_vm2 = vcmp.gt.f32.partialorder %v3750_v43, 0.0  ;;  %v3814_v55 = vmul.f32 0.2, %v3750_v43 }
 0xa54   :  { %v3846_v20 = vsel %vm3782_vm2, %v3750_v43, %v3814_v55 }
 0xa55   :  { %7033 = vmatmul.msk.f32.gmra.mxu3 %vm192_vm1, %v3846_v20 }
 0xa57   :  { %v3611_v4 = vpop.f32.mrf.mxu1 }
 0xa58   :  { %v3751_v51 = vadd.f32 %v3719_v38, %v3611_v4  ;;  %v3986_v62 = vpop.f32.mrf.mxu3 }
 0xa59   :  { %v4080_v46 = vsel %vm192_vm1, %v3986_v62, -inf }
 0xa5a   :  { %vm3783_vm3 = vcmp.gt.f32.partialorder %v3751_v51, 0.0  ;;  %v3815_v35 = vmul.f32 0.2, %v3751_v51  ;;  %v4081_v6 = vmax.f32 %v4079_v24, %v4080_v46 }
 0xa5c   :  { %v4082_v33 = vrot.slane %v4081_v6, 4  ;;  %v3847_v8 = vsel %vm3783_vm3, %v3751_v51, %v3815_v35 }
 0xa5d   :  { %7034 = vmatmul.msk.f32.gmra.mxu3 %vm192_vm1, %v3847_v8 }
 0xa5e   :  { %v4083_v49 = vmax.f32 %v4081_v6, %v4082_v33 }
 0xa5f   :  { %v3614_v16 = vpop.f32.mrf.mxu1 }
 0xa60   :  { %v4084_v39 = vrot.slane %v4083_v49, 2  ;;  %v3752_v32 = vadd.f32 %v3720_v63, %v3614_v16  ;;  %v3989_v40 = vpop.f32.mrf.mxu3 }
 0xa61   :  { %v4088_v1 = vsel %vm192_vm1, %v3989_v40, -inf }
 0xa62   :  { %v4085_v29 = vmax.f32 %v4083_v49, %v4084_v39  ;;  %vm3784_vm12 = vcmp.gt.f32.partialorder %v3752_v32, 0.0  ;;  %v3816_v34 = vmul.f32 0.2, %v3752_v32 }
 0xa64   :  { %v4086_v60 = vrot.slane %v4085_v29, 1  ;;  %v3848_v50 = vsel %vm3784_vm12, %v3752_v32, %v3816_v34  ;;  %v3724_v32 = vadd.f32 %v3680_v15, %v9471_v10 }
 0xa65   :  { %7035 = vmatmul.msk.f32.gmra.mxu3 %vm192_vm1, %v3848_v50 }
 0xa66   :  { %v4087_v53 = vmax.f32 %v4085_v29, %v4086_v60 }
 0xa67   :  { %v3617_v9 = vpop.f32.mrf.mxu1 }
 0xa68   :  { %v4223_v61 = vsub.f32 %v3983_v48, %v4087_v53  ;;  %v4224_v41 = vsub.f32 %v3986_v62, %v4087_v53  ;;  %v3753_v31 = vadd.f32 %v3721_v58, %v3617_v9  ;;  %v3992_v25 = vpop.f32.mrf.mxu3  ;;  %v3723_v48 = vadd.f32 %v3680_v15, %v9468_v30 }
 0xa69   :  { %v4089_v52 = vsel %vm192_vm1, %v3992_v25, -inf }
 0xa6a   :  { %v4255_v28 = vmul.f32 1.442695, %v4223_v61  ;;  %v4257_v13 = vmul.f32 1.442695, %v4224_v41  ;;  %vm3785_vm13 = vcmp.gt.f32.partialorder %v3753_v31, 0.0  ;;  %v4090_v47 = vmax.f32 %v4088_v1, %v4089_v52 }
 0xa6b   :  { %v3817_v3 = vmul.f32 0.2, %v3753_v31 }
 0xa6c   :  { %7477 = vpow2.f32 %v4255_v28  ;;  %v4091_v7 = vrot.slane %v4090_v47, 4 }
 0xa6d   :  { %7479 = vpow2.f32 %v4257_v13  ;;  %v3849_v14 = vsel %vm3785_vm13, %v3753_v31, %v3817_v3 }
 0xa6e   :  { %v4092_v11 = vmax.f32 %v4090_v47, %v4091_v7  ;;  %7036 = vmatmul.msk.f32.gmra.mxu3 %vm192_vm1, %v3849_v14 }
 0xa6f   :  { %v3620_v0 = vpop.f32.mrf.mxu1 }
 0xa70   :  { %v4093_v27 = vrot.slane %v4092_v11, 2  ;;  %v3754_v57 = vadd.f32 %v3722_v37, %v3620_v0  ;;  %v9565_v54 = vpop.f32.mrf.mxu3 }
 0xa71   :  { %v4097_v24 = vsel %vm192_vm1, %v9565_v54, -inf }
 0xa72   :  { %v9567_v36 = vpop.eup %7477  ;;  %v4094_v2 = vmax.f32 %v4092_v11, %v4093_v27  ;;  %vm3786_vm14 = vcmp.gt.f32.partialorder %v3754_v57, 0.0  ;;  %v3818_v59 = vmul.f32 0.2, %v3754_v57 }
 0xa73   :  { %v9569_v17 = vpop.eup %7479  ;;  %v4319_v45 = vsel %vm192_vm1, %v9567_v36, 0.0 }
 0xa74   :  { %v4320_v19 = vsel %vm192_vm1, %v9569_v17, 0.0  ;;  %v4095_v5 = vrot.slane %v4094_v2, 1  ;;  %v3850_v22 = vsel %vm3786_vm14, %v3754_v57, %v3818_v59 }
 0xa75   :  { %v4321_v42 = vadd.f32 %v4320_v19, %v4319_v45 }
 0xa76   :  { %v4096_v43 = vmax.f32 %v4094_v2, %v4095_v5  ;;  %7037 = vmatmul.msk.f32.gmra.mxu3 %vm192_vm1, %v3850_v22 }
 0xa77   :  { %v4322_v55 = vrot.slane %v4321_v42, 4  ;;  %v3623_v26 = vpop.f32.mrf.mxu1 }
 0xa78   :  { %v4225_v20 = vsub.f32 %v3989_v40, %v4096_v43  ;;  %v4226_v38 = vsub.f32 %v3992_v25, %v4096_v43  ;;  %v3755_v4 = vadd.f32 %v3723_v48, %v3623_v26  ;;  %v3998_v51 = vpop.f32.mrf.mxu3  ;;  %v3665_v40 = vrot.slane %v9540_v21, 4 }
 0xa79   :  { %v4323_v62 = vadd.f32 %v4322_v55, %v4321_v42  ;;  %v4098_v46 = vsel %vm192_vm1, %v3998_v51, -inf }
 0xa7a   :  { %v4259_v35 = vmul.f32 1.442695, %v4225_v20  ;;  %v4261_v6 = vmul.f32 1.442695, %v4226_v38  ;;  %vm3787_vm15 = vcmp.gt.f32.partialorder %v3755_v4, 0.0  ;;  %v4099_v33 = vmax.f32 %v4097_v24, %v4098_v46 }
 0xa7b   :  { %v4324_v8 = vrot.slane %v4323_v62, 2  ;;  %v3819_v49 = vmul.f32 0.2, %v3755_v4  ;;  %v3681_v41 = vperm.slane %v3665_v40, 0 }
 0xa7c   :  { %7481 = vpow2.f32 %v4259_v35  ;;  %v4100_v63 = vrot.slane %v4099_v33, 4 }
 0xa7d   :  { %v4325_v12 = vadd.f32 %v4324_v8, %v4323_v62  ;;  %7483 = vpow2.f32 %v4261_v6  ;;  %v3851_v16 = vsel %vm3787_vm15, %v3755_v4, %v3819_v49  ;;  %v3725_v3 = vadd.f32 %v3681_v41, %v9468_v30 }
 0xa7e   :  { %v4101_v39 = vmax.f32 %v4099_v33, %v4100_v63  ;;  %7038 = vmatmul.msk.f32.gmra.mxu3 %vm192_vm1, %v3851_v16  ;;  %v3666_v4 = vrot.slane %v9540_v21, 5 }
 0xa7f   :  { %v4326_v29 = vrot.slane %v4325_v12, 1  ;;  %v3626_v34 = vpop.f32.mrf.mxu1 }
 0xa80   :  { %v4102_v23 = vrot.slane %v4101_v39, 2  ;;  %v3756_v60 = vadd.f32 %v3724_v32, %v3626_v34  ;;  %v9583_v50 = vpop.f32.mrf.mxu3 }
 0xa81   :  { %v4327_v53 = vadd.f32 %v4326_v29, %v4325_v12  ;;  %v4106_v2 = vsel %vm192_vm1, %v9583_v50, -inf  ;;  %v3682_v12 = vperm.slane %v3666_v4, 0 }
 0xa82   :  { %v9585_v58 = vpop.eup %7481  ;;  %v4103_v9 = vmax.f32 %v4101_v39, %v4102_v23  ;;  %vm3788_vm0 = vcmp.gt.f32.partialorder %v3756_v60, 0.0  ;;  %v3820_v61 = vmul.f32 0.2, %v3756_v60 }
 0xa83   :  { %v9587_v31 = vpop.eup %7483  ;;  %7485 = vrcp.f32 %v4327_v53  ;;  %v4328_v25 = vsel %vm192_vm1, %v9585_v58, 0.0  ;;  %v3727_v53 = vadd.f32 %v3682_v12, %v9468_v30 }
 0xa84   :  { %v4329_v1 = vsel %vm192_vm1, %v9587_v31, 0.0  ;;  %v4104_v52 = vrot.slane %v4103_v9, 1  ;;  %v3852_v28 = vsel %vm3788_vm0, %v3756_v60, %v3820_v61 }
 0xa85   :  { %v4330_v13 = vadd.f32 %v4329_v1, %v4328_v25 }
 0xa86   :  { %v4105_v47 = vmax.f32 %v4103_v9, %v4104_v52  ;;  %7039 = vmatmul.msk.f32.gmra.mxu3 %vm192_vm1, %v3852_v28 }
 0xa87   :  { %v4331_v7 = vrot.slane %v4330_v13, 4  ;;  %v3629_v14 = vpop.f32.mrf.mxu1 }
 0xa88   :  { %v4227_v11 = vsub.f32 %v9565_v54, %v4105_v47  ;;  %v4228_v37 = vsub.f32 %v3998_v51, %v4105_v47  ;;  %v3757_v44 = vadd.f32 %v3725_v3, %v3629_v14  ;;  %v9596_v0 = vpop.f32.mrf.mxu3 }
 0xa89   :  { %v7486_v27 = vpop.eup %7485  ;;  %v4332_v57 = vadd.f32 %v4331_v7, %v4330_v13  ;;  %v4107_v59 = vsel %vm192_vm1, %v9596_v0, -inf }
 0xa8a   :  { %v4479_v15 = vmul.f32 %v7486_v27, %v9567_v36  ;;  %v4480_v45 = vmul.f32 %v7486_v27, %v9569_v17  ;;  %v4263_v19 = vmul.f32 1.442695, %v4227_v11  ;;  %v4265_v5 = vmul.f32 1.442695, %v4228_v37 }
 0xa8b   :  { %v4333_v22 = vrot.slane %v4332_v57, 2  ;;  %vm3789_vm2 = vcmp.gt.f32.partialorder %v3757_v44, 0.0  ;;  %v3821_v54 = vmul.f32 0.2, %v3757_v44  ;;  %v4108_v42 = vmax.f32 %v4106_v2, %v4107_v59 }
 0xa8c   :  { %v4511_v43 = vmul.f32 %v4479_v15, %v9468_v30  ;;  %v4512_v48 = vmul.f32 %v4480_v45, %v9471_v10  ;;  %7487 = vpow2.f32 %v4263_v19  ;;  %v3726_v17 = vadd.f32 %v3681_v41, %v9471_v10 }
 0xa8d   :  { %v4334_v55 = vadd.f32 %v4333_v22, %v4332_v57  ;;  %7489 = vpow2.f32 %v4265_v5  ;;  %v4109_v26 = vrot.slane %v4108_v42, 4  ;;  %v3853_v20 = vsel %vm3789_vm2, %v3757_v44, %v3821_v54 }
 0xa8e   :  { %v4543_v38 = vsel %vm192_vm1, %v4511_v43, 0.0  ;;  %v4544_v36 = vsel %vm192_vm1, %v4512_v48, 0.0  ;;  %7040 = vmatmul.msk.f32.gmra.mxu3 %vm192_vm1, %v3853_v20  ;;  %v3728_v22 = vadd.f32 %v3682_v12, %v9471_v10 }
 0xa8f   :  { %v4545_v51 = vadd.f32 %v4544_v36, %v4543_v38  ;;  %v4335_v62 = vrot.slane %v4334_v55, 1  ;;  %v4110_v24 = vmax.f32 %v4108_v42, %v4109_v26  ;;  %v3632_v46 = vpop.f32.mrf.mxu1 }
 0xa90   :  { %v3758_v35 = vadd.f32 %v3726_v17, %v3632_v46  ;;  %v9611_v6 = vpop.f32.mrf.mxu3 }
 0xa91   :  { %v4336_v33 = vadd.f32 %v4335_v62, %v4334_v55  ;;  %v4111_v8 = vrot.slane %v4110_v24, 2  ;;  %v4546_v39 = vrot.slane %v4545_v51, 4  ;;  %v4115_v7 = vsel %vm192_vm1, %v9611_v6, -inf }
 0xa92   :  { %v9613_v49 = vpop.eup %7487  ;;  %vm3790_vm3 = vcmp.gt.f32.partialorder %v3758_v35, 0.0  ;;  %v3822_v63 = vmul.f32 0.2, %v3758_v35 }
 0xa93   :  { %v9615_v16 = vpop.eup %7489  ;;  %7491 = vrcp.f32 %v4336_v33  ;;  %v4337_v32 = vsel %vm192_vm1, %v9613_v49, 0.0  ;;  %v4112_v40 = vmax.f32 %v4110_v24, %v4111_v8  ;;  %v4547_v9 = vadd.f32 %v4546_v39, %v4545_v51 }
 0xa94   :  { %v4338_v29 = vsel %vm192_vm1, %v9615_v16, 0.0  ;;  %v3854_v34 = vsel %vm3790_vm3, %v3758_v35, %v3822_v63 }
 0xa95   :  { %v4339_v23 = vadd.f32 %v4338_v29, %v4337_v32  ;;  %v4113_v60 = vrot.slane %v4112_v40, 1  ;;  %v4548_v44 = vrot.slane %v4547_v9, 2 }
 0xa96   :  { %7041 = vmatmul.msk.f32.gmra.mxu3 %vm192_vm1, %v3854_v34 }
 0xa97   :  { %v4340_v61 = vrot.slane %v4339_v23, 4  ;;  %v4114_v41 = vmax.f32 %v4112_v40, %v4113_v60  ;;  %v3635_v25 = vpop.f32.mrf.mxu1  ;;  %v4549_v55 = vadd.f32 %v4548_v44, %v4547_v9 }
 0xa98   :  { %v3759_v1 = vadd.f32 %v3727_v53, %v3635_v25  ;;  %v9623_v52 = vpop.f32.mrf.mxu3  ;;  %v3668_v53 = vrot.slane %v9540_v21, 7 }
 0xa99   :  { %v7492_v28 = vpop.eup %7491  ;;  %v4341_v13 = vadd.f32 %v4340_v61, %v4339_v23  ;;  %v4229_v47 = vsub.f32 %v9583_v50, %v4114_v41  ;;  %v4230_v3 = vsub.f32 %v9596_v0, %v4114_v41  ;;  %v4116_v50 = vsel %vm192_vm1, %v9623_v52, -inf }
 0xa9a   :  { %v4481_v14 = vmul.f32 %v7492_v28, %v9585_v58  ;;  %v4482_v11 = vmul.f32 %v7492_v28, %v9587_v31  ;;  %vm3791_vm12 = vcmp.gt.f32.partialorder %v3759_v1, 0.0  ;;  %v3823_v37 = vmul.f32 0.2, %v3759_v1 }
 0xa9b   :  { %v4342_v27 = vrot.slane %v4341_v13, 2  ;;  %v4267_v57 = vmul.f32 1.442695, %v4229_v47  ;;  %v4269_v2 = vmul.f32 1.442695, %v4230_v3  ;;  %v4117_v19 = vmax.f32 %v4115_v7, %v4116_v50 }
 0xa9c   :  { %v4513_v59 = vmul.f32 %v4481_v14, %v9468_v30  ;;  %v4514_v15 = vmul.f32 %v4482_v11, %v9471_v10  ;;  %v3855_v0 = vsel %vm3791_vm12, %v3759_v1, %v3823_v37  ;;  %v3667_v58 = vrot.slane %v9540_v21, 6  ;;  %v9663_v37 = vld [vmem:[%s8227_s17 + $0x2] ss:$0 sm:$0xff] }
 0xa9d   :  { %v4343_v45 = vadd.f32 %v4342_v27, %v4341_v13  ;;  %7493 = vpow2.f32 %v4267_v57  ;;  %v4118_v43 = vrot.slane %v4117_v19, 4  ;;  %v4550_v33 = vrot.slane %v4549_v55, 1 }
 0xa9e   :  { %v4552_v31 = vsel %vm192_vm1, %v4513_v59, 0.0  ;;  %v4553_v5 = vsel %vm192_vm1, %v4514_v15, 0.0  ;;  %7495 = vpow2.f32 %v4269_v2  ;;  %7042 = vmatmul.msk.f32.gmra.mxu3 %vm192_vm1, %v3855_v0  ;;  %v3683_v51 = vperm.slane %v3667_v58, 0 }
 0xa9f   :  { %v4554_v54 = vadd.f32 %v4553_v5, %v4552_v31  ;;  %v4344_v42 = vrot.slane %v4343_v45, 1  ;;  %v3638_v48 = vpop.f32.mrf.mxu1  ;;  %v4119_v17 = vmax.f32 %v4117_v19, %v4118_v43  ;;  %v4551_v9 = vadd.f32 %v4550_v33, %v4549_v55 }
 0xaa0   :  { %v3760_v26 = vadd.f32 %v3728_v22, %v3638_v48  ;;  %v9640_v20 = vpop.f32.mrf.mxu3  ;;  %v3729_v29 = vadd.f32 %v3683_v51, %v9468_v30  ;;  %v3730_v1 = vadd.f32 %v3683_v51, %v9471_v10 }
 0xaa1   :  { %v4555_v38 = vrot.slane %v4554_v54, 4  ;;  %v4345_v36 = vadd.f32 %v4344_v42, %v4343_v45  ;;  %v4120_v46 = vrot.slane %v4119_v17, 2  ;;  %v4124_v3 = vsel %vm192_vm1, %v9640_v20, -inf }
 0xaa2   :  { %vm3792_vm13 = vcmp.gt.f32.partialorder %v3760_v26, 0.0  ;;  %v3824_v4 = vmul.f32 0.2, %v3760_v26 }
 0xaa3   :  { %v9642_v62 = vpop.eup %7493  ;;  %v4556_v24 = vadd.f32 %v4555_v38, %v4554_v54  ;;  %7497 = vrcp.f32 %v4345_v36  ;;  %v4121_v32 = vmax.f32 %v4119_v17, %v4120_v46  ;;  %v3684_v36 = vperm.slane %v3668_v53, 0 }
 0xaa4   :  { %v9644_v35 = vpop.eup %7495  ;;  %v4346_v8 = vsel %vm192_vm1, %v9642_v62, 0.0  ;;  %v3856_v63 = vsel %vm3792_vm13, %v3760_v26, %v3824_v4 }
 0xaa5   :  { %v4557_v12 = vrot.slane %v4556_v24, 2  ;;  %v4347_v39 = vsel %vm192_vm1, %v9644_v35, 0.0  ;;  %v4122_v23 = vrot.slane %v4121_v32, 1 }
 0xaa6   :  { %v4348_v40 = vadd.f32 %v4347_v39, %v4346_v8  ;;  %7043 = vmatmul.msk.f32.gmra.mxu3 %vm192_vm1, %v3856_v63 }
 0xaa7   :  { %v4558_v34 = vadd.f32 %v4557_v12, %v4556_v24  ;;  %v3641_v60 = vpop.f32.mrf.mxu1  ;;  %v4123_v47 = vmax.f32 %v4121_v32, %v4122_v23 }
 0xaa8   :  { %v4349_v61 = vrot.slane %v4348_v40, 4  ;;  %v3761_v41 = vadd.f32 %v3729_v29, %v3641_v60  ;;  %v9653_v25 = vpop.f32.mrf.mxu3  ;;  %v3731_v29 = vadd.f32 %v3684_v36, %v9468_v30 }
 0xaa9   :  { %v7498_v28 = vpop.eup %7497  ;;  %v4559_v13 = vrot.slane %v4558_v34, 1  ;;  %v4125_v7 = vsel %vm192_vm1, %v9653_v25, -inf  ;;  %v4231_v27 = vsub.f32 %v9611_v6, %v4123_v47  ;;  %v4232_v57 = vsub.f32 %v9623_v52, %v4123_v47 }
 0xaaa   :  { %v4483_v14 = vmul.f32 %v7498_v28, %v9613_v49  ;;  %v4484_v21 = vmul.f32 %v7498_v28, %v9615_v16  ;;  %v4350_v11 = vadd.f32 %v4349_v61, %v4348_v40  ;;  %vm3793_vm14 = vcmp.gt.f32.partialorder %v3761_v41, 0.0 }
 0xaab   :  { %v4560_v44 = vadd.f32 %v4559_v13, %v4558_v34  ;;  %v3825_v2 = vmul.f32 0.2, %v3761_v41  ;;  %v4126_v0 = vmax.f32 %v4124_v3, %v4125_v7  ;;  %v4271_v45 = vmul.f32 1.442695, %v4231_v27 }
 0xaac   :  { %v4515_v59 = vmul.f32 %v4483_v14, %v9468_v30  ;;  %v4516_v15 = vmul.f32 %v4484_v21, %v9471_v10  ;;  %v4351_v50 = vrot.slane %v4350_v11, 2  ;;  %v4273_v16 = vmul.f32 1.442695, %v4232_v57 }
 0xaad   :  { %v4693_v49 = vadd.f32 %v9663_v37, %v4560_v44  ;;  %v3857_v19 = vsel %vm3793_vm14, %v3761_v41, %v3825_v2  ;;  %v4127_v6 = vrot.slane %v4126_v0, 4  ;;  %v4692_v52 = vadd.f32 %v9663_v37, %v4551_v9 }
 0xaae   :  { %v4561_v58 = vsel %vm192_vm1, %v4515_v59, 0.0  ;;  %v4562_v31 = vsel %vm192_vm1, %v4516_v15, 0.0  ;;  %v4352_v5 = vadd.f32 %v4351_v50, %v4350_v11  ;;  %7044 = vmatmul.msk.f32.gmra.mxu3 %vm192_vm1, %v3857_v19  ;;  %7499 = vpow2.f32 %v4271_v45 }
 0xaaf   :  { %v4738_v22 = vrot.slane %v4693_v49, 7  ;;  %v4563_v54 = vadd.f32 %v4562_v31, %v4561_v58  ;;  %v3644_v42 = vpop.f32.mrf.mxu1  ;;  %7501 = vpow2.f32 %v4273_v16  ;;  %v4128_v48 = vmax.f32 %v4126_v0, %v4127_v6 }
 0xab0   :  { %v4353_v43 = vrot.slane %v4352_v5, 1  ;;  %v3762_v55 = vadd.f32 %v3730_v1, %v3644_v42  ;;  %v9674_v26 = vpop.f32.mrf.mxu3 }
 0xab1   :  { %v4564_v38 = vrot.slane %v4563_v54, 4  ;;  %v4739_v17 = vsel %vm1842_vm4, %v4738_v22, %v4692_v52  ;;  %v4129_v51 = vrot.slane %v4128_v48, 2  ;;  %v4133_v28 = vsel %vm192_vm1, %v9674_v26, -inf }
 0xab2   :  { %v4354_v4 = vadd.f32 %v4353_v43, %v4352_v5  ;;  %vm3794_vm15 = vcmp.gt.f32.partialorder %v3762_v55, 0.0  ;;  %v3826_v24 = vmul.f32 0.2, %v3762_v55 }
 0xab3   :  { %v4565_v46 = vadd.f32 %v4564_v38, %v4563_v54  ;;  %v4130_v33 = vmax.f32 %v4128_v48, %v4129_v51 }
 0xab4   :  { %7503 = vrcp.f32 %v4354_v4  ;;  %v3858_v8 = vsel %vm3794_vm15, %v3762_v55, %v3826_v24  ;;  %v9677_v63 = vpop.eup %7499 }
 0xab5   :  { %v4566_v12 = vrot.slane %v4565_v46, 2  ;;  %v9679_v39 = vpop.eup %7501  ;;  %v4355_v32 = vsel %vm192_vm1, %v9677_v63, 0.0  ;;  %v4131_v40 = vrot.slane %v4130_v33, 1 }
 0xab6   :  { %7045 = vmatmul.msk.f32.gmra.mxu3 %vm192_vm1, %v3858_v8  ;;  %v4356_v23 = vsel %vm192_vm1, %v9679_v39, 0.0 }
 0xab7   :  { %v4567_v34 = vadd.f32 %v4566_v12, %v4565_v46  ;;  %v3647_v60 = vpop.f32.mrf.mxu1  ;;  %v4357_v53 = vadd.f32 %v4356_v23, %v4355_v32  ;;  %v4132_v9 = vmax.f32 %v4130_v33, %v4131_v40 }
 0xab8   :  { %v3763_v61 = vadd.f32 %v3731_v29, %v3647_v60  ;;  %v9687_v41 = vpop.f32.mrf.mxu3 }
 0xab9   :  { %v4568_v1 = vrot.slane %v4567_v34, 1  ;;  %v4134_v13 = vsel %vm192_vm1, %v9687_v41, -inf  ;;  %v4358_v3 = vrot.slane %v4357_v53, 4  ;;  %v4233_v7 = vsub.f32 %v9640_v20, %v4132_v9 }
 0xaba   :  { %v7504_v47 = vpop.eup %7503  ;;  %v4234_v14 = vsub.f32 %v9653_v25, %v4132_v9  ;;  %vm3795_vm0 = vcmp.gt.f32.partialorder %v3763_v61, 0.0  ;;  %v3827_v27 = vmul.f32 0.2, %v3763_v61  ;;  %v4135_v59 = vmax.f32 %v4133_v28, %v4134_v13 }
 0xabb   :  { %v4569_v21 = vadd.f32 %v4568_v1, %v4567_v34  ;;  %v4485_v11 = vmul.f32 %v7504_v47, %v9642_v62  ;;  %v4486_v44 = vmul.f32 %v7504_v47, %v9644_v35  ;;  %v4275_v57 = vmul.f32 1.442695, %v4233_v7 }
 0xabc   :  { %v4277_v2 = vmul.f32 1.442695, %v4234_v14  ;;  %v3859_v49 = vsel %vm3795_vm0, %v3763_v61, %v3827_v27  ;;  %v4359_v20 = vadd.f32 %v4358_v3, %v4357_v53  ;;  %v4136_v25 = vrot.slane %v4135_v59, 4 }
 0xabd   :  { %v4694_v15 = vadd.f32 %v9663_v37, %v4569_v21  ;;  %v4517_v50 = vmul.f32 %v4485_v11, %v9468_v30  ;;  %v4518_v0 = vmul.f32 %v4486_v44, %v9471_v10  ;;  %7505 = vpow2.f32 %v4275_v57 }
 0xabe   :  { %7046 = vmatmul.msk.f32.gmra.mxu3 %vm192_vm1, %v3859_v49  ;;  %v3732_v62 = vadd.f32 %v3684_v36, %v9471_v10  ;;  %7507 = vpow2.f32 %v4277_v2  ;;  %v4137_v31 = vmax.f32 %v4135_v59, %v4136_v25  ;;  %v4360_v42 = vrot.slane %v4359_v20, 2 }
 0xabf   :  { %v4570_v35 = vsel %vm192_vm1, %v4517_v50, 0.0  ;;  %v4571_v45 = vsel %vm192_vm1, %v4518_v0, 0.0  ;;  %v3650_v16 = vpop.f32.mrf.mxu1  ;;  %v4740_v19 = vrot.slane %v4694_v15, 6 }
 0xac0   :  { %v4572_v58 = vadd.f32 %v4571_v45, %v4570_v35  ;;  %v3764_v5 = vadd.f32 %v3732_v62, %v3650_v16  ;;  %v9704_v6 = vpop.f32.mrf.mxu3  ;;  %v4138_v54 = vrot.slane %v4137_v31, 2  ;;  %v4361_v33 = vadd.f32 %v4360_v42, %v4359_v20 }
 0xac1   :  { %v4741_v52 = vsel %vm1845_vm5, %v4740_v19, %v4739_v17  ;;  %v4142_v34 = vsel %vm192_vm1, %v9704_v6, -inf }
 0xac2   :  { %v4573_v22 = vrot.slane %v4572_v58, 4  ;;  %vm3796_vm2 = vcmp.gt.f32.partialorder %v3764_v5, 0.0  ;;  %v3828_v43 = vmul.f32 0.2, %v3764_v5  ;;  %v4139_v38 = vmax.f32 %v4137_v31, %v4138_v54 }
 0xac3   :  { %v9707_v48 = vpop.eup %7505  ;;  %v4362_v1 = vrot.slane %v4361_v33, 1 }
 0xac4   :  { %v4574_v55 = vadd.f32 %v4573_v22, %v4572_v58  ;;  %v9709_v36 = vpop.eup %7507  ;;  %v4364_v4 = vsel %vm192_vm1, %v9707_v48, 0.0  ;;  %v3860_v51 = vsel %vm3796_vm2, %v3764_v5, %v3828_v43  ;;  %v4140_v17 = vrot.slane %v4139_v38, 1 }
 0xac5   :  { %v4365_v46 = vsel %vm192_vm1, %v9709_v36, 0.0  ;;  %v4363_v44 = vadd.f32 %v4362_v1, %v4361_v33 }
 0xac6   :  { %v4575_v24 = vrot.slane %v4574_v55, 2  ;;  %7047 = vmatmul.msk.f32.gmra.mxu3 %vm192_vm1, %v3860_v51  ;;  %v4366_v8 = vadd.f32 %v4365_v46, %v4364_v4  ;;  %v4141_v32 = vmax.f32 %v4139_v38, %v4140_v17 }
 0xac8   :  { %v4576_v12 = vadd.f32 %v4575_v24, %v4574_v55  ;;  %v4028_v40 = vpop.f32.mrf.mxu3  ;;  %v4367_v29 = vrot.slane %v4366_v8, 4  ;;  %v4235_v53 = vsub.f32 %v9674_v26, %v4141_v32  ;;  %v4236_v9 = vsub.f32 %v9687_v41, %v4141_v32 }
 0xac9   :  { %v4143_v23 = vsel %vm192_vm1, %v4028_v40, -inf }
 0xaca   :  { %v4577_v60 = vrot.slane %v4576_v12, 1  ;;  %v4144_v61 = vmax.f32 %v4142_v34, %v4143_v23  ;;  %v4368_v28 = vadd.f32 %v4367_v29, %v4366_v8  ;;  %v4279_v47 = vmul.f32 1.442695, %v4235_v53 }
 0xacb   :  { %v4281_v3 = vmul.f32 1.442695, %v4236_v9 }
 0xacc   :  { %v4578_v13 = vadd.f32 %v4577_v60, %v4576_v12  ;;  %v4145_v7 = vrot.slane %v4144_v61, 4  ;;  %v4369_v14 = vrot.slane %v4368_v28, 2  ;;  %7509 = vpow2.f32 %v4279_v47 }
 0xacd   :  { %7511 = vpow2.f32 %v4281_v3 }
 0xace   :  { %v4146_v21 = vmax.f32 %v4144_v61, %v4145_v7  ;;  %v4695_v11 = vadd.f32 %v9663_v37, %v4578_v13  ;;  %v4370_v27 = vadd.f32 %v4369_v14, %v4368_v28  ;;  %7513 = vrcp.f32 %v4363_v44 }
 0xad0   :  { %v4147_v57 = vrot.slane %v4146_v21, 2  ;;  %v9722_v2 = vpop.f32.mrf.mxu3  ;;  %v4742_v26 = vrot.slane %v4695_v11, 5  ;;  %v4371_v41 = vrot.slane %v4370_v27, 1 }
 0xad2   :  { %v4148_v59 = vmax.f32 %v4146_v21, %v4147_v57  ;;  %v9725_v15 = vsel %vm1848_vm6, %v4742_v26, %v4741_v52  ;;  %v4372_v50 = vadd.f32 %v4371_v41, %v4370_v27  ;;  %v9727_v0 = vpop.eup %7509  ;;  %v4151_v52 = vsel %vm192_vm1, %v9722_v2, -inf }
 0xad3   :  { %v9729_v20 = vpop.eup %7511  ;;  %v4373_v25 = vsel %vm192_vm1, %v9727_v0, 0.0 }
 0xad4   :  { %v4149_v49 = vrot.slane %v4148_v59, 1  ;;  %v4374_v62 = vsel %vm192_vm1, %v9729_v20, 0.0  ;;  %7515 = vrcp.f32 %v4372_v50  ;;  %v7514_v31 = vpop.eup %7513 }
 0xad5   :  { %v4375_v45 = vadd.f32 %v4374_v62, %v4373_v25  ;;  %v4487_v38 = vmul.f32 %v7514_v31, %v9677_v63  ;;  %v4488_v4 = vmul.f32 %v7514_v31, %v9679_v39 }
 0xad6   :  { %v4150_v35 = vmax.f32 %v4148_v59, %v4149_v49 }
 0xad7   :  { %v4376_v5 = vrot.slane %v4375_v45, 4  ;;  %v4519_v33 = vmul.f32 %v4487_v38, %v9468_v30  ;;  %v4520_v8 = vmul.f32 %v4488_v4, %v9471_v10 }
 0xad8   :  { %v4237_v16 = vsub.f32 %v9704_v6, %v4150_v35  ;;  %v4238_v19 = vsub.f32 %v4028_v40, %v4150_v35  ;;  %v4034_v58 = vpop.f32.mrf.mxu3 }
 0xad9   :  { %v4152_v22 = vsel %vm192_vm1, %v4034_v58, -inf  ;;  %v4377_v55 = vadd.f32 %v4376_v5, %v4375_v45  ;;  %v4579_v9 = vsel %vm192_vm1, %v4519_v33, 0.0  ;;  %v4580_v61 = vsel %vm192_vm1, %v4520_v8, 0.0 }
 0xada   :  { %v4283_v54 = vmul.f32 1.442695, %v4237_v16  ;;  %v4285_v42 = vmul.f32 1.442695, %v4238_v19  ;;  %v4153_v43 = vmax.f32 %v4151_v52, %v4152_v22  ;;  %v7516_v51 = vpop.eup %7515  ;;  %v4581_v7 = vadd.f32 %v4580_v61, %v4579_v9  ;;  %v7053_v61 = vld [vmem:[%s8475_s21 + $0xa0] sm:$0xff] }
 0xadb   :  { %v4378_v6 = vrot.slane %v4377_v55, 2  ;;  %v4489_v12 = vmul.f32 %v7516_v51, %v9707_v48  ;;  %v4490_v40 = vmul.f32 %v7516_v51, %v9709_v36  ;;  %v7056_v51 = vld [vmem:[%s8475_s21 + $0xb8] sm:$0xff] }
 0xadc   :  { %7517 = vpow2.f32 %v4283_v54  ;;  %v4154_v24 = vrot.slane %v4153_v43, 4  ;;  %v4582_v35 = vrot.slane %v4581_v7, 4  ;;  %4778 = vmatpush.msra.mxu0 %v7056_v51 }
 0xadd   :  { %7519 = vpow2.f32 %v4285_v42  ;;  %v4379_v46 = vadd.f32 %v4378_v6, %v4377_v55  ;;  %v4521_v48 = vmul.f32 %v4489_v12, %v9468_v30  ;;  %v4522_v1 = vmul.f32 %v4490_v40, %v9471_v10 }
 0xade   :  { %v4155_v17 = vmax.f32 %v4153_v43, %v4154_v24  ;;  %v4583_v54 = vadd.f32 %v4582_v35, %v4581_v7  ;;  %v7050_v35 = vld [vmem:[%s8475_s21 + $0x88] sm:$0xff] }
 0xadf   :  { %v4380_v63 = vrot.slane %v4379_v46, 1  ;;  %v4588_v14 = vsel %vm192_vm1, %v4521_v48, 0.0  ;;  %v4589_v11 = vsel %vm192_vm1, %v4522_v1, 0.0 }
 0xae0   :  { %v9744_v32 = vpop.f32.mrf.mxu3  ;;  %v4156_v29 = vrot.slane %v4155_v17, 2  ;;  %v4590_v45 = vadd.f32 %v4589_v11, %v4588_v14  ;;  %v4584_v8 = vrot.slane %v4583_v54, 2  ;;  %v7052_v11 = vld [vmem:[%s8475_s21 + $0x98] sm:$0xff] }
 0xae1   :  { %v4381_v23 = vadd.f32 %v4380_v63, %v4379_v46  ;;  %v4160_v26 = vsel %vm192_vm1, %v9744_v32, -inf }
 0xae2   :  { %v9747_v39 = vpop.eup %7517  ;;  %v4157_v53 = vmax.f32 %v4155_v17, %v4156_v29  ;;  %v4591_v42 = vrot.slane %v4590_v45, 4  ;;  %v7055_v17 = vld [vmem:[%s8475_s21 + $0xb0] sm:$0xff]  ;;  %v4585_v48 = vadd.f32 %v4584_v8, %v4583_v54 }
 0xae3   :  { %v9749_v34 = vpop.eup %7519  ;;  %v4382_v60 = vsel %vm192_vm1, %v9747_v39, 0.0  ;;  %7521 = vrcp.f32 %v4381_v23  ;;  %4779 = vmatpush.msra.mxu0 %v7055_v17  ;;  %v7781_v17 = vld [vmem:[%s7878_s13 + $0x30] sm:$0xff] }
 0xae4   :  { %v4383_v36 = vsel %vm192_vm1, %v9749_v34, 0.0  ;;  %v4158_v13 = vrot.slane %v4157_v53, 1  ;;  %v4592_v12 = vadd.f32 %v4591_v42, %v4590_v45 }
 0xae5   :  { %v4384_v28 = vadd.f32 %v4383_v36, %v4382_v60  ;;  %v7054_v60 = vld [vmem:[%s8475_s21 + $0xa8] sm:$0xff] }
 0xae6   :  { %v4159_v3 = vmax.f32 %v4157_v53, %v4158_v13  ;;  %4780 = vmatpush.msra.mxu0 %v7054_v60  ;;  %v4593_v36 = vrot.slane %v4592_v12, 2 }
 0xae7   :  { %v4385_v47 = vrot.slane %v4384_v28, 4 }
 0xae8   :  { %v9760_v21 = vpop.f32.mrf.mxu3  ;;  %v4239_v27 = vsub.f32 %v9722_v2, %v4159_v3  ;;  %v4240_v57 = vsub.f32 %v4034_v58, %v4159_v3  ;;  %4781 = vmatpush.msra.mxu0 %v7053_v61 }
 0xae9   :  { %v4386_v44 = vadd.f32 %v4385_v47, %v4384_v28  ;;  %v4161_v41 = vsel %vm192_vm1, %v9760_v21, -inf  ;;  %v7522_v59 = vpop.eup %7521 }
 0xaea   :  { %v4287_v49 = vmul.f32 1.442695, %v4239_v27  ;;  %v4289_v25 = vmul.f32 1.442695, %v4240_v57  ;;  %v4162_v62 = vmax.f32 %v4160_v26, %v4161_v41  ;;  %v4491_v16 = vmul.f32 %v7522_v59, %v9727_v0  ;;  %4782 = vmatpush.msra.mxu0 %v7052_v11 }
 0xaeb   :  { %v4387_v50 = vrot.slane %v4386_v44, 2  ;;  %v4492_v19 = vmul.f32 %v7522_v59, %v9729_v20 }
 0xaec   :  { %7523 = vpow2.f32 %v4287_v49  ;;  %v4163_v2 = vrot.slane %v4162_v62, 4  ;;  %v4523_v58 = vmul.f32 %v4491_v16, %v9468_v30 }
 0xaed   :  { %v4388_v31 = vadd.f32 %v4387_v50, %v4386_v44  ;;  %v4524_v5 = vmul.f32 %v4492_v19, %v9471_v10  ;;  %7525 = vpow2.f32 %v4289_v25  ;;  %v4594_v50 = vadd.f32 %v4593_v36, %v4592_v12 }
 0xaee   :  { %v4164_v22 = vmax.f32 %v4162_v62, %v4163_v2  ;;  %v4597_v43 = vsel %vm192_vm1, %v4523_v58, 0.0 }
 0xaef   :  { %v4389_v52 = vrot.slane %v4388_v31, 1  ;;  %v4598_v0 = vsel %vm192_vm1, %v4524_v5, 0.0  ;;  %v7049_v5 = vld [vmem:[%s8475_s21 + $0x80] sm:$0xff] }
 0xaf0   :  { %v4599_v55 = vadd.f32 %v4598_v0, %v4597_v43  ;;  %v4165_v38 = vrot.slane %v4164_v22, 2 }
 0xaf1   :  { %v4390_v20 = vadd.f32 %v4389_v52, %v4388_v31  ;;  %v9774_v4 = vpop.f32.mrf.mxu3 }
 0xaf2   :  { %v9777_v6 = vpop.eup %7523  ;;  %v4600_v24 = vrot.slane %v4599_v55, 4  ;;  %v4166_v46 = vmax.f32 %v4164_v22, %v4165_v38  ;;  %v4169_v7 = vsel %vm192_vm1, %v9774_v4, -inf  ;;  %v4595_v22 = vrot.slane %v4594_v50, 1 }
 0xaf3   :  { %7527 = vrcp.f32 %v4390_v20  ;;  %v9780_v33 = vpop.eup %7525  ;;  %v4391_v40 = vsel %vm192_vm1, %v9777_v6, 0.0 }
 0xaf4   :  { %v4601_v63 = vadd.f32 %v4600_v24, %v4599_v55  ;;  %v4392_v29 = vsel %vm192_vm1, %v9780_v33, 0.0  ;;  %v4167_v23 = vrot.slane %v4166_v46, 1  ;;  %v7780_v55 = vld [vmem:[%s7878_s13 + $0x38] sm:$0xff] }
 0xaf5   :  { %v4393_v53 = vadd.f32 %v4392_v29, %v4391_v40  ;;  %v4596_v40 = vadd.f32 %v4595_v22, %v4594_v50 }
 0xaf6   :  { %v4168_v9 = vmax.f32 %v4166_v46, %v4167_v23  ;;  %v4602_v13 = vrot.slane %v4601_v63, 2 }
 0xaf7   :  { %v4394_v1 = vrot.slane %v4393_v53, 4 }
 0xaf8   :  { %v4241_v47 = vsub.f32 %v9744_v32, %v4168_v9  ;;  %v4242_v3 = vsub.f32 %v9760_v21, %v4168_v9  ;;  %v7051_v21 = vld [vmem:[%s8475_s21 + $0x90] sm:$0xff]  ;;  %v4603_v45 = vadd.f32 %v4602_v13, %v4601_v63  ;;  %v4697_v13 = vadd.f32 %v9663_v37, %v4596_v40 }
 0xaf9   :  { %v7528_v28 = vpop.eup %7527  ;;  %v9792_v14 = vpop.f32.mrf.mxu3  ;;  %v4395_v57 = vadd.f32 %v4394_v1, %v4393_v53  ;;  %4783 = vmatpush.msra.mxu0 %v7051_v21  ;;  %v7782_v53 = vld [vmem:[%s7878_s13 + $0x28] sm:$0xff]  ;;  %v7783_v1 = vld [vmem:[%s7878_s13 + $0x20] sm:$0xff] }
 0xafa   :  { %v4493_v44 = vmul.f32 %v7528_v28, %v9747_v39  ;;  %v4494_v27 = vmul.f32 %v7528_v28, %v9749_v34  ;;  %v4170_v26 = vsel %vm192_vm1, %v9792_v14, -inf  ;;  %v4291_v41 = vmul.f32 1.442695, %v4241_v47 }
 0xafb   :  { %v4293_v32 = vmul.f32 1.442695, %v4242_v3  ;;  %v4171_v59 = vmax.f32 %v4169_v7, %v4170_v26  ;;  %v4396_v62 = vrot.slane %v4395_v57, 2  ;;  %v4586_v39 = vrot.slane %v4585_v48, 1  ;;  %4784 = vmatpush.msra.mxu0 %v7050_v35 }
 0xafc   :  { %v4525_v49 = vmul.f32 %v4493_v44, %v9468_v30  ;;  %v4526_v25 = vmul.f32 %v4494_v27, %v9471_v10  ;;  %7529 = vpow2.f32 %v4291_v41  ;;  %v4604_v0 = vrot.slane %v4603_v45, 1  ;;  %v7784_v27 = vld [vmem:[%s7878_s13 + $0x18] sm:$0xff] }
 0xafd   :  { %v4172_v34 = vrot.slane %v4171_v59, 4  ;;  %v4397_v31 = vadd.f32 %v4396_v62, %v4395_v57  ;;  %7531 = vpow2.f32 %v4293_v32  ;;  %4785 = vmatpush.msra.mxu0 %v7049_v5  ;;  %v4587_v38 = vadd.f32 %v4586_v39, %v4585_v48 }
 0xafe   :  { %v4606_v16 = vsel %vm192_vm1, %v4525_v49, 0.0  ;;  %v4607_v19 = vsel %vm192_vm1, %v4526_v25, 0.0  ;;  %v4605_v23 = vadd.f32 %v4604_v0, %v4603_v45  ;;  %v7785_v49 = vld [vmem:[%s7878_s13 + $0x10] sm:$0xff] }
 0xaff   :  { %v4608_v2 = vadd.f32 %v4607_v19, %v4606_v16  ;;  %v4173_v58 = vmax.f32 %v4171_v59, %v4172_v34  ;;  %v4398_v52 = vrot.slane %v4397_v31, 1  ;;  %4842 = vmatpush.msrb.mxu0 %v7780_v55  ;;  %v4696_v61 = vadd.f32 %v9663_v37, %v4587_v38  ;;  %v7786_v19 = vld [vmem:[%s7878_s13 + $0x8] sm:$0xff] }
 0xb00   :  { %v4698_v44 = vadd.f32 %v9663_v37, %v4605_v23  ;;  %v4746_v34 = vrot.slane %v4697_v13, 3 }
 0xb01   :  { %v4609_v54 = vrot.slane %v4608_v2, 4  ;;  %v4174_v42 = vrot.slane %v4173_v58, 2  ;;  %v9806_v43 = vpop.f32.mrf.mxu3  ;;  %v4399_v20 = vadd.f32 %v4398_v52, %v4397_v31  ;;  %4843 = vmatpush.msrb.mxu0 %v7781_v17  ;;  %v7787_v52 = vld [vmem:[%s7878_s13] sm:$0xff] }
 0xb02   :  { %v9809_v51 = vpop.eup %7529  ;;  %v4178_v41 = vsel %vm192_vm1, %v9806_v43, -inf  ;;  %v4748_v16 = vrot.slane %v4698_v44, 2 }
 0xb03   :  { %v4610_v24 = vadd.f32 %v4609_v54, %v4608_v2  ;;  %v4175_v46 = vmax.f32 %v4173_v58, %v4174_v42  ;;  %v9812_v8 = vpop.eup %7531  ;;  %7533 = vrcp.f32 %v4399_v20  ;;  %v4400_v12 = vsel %vm192_vm1, %v9809_v51, 0.0  ;;  %4844 = vmatpush.msrb.mxu0 %v7782_v53 }
 0xb04   :  { %v4401_v63 = vsel %vm192_vm1, %v9812_v8, 0.0 }
 0xb05   :  { %v4176_v29 = vrot.slane %v4175_v46, 1  ;;  %v4611_v60 = vrot.slane %v4610_v24, 2  ;;  %v4402_v9 = vadd.f32 %v4401_v63, %v4400_v12  ;;  %4845 = vmatpush.msrb.mxu0 %v7783_v1 }
 0xb07   :  { %v4177_v48 = vmax.f32 %v4175_v46, %v4176_v29  ;;  %v4612_v36 = vadd.f32 %v4611_v60, %v4610_v24  ;;  %v4403_v28 = vrot.slane %v4402_v9, 4  ;;  %4846 = vmatpush.msrb.mxu0 %v7784_v27 }
 0xb09   :  { %v4243_v47 = vsub.f32 %v9774_v4, %v4177_v48  ;;  %v4244_v3 = vsub.f32 %v9792_v14, %v4177_v48  ;;  %v9824_v7 = vpop.f32.mrf.mxu3  ;;  %v4613_v11 = vrot.slane %v4612_v36, 1  ;;  %v7534_v57 = vpop.eup %7533  ;;  %v4404_v26 = vadd.f32 %v4403_v28, %v4402_v9  ;;  %4847 = vmatpush.msrb.mxu0 %v7785_v49 }
 0xb0a   :  { %v4179_v32 = vsel %vm192_vm1, %v9824_v7, -inf  ;;  %v4744_v4 = vrot.slane %v4696_v61, 4  ;;  %v4495_v59 = vmul.f32 %v7534_v57, %v9777_v6  ;;  %v4496_v14 = vmul.f32 %v7534_v57, %v9780_v33 }
 0xb0b   :  { %v4295_v21 = vmul.f32 1.442695, %v4243_v47  ;;  %v4297_v50 = vmul.f32 1.442695, %v4244_v3  ;;  %v4405_v25 = vrot.slane %v4404_v26, 2  ;;  %v4180_v62 = vmax.f32 %v4178_v41, %v4179_v32  ;;  %4848 = vmatpush.msrb.mxu0 %v7786_v19 }
 0xb0c   :  { %v4614_v39 = vadd.f32 %v4613_v11, %v4612_v36  ;;  %v4527_v35 = vmul.f32 %v4495_v59, %v9468_v30  ;;  %v4528_v45 = vmul.f32 %v4496_v14, %v9471_v10  ;;  %v4745_v5 = vsel %vm1851_vm7, %v4744_v4, %v9725_v15 }
 0xb0d   :  { %7535 = vpow2.f32 %v4295_v21  ;;  %v4406_v6 = vadd.f32 %v4405_v25, %v4404_v26  ;;  %v4181_v33 = vrot.slane %v4180_v62, 4  ;;  %4849 = vmatpush.msrb.mxu0 %v7787_v52  ;;  %v4747_v20 = vsel %vm1854_vm9, %v4746_v34, %v4745_v5 }
 0xb0e   :  { %7537 = vpow2.f32 %v4297_v50  ;;  %v4699_v31 = vadd.f32 %v9663_v37, %v4614_v39  ;;  %v4615_v2 = vsel %vm192_vm1, %v4527_v35, 0.0  ;;  %v4616_v58 = vsel %vm192_vm1, %v4528_v45, 0.0 }
 0xb0f   :  { %v4617_v22 = vadd.f32 %v4616_v58, %v4615_v2  ;;  %v4407_v54 = vrot.slane %v4406_v6, 1  ;;  %v4182_v42 = vmax.f32 %v4180_v62, %v4181_v33  ;;  %v4749_v46 = vsel %vm1857_vm10, %v4748_v16, %v4747_v20 }
 0xb10   :  { %v4750_v0 = vrot.slane %v4699_v31, 1 }
 0xb11   :  { %v9844_v55 = vpop.f32.mrf.mxu3  ;;  %v4408_v38 = vadd.f32 %v4407_v54, %v4406_v6  ;;  %v4183_v24 = vrot.slane %v4182_v42, 2  ;;  %v4618_v23 = vrot.slane %v4617_v22, 4 }
 0xb12   :  { %v4751_v12 = vsel %vm1860_vm11, %v4750_v0, %v4749_v46  ;;  %v4187_v41 = vsel %vm192_vm1, %v9844_v55, -inf }
 0xb13   :  { %v9848_v17 = vpop.eup %7535  ;;  %7539 = vrcp.f32 %v4408_v38  ;;  %v4184_v63 = vmax.f32 %v4182_v42, %v4183_v24  ;;  %7058 = vmatmul.msk.f32.vlgmr.msra.gmra.mxu0 %vm192_vm1, %v4751_v12  ;;  %v4619_v1 = vadd.f32 %v4618_v23, %v4617_v22 }
 0xb14   :  { %v9851_v40 = vpop.eup %7537  ;;  %v4409_v15 = vsel %vm192_vm1, %v9848_v17, 0.0 }
 0xb15   :  { %v4410_v29 = vsel %vm192_vm1, %v9851_v40, 0.0  ;;  %v4185_v53 = vrot.slane %v4184_v63, 1 }
 0xb16   :  { %v4411_v60 = vadd.f32 %v4410_v29, %v4409_v15 }
 0xb17   :  { %v4186_v61 = vmax.f32 %v4184_v63, %v4185_v53 }
 0xb18   :  { %v4412_v9 = vrot.slane %v4411_v60, 4 }
 0xb19   :  { %v4058_v48 = vpop.f32.mrf.mxu3  ;;  %v7540_v36 = vpop.eup %7539  ;;  %v4245_v13 = vsub.f32 %v9806_v43, %v4186_v61  ;;  %v4246_v47 = vsub.f32 %v9824_v7, %v4186_v61  ;;  %v4620_v43 = vrot.slane %v4619_v1, 2 }
 0xb1a   :  { %v4413_v28 = vadd.f32 %v4412_v9, %v4411_v60  ;;  %v4497_v3 = vmul.f32 %v7540_v36, %v9809_v51  ;;  %v4498_v11 = vmul.f32 %v7540_v36, %v9812_v8  ;;  %v4188_v44 = vsel %vm192_vm1, %v4058_v48, -inf }
 0xb1b   :  { %v4299_v57 = vmul.f32 1.442695, %v4245_v13  ;;  %v4301_v26 = vmul.f32 1.442695, %v4246_v47  ;;  %v4189_v59 = vmax.f32 %v4187_v41, %v4188_v44  ;;  %v4621_v62 = vadd.f32 %v4620_v43, %v4619_v1 }
 0xb1c   :  { %v4414_v27 = vrot.slane %v4413_v28, 2  ;;  %v4529_v32 = vmul.f32 %v4497_v3, %v9468_v30  ;;  %v4530_v4 = vmul.f32 %v4498_v11, %v9471_v10 }
 0xb1d   :  { %7541 = vpow2.f32 %v4299_v57  ;;  %v4190_v7 = vrot.slane %v4189_v59, 4  ;;  %v4622_v31 = vrot.slane %v4621_v62, 1 }
 0xb1e   :  { %v4415_v14 = vadd.f32 %v4414_v27, %v4413_v28  ;;  %v4624_v51 = vsel %vm192_vm1, %v4529_v32, 0.0  ;;  %v4625_v8 = vsel %vm192_vm1, %v4530_v4, 0.0  ;;  %7543 = vpow2.f32 %v4301_v26 }
 0xb1f   :  { %v4626_v21 = vadd.f32 %v4625_v8, %v4624_v51  ;;  %v4191_v49 = vmax.f32 %v4189_v59, %v4190_v7  ;;  %v4623_v38 = vadd.f32 %v4622_v31, %v4621_v62 }
 0xb20   :  { %v4416_v50 = vrot.slane %v4415_v14, 1 }
 0xb21   :  { %v9869_v25 = vpop.f32.mrf.mxu3  ;;  %v4627_v39 = vrot.slane %v4626_v21, 4  ;;  %v4192_v35 = vrot.slane %v4191_v49, 2  ;;  %v4700_v3 = vadd.f32 %v9663_v37, %v4623_v38 }
 0xb22   :  { %v4417_v34 = vadd.f32 %v4416_v50, %v4415_v14  ;;  %v4196_v46 = vsel %vm192_vm1, %v9869_v25, -inf }
 0xb23   :  { %v9871_v45 = vpop.eup %7541  ;;  %v4628_v16 = vadd.f32 %v4627_v39, %v4626_v21  ;;  %v4193_v33 = vmax.f32 %v4191_v49, %v4192_v35 }
 0xb24   :  { %7545 = vrcp.f32 %v4417_v34  ;;  %v9873_v19 = vpop.eup %7543  ;;  %v4418_v6 = vsel %vm192_vm1, %v9871_v45, 0.0 }
 0xb25   :  { %v4629_v2 = vrot.slane %v4628_v16, 2  ;;  %v4419_v58 = vsel %vm192_vm1, %v9873_v19, 0.0  ;;  %v4194_v52 = vrot.slane %v4193_v33, 1 }
 0xb26   :  { %v4420_v5 = vadd.f32 %v4419_v58, %v4418_v6 }
 0xb27   :  { %v4630_v22 = vadd.f32 %v4629_v2, %v4628_v16  ;;  %v4195_v42 = vmax.f32 %v4193_v33, %v4194_v52 }
 0xb28   :  { %v4421_v54 = vrot.slane %v4420_v5, 4 }
 0xb29   :  { %v4064_v0 = vpop.f32.mrf.mxu3  ;;  %v4631_v24 = vrot.slane %v4630_v22, 1  ;;  %v4247_v23 = vsub.f32 %v9844_v55, %v4195_v42  ;;  %v4248_v53 = vsub.f32 %v4058_v48, %v4195_v42 }
 0xb2a   :  { %v7546_v20 = vpop.eup %7545  ;;  %v4197_v12 = vsel %vm192_vm1, %v4064_v0, -inf  ;;  %v4422_v29 = vadd.f32 %v4421_v54, %v4420_v5 }
 0xb2b   :  { %v4499_v15 = vmul.f32 %v7546_v20, %v9848_v17  ;;  %v4500_v63 = vmul.f32 %v7546_v20, %v9851_v40  ;;  %v4632_v60 = vadd.f32 %v4631_v24, %v4630_v22  ;;  %v4198_v9 = vmax.f32 %v4196_v46, %v4197_v12 }
 0xb2c   :  { %v4423_v1 = vrot.slane %v4422_v29, 2  ;;  %v4303_v28 = vmul.f32 1.442695, %v4247_v23  ;;  %v4305_v13 = vmul.f32 1.442695, %v4248_v53 }
 0xb2d   :  { %v4531_v61 = vmul.f32 %v4499_v15, %v9468_v30  ;;  %v4532_v36 = vmul.f32 %v4500_v63, %v9471_v10  ;;  %v4199_v47 = vrot.slane %v4198_v9, 4  ;;  %v4701_v17 = vadd.f32 %v9663_v37, %v4632_v60 }
 0xb2e   :  { %v4424_v55 = vadd.f32 %v4423_v1, %v4422_v29  ;;  %7547 = vpow2.f32 %v4303_v28 }
 0xb2f   :  { %v4633_v40 = vsel %vm192_vm1, %v4531_v61, 0.0  ;;  %v4634_v11 = vsel %vm192_vm1, %v4532_v36, 0.0  ;;  %7549 = vpow2.f32 %v4305_v13  ;;  %v4200_v44 = vmax.f32 %v4198_v9, %v4199_v47 }
 0xb30   :  { %v4635_v48 = vadd.f32 %v4634_v11, %v4633_v40  ;;  %v4752_v27 = vrot.slane %v4701_v17, 7  ;;  %v4425_v57 = vrot.slane %v4424_v55, 1 }
 0xb31   :  { %v9891_v26 = vpop.f32.mrf.mxu3  ;;  %v4201_v32 = vrot.slane %v4200_v44, 2 }
 0xb32   :  { %v4636_v41 = vrot.slane %v4635_v48, 4  ;;  %v4753_v4 = vsel %vm1842_vm4, %v4752_v27, %v4700_v3  ;;  %v4426_v59 = vadd.f32 %v4425_v57, %v4424_v55  ;;  %v4205_v58 = vsel %vm192_vm1, %v9891_v26, -inf }
 0xb33   :  { %v4202_v14 = vmax.f32 %v4200_v44, %v4201_v32 }
 0xb34   :  { %v4637_v43 = vadd.f32 %v4636_v41, %v4635_v48  ;;  %v9894_v51 = vpop.eup %7547  ;;  %7551 = vrcp.f32 %v4426_v59 }
 0xb35   :  { %v9896_v8 = vpop.eup %7549  ;;  %v4427_v21 = vsel %vm192_vm1, %v9894_v51, 0.0  ;;  %v4203_v50 = vrot.slane %v4202_v14, 1 }
 0xb36   :  { %v4638_v7 = vrot.slane %v4637_v43, 2  ;;  %v4428_v49 = vsel %vm192_vm1, %v9896_v8, 0.0 }
 0xb37   :  { %v4429_v39 = vadd.f32 %v4428_v49, %v4427_v21  ;;  %v4204_v34 = vmax.f32 %v4202_v14, %v4203_v50 }
 0xb38   :  { %v4639_v62 = vadd.f32 %v4638_v7, %v4637_v43 }
 0xb39   :  { %v4070_v35 = vpop.f32.mrf.mxu3  ;;  %v4430_v6 = vrot.slane %v4429_v39, 4  ;;  %v4249_v33 = vsub.f32 %v9869_v25, %v4204_v34  ;;  %v4250_v31 = vsub.f32 %v4064_v0, %v4204_v34 }
 0xb3a   :  { %v4640_v16 = vrot.slane %v4639_v62, 1  ;;  %v7552_v2 = vpop.eup %7551  ;;  %v4206_v5 = vsel %vm192_vm1, %v4070_v35, -inf }
 0xb3b   :  { %v4501_v22 = vmul.f32 %v7552_v2, %v9871_v45  ;;  %v4502_v54 = vmul.f32 %v7552_v2, %v9873_v19  ;;  %v4431_v42 = vadd.f32 %v4430_v6, %v4429_v39  ;;  %v4307_v20 = vmul.f32 1.442695, %v4249_v33 }
 0xb3c   :  { %v4641_v52 = vadd.f32 %v4640_v16, %v4639_v62  ;;  %v4309_v38 = vmul.f32 1.442695, %v4250_v31  ;;  %v4207_v24 = vmax.f32 %v4205_v58, %v4206_v5  ;;  %v9933_v58 = vld [vmem:[%s8227_s17 + $0x2] ss:$0 sm:$0xff] }
 0xb3d   :  { %v4533_v46 = vmul.f32 %v4501_v22, %v9468_v30  ;;  %v4534_v25 = vmul.f32 %v4502_v54, %v9471_v10  ;;  %v4432_v0 = vrot.slane %v4431_v42, 2  ;;  %7553 = vpow2.f32 %v4307_v20 }
 0xb3e   :  { %v4702_v12 = vadd.f32 %v9663_v37, %v4641_v52  ;;  %v4208_v15 = vrot.slane %v4207_v24, 4  ;;  %7555 = vpow2.f32 %v4309_v38 }
 0xb3f   :  { %v4642_v63 = vsel %vm192_vm1, %v4533_v46, 0.0  ;;  %v4643_v29 = vsel %vm192_vm1, %v4534_v25, 0.0  ;;  %v4433_v45 = vadd.f32 %v4432_v0, %v4431_v42 }
 0xb40   :  { %v4644_v19 = vadd.f32 %v4643_v29, %v4642_v63  ;;  %v4209_v23 = vmax.f32 %v4207_v24, %v4208_v15  ;;  %v4754_v53 = vrot.slane %v4702_v12, 6 }
 0xb41   :  { %v9913_v60 = vpop.f32.mrf.mxu3  ;;  %v4434_v9 = vrot.slane %v4433_v45, 1 }
 0xb42   :  { %v4645_v61 = vrot.slane %v4644_v19, 4  ;;  %v4210_v36 = vrot.slane %v4209_v23, 2  ;;  %v4755_v1 = vsel %vm1845_vm5, %v4754_v53, %v4753_v4  ;;  %v4214_v32 = vsel %vm192_vm1, %v9913_v60, -inf }
 0xb43   :  { %v4435_v28 = vadd.f32 %v4434_v9, %v4433_v45  ;;  %v9916_v37 = vpop.eup %7553 }
 0xb44   :  { %v4646_v13 = vadd.f32 %v4645_v61, %v4644_v19  ;;  %v4211_v47 = vmax.f32 %v4209_v23, %v4210_v36  ;;  %v9918_v3 = vpop.eup %7555  ;;  %v4436_v17 = vsel %vm192_vm1, %v9916_v37, 0.0 }
 0xb45   :  { %7557 = vrcp.f32 %v4435_v28  ;;  %v4437_v11 = vsel %vm192_vm1, %v9918_v3, 0.0 }
 0xb46   :  { %v4647_v40 = vrot.slane %v4646_v13, 2  ;;  %v4212_v55 = vrot.slane %v4211_v47, 1  ;;  %v4438_v48 = vadd.f32 %v4437_v11, %v4436_v17 }
 0xb48   :  { %v4648_v44 = vadd.f32 %v4647_v40, %v4646_v13  ;;  %v4213_v27 = vmax.f32 %v4211_v47, %v4212_v55  ;;  %v4439_v41 = vrot.slane %v4438_v48, 4 }
 0xb49   :  { %v4076_v57 = vpop.f32.mrf.mxu3 }
 0xb4a   :  { %v4215_v4 = vsel %vm192_vm1, %v4076_v57, -inf  ;;  %v4649_v59 = vrot.slane %v4648_v44, 1  ;;  %v4251_v43 = vsub.f32 %v9891_v26, %v4213_v27  ;;  %v4252_v14 = vsub.f32 %v4070_v35, %v4213_v27 }
 0xb4b   :  { %v4216_v7 = vmax.f32 %v4214_v32, %v4215_v4  ;;  %v7558_v21 = vpop.eup %7557  ;;  %v4440_v50 = vadd.f32 %v4439_v41, %v4438_v48 }
 0xb4c   :  { %v4503_v49 = vmul.f32 %v7558_v21, %v9894_v51  ;;  %v4504_v62 = vmul.f32 %v7558_v21, %v9896_v8  ;;  %v4311_v39 = vmul.f32 1.442695, %v4251_v43  ;;  %v4313_v34 = vmul.f32 1.442695, %v4252_v14 }
 0xb4d   :  { %v4441_v16 = vrot.slane %v4440_v50, 2  ;;  %v4217_v6 = vrot.slane %v4216_v7, 4  ;;  %v4650_v33 = vadd.f32 %v4649_v59, %v4648_v44 }
 0xb4e   :  { %v4535_v31 = vmul.f32 %v4503_v49, %v9468_v30  ;;  %v4536_v2 = vmul.f32 %v4504_v62, %v9471_v10  ;;  %7559 = vpow2.f32 %v4311_v39 }
 0xb4f   :  { %v4442_v26 = vadd.f32 %v4441_v16, %v4440_v50  ;;  %7561 = vpow2.f32 %v4313_v34  ;;  %v4218_v35 = vmax.f32 %v4216_v7, %v4217_v6  ;;  %v4703_v5 = vadd.f32 %v9933_v58, %v4650_v33 }
 0xb50   :  { %v4651_v51 = vsel %vm192_vm1, %v4535_v31, 0.0  ;;  %v4652_v8 = vsel %vm192_vm1, %v4536_v2, 0.0 }
 0xb51   :  { %v4653_v52 = vadd.f32 %v4652_v8, %v4651_v51  ;;  %v4443_v22 = vrot.slane %v4442_v26, 1  ;;  %v4219_v54 = vrot.slane %v4218_v35, 2  ;;  %v4756_v42 = vrot.slane %v4703_v5, 5 }
 0xb53   :  { %v4654_v20 = vrot.slane %v4653_v52, 4  ;;  %v4220_v38 = vmax.f32 %v4218_v35, %v4219_v54  ;;  %v4757_v24 = vsel %vm1848_vm6, %v4756_v42, %v4755_v1  ;;  %v4444_v25 = vadd.f32 %v4443_v22, %v4442_v26 }
 0xb54   :  { %v7560_v46 = vpop.eup %7559 }
 0xb55   :  { %v7562_v0 = vpop.eup %7561  ;;  %v4655_v12 = vadd.f32 %v4654_v20, %v4653_v52  ;;  %v4445_v15 = vsel %vm192_vm1, %v7560_v46, 0.0  ;;  %v4221_v63 = vrot.slane %v4220_v38, 1  ;;  %7563 = vrcp.f32 %v4444_v25 }
 0xb56   :  { %v4446_v29 = vsel %vm192_vm1, %v7562_v0, 0.0 }
 0xb57   :  { %v4656_v45 = vrot.slane %v4655_v12, 2  ;;  %v4447_v19 = vadd.f32 %v4446_v29, %v4445_v15  ;;  %v4222_v23 = vmax.f32 %v4220_v38, %v4221_v63 }
 0xb59   :  { %v4657_v53 = vadd.f32 %v4656_v45, %v4655_v12  ;;  %v4448_v9 = vrot.slane %v4447_v19, 4  ;;  %v4253_v61 = vsub.f32 %v9913_v60, %v4222_v23  ;;  %v4254_v36 = vsub.f32 %v4076_v57, %v4222_v23 }
 0xb5b   :  { %v4449_v28 = vadd.f32 %v4448_v9, %v4447_v19  ;;  %v4315_v1 = vmul.f32 1.442695, %v4253_v61  ;;  %v4317_v13 = vmul.f32 1.442695, %v4254_v36  ;;  %v4658_v47 = vrot.slane %v4657_v53, 1  ;;  %v7564_v11 = vpop.eup %7563 }
 0xb5c   :  { %v4505_v44 = vmul.f32 %v7564_v11, %v9916_v37  ;;  %v4506_v27 = vmul.f32 %v7564_v11, %v9918_v3 }
 0xb5d   :  { %v4450_v17 = vrot.slane %v4449_v28, 2  ;;  %7565 = vpow2.f32 %v4315_v1  ;;  %v4659_v40 = vadd.f32 %v4658_v47, %v4657_v53 }
 0xb5e   :  { %7567 = vpow2.f32 %v4317_v13  ;;  %v4537_v14 = vmul.f32 %v4505_v44, %v9468_v30  ;;  %v4538_v7 = vmul.f32 %v4506_v27, %v9471_v10 }
 0xb5f   :  { %v4451_v55 = vadd.f32 %v4450_v17, %v4449_v28  ;;  %v4704_v48 = vadd.f32 %v9933_v58, %v4659_v40 }
 0xb60   :  { %v4660_v3 = vsel %vm192_vm1, %v4537_v14, 0.0  ;;  %v4661_v49 = vsel %vm192_vm1, %v4538_v7, 0.0  ;;  %v7073_v7 = vld [vmem:[%s8045_s28 + $0xf8] sm:$0xff] }
 0xb61   :  { %v4452_v41 = vrot.slane %v4451_v55, 1  ;;  %v4758_v32 = vrot.slane %v4704_v48, 4  ;;  %v4662_v34 = vadd.f32 %v4661_v49, %v4660_v3  ;;  %4929 = vmatpush.msrb.mxu2 %v7073_v7  ;;  %v7083_v3 = vld [vmem:[%s8040_s24 + $0xf0] sm:$0xff] }
 0xb62   :  { %v7795_v7 = vld [vmem:[%s7996_s11 + $0x30] sm:$0xff] }
 0xb63   :  { %v7566_v60 = vpop.eup %7565  ;;  %v4453_v57 = vadd.f32 %v4452_v41, %v4451_v55  ;;  %v4759_v4 = vsel %vm1851_vm7, %v4758_v32, %v4757_v24  ;;  %v4663_v35 = vrot.slane %v4662_v34, 4  ;;  %v7256_v55 = vld [vmem:[%s8555_s26 + $0x2] ss:$0 sm:$0xff] }
 0xb64   :  { %v7568_v59 = vpop.eup %7567  ;;  %v4454_v43 = vsel %vm192_vm1, %v7566_v60, 0.0 }
 0xb65   :  { %7569 = vrcp.f32 %v4453_v57  ;;  %v4455_v21 = vsel %vm192_vm1, %v7568_v59, 0.0  ;;  %v4664_v42 = vadd.f32 %v4663_v35, %v4662_v34  ;;  %v7068_v35 = vld [vmem:[%s8045_s28 + $0xd0] sm:$0xff] }
 0xb66   :  { %v4456_v50 = vadd.f32 %v4455_v21, %v4454_v43  ;;  %v7084_v21 = vld [vmem:[%s8040_s24 + $0xf8] sm:$0xff] }
 0xb67   :  { %v4665_v38 = vrot.slane %v4664_v42, 2  ;;  %4966 = vmatpush.msra.mxu0 %v7084_v21  ;;  %v7796_v21 = vld [vmem:[%s7996_s11 + $0x38] sm:$0xff] }
 0xb68   :  { %v4457_v37 = vrot.slane %v4456_v50, 4 }
 0xb69   :  { %v4666_v12 = vadd.f32 %v4665_v38, %v4664_v42  ;;  %4967 = vmatpush.msra.mxu0 %v7083_v3  ;;  %v7799_v3 = vld [vmem:[%s7996_s11 + $0x50] sm:$0xff] }
 0xb6a   :  { %v4458_v62 = vadd.f32 %v4457_v37, %v4456_v50  ;;  %v7072_v50 = vld [vmem:[%s8045_s28 + $0xf0] sm:$0xff] }
 0xb6b   :  { %v7570_v39 = vpop.eup %7569  ;;  %v4667_v53 = vrot.slane %v4666_v12, 1  ;;  %4930 = vmatpush.msrb.mxu2 %v7072_v50  ;;  %v7797_v50 = vld [vmem:[%s7996_s11 + $0x40] sm:$0xff] }
 0xb6c   :  { %v4507_v16 = vmul.f32 %v7570_v39, %v7560_v46  ;;  %v4508_v6 = vmul.f32 %v7570_v39, %v7562_v0  ;;  %v4459_v33 = vrot.slane %v4458_v62, 2  ;;  %v7082_v39 = vld [vmem:[%s8040_s24 + $0xe8] sm:$0xff] }
 0xb6d   :  { %v4668_v36 = vadd.f32 %v4667_v53, %v4666_v12  ;;  %4968 = vmatpush.msra.mxu0 %v7082_v39  ;;  %v7091_v53 = vld [vmem:[%s7979_s7 + $0x78] sm:$0xff]  ;;  %v7130_v39 = vld [vmem:[%s8143_s12 + $0xf0] sm:$0xff] }
 0xb6e   :  { %v4539_v31 = vmul.f32 %v4507_v16, %v9468_v30  ;;  %v4540_v2 = vmul.f32 %v4508_v6, %v9471_v10  ;;  %v4460_v26 = vadd.f32 %v4459_v33, %v4458_v62  ;;  %v7071_v62 = vld [vmem:[%s8045_s28 + $0xe8] sm:$0xff]  ;;  %v7070_v6 = vld [vmem:[%s8045_s28 + $0xe0] sm:$0xff] }
 0xb6f   :  { %v4705_v17 = vadd.f32 %v9933_v58, %v4668_v36  ;;  %v7081_v33 = vld [vmem:[%s8040_s24 + $0xe0] sm:$0xff]  ;;  %4931 = vmatpush.msrb.mxu2 %v7071_v62  ;;  %v7131_v62 = vld [vmem:[%s8143_s12 + $0xf8] sm:$0xff] }
 0xb70   :  { %v4669_v5 = vsel %vm192_vm1, %v4539_v31, 0.0  ;;  %v4670_v51 = vsel %vm192_vm1, %v4540_v2, 0.0  ;;  %v4461_v8 = vrot.slane %v4460_v26, 1  ;;  %v7069_v2 = vld [vmem:[%s8045_s28 + $0xd8] sm:$0xff]  ;;  %4969 = vmatpush.msra.mxu0 %v7081_v33 }
 0xb71   :  { %v4671_v52 = vadd.f32 %v4670_v51, %v4669_v5  ;;  %v4760_v11 = vrot.slane %v4705_v17, 3  ;;  %4932 = vmatpush.msrb.mxu2 %v7070_v6  ;;  %v7079_v5 = vld [vmem:[%s8040_s24 + $0xd0] sm:$0xff]  ;;  %v7067_v51 = vld [vmem:[%s8045_s28 + $0xc8] sm:$0xff]  ;;  %v7801_v6 = vld [vmem:[%s7996_s11 + $0x60] sm:$0xff] }
 0xb72   :  { %v4462_v22 = vadd.f32 %v4461_v8, %v4460_v26  ;;  %v7080_v26 = vld [vmem:[%s8040_s24 + $0xd8] sm:$0xff]  ;;  %v7078_v8 = vld [vmem:[%s8040_s24 + $0xc8] sm:$0xff] }
 0xb73   :  { %v4672_v54 = vrot.slane %v4671_v52, 4  ;;  %v4761_v41 = vsel %vm1854_vm9, %v4760_v11, %v4759_v4  ;;  %4933 = vmatpush.msrb.mxu2 %v7069_v2  ;;  %4970 = vmatpush.msra.mxu0 %v7080_v26  ;;  %v7127_v33 = vld [vmem:[%s8143_s12 + $0xd8] sm:$0xff]  ;;  %v7126_v2 = vld [vmem:[%s8143_s12 + $0xd0] sm:$0xff]  ;;  %v7125_v26 = vld [vmem:[%s8143_s12 + $0xc8] sm:$0xff] }
 0xb74   :  { %7571 = vrcp.f32 %v4462_v22  ;;  %v7077_v22 = vld [vmem:[%s8040_s24 + $0xc0] sm:$0xff] }
 0xb75   :  { %v4673_v20 = vadd.f32 %v4672_v54, %v4671_v52  ;;  %4934 = vmatpush.msrb.mxu2 %v7068_v35  ;;  %4971 = vmatpush.msra.mxu0 %v7079_v5  ;;  %v7066_v52 = vld [vmem:[%s8045_s28 + $0xc0] sm:$0xff]  ;;  %v7803_v5 = vld [vmem:[%s7996_s11 + $0x70] sm:$0xff]  ;;  %s7851_s28 = smov 24  }
 0xb76   :  { %v7124_v35 = vld [vmem:[%s8143_s12 + $0xc0] sm:$0xff]  ;;  %s10619_s9 = sld [smem:[%s10765_s0 + %s7851_s28]]  }
 0xb77   :  { %v4674_v24 = vrot.slane %v4673_v20, 2  ;;  %4935 = vmatpush.msrb.mxu2 %v7067_v51  ;;  %4972 = vmatpush.msra.mxu0 %v7078_v8  ;;  %v10059_v8 = vld [vmem:[%s8096_s6 + $0x3] ss:$0 sm:$0xff]  ;;  %s7859_s6 = smov 27  }
 0xb79   :  { %v4675_v29 = vadd.f32 %v4674_v24, %v4673_v20  ;;  %4936 = vmatpush.msrb.mxu2 %v7066_v52  ;;  %4973 = vmatpush.msra.mxu0 %v7077_v22  ;;  %v7804_v52 = vld [vmem:[%s7996_s11 + $0x78] sm:$0xff] }
 0xb7a   :  { %v7572_v46 = vpop.eup %7571 }
 0xb7b   :  { %v4509_v25 = vmul.f32 %v7572_v46, %v7566_v60  ;;  %v4510_v0 = vmul.f32 %v7572_v46, %v7568_v59  ;;  %v4676_v9 = vrot.slane %v4675_v29, 1 }
 0xb7d   :  { %v4541_v15 = vmul.f32 %v4509_v25, %v9468_v30  ;;  %v4542_v63 = vmul.f32 %v4510_v0, %v9471_v10  ;;  %v4677_v1 = vadd.f32 %v4676_v9, %v4675_v29  ;;  %v7257_v0 = vld [vmem:[%s8734_s1 + $0x2] ss:$0 sm:$0xff]  ;;  %v7090_v9 = vld [vmem:[%s7979_s7 + $0x70] sm:$0xff] }
 0xb7f   :  { %v4678_v45 = vsel %vm192_vm1, %v4541_v15, 0.0  ;;  %v4679_v19 = vsel %vm192_vm1, %v4542_v63, 0.0  ;;  %v4706_v30 = vadd.f32 %v9933_v58, %v4677_v1  ;;  %v7258_v63 = vld [vmem:[%s8739_s8 + $0x2] ss:$0 sm:$0xff] }
 0xb80   :  { %v4680_v23 = vadd.f32 %v4679_v19, %v4678_v45 }
 0xb81   :  { %v4762_v48 = vrot.slane %v4706_v30, 2 }
 0xb82   :  { %v4681_v61 = vrot.slane %v4680_v23, 4 }
 0xb83   :  { %v4763_v57 = vsel %vm1857_vm10, %v4762_v48, %v4761_v41 }
 0xb84   :  { %v4682_v28 = vadd.f32 %v4681_v61, %v4680_v23 }
 0xb86   :  { %v4683_v13 = vrot.slane %v4682_v28, 2 }
 0xb88   :  { %v4684_v47 = vadd.f32 %v4683_v13, %v4682_v28  ;;  %v7089_v13 = vld [vmem:[%s7979_s7 + $0x68] sm:$0xff] }
 0xb8a   :  { %v4685_v10 = vrot.slane %v4684_v47, 1 }
 0xb8c   :  { %v4686_v40 = vadd.f32 %v4685_v10, %v4684_v47 }
 0xb8e   :  { %v4707_v44 = vadd.f32 %v9933_v58, %v4686_v40 }
 0xb90   :  { %v4787_v27 = vpop.f32.mrf.mxu0  ;;  %v4764_v32 = vrot.slane %v4707_v44, 1 }
 0xb91   :  { %v9965_v60 = vadd.f32 %v7256_v55, %v4787_v27 }
 0xb92   :  { %v4765_v59 = vsel %vm1860_vm11, %v4764_v32, %v4763_v57 }
 0xb93   :  { %7059 = vmatmul.msk.f32.gmra.mxu0 %vm192_vm1, %v4765_v59  ;;  %7062 = vmatmul.msk.f32.vlgmr.msra.gmra.mxu2 %vm192_vm1, %v9965_v60  ;;  %v4826_v58 = vmul.f32 %v9965_v60, %v9965_v60  ;;  %v7789_v59 = vld [vmem:[%s7996_s11] sm:$0xff] }
 0xb94   :  { %4998 = vmatpush.msra.mxu2 %v7091_v53 }
 0xb96   :  { %4999 = vmatpush.msra.mxu2 %v7090_v9 }
 0xb98   :  { %5000 = vmatpush.msra.mxu2 %v7089_v13 }
 0xb9b   :  { %7064 = vmatmul.msk.f32.vlgmr.msrb.gmra.mxu0 %vm192_vm1, %v4826_v58  ;;  %v7790_v58 = vld [vmem:[%s7996_s11 + $0x8] sm:$0xff] }
 0xb9c   :  { %5420 = vmatpush.msrb.mxu0 %v7131_v62 }
 0xb9e   :  { %5421 = vmatpush.msrb.mxu0 %v7130_v39 }
 0xc10   :  { %v4790_v4 = vpop.f32.mrf.mxu0 }
 0xc11   :  { %v9975_v43 = vadd.f32 %v7256_v55, %v4790_v4  ;;  %v7791_v4 = vld [vmem:[%s7996_s11 + $0x10] sm:$0xff] }
 0xc13   :  { %v4827_v14 = vmul.f32 %v9975_v43, %v9975_v43  ;;  %7063 = vmatmul.msk.f32.gmra.mxu2 %vm192_vm1, %v9975_v43 }
 0xc15   :  { %7065 = vmatmul.msk.f32.gmra.mxu0 %vm192_vm1, %v4827_v14  ;;  %v7794_v14 = vld [vmem:[%s7996_s11 + $0x28] sm:$0xff] }
 0xc16   :  { %v4820_v37 = vpop.f32.mrf.mxu2 }
 0xc17   :  { %v4857_v49 = vmul.f32 %v4820_v37, %v4820_v37  ;;  %v4861_v25 = vsub.f32 %v9965_v60, %v4820_v37  ;;  %v7798_v37 = vld [vmem:[%s7996_s11 + $0x48] sm:$0xff] }
 0xc18   :  { %v4851_v34 = vpop.f32.mrf.mxu0 }
 0xc19   :  { %v4859_v16 = vsub.f32 %v4851_v34, %v4857_v49  ;;  %v7800_v49 = vld [vmem:[%s7996_s11 + $0x58] sm:$0xff]  ;;  %v7129_v34 = vld [vmem:[%s8143_s12 + $0xe8] sm:$0xff] }
 0xc1a   :  { %5422 = vmatpush.msrb.mxu0 %v7129_v34 }
 0xc1b   :  { %v4863_v31 = vadd.f32 1e-05, %v4859_v16  ;;  %v7128_v16 = vld [vmem:[%s8143_s12 + $0xe0] sm:$0xff]  ;;  %s6740_s12 = sld [smem:[%s10765_s0 + %s7859_s6]]  }
 0xc1c   :  { %5423 = vmatpush.msrb.mxu0 %v7128_v16 }
 0xc1d   :  { %7573 = vrsqrt.f32 %v4863_v31  ;;  %vm4871_vm12 = vweird.f32 %v4863_v31 }
 0xc1e   :  { %5424 = vmatpush.msrb.mxu0 %v7127_v33 }
 0xc20   :  { %5425 = vmatpush.msrb.mxu0 %v7126_v2 }
 0xc22   :  { %5426 = vmatpush.msrb.mxu0 %v7125_v26 }
 0xc23   :  { %v7574_v54 = vpop.eup %7573 }
 0xc24   :  { %v4866_v42 = vmul.f32 %v7574_v54, %v4863_v31  ;;  %vm4872_vm3 = vweird.f32 %v7574_v54  ;;  %v7802_v31 = vld [vmem:[%s7996_s11 + $0x68] sm:$0xff]  ;;  %5427 = vmatpush.msrb.mxu0 %v7124_v35 }
 0xc25   :  { %vm4873_vm13 = vmor %vm4871_vm12, %vm4872_vm3 }
 0xc26   :  { %v4867_v20 = vmul.f32 %v7574_v54, %v4866_v42 }
 0xc28   :  { %v4868_v38 = vmul.f32 0.5, %v4867_v20 }
 0xc2a   :  { %v4869_v24 = vsub.f32 1.5, %v4868_v38 }
 0xc2c   :  { %v4870_v46 = vmul.f32 %v7574_v54, %v4869_v24  ;;  %v7805_v24 = vld [vmem:[%s7996_s11 + $0x80] sm:$0xff] }
 0xc2e   :  { %v4874_v12 = vsel %vm4873_vm13, %v7574_v54, %v4870_v46  ;;  %v7260_v54 = vld [vmem:[%s8091_s2 + $0x3] ss:$0 sm:$0xff] }
 0xc2f   :  { %v4885_v15 = vmul.f32 %v4874_v12, %v4861_v25 }
 0xc31   :  { %v4890_v29 = vmul.f32 %v7257_v0, %v4885_v15 }
 0xc33   :  { %v4895_v45 = vadd.f32 %v7258_v63, %v4890_v29 }
 0xc35   :  { %v4897_v19 = vmax.f32 %v4895_v45, 0.0  ;;  %v7806_v45 = vld [vmem:[%s7996_s11 + $0x88] sm:$0xff] }
 0xc37   :  { %v10002_v23 = vadd.f32 %v4897_v19, %v9397_v56  ;;  %v7088_v56 = vld [vmem:[%s7979_s7 + $0x60] sm:$0xff]  ;;  %s10653_s7 = sld [smem:[%s10765_s0 + %s7857_s5]]  }
 0xc38   :  { %5001 = vmatpush.msra.mxu2 %v7088_v56 }
 0xc39   :  { %7075 = vmatmul.msk.f32.vlgmr.msrb.gmra.mxu2 %vm192_vm1, %v10002_v23  ;;  %7086 = vmatmul.msk.f32.vlgmr.msra.gmra.mxu0 %vm192_vm1, %v10002_v23 }
 0xc92   :  { %v4854_v28 = vpop.f32.mrf.mxu0 }
 0xc96   :  { %v4823_v61 = vpop.f32.mrf.mxu2 }
 0xc97   :  { %v4858_v36 = vmul.f32 %v4823_v61, %v4823_v61  ;;  %v4862_v48 = vsub.f32 %v9975_v43, %v4823_v61  ;;  %v7793_v43 = vld [vmem:[%s7996_s11 + $0x20] sm:$0xff] }
 0xc99   :  { %v4860_v1 = vsub.f32 %v4854_v28, %v4858_v36  ;;  %v7807_v28 = vld [vmem:[%s7996_s11 + $0x90] sm:$0xff] }
 0xc9b   :  { %v4864_v47 = vadd.f32 1e-05, %v4860_v1 }
 0xc9d   :  { %7575 = vrsqrt.f32 %v4864_v47  ;;  %vm4881_vm15 = vweird.f32 %v4864_v47 }
 0xca3   :  { %v7576_v17 = vpop.eup %7575 }
 0xca4   :  { %v4876_v30 = vmul.f32 %v7576_v17, %v4864_v47  ;;  %vm4882_vm14 = vweird.f32 %v7576_v17 }
 0xca5   :  { %vm4883_vm0 = vmor %vm4881_vm15, %vm4882_vm14 }
 0xca6   :  { %v4877_v10 = vmul.f32 %v7576_v17, %v4876_v30 }
 0xca8   :  { %v4878_v40 = vmul.f32 0.5, %v4877_v10  ;;  %v7808_v10 = vld [vmem:[%s7996_s11 + $0x98] sm:$0xff] }
 0xcaa   :  { %v4879_v11 = vsub.f32 1.5, %v4878_v40 }
 0xcac   :  { %v4880_v55 = vmul.f32 %v7576_v17, %v4879_v11 }
 0xcae   :  { %v4884_v44 = vsel %vm4883_vm0, %v7576_v17, %v4880_v55 }
 0xcaf   :  { %v4886_v27 = vmul.f32 %v4884_v44, %v4862_v48 }
 0xcb1   :  { %v4891_v41 = vmul.f32 %v7257_v0, %v4886_v27 }
 0xcb3   :  { %v4896_v32 = vadd.f32 %v7258_v63, %v4891_v41  ;;  %v7809_v41 = vld [vmem:[%s7996_s11 + $0xa0] sm:$0xff] }
 0xcb5   :  { %v4898_v60 = vmax.f32 %v4896_v32, 0.0 }
 0xcb6   :  { %v4975_v22 = vpop.f32.mrf.mxu0 }
 0xcb7   :  { %v10014_v57 = vadd.f32 %v4898_v60, %v9411_v18  ;;  %v7792_v18 = vld [vmem:[%s7996_s11 + $0x18] sm:$0xff]  ;;  %v10065_v20 = vadd.f32 %v10059_v8, %v4975_v22  ;;  %v7813_v22 = vld [vmem:[%s7996_s11 + $0xc0] sm:$0xff] }
 0xcb9   :  { %7076 = vmatmul.msk.f32.gmra.mxu2 %vm192_vm1, %v10014_v57  ;;  %7087 = vmatmul.msk.f32.gmra.mxu0 %vm192_vm1, %v10014_v57  ;;  %v5115_v46 = vperm.slane %v10065_v20, 0  ;;  %v5101_v61 = vrot.slane %v10065_v20, 1  ;;  %v5102_v44 = vrot.slane %v10065_v20, 2 }
 0xcbb   :  { %v5116_v13 = vperm.slane %v5101_v61, 0  ;;  %v5117_v60 = vperm.slane %v5102_v44, 0  ;;  %v7815_v61 = vld [vmem:[%s7996_s11 + $0xd0] sm:$0xff]  ;;  %v7817_v44 = vld [vmem:[%s7996_s11 + $0xe0] sm:$0xff] }
 0xcbc   :  { %v4938_v51 = vpop.f32.mrf.mxu2 }
 0xcbd   :  { %v10067_v38 = vadd.f32 %v7260_v54, %v4938_v51  ;;  %v5104_v51 = vrot.slane %v10065_v20, 4 }
 0xcbf   :  { %v5147_v25 = vadd.f32 %v5115_v46, %v10067_v38  ;;  %v5149_v47 = vadd.f32 %v5116_v13, %v10067_v38 }
 0xcc1   :  { %7092 = vmatmul.msk.f32.vlgmr.msra.gmra.mxu2 %vm550_vm8, %v7789_v59  ;;  %v5151_v59 = vadd.f32 %v5117_v60, %v10067_v38 }
 0xcc9   :  { %7093 = vmatmul.msk.f32.gmra.mxu2 %vm550_vm8, %v7790_v58 }
 0xcd1   :  { %7094 = vmatmul.msk.f32.gmra.mxu2 %vm550_vm8, %v7791_v4 }
 0xcd9   :  { %7095 = vmatmul.msk.f32.gmra.mxu2 %vm550_vm8, %v7792_v18 }
 0xce1   :  { %7096 = vmatmul.msk.f32.gmra.mxu2 %vm550_vm8, %v7793_v43  ;;  %v7810_v43 = vld [vmem:[%s7996_s11 + $0xa8] sm:$0xff] }
 0xce9   :  { %7097 = vmatmul.msk.f32.gmra.mxu2 %vm550_vm8, %v7794_v14 }
 0xcf1   :  { %7098 = vmatmul.msk.f32.gmra.mxu2 %vm550_vm8, %v7795_v7 }
 0xcf9   :  { %7099 = vmatmul.msk.f32.gmra.mxu2 %vm550_vm8, %v7796_v21 }
 0xd01   :  { %7100 = vmatmul.msk.f32.gmra.mxu2 %vm550_vm8, %v7797_v50 }
 0xd09   :  { %7101 = vmatmul.msk.f32.gmra.mxu2 %vm550_vm8, %v7798_v37  ;;  %v5103_v37 = vrot.slane %v10065_v20, 3 }
 0xd0b   :  { %v5118_v39 = vperm.slane %v5103_v37, 0  ;;  %v7819_v37 = vld [vmem:[%s7996_s11 + $0xf0] sm:$0xff] }
 0xd0d   :  { %v5153_v34 = vadd.f32 %v5118_v39, %v10067_v38 }
 0xd11   :  { %7102 = vmatmul.msk.f32.gmra.mxu2 %vm550_vm8, %v7799_v3 }
 0xd19   :  { %7103 = vmatmul.msk.f32.gmra.mxu2 %vm550_vm8, %v7800_v49  ;;  %v7811_v49 = vld [vmem:[%s7996_s11 + $0xb0] sm:$0xff] }
 0xd21   :  { %7104 = vmatmul.msk.f32.gmra.mxu2 %vm550_vm8, %v7801_v6 }
 0xd29   :  { %7105 = vmatmul.msk.f32.gmra.mxu2 %vm550_vm8, %v7802_v31  ;;  %v7812_v31 = vld [vmem:[%s7996_s11 + $0xb8] sm:$0xff] }
 0xd31   :  { %7106 = vmatmul.msk.f32.gmra.mxu2 %vm550_vm8, %v7803_v5 }
 0xd39   :  { %7107 = vmatmul.msk.f32.gmra.mxu2 %vm550_vm8, %v7804_v52 }
 0xd3c   :  { %v4941_v42 = vpop.f32.mrf.mxu2 }
 0xd3d   :  { %v10073_v15 = vadd.f32 %v7260_v54, %v4941_v42  ;;  %v5119_v42 = vperm.slane %v5104_v51, 0 }
 0xd3f   :  { %v5148_v19 = vadd.f32 %v5115_v46, %v10073_v15  ;;  %v5150_v11 = vadd.f32 %v5116_v13, %v10073_v15  ;;  %v5152_v7 = vadd.f32 %v5117_v60, %v10073_v15  ;;  %v5154_v26 = vadd.f32 %v5118_v39, %v10073_v15 }
 0xd41   :  { %7108 = vmatmul.msk.f32.gmra.mxu2 %vm550_vm8, %v7805_v24  ;;  %v5155_v24 = vadd.f32 %v5119_v42, %v10067_v38 }
 0xd44   :  { %v5003_v0 = vpop.f32.mrf.mxu2 }
 0xd45   :  { %v5179_v12 = vadd.f32 %v5147_v25, %v5003_v0 }
 0xd47   :  { %vm5211_vm2 = vcmp.gt.f32.partialorder %v5179_v12, 0.0  ;;  %v5243_v63 = vmul.f32 0.2, %v5179_v12 }
 0xd49   :  { %v5275_v29 = vsel %vm5211_vm2, %v5179_v12, %v5243_v63  ;;  %7109 = vmatmul.msk.f32.gmra.mxu2 %vm550_vm8, %v7806_v45  ;;  %v7814_v12 = vld [vmem:[%s7996_s11 + $0xc8] sm:$0xff] }
 0xd4a   :  { %7132 = vmatmul.msk.f32.vlgmr.msrb.gmra.mxu0 %vm192_vm1, %v5275_v29  ;;  %v5156_v29 = vadd.f32 %v5119_v42, %v10073_v15 }
 0xd4c   :  { %v5006_v53 = vpop.f32.mrf.mxu2 }
 0xd4d   :  { %v5180_v9 = vadd.f32 %v5148_v19, %v5006_v53  ;;  %v5105_v53 = vrot.slane %v10065_v20, 5 }
 0xd4f   :  { %v5244_v36 = vmul.f32 0.2, %v5180_v9  ;;  %vm5212_vm3 = vcmp.gt.f32.partialorder %v5180_v9, 0.0 }
 0xd51   :  { %7110 = vmatmul.msk.f32.gmra.mxu2 %vm550_vm8, %v7807_v28  ;;  %v5276_v1 = vsel %vm5212_vm3, %v5180_v9, %v5244_v36  ;;  %v5120_v28 = vperm.slane %v5105_v53, 0 }
 0xd52   :  { %7133 = vmatmul.msk.f32.gmra.mxu0 %vm192_vm1, %v5276_v1 }
 0xd53   :  { %v5157_v1 = vadd.f32 %v5120_v28, %v10067_v38 }
 0xd54   :  { %v5009_v56 = vpop.f32.mrf.mxu2 }
 0xd55   :  { %v5181_v17 = vadd.f32 %v5149_v47, %v5009_v56 }
 0xd57   :  { %v5245_v30 = vmul.f32 0.2, %v5181_v17  ;;  %vm5213_vm12 = vcmp.gt.f32.partialorder %v5181_v17, 0.0 }
 0xd59   :  { %7111 = vmatmul.msk.f32.gmra.mxu2 %vm550_vm8, %v7808_v10  ;;  %v5277_v40 = vsel %vm5213_vm12, %v5181_v17, %v5245_v30  ;;  %v7816_v17 = vld [vmem:[%s7996_s11 + $0xd8] sm:$0xff]  ;;  %v5158_v10 = vadd.f32 %v5120_v28, %v10073_v15 }
 0xd5a   :  { %7134 = vmatmul.msk.f32.gmra.mxu0 %vm192_vm1, %v5277_v40 }
 0xd5c   :  { %v5012_v55 = vpop.f32.mrf.mxu2 }
 0xd5d   :  { %v5182_v48 = vadd.f32 %v5150_v11, %v5012_v55  ;;  %v5106_v55 = vrot.slane %v10065_v20, 6 }
 0xd5f   :  { %v5246_v27 = vmul.f32 0.2, %v5182_v48  ;;  %vm5214_vm13 = vcmp.gt.f32.partialorder %v5182_v48, 0.0 }
 0xd61   :  { %7112 = vmatmul.msk.f32.gmra.mxu2 %vm550_vm8, %v7809_v41  ;;  %v5278_v32 = vsel %vm5214_vm13, %v5182_v48, %v5246_v27  ;;  %v5121_v41 = vperm.slane %v5106_v55, 0 }
 0xd62   :  { %7135 = vmatmul.msk.f32.gmra.mxu0 %vm192_vm1, %v5278_v32 }
 0xd63   :  { %v5159_v32 = vadd.f32 %v5121_v41, %v10067_v38 }
 0xd64   :  { %v5015_v58 = vpop.f32.mrf.mxu2 }
 0xd65   :  { %v5183_v4 = vadd.f32 %v5151_v59, %v5015_v58 }
 0xd67   :  { %v5247_v18 = vmul.f32 0.2, %v5183_v4  ;;  %vm5215_vm14 = vcmp.gt.f32.partialorder %v5183_v4, 0.0 }
 0xd69   :  { %7113 = vmatmul.msk.f32.gmra.mxu2 %vm550_vm8, %v7810_v43  ;;  %v5279_v14 = vsel %vm5215_vm14, %v5183_v4, %v5247_v18  ;;  %v7818_v4 = vld [vmem:[%s7996_s11 + $0xe8] sm:$0xff]  ;;  %v5160_v43 = vadd.f32 %v5121_v41, %v10073_v15 }
 0xd6a   :  { %7136 = vmatmul.msk.f32.gmra.mxu0 %vm192_vm1, %v5279_v14 }
 0xd6c   :  { %v5018_v21 = vpop.f32.mrf.mxu2 }
 0xd6d   :  { %v5184_v50 = vadd.f32 %v5152_v7, %v5018_v21  ;;  %v5107_v21 = vrot.slane %v10065_v20, 7 }
 0xd6f   :  { %v5248_v3 = vmul.f32 0.2, %v5184_v50  ;;  %vm5216_vm15 = vcmp.gt.f32.partialorder %v5184_v50, 0.0 }
 0xd71   :  { %7114 = vmatmul.msk.f32.gmra.mxu2 %vm550_vm8, %v7811_v49  ;;  %v5280_v62 = vsel %vm5216_vm15, %v5184_v50, %v5248_v3  ;;  %v5122_v49 = vperm.slane %v5107_v21, 0 }
 0xd72   :  { %7137 = vmatmul.msk.f32.gmra.mxu0 %vm192_vm1, %v5280_v62 }
 0xd73   :  { %v5161_v62 = vadd.f32 %v5122_v49, %v10067_v38 }
 0xd74   :  { %v5021_v16 = vpop.f32.mrf.mxu2 }
 0xd75   :  { %v5185_v6 = vadd.f32 %v5153_v34, %v5021_v16 }
 0xd77   :  { %v5249_v33 = vmul.f32 0.2, %v5185_v6  ;;  %vm5217_vm0 = vcmp.gt.f32.partialorder %v5185_v6, 0.0 }
 0xd79   :  { %7115 = vmatmul.msk.f32.gmra.mxu2 %vm550_vm8, %v7812_v31  ;;  %v5281_v2 = vsel %vm5217_vm0, %v5185_v6, %v5249_v33  ;;  %v4978_v6 = vpop.f32.mrf.mxu0  ;;  %v7820_v33 = vld [vmem:[%s7996_s11 + $0xf8] sm:$0xff]  ;;  %s7858_s11 = smov 30  }
 0xd7a   :  { %7138 = vmatmul.msk.f32.gmra.mxu0 %vm192_vm1, %v5281_v2  ;;  %v10142_v31 = vadd.f32 %v10059_v8, %v4978_v6  ;;  %v5162_v2 = vadd.f32 %v5122_v49, %v10073_v15  ;;  %s10727_s2 = sld [smem:[%s10765_s0 + %s7858_s11]]  }
 0xd7c   :  { %v5024_v35 = vpop.f32.mrf.mxu2  ;;  %v5123_v51 = vperm.slane %v10142_v31, 0 }
 0xd7d   :  { %v5186_v5 = vadd.f32 %v5154_v26, %v5024_v35 }
 0xd7f   :  { %v5250_v52 = vmul.f32 0.2, %v5186_v5  ;;  %vm5218_vm2 = vcmp.gt.f32.partialorder %v5186_v5, 0.0 }
 0xd81   :  { %7116 = vmatmul.msk.f32.gmra.mxu2 %vm550_vm8, %v7813_v22  ;;  %v5282_v54 = vsel %vm5218_vm2, %v5186_v5, %v5250_v52  ;;  %v5163_v22 = vadd.f32 %v5123_v51, %v10067_v38 }
 0xd82   :  { %7139 = vmatmul.msk.f32.gmra.mxu0 %vm192_vm1, %v5282_v54 }
 0xd84   :  { %v5027_v46 = vpop.f32.mrf.mxu2 }
 0xd85   :  { %v5187_v25 = vadd.f32 %v5155_v24, %v5027_v46 }
 0xd87   :  { %v5251_v0 = vmul.f32 0.2, %v5187_v25  ;;  %vm5219_vm3 = vcmp.gt.f32.partialorder %v5187_v25, 0.0 }
 0xd89   :  { %7117 = vmatmul.msk.f32.gmra.mxu2 %vm550_vm8, %v7814_v12  ;;  %v5283_v63 = vsel %vm5219_vm3, %v5187_v25, %v5251_v0  ;;  %v5164_v25 = vadd.f32 %v5123_v51, %v10073_v15  ;;  %v5108_v0 = vrot.slane %v10142_v31, 1 }
 0xd8a   :  { %7140 = vmatmul.msk.f32.gmra.mxu0 %vm192_vm1, %v5283_v63 }
 0xd8c   :  { %v5030_v45 = vpop.f32.mrf.mxu2 }
 0xd8d   :  { %v5188_v19 = vadd.f32 %v5156_v29, %v5030_v45 }
 0xd8f   :  { %v5252_v9 = vmul.f32 0.2, %v5188_v19  ;;  %vm5220_vm12 = vcmp.gt.f32.partialorder %v5188_v19, 0.0 }
 0xd91   :  { %7118 = vmatmul.msk.f32.gmra.mxu2 %vm550_vm8, %v7815_v61  ;;  %v5284_v36 = vsel %vm5220_vm12, %v5188_v19, %v5252_v9  ;;  %v5124_v19 = vperm.slane %v5108_v0, 0 }
 0xd92   :  { %7141 = vmatmul.msk.f32.gmra.mxu0 %vm192_vm1, %v5284_v36 }
 0xd93   :  { %v5165_v9 = vadd.f32 %v5124_v19, %v10067_v38 }
 0xd94   :  { %v5033_v13 = vpop.f32.mrf.mxu2 }
 0xd95   :  { %v5189_v47 = vadd.f32 %v5157_v1, %v5033_v13 }
 0xd97   :  { %vm5221_vm13 = vcmp.gt.f32.partialorder %v5189_v47, 0.0  ;;  %v5253_v56 = vmul.f32 0.2, %v5189_v47 }
 0xd99   :  { %7119 = vmatmul.msk.f32.gmra.mxu2 %vm550_vm8, %v7816_v17  ;;  %v5285_v30 = vsel %vm5221_vm13, %v5189_v47, %v5253_v56  ;;  %v5166_v47 = vadd.f32 %v5124_v19, %v10073_v15  ;;  %v5109_v56 = vrot.slane %v10142_v31, 2 }
 0xd9a   :  { %7142 = vmatmul.msk.f32.gmra.mxu0 %vm192_vm1, %v5285_v30 }
 0xd9c   :  { %v5036_v40 = vpop.f32.mrf.mxu2 }
 0xd9d   :  { %v5190_v11 = vadd.f32 %v5158_v10, %v5036_v40 }
 0xd9f   :  { %vm5222_vm14 = vcmp.gt.f32.partialorder %v5190_v11, 0.0  ;;  %v5254_v48 = vmul.f32 0.2, %v5190_v11 }
 0xda1   :  { %7120 = vmatmul.msk.f32.gmra.mxu2 %vm550_vm8, %v7817_v44  ;;  %v5286_v27 = vsel %vm5222_vm14, %v5190_v11, %v5254_v48  ;;  %v5125_v11 = vperm.slane %v5109_v56, 0 }
 0xda2   :  { %7143 = vmatmul.msk.f32.gmra.mxu0 %vm192_vm1, %v5286_v27 }
 0xda3   :  { %v5167_v48 = vadd.f32 %v5125_v11, %v10067_v38 }
 0xda4   :  { %v5039_v60 = vpop.f32.mrf.mxu2 }
 0xda5   :  { %v5191_v59 = vadd.f32 %v5159_v32, %v5039_v60 }
 0xda7   :  { %vm5223_vm15 = vcmp.gt.f32.partialorder %v5191_v59, 0.0  ;;  %v5255_v58 = vmul.f32 0.2, %v5191_v59 }
 0xda9   :  { %7121 = vmatmul.msk.f32.gmra.mxu2 %vm550_vm8, %v7818_v4  ;;  %v5287_v18 = vsel %vm5223_vm15, %v5191_v59, %v5255_v58  ;;  %v5168_v59 = vadd.f32 %v5125_v11, %v10073_v15  ;;  %v5110_v58 = vrot.slane %v10142_v31, 3 }
 0xdaa   :  { %7144 = vmatmul.msk.f32.gmra.mxu0 %vm192_vm1, %v5287_v18 }
 0xdac   :  { %v5042_v14 = vpop.f32.mrf.mxu2 }
 0xdad   :  { %v5192_v7 = vadd.f32 %v5160_v43, %v5042_v14 }
 0xdaf   :  { %vm5224_vm0 = vcmp.gt.f32.partialorder %v5192_v7, 0.0  ;;  %v5256_v50 = vmul.f32 0.2, %v5192_v7 }
 0xdb1   :  { %7122 = vmatmul.msk.f32.gmra.mxu2 %vm550_vm8, %v7819_v37  ;;  %v5288_v3 = vsel %vm5224_vm0, %v5192_v7, %v5256_v50  ;;  %v5126_v37 = vperm.slane %v5110_v58, 0 }
 0xdb2   :  { %7145 = vmatmul.msk.f32.gmra.mxu0 %vm192_vm1, %v5288_v3 }
 0xdb3   :  { %v5169_v6 = vadd.f32 %v5126_v37, %v10067_v38 }
 0xdb4   :  { %v5045_v39 = vpop.f32.mrf.mxu2 }
 0xdb5   :  { %v5193_v34 = vadd.f32 %v5161_v62, %v5045_v39 }
 0xdb7   :  { %vm5225_vm2 = vcmp.gt.f32.partialorder %v5193_v34, 0.0  ;;  %v5257_v16 = vmul.f32 0.2, %v5193_v34 }
 0xdb9   :  { %7123 = vmatmul.msk.f32.gmra.mxu2 %vm550_vm8, %v7820_v33  ;;  %v5289_v20 = vsel %vm5225_vm2, %v5193_v34, %v5257_v16 }
 0xdba   :  { %7146 = vmatmul.msk.f32.gmra.mxu0 %vm192_vm1, %v5289_v20 }
 0xdbc   :  { %v5048_v26 = vpop.f32.mrf.mxu2 }
 0xdbd   :  { %v5194_v35 = vadd.f32 %v5162_v2, %v5048_v26 }
 0xdbf   :  { %vm5226_vm3 = vcmp.gt.f32.partialorder %v5194_v35, 0.0  ;;  %v5258_v5 = vmul.f32 0.2, %v5194_v35 }
 0xdc1   :  { %v5290_v52 = vsel %vm5226_vm3, %v5194_v35, %v5258_v5 }
 0xdc2   :  { %7147 = vmatmul.msk.f32.gmra.mxu0 %vm192_vm1, %v5290_v52 }
 0xdc4   :  { %v5051_v54 = vpop.f32.mrf.mxu2 }
 0xdc5   :  { %v5195_v42 = vadd.f32 %v5163_v22, %v5051_v54 }
 0xdc7   :  { %vm5227_vm8 = vcmp.gt.f32.partialorder %v5195_v42, 0.0  ;;  %v5259_v24 = vmul.f32 0.2, %v5195_v42  ;;  %v10148_v46 = vpop.f32.mrf.mxu0 }
 0xdc8   :  { %v5525_v33 = vsel %vm192_vm1, %v10148_v46, -inf }
 0xdc9   :  { %v5291_v8 = vsel %vm5227_vm8, %v5195_v42, %v5259_v24  ;;  %v5111_v42 = vrot.slane %v10142_v31, 4 }
 0xdca   :  { %7148 = vmatmul.msk.f32.gmra.mxu0 %vm192_vm1, %v5291_v8 }
 0xdcc   :  { %v5054_v12 = vpop.f32.mrf.mxu2 }
 0xdcd   :  { %v5196_v63 = vadd.f32 %v5164_v25, %v5054_v12  ;;  %v5170_v25 = vadd.f32 %v5126_v37, %v10073_v15 }
 0xdcf   :  { %vm5228_vm12 = vcmp.gt.f32.partialorder %v5196_v63, 0.0  ;;  %v5260_v29 = vmul.f32 0.2, %v5196_v63  ;;  %v10153_v45 = vpop.f32.mrf.mxu0 }
 0xdd0   :  { %v5526_v62 = vsel %vm192_vm1, %v10153_v45, -inf }
 0xdd1   :  { %v5292_v53 = vsel %vm5228_vm12, %v5196_v63, %v5260_v29  ;;  %v5527_v2 = vmax.f32 %v5525_v33, %v5526_v62  ;;  %v5127_v29 = vperm.slane %v5111_v42, 0 }
 0xdd2   :  { %7149 = vmatmul.msk.f32.gmra.mxu0 %vm192_vm1, %v5292_v53 }
 0xdd3   :  { %v5528_v22 = vrot.slane %v5527_v2, 4 }
 0xdd4   :  { %v5057_v61 = vpop.f32.mrf.mxu2 }
 0xdd5   :  { %v5197_v36 = vadd.f32 %v5165_v9, %v5057_v61  ;;  %v5529_v12 = vmax.f32 %v5527_v2, %v5528_v22 }
 0xdd7   :  { %vm5229_vm13 = vcmp.gt.f32.partialorder %v5197_v36, 0.0  ;;  %v5261_v28 = vmul.f32 0.2, %v5197_v36  ;;  %v10157_v1 = vpop.f32.mrf.mxu0 }
 0xdd8   :  { %v5534_v14 = vsel %vm192_vm1, %v10157_v1, -inf }
 0xdd9   :  { %v5293_v13 = vsel %vm5229_vm13, %v5197_v36, %v5261_v28  ;;  %v5530_v28 = vrot.slane %v5529_v12, 2 }
 0xdda   :  { %7150 = vmatmul.msk.f32.gmra.mxu0 %vm192_vm1, %v5293_v13 }
 0xddc   :  { %v5060_v17 = vpop.f32.mrf.mxu2 }
 0xddd   :  { %v5198_v30 = vadd.f32 %v5166_v47, %v5060_v17 }
 0xddf   :  { %vm5230_vm14 = vcmp.gt.f32.partialorder %v5198_v30, 0.0  ;;  %v5262_v10 = vmul.f32 0.2, %v5198_v30  ;;  %v10162_v40 = vpop.f32.mrf.mxu0 }
 0xde0   :  { %v5535_v4 = vsel %vm192_vm1, %v10162_v40, -inf }
 0xde1   :  { %v5294_v55 = vsel %vm5230_vm14, %v5198_v30, %v5262_v10  ;;  %v5536_v7 = vmax.f32 %v5534_v14, %v5535_v4  ;;  %v5171_v10 = vadd.f32 %v5127_v29, %v10067_v38 }
 0xde2   :  { %7151 = vmatmul.msk.f32.gmra.mxu0 %vm192_vm1, %v5294_v55 }
 0xde3   :  { %v5537_v34 = vrot.slane %v5536_v7, 4 }
 0xde4   :  { %v5063_v44 = vpop.f32.mrf.mxu2 }
 0xde5   :  { %v5199_v27 = vadd.f32 %v5167_v48, %v5063_v44  ;;  %v5538_v35 = vmax.f32 %v5536_v7, %v5537_v34  ;;  %v5531_v48 = vmax.f32 %v5529_v12, %v5530_v28 }
 0xde7   :  { %vm5231_vm15 = vcmp.gt.f32.partialorder %v5199_v27, 0.0  ;;  %v5263_v41 = vmul.f32 0.2, %v5199_v27  ;;  %v10166_v32 = vpop.f32.mrf.mxu0  ;;  %v5539_v24 = vrot.slane %v5538_v35, 2  ;;  %v5532_v4 = vrot.slane %v5531_v48, 1 }
 0xde8   :  { %v5543_v39 = vsel %vm192_vm1, %v10166_v32, -inf }
 0xde9   :  { %v5295_v60 = vsel %vm5231_vm15, %v5199_v27, %v5263_v41  ;;  %v5540_v19 = vmax.f32 %v5538_v35, %v5539_v24  ;;  %v5533_v62 = vmax.f32 %v5531_v48, %v5532_v4 }
 0xdea   :  { %7152 = vmatmul.msk.f32.gmra.mxu0 %vm192_vm1, %v5295_v60 }
 0xdeb   :  { %v5541_v17 = vrot.slane %v5540_v19, 1  ;;  %v5669_v35 = vsub.f32 %v10148_v46, %v5533_v62  ;;  %v5670_v22 = vsub.f32 %v10153_v45, %v5533_v62 }
 0xdec   :  { %v5066_v18 = vpop.f32.mrf.mxu2 }
 0xded   :  { %v5200_v43 = vadd.f32 %v5168_v59, %v5066_v18  ;;  %v5542_v41 = vmax.f32 %v5540_v19, %v5541_v17  ;;  %v5703_v12 = vmul.f32 1.442695, %v5670_v22 }
 0xdef   :  { %vm5232_vm0 = vcmp.gt.f32.partialorder %v5200_v43, 0.0  ;;  %v5264_v21 = vmul.f32 0.2, %v5200_v43  ;;  %v10175_v50 = vpop.f32.mrf.mxu0  ;;  %v5671_v14 = vsub.f32 %v10157_v1, %v5542_v41  ;;  %v5672_v37 = vsub.f32 %v10162_v40, %v5542_v41 }
 0xdf0   :  { %v5544_v3 = vsel %vm192_vm1, %v10175_v50, -inf }
 0xdf1   :  { %v5296_v49 = vsel %vm5232_vm0, %v5200_v43, %v5264_v21  ;;  %v5545_v16 = vmax.f32 %v5543_v39, %v5544_v3  ;;  %v5172_v21 = vadd.f32 %v5127_v29, %v10073_v15  ;;  %v5707_v1 = vmul.f32 1.442695, %v5672_v37 }
 0xdf2   :  { %7153 = vmatmul.msk.f32.gmra.mxu0 %vm192_vm1, %v5296_v49  ;;  %v5112_v49 = vrot.slane %v10142_v31, 5 }
 0xdf3   :  { %v5546_v5 = vrot.slane %v5545_v16, 4 }
 0xdf4   :  { %v5069_v20 = vpop.f32.mrf.mxu2 }
 0xdf5   :  { %v5201_v26 = vadd.f32 %v5169_v6, %v5069_v20  ;;  %v5547_v8 = vmax.f32 %v5545_v16, %v5546_v5  ;;  %v5705_v16 = vmul.f32 1.442695, %v5671_v14 }
 0xdf7   :  { %vm5233_vm2 = vcmp.gt.f32.partialorder %v5201_v26, 0.0  ;;  %v5265_v51 = vmul.f32 0.2, %v5201_v26  ;;  %v10187_v52 = vpop.f32.mrf.mxu0  ;;  %v5548_v53 = vrot.slane %v5547_v8, 2  ;;  %7577 = vpow2.f32 %v5705_v16 }
 0xdf8   :  { %v5552_v13 = vsel %vm192_vm1, %v10187_v52, -inf  ;;  %7579 = vpow2.f32 %v5707_v1  ;;  %v7172_v1 = vld [vmem:[%s8475_s21 + $0xf8] sm:$0xff] }
 0xdf9   :  { %v5297_v54 = vsel %vm5233_vm2, %v5201_v26, %v5265_v51  ;;  %v5549_v30 = vmax.f32 %v5547_v8, %v5548_v53  ;;  %v5128_v26 = vperm.slane %v5112_v49, 0  ;;  %v5701_v8 = vmul.f32 1.442695, %v5669_v35  ;;  %6224 = vmatpush.msra.mxu1 %v7172_v1 }
 0xdfa   :  { %7154 = vmatmul.msk.f32.gmra.mxu0 %vm192_vm1, %v5297_v54 }
 0xdfb   :  { %v5550_v60 = vrot.slane %v5549_v30, 1  ;;  %v5173_v46 = vadd.f32 %v5128_v26, %v10067_v38  ;;  %v5174_v17 = vadd.f32 %v5128_v26, %v10073_v15 }
 0xdfc   :  { %v5072_v0 = vpop.f32.mrf.mxu2 }
 0xdfd   :  { %v5202_v63 = vadd.f32 %v5170_v25, %v5072_v0  ;;  %v5551_v7 = vmax.f32 %v5549_v30, %v5550_v60  ;;  %v10221_v53 = vpop.eup %7577 }
 0xdfe   :  { %v10224_v28 = vpop.eup %7579  ;;  %v5774_v30 = vsel %vm192_vm1, %v10221_v53, 0.0 }
 0xdff   :  { %vm5234_vm3 = vcmp.gt.f32.partialorder %v5202_v63, 0.0  ;;  %v5266_v9 = vmul.f32 0.2, %v5202_v63  ;;  %v10192_v61 = vpop.f32.mrf.mxu0  ;;  %v5673_v6 = vsub.f32 %v10166_v32, %v5551_v7  ;;  %v5674_v2 = vsub.f32 %v10175_v50, %v5551_v7 }
 0xe00   :  { %v5553_v36 = vsel %vm192_vm1, %v10192_v61, -inf }
 0xe01   :  { %v5554_v47 = vmax.f32 %v5552_v13, %v5553_v36  ;;  %v5298_v56 = vsel %vm5234_vm3, %v5202_v63, %v5266_v9  ;;  %v5709_v54 = vmul.f32 1.442695, %v5673_v6  ;;  %v5711_v50 = vmul.f32 1.442695, %v5674_v2 }
 0xe02   :  { %7155 = vmatmul.msk.f32.gmra.mxu0 %vm192_vm1, %v5298_v56 }
 0xe03   :  { %v5555_v11 = vrot.slane %v5554_v47, 4  ;;  %7581 = vpow2.f32 %v5709_v54 }
 0xe04   :  { %v5075_v55 = vpop.f32.mrf.mxu2  ;;  %7583 = vpow2.f32 %v5711_v50 }
 0xe05   :  { %v5203_v44 = vadd.f32 %v5171_v10, %v5075_v55  ;;  %v5556_v27 = vmax.f32 %v5554_v47, %v5555_v11  ;;  %7585 = vpow2.f32 %v5701_v8  ;;  %v5113_v11 = vrot.slane %v10142_v31, 6 }
 0xe06   :  { %7587 = vpow2.f32 %v5703_v12 }
 0xe07   :  { %vm5235_vm8 = vcmp.gt.f32.partialorder %v5203_v44, 0.0  ;;  %v5267_v59 = vmul.f32 0.2, %v5203_v44  ;;  %v10200_v58 = vpop.f32.mrf.mxu0  ;;  %v5557_v18 = vrot.slane %v5556_v27, 2  ;;  %v5129_v37 = vperm.slane %v5113_v11, 0 }
 0xe08   :  { %v5561_v32 = vsel %vm192_vm1, %v10200_v58, -inf }
 0xe09   :  { %v5299_v43 = vsel %vm5235_vm8, %v5203_v44, %v5267_v59  ;;  %v5558_v39 = vmax.f32 %v5556_v27, %v5557_v18  ;;  %v10232_v55 = vpop.eup %7581 }
 0xe0a   :  { %7156 = vmatmul.msk.f32.gmra.mxu0 %vm192_vm1, %v5299_v43  ;;  %v10236_v27 = vpop.eup %7583  ;;  %v5783_v7 = vsel %vm192_vm1, %v10232_v55, 0.0 }
 0xe0b   :  { %v5559_v40 = vrot.slane %v5558_v39, 1  ;;  %v10238_v60 = vpop.eup %7585 }
 0xe0c   :  { %v5078_v3 = vpop.f32.mrf.mxu2  ;;  %v10242_v43 = vpop.eup %7587  ;;  %v5765_v6 = vsel %vm192_vm1, %v10238_v60, 0.0 }
 0xe0d   :  { %v5204_v34 = vadd.f32 %v5172_v21, %v5078_v3  ;;  %v5560_v25 = vmax.f32 %v5558_v39, %v5559_v40  ;;  %v5784_v3 = vsel %vm192_vm1, %v10236_v27, 0.0 }
 0xe0e   :  { %v5785_v26 = vadd.f32 %v5784_v3, %v5783_v7 }
 0xe0f   :  { %vm5236_vm12 = vcmp.gt.f32.partialorder %v5204_v34, 0.0  ;;  %v5268_v33 = vmul.f32 0.2, %v5204_v34  ;;  %v10208_v20 = vpop.f32.mrf.mxu0  ;;  %v5675_v9 = vsub.f32 %v10187_v52, %v5560_v25  ;;  %v5676_v13 = vsub.f32 %v10192_v61, %v5560_v25 }
 0xe10   :  { %v5562_v5 = vsel %vm192_vm1, %v10208_v20, -inf  ;;  %v5775_v52 = vsel %vm192_vm1, %v10224_v28, 0.0  ;;  %v5114_v25 = vrot.slane %v10142_v31, 7 }
 0xe11   :  { %v5300_v51 = vsel %vm5236_vm12, %v5204_v34, %v5268_v33  ;;  %v5563_v42 = vmax.f32 %v5561_v32, %v5562_v5  ;;  %v5713_v48 = vmul.f32 1.442695, %v5675_v9  ;;  %v5715_v41 = vmul.f32 1.442695, %v5676_v13 }
 0xe12   :  { %7157 = vmatmul.msk.f32.gmra.mxu0 %vm192_vm1, %v5300_v51  ;;  %v5776_v14 = vadd.f32 %v5775_v52, %v5774_v30  ;;  %v5766_v33 = vsel %vm192_vm1, %v10242_v43, 0.0  ;;  %v5176_v13 = vadd.f32 %v5129_v37, %v10073_v15  ;;  %v5130_v52 = vperm.slane %v5114_v25, 0 }
 0xe13   :  { %v5564_v0 = vrot.slane %v5563_v42, 4  ;;  %7589 = vpow2.f32 %v5713_v48  ;;  %v5767_v5 = vadd.f32 %v5766_v33, %v5765_v6 }
 0xe14   :  { %v5081_v24 = vpop.f32.mrf.mxu2  ;;  %7591 = vpow2.f32 %v5715_v41  ;;  %v5777_v51 = vrot.slane %v5776_v14, 4 }
 0xe15   :  { %v5205_v63 = vadd.f32 %v5173_v46, %v5081_v24  ;;  %v5565_v45 = vmax.f32 %v5563_v42, %v5564_v0  ;;  %v5786_v24 = vrot.slane %v5785_v26, 4  ;;  %v5768_v0 = vrot.slane %v5767_v5, 4 }
 0xe16   :  { %v5778_v12 = vadd.f32 %v5777_v51, %v5776_v14 }
 0xe17   :  { %v10219_v29 = vpop.f32.mrf.mxu0  ;;  %vm5237_vm13 = vcmp.gt.f32.partialorder %v5205_v63, 0.0  ;;  %v5269_v19 = vmul.f32 0.2, %v5205_v63  ;;  %v5566_v36 = vrot.slane %v5565_v45, 2  ;;  %v5769_v48 = vadd.f32 %v5768_v0, %v5767_v5 }
 0xe18   :  { %v5570_v62 = vsel %vm192_vm1, %v10219_v29, -inf }
 0xe19   :  { %v5301_v47 = vsel %vm5237_vm13, %v5205_v63, %v5269_v19  ;;  %v5567_v56 = vmax.f32 %v5565_v45, %v5566_v36  ;;  %v10261_v32 = vpop.eup %7589 }
 0xe1a   :  { %7158 = vmatmul.msk.f32.gmra.mxu0 %vm192_vm1, %v5301_v47  ;;  %v10265_v50 = vpop.eup %7591  ;;  %v5792_v19 = vsel %vm192_vm1, %v10261_v32, 0.0 }
 0xe1b   :  { %v5568_v44 = vrot.slane %v5567_v56, 1  ;;  %v5793_v9 = vsel %vm192_vm1, %v10265_v50, 0.0 }
 0xe1c   :  { %v5084_v10 = vpop.f32.mrf.mxu2 }
 0xe1d   :  { %v5206_v61 = vadd.f32 %v5174_v17, %v5084_v10  ;;  %v5569_v59 = vmax.f32 %v5567_v56, %v5568_v44  ;;  %v5787_v56 = vadd.f32 %v5786_v24, %v5785_v26  ;;  %v5779_v44 = vrot.slane %v5778_v12, 2 }
 0xe1f   :  { %vm5238_vm14 = vcmp.gt.f32.partialorder %v5206_v61, 0.0  ;;  %v5270_v4 = vmul.f32 0.2, %v5206_v61  ;;  %v10240_v18 = vpop.f32.mrf.mxu0  ;;  %v5677_v49 = vsub.f32 %v10200_v58, %v5569_v59  ;;  %v5678_v39 = vsub.f32 %v10208_v20, %v5569_v59 }
 0xe20   :  { %v5571_v21 = vsel %vm192_vm1, %v10240_v18, -inf  ;;  %v5175_v20 = vadd.f32 %v5129_v37, %v10067_v38  ;;  %v5788_v7 = vrot.slane %v5787_v56, 2 }
 0xe21   :  { %v5572_v34 = vmax.f32 %v5570_v62, %v5571_v21  ;;  %v5302_v16 = vsel %vm5238_vm14, %v5206_v61, %v5270_v4  ;;  %v5717_v2 = vmul.f32 1.442695, %v5677_v49  ;;  %v5719_v58 = vmul.f32 1.442695, %v5678_v39 }
 0xe22   :  { %7159 = vmatmul.msk.f32.gmra.mxu0 %vm192_vm1, %v5302_v16  ;;  %v5794_v61 = vadd.f32 %v5793_v9, %v5792_v19  ;;  %v5177_v62 = vadd.f32 %v5130_v52, %v10067_v38  ;;  %v5770_v39 = vrot.slane %v5769_v48, 2 }
 0xe23   :  { %v5573_v35 = vrot.slane %v5572_v34, 4  ;;  %7593 = vpow2.f32 %v5717_v2 }
 0xe24   :  { %v5087_v40 = vpop.f32.mrf.mxu2  ;;  %7595 = vpow2.f32 %v5719_v58  ;;  %v5795_v16 = vrot.slane %v5794_v61, 4  ;;  %v5789_v58 = vadd.f32 %v5788_v7, %v5787_v56 }
 0xe25   :  { %v5574_v22 = vmax.f32 %v5572_v34, %v5573_v35  ;;  %v5207_v54 = vadd.f32 %v5175_v20, %v5087_v40  ;;  %v5780_v34 = vadd.f32 %v5779_v44, %v5778_v12  ;;  %v5771_v40 = vadd.f32 %v5770_v39, %v5769_v48 }
 0xe26   :  { %v5796_v5 = vadd.f32 %v5795_v16, %v5794_v61 }
 0xe27   :  { %v10263_v42 = vpop.f32.mrf.mxu0  ;;  %v5575_v46 = vrot.slane %v5574_v22, 2  ;;  %vm5239_vm15 = vcmp.gt.f32.partialorder %v5207_v54, 0.0  ;;  %v5271_v8 = vmul.f32 0.2, %v5207_v54  ;;  %v5781_v20 = vrot.slane %v5780_v34, 1 }
 0xe28   :  { %v5579_v6 = vsel %vm192_vm1, %v10263_v42, -inf  ;;  %v5772_v0 = vrot.slane %v5771_v40, 1 }
 0xe29   :  { %v5576_v63 = vmax.f32 %v5574_v22, %v5575_v46  ;;  %v10268_v45 = vpop.eup %7593  ;;  %v5303_v36 = vsel %vm5239_vm15, %v5207_v54, %v5271_v8  ;;  %v5790_v46 = vrot.slane %v5789_v58, 1  ;;  %v5782_v12 = vadd.f32 %v5781_v20, %v5780_v34 }
 0xe2a   :  { %v10275_v47 = vpop.eup %7595  ;;  %v5801_v31 = vsel %vm192_vm1, %v10268_v45, 0.0  ;;  %7160 = vmatmul.msk.f32.gmra.mxu0 %vm192_vm1, %v5303_v36  ;;  %v5773_v44 = vadd.f32 %v5772_v0, %v5771_v40 }
 0xe2b   :  { %v5577_v17 = vrot.slane %v5576_v63, 1  ;;  %v5802_v10 = vsel %vm192_vm1, %v10275_v47, 0.0 }
 0xe2c   :  { %v5090_v30 = vpop.f32.mrf.mxu2  ;;  %v5803_v59 = vadd.f32 %v5802_v10, %v5801_v31  ;;  %v5791_v31 = vadd.f32 %v5790_v46, %v5789_v58 }
 0xe2d   :  { %v5208_v11 = vadd.f32 %v5176_v13, %v5090_v30  ;;  %v5578_v41 = vmax.f32 %v5576_v63, %v5577_v17  ;;  %v5797_v63 = vrot.slane %v5796_v5, 2  ;;  %v5178_v13 = vadd.f32 %v5130_v52, %v10073_v15 }
 0xe2e   :  { %v5804_v33 = vrot.slane %v5803_v59, 4 }
 0xe2f   :  { %vm5240_vm0 = vcmp.gt.f32.partialorder %v5208_v11, 0.0  ;;  %v5272_v4 = vmul.f32 0.2, %v5208_v11  ;;  %v10282_v14 = vpop.f32.mrf.mxu0  ;;  %v5679_v21 = vsub.f32 %v10219_v29, %v5578_v41  ;;  %v5680_v37 = vsub.f32 %v10240_v18, %v5578_v41 }
 0xe30   :  { %v5580_v3 = vsel %vm192_vm1, %v10282_v14, -inf  ;;  %v5805_v51 = vadd.f32 %v5804_v33, %v5803_v59  ;;  %v5798_v61 = vadd.f32 %v5797_v63, %v5796_v5 }
 0xe31   :  { %v5304_v49 = vsel %vm5240_vm0, %v5208_v11, %v5272_v4  ;;  %v5721_v1 = vmul.f32 1.442695, %v5679_v21  ;;  %v5723_v2 = vmul.f32 1.442695, %v5680_v37  ;;  %v5581_v26 = vmax.f32 %v5579_v6, %v5580_v3  ;;  %v7171_v6 = vld [vmem:[%s8475_s21 + $0xf0] sm:$0xff] }
 0xe32   :  { %7161 = vmatmul.msk.f32.gmra.mxu0 %vm192_vm1, %v5304_v49  ;;  %v5806_v9 = vrot.slane %v5805_v51, 2  ;;  %v5799_v34 = vrot.slane %v5798_v61, 1  ;;  %6225 = vmatpush.msra.mxu1 %v7171_v6 }
 0xe33   :  { %7597 = vpow2.f32 %v5721_v1  ;;  %v5582_v18 = vrot.slane %v5581_v26, 4 }
 0xe34   :  { %v5093_v29 = vpop.f32.mrf.mxu2  ;;  %7599 = vpow2.f32 %v5723_v2  ;;  %v5807_v52 = vadd.f32 %v5806_v9, %v5805_v51 }
 0xe35   :  { %v5209_v35 = vadd.f32 %v5177_v62, %v5093_v29  ;;  %v5583_v22 = vmax.f32 %v5581_v26, %v5582_v18  ;;  %7601 = vrcp.f32 %v5782_v12 }
 0xe36   :  { %7603 = vrcp.f32 %v5791_v31  ;;  %v5808_v1 = vrot.slane %v5807_v52, 1 }
 0xe37   :  { %vm5241_vm2 = vcmp.gt.f32.partialorder %v5209_v35, 0.0  ;;  %v5273_v54 = vmul.f32 0.2, %v5209_v35  ;;  %v10292_v24 = vpop.f32.mrf.mxu0  ;;  %v5584_v8 = vrot.slane %v5583_v22, 2  ;;  %7605 = vrcp.f32 %v5773_v44 }
 0xe38   :  { %v5588_v37 = vsel %vm192_vm1, %v10292_v24, -inf  ;;  %v5809_v20 = vadd.f32 %v5808_v1, %v5807_v52 }
 0xe39   :  { %v5305_v25 = vsel %vm5241_vm2, %v5209_v35, %v5273_v54  ;;  %v10294_v19 = vpop.eup %7597  ;;  %v5585_v36 = vmax.f32 %v5583_v22, %v5584_v8 }
 0xe3a   :  { %v10297_v56 = vpop.eup %7599  ;;  %v5810_v17 = vsel %vm192_vm1, %v10294_v19, 0.0  ;;  %7162 = vmatmul.msk.f32.gmra.mxu0 %vm192_vm1, %v5305_v25 }
 0xe3b   :  { %v5811_v10 = vsel %vm192_vm1, %v10297_v56, 0.0  ;;  %v5586_v11 = vrot.slane %v5585_v36, 1  ;;  %v7602_v26 = vpop.eup %7601 }
 0xe3c   :  { %v5096_v30 = vpop.f32.mrf.mxu2  ;;  %v5812_v41 = vadd.f32 %v5811_v10, %v5810_v17  ;;  %v7604_v35 = vpop.eup %7603  ;;  %v5927_v46 = vmul.f32 %v7602_v26, %v10221_v53  ;;  %v5928_v8 = vmul.f32 %v7602_v26, %v10224_v28 }
 0xe3d   :  { %v5210_v48 = vadd.f32 %v5178_v13, %v5096_v30  ;;  %v5587_v59 = vmax.f32 %v5585_v36, %v5586_v11  ;;  %v7606_v51 = vpop.eup %7605  ;;  %v5929_v25 = vmul.f32 %v7604_v35, %v10232_v55  ;;  %v5930_v36 = vmul.f32 %v7604_v35, %v10236_v27 }
 0xe3e   :  { %v5813_v21 = vrot.slane %v5812_v41, 4  ;;  %v5925_v9 = vmul.f32 %v7606_v51, %v10238_v60  ;;  %v5926_v31 = vmul.f32 %v7606_v51, %v10242_v43  ;;  %v5959_v55 = vmul.f32 %v5927_v46, %v10067_v38 }
 0xe3f   :  { %vm5242_vm3 = vcmp.gt.f32.partialorder %v5210_v48, 0.0  ;;  %v5274_v4 = vmul.f32 0.2, %v5210_v48  ;;  %v10304_v7 = vpop.f32.mrf.mxu0  ;;  %v5681_v49 = vsub.f32 %v10263_v42, %v5587_v59  ;;  %v5682_v62 = vsub.f32 %v10282_v14, %v5587_v59 }
 0xe40   :  { %v5589_v3 = vsel %vm192_vm1, %v10304_v7, -inf  ;;  %v5814_v16 = vadd.f32 %v5813_v21, %v5812_v41  ;;  %v5800_v42 = vadd.f32 %v5799_v34, %v5798_v61  ;;  %v5960_v17 = vmul.f32 %v5928_v8, %v10073_v15 }
 0xe41   :  { %v5590_v39 = vmax.f32 %v5588_v37, %v5589_v3  ;;  %v5306_v33 = vsel %vm5242_vm3, %v5210_v48, %v5274_v4  ;;  %v5725_v2 = vmul.f32 1.442695, %v5681_v49  ;;  %v5727_v29 = vmul.f32 1.442695, %v5682_v62 }
 0xe42   :  { %v5815_v58 = vrot.slane %v5814_v16, 2  ;;  %7163 = vmatmul.msk.f32.gmra.mxu0 %vm192_vm1, %v5306_v33  ;;  %v5961_v30 = vmul.f32 %v5929_v25, %v10067_v38  ;;  %v5957_v11 = vmul.f32 %v5925_v9, %v10067_v38  ;;  %v5962_v43 = vmul.f32 %v5930_v36, %v10073_v15 }
 0xe43   :  { %v5591_v18 = vrot.slane %v5590_v39, 4  ;;  %7607 = vpow2.f32 %v5725_v2  ;;  %v5958_v61 = vmul.f32 %v5926_v31, %v10073_v15  ;;  %v5998_v21 = vsel %vm192_vm1, %v5959_v55, 0.0 }
 0xe44   :  { %v5816_v40 = vadd.f32 %v5815_v58, %v5814_v16  ;;  %7609 = vpow2.f32 %v5727_v29  ;;  %v5999_v37 = vsel %vm192_vm1, %v5960_v17, 0.0  ;;  %v6007_v3 = vsel %vm192_vm1, %v5961_v30, 0.0 }
 0xe45   :  { %v5592_v14 = vmax.f32 %v5590_v39, %v5591_v18  ;;  %7611 = vrcp.f32 %v5800_v42  ;;  %v5989_v42 = vsel %vm192_vm1, %v5957_v11, 0.0 }
 0xe46   :  { %v5817_v22 = vrot.slane %v5816_v40, 1  ;;  %7613 = vrcp.f32 %v5809_v20 }
 0xe47   :  { %v10314_v5 = vpop.f32.mrf.mxu0  ;;  %v5593_v54 = vrot.slane %v5592_v14, 2 }
 0xe48   :  { %v5818_v0 = vadd.f32 %v5817_v22, %v5816_v40  ;;  %v5597_v6 = vsel %vm192_vm1, %v10314_v5, -inf  ;;  %v6000_v40 = vadd.f32 %v5999_v37, %v5998_v21 }
 0xe49   :  { %v5594_v12 = vmax.f32 %v5592_v14, %v5593_v54  ;;  %v10319_v63 = vpop.eup %7607 }
 0xe4a   :  { %v10323_v13 = vpop.eup %7609  ;;  %7615 = vrcp.f32 %v5818_v0  ;;  %v5819_v53 = vsel %vm192_vm1, %v10319_v63, 0.0 }
 0xe4b   :  { %v5595_v28 = vrot.slane %v5594_v12, 1  ;;  %v5820_v60 = vsel %vm192_vm1, %v10323_v13, 0.0  ;;  %v7612_v44 = vpop.eup %7611 }
 0xe4c   :  { %v5821_v27 = vadd.f32 %v5820_v60, %v5819_v53  ;;  %v7614_v4 = vpop.eup %7613  ;;  %v5932_v33 = vmul.f32 %v7612_v44, %v10265_v50  ;;  %v5990_v50 = vsel %vm192_vm1, %v5958_v61, 0.0 }
 0xe4d   :  { %v5596_v10 = vmax.f32 %v5594_v12, %v5595_v28  ;;  %v5933_v2 = vmul.f32 %v7614_v4, %v10268_v45  ;;  %v5934_v26 = vmul.f32 %v7614_v4, %v10275_v47  ;;  %v5991_v0 = vadd.f32 %v5990_v50, %v5989_v42 }
 0xe4e   :  { %v5822_v41 = vrot.slane %v5821_v27, 4  ;;  %v5964_v45 = vmul.f32 %v5932_v33, %v10073_v15  ;;  %v6001_v12 = vrot.slane %v6000_v40, 4 }
 0xe4f   :  { %v10335_v48 = vpop.f32.mrf.mxu0  ;;  %v5683_v52 = vsub.f32 %v10292_v24, %v5596_v10  ;;  %v5684_v59 = vsub.f32 %v10304_v7, %v5596_v10  ;;  %v6008_v24 = vsel %vm192_vm1, %v5962_v43, 0.0  ;;  %v5931_v7 = vmul.f32 %v7612_v44, %v10261_v32  ;;  %v7170_v44 = vld [vmem:[%s8475_s21 + $0xe8] sm:$0xff] }
 0xe50   :  { %v5598_v49 = vsel %vm192_vm1, %v10335_v48, -inf  ;;  %v7616_v62 = vpop.eup %7615  ;;  %v5823_v39 = vadd.f32 %v5822_v41, %v5821_v27  ;;  %v6009_v14 = vadd.f32 %v6008_v24, %v6007_v3  ;;  %v6017_v28 = vsel %vm192_vm1, %v5964_v45, 0.0  ;;  %6226 = vmatpush.msra.mxu1 %v7170_v44 }
 0xe51   :  { %v5729_v34 = vmul.f32 1.442695, %v5683_v52  ;;  %v5731_v16 = vmul.f32 1.442695, %v5684_v59  ;;  %v5599_v1 = vmax.f32 %v5597_v6, %v5598_v49  ;;  %v5935_v29 = vmul.f32 %v7616_v62, %v10294_v19 }
 0xe52   :  { %v5824_v58 = vrot.slane %v5823_v39, 2  ;;  %v5936_v18 = vmul.f32 %v7616_v62, %v10297_v56  ;;  %v5963_v20 = vmul.f32 %v5931_v7, %v10067_v38  ;;  %v5965_v19 = vmul.f32 %v5933_v2, %v10067_v38 }
 0xe53   :  { %7617 = vpow2.f32 %v5729_v34  ;;  %v5600_v35 = vrot.slane %v5599_v1, 4  ;;  %v5966_v56 = vmul.f32 %v5934_v26, %v10073_v15  ;;  %v5967_v54 = vmul.f32 %v5935_v29, %v10067_v38 }
 0xe54   :  { %7619 = vpow2.f32 %v5731_v16  ;;  %v5825_v32 = vadd.f32 %v5824_v58, %v5823_v39  ;;  %v5968_v46 = vmul.f32 %v5936_v18, %v10073_v15  ;;  %v6010_v9 = vrot.slane %v6009_v14, 4 }
 0xe55   :  { %v5601_v47 = vmax.f32 %v5599_v1, %v5600_v35  ;;  %v6016_v53 = vsel %vm192_vm1, %v5963_v20, 0.0  ;;  %v6025_v30 = vsel %vm192_vm1, %v5965_v19, 0.0  ;;  %v6026_v60 = vsel %vm192_vm1, %v5966_v56, 0.0 }
 0xe56   :  { %v5826_v22 = vrot.slane %v5825_v32, 1  ;;  %v6034_v10 = vsel %vm192_vm1, %v5967_v54, 0.0  ;;  %v6035_v11 = vsel %vm192_vm1, %v5968_v46, 0.0  ;;  %v5992_v41 = vrot.slane %v5991_v0, 4 }
 0xe57   :  { %v10358_v51 = vpop.f32.mrf.mxu0  ;;  %v5602_v8 = vrot.slane %v5601_v47, 2  ;;  %v6002_v52 = vadd.f32 %v6001_v12, %v6000_v40  ;;  %v6011_v59 = vadd.f32 %v6010_v9, %v6009_v14  ;;  %v6018_v4 = vadd.f32 %v6017_v28, %v6016_v53 }
 0xe58   :  { %v5827_v36 = vadd.f32 %v5826_v22, %v5825_v32  ;;  %v6027_v49 = vadd.f32 %v6026_v60, %v6025_v30  ;;  %v6036_v62 = vadd.f32 %v6035_v11, %v6034_v10  ;;  %v5606_v39 = vsel %vm192_vm1, %v10358_v51, -inf }
 0xe59   :  { %v10364_v25 = vpop.eup %7617  ;;  %v5603_v17 = vmax.f32 %v5601_v47, %v5602_v8  ;;  %v5993_v1 = vadd.f32 %v5992_v41, %v5991_v0  ;;  %v6003_v2 = vrot.slane %v6002_v52, 2  ;;  %v6012_v26 = vrot.slane %v6011_v59, 2 }
 0xe5a   :  { %v10366_v31 = vpop.eup %7619  ;;  %v5828_v55 = vsel %vm192_vm1, %v10364_v25, 0.0  ;;  %7621 = vrcp.f32 %v5827_v36  ;;  %v6019_v58 = vrot.slane %v6018_v4, 4  ;;  %v6028_v40 = vrot.slane %v6027_v49, 4 }
 0xe5b   :  { %v5829_v27 = vsel %vm192_vm1, %v10366_v31, 0.0  ;;  %v5604_v61 = vrot.slane %v5603_v17, 1  ;;  %v6037_v14 = vrot.slane %v6036_v62, 4  ;;  %v5994_v45 = vrot.slane %v5993_v1, 2 }
 0xe5c   :  { %v5830_v43 = vadd.f32 %v5829_v27, %v5828_v55  ;;  %v6004_v47 = vadd.f32 %v6003_v2, %v6002_v52  ;;  %v6020_v56 = vadd.f32 %v6019_v58, %v6018_v4  ;;  %v6013_v46 = vadd.f32 %v6012_v26, %v6011_v59  ;;  %v7169_v27 = vld [vmem:[%s8475_s21 + $0xe0] sm:$0xff]  ;;  %v7168_v4 = vld [vmem:[%s8475_s21 + $0xd8] sm:$0xff] }
 0xe5d   :  { %v5605_v37 = vmax.f32 %v5603_v17, %v5604_v61  ;;  %v6029_v12 = vadd.f32 %v6028_v40, %v6027_v49  ;;  %v6038_v9 = vadd.f32 %v6037_v14, %v6036_v62  ;;  %v10397_v17 = vadd.f32 %v5994_v45, %v5993_v1  ;;  %6227 = vmatpush.msra.mxu1 %v7169_v27 }
 0xe5e   :  { %v5831_v21 = vrot.slane %v5830_v43, 4  ;;  %v6005_v30 = vrot.slane %v6004_v47, 1  ;;  %v6021_v60 = vrot.slane %v6020_v56, 2  ;;  %v6014_v11 = vrot.slane %v6013_v46, 1 }
 0xe5f   :  { %v10379_v3 = vpop.f32.mrf.mxu0  ;;  %v5685_v6 = vsub.f32 %v10314_v5, %v5605_v37  ;;  %v5686_v24 = vsub.f32 %v10335_v48, %v5605_v37  ;;  %v6030_v41 = vrot.slane %v6029_v12, 2  ;;  %v6039_v52 = vrot.slane %v6038_v9, 2  ;;  %6228 = vmatpush.msra.mxu1 %v7168_v4 }
 0xe60   :  { %v5607_v34 = vsel %vm192_vm1, %v10379_v3, -inf  ;;  %v5832_v16 = vadd.f32 %v5831_v21, %v5830_v43  ;;  %v7622_v33 = vpop.eup %7621  ;;  %v5996_v49 = vrot.slane %v10397_v17, 1  ;;  %v6006_v62 = vadd.f32 %v6005_v30, %v6004_v47 }
 0xe61   :  { %v5608_v7 = vmax.f32 %v5606_v39, %v5607_v34  ;;  %v5937_v29 = vmul.f32 %v7622_v33, %v10319_v63  ;;  %v5938_v18 = vmul.f32 %v7622_v33, %v10323_v13  ;;  %v5733_v42 = vmul.f32 1.442695, %v5685_v6  ;;  %v7167_v6 = vld [vmem:[%s8475_s21 + $0xd0] sm:$0xff] }
 0xe62   :  { %v5833_v35 = vrot.slane %v5832_v16, 2  ;;  %v5735_v32 = vmul.f32 1.442695, %v5686_v24  ;;  %v6022_v39 = vadd.f32 %v6021_v60, %v6020_v56  ;;  %v6015_v24 = vadd.f32 %v6014_v11, %v6013_v46  ;;  %6229 = vmatpush.msra.mxu1 %v7167_v6 }
 0xe63   :  { %v5609_v50 = vrot.slane %v5608_v7, 4  ;;  %v5969_v5 = vmul.f32 %v5937_v29, %v10067_v38  ;;  %v5970_v48 = vmul.f32 %v5938_v18, %v10073_v15  ;;  %7623 = vpow2.f32 %v5733_v42 }
 0xe64   :  { %v5834_v20 = vadd.f32 %v5833_v35, %v5832_v16  ;;  %7625 = vpow2.f32 %v5735_v32  ;;  %v6031_v26 = vadd.f32 %v6030_v41, %v6029_v12  ;;  %v6040_v58 = vadd.f32 %v6039_v52, %v6038_v9  ;;  %v7166_v35 = vld [vmem:[%s8475_s21 + $0xc8] sm:$0xff] }
 0xe65   :  { %v5610_v19 = vmax.f32 %v5608_v7, %v5609_v50  ;;  %v6043_v63 = vsel %vm192_vm1, %v5969_v5, 0.0  ;;  %v6044_v13 = vsel %vm192_vm1, %v5970_v48, 0.0  ;;  %6230 = vmatpush.msra.mxu1 %v7166_v35  ;;  %v6023_v32 = vrot.slane %v6022_v39, 1 }
 0xe66   :  { %v5835_v22 = vrot.slane %v5834_v20, 1  ;;  %v6045_v8 = vadd.f32 %v6044_v13, %v6043_v63  ;;  %v7821_v63 = vld [vmem:[%s7878_s13 + $0x38] sm:$0xff]  ;;  %v6041_v13 = vrot.slane %v6040_v58, 1  ;;  %v5997_v27 = vadd.f32 %v5996_v49, %v10397_v17  ;;  %v7824_v17 = vld [vmem:[%s7878_s13 + $0x20] sm:$0xff] }
 0xe67   :  { %v10393_v54 = vpop.f32.mrf.mxu0  ;;  %v5611_v0 = vrot.slane %v5610_v19, 2 }
 0xe68   :  { %v5836_v36 = vadd.f32 %v5835_v22, %v5834_v20  ;;  %v6046_v53 = vrot.slane %v6045_v8, 4  ;;  %v5615_v29 = vsel %vm192_vm1, %v10393_v54, -inf  ;;  %v7165_v20 = vld [vmem:[%s8475_s21 + $0xc0] sm:$0xff]  ;;  %v6042_v4 = vadd.f32 %v6041_v13, %v6040_v58  ;;  %s10747_s21 = sld [smem:[%s10765_s0 + %s7861_s18]]  }
 0xe69   :  { %v5612_v28 = vmax.f32 %v5610_v19, %v5611_v0  ;;  %v10395_v55 = vpop.eup %7623  ;;  %6231 = vmatpush.msra.mxu1 %v7165_v20 }
 0xe6a   :  { %7627 = vrcp.f32 %v5836_v36  ;;  %v10400_v10 = vpop.eup %7625  ;;  %v6047_v43 = vadd.f32 %v6046_v53, %v6045_v8  ;;  %v5837_v44 = vsel %vm192_vm1, %v10395_v55, 0.0  ;;  %v7822_v53 = vld [vmem:[%s7878_s13 + $0x30] sm:$0xff] }
 0xe6b   :  { %v5613_v61 = vrot.slane %v5612_v28, 1  ;;  %v5838_v59 = vsel %vm192_vm1, %v10400_v10, 0.0  ;;  %6288 = vmatpush.msrb.mxu1 %v7821_v63 }
 0xe6c   :  { %v5839_v21 = vadd.f32 %v5838_v59, %v5837_v44  ;;  %v6048_v34 = vrot.slane %v6047_v43, 2  ;;  %v7823_v44 = vld [vmem:[%s7878_s13 + $0x28] sm:$0xff] }
 0xe6d   :  { %v5614_v37 = vmax.f32 %v5612_v28, %v5613_v61  ;;  %6289 = vmatpush.msrb.mxu1 %v7822_v53  ;;  %v6024_v28 = vadd.f32 %v6023_v32, %v6022_v39 }
 0xe6e   :  { %v5840_v7 = vrot.slane %v5839_v21, 4  ;;  %v6049_v50 = vadd.f32 %v6048_v34, %v6047_v43 }
 0xe6f   :  { %v10408_v16 = vpop.f32.mrf.mxu0  ;;  %v5687_v33 = vsub.f32 %v10358_v51, %v5614_v37  ;;  %v5688_v1 = vsub.f32 %v10379_v3, %v5614_v37  ;;  %v10421_v3 = vld [vmem:[%s8227_s17 + $0x3] ss:$0 sm:$0xff]  ;;  %6290 = vmatpush.msrb.mxu1 %v7823_v44  ;;  %s6745_s17 = sld [smem:[%s10765_s0 + %s7860_s14]]  }
 0xe70   :  { %v7628_v2 = vpop.eup %7627  ;;  %v5616_v18 = vsel %vm192_vm1, %v10408_v16, -inf  ;;  %v5841_v14 = vadd.f32 %v5840_v7, %v5839_v21  ;;  %v6140_v0 = vadd.f32 %v10421_v3, %v6015_v24  ;;  %v6050_v60 = vrot.slane %v6049_v50, 1 }
 0xe71   :  { %v5939_v42 = vmul.f32 %v7628_v2, %v10364_v25  ;;  %v5940_v40 = vmul.f32 %v7628_v2, %v10366_v31  ;;  %v5737_v51 = vmul.f32 1.442695, %v5687_v33  ;;  %v5739_v5 = vmul.f32 1.442695, %v5688_v1  ;;  %6291 = vmatpush.msrb.mxu1 %v7824_v17 }
 0xe72   :  { %v5617_v48 = vmax.f32 %v5615_v29, %v5616_v18  ;;  %v5842_v19 = vrot.slane %v5841_v14, 2  ;;  %v6139_v25 = vadd.f32 %v10421_v3, %v6006_v62  ;;  %v6032_v31 = vrot.slane %v6031_v26, 1 }
 0xe73   :  { %v5971_v45 = vmul.f32 %v5939_v42, %v10067_v38  ;;  %v5972_v47 = vmul.f32 %v5940_v40, %v10073_v15  ;;  %7629 = vpow2.f32 %v5737_v51  ;;  %v6186_v34 = vrot.slane %v6140_v0, 6 }
 0xe74   :  { %7631 = vpow2.f32 %v5739_v5  ;;  %v5618_v56 = vrot.slane %v5617_v48, 4  ;;  %v5843_v8 = vadd.f32 %v5842_v19, %v5841_v14  ;;  %v6184_v41 = vrot.slane %v6139_v25, 7  ;;  %v7826_v14 = vld [vmem:[%s7878_s13 + $0x10] sm:$0xff]  ;;  %v7827_v25 = vld [vmem:[%s7878_s13 + $0x8] sm:$0xff] }
 0xe75   :  { %v6052_v22 = vsel %vm192_vm1, %v5971_v45, 0.0  ;;  %v6053_v46 = vsel %vm192_vm1, %v5972_v47, 0.0  ;;  %v6033_v59 = vadd.f32 %v6032_v31, %v6031_v26  ;;  %v6051_v6 = vadd.f32 %v6050_v60, %v6049_v50  ;;  %v7825_v26 = vld [vmem:[%s7878_s13 + $0x18] sm:$0xff] }
 0xe76   :  { %v6054_v12 = vadd.f32 %v6053_v46, %v6052_v22  ;;  %v5619_v9 = vmax.f32 %v5617_v48, %v5618_v56  ;;  %v5844_v30 = vrot.slane %v5843_v8, 1  ;;  %v6141_v24 = vadd.f32 %v10421_v3, %v6024_v28  ;;  %6292 = vmatpush.msrb.mxu1 %v7825_v26 }
 0xe77   :  { %v10431_v36 = vpop.f32.mrf.mxu0  ;;  %v6138_v7 = vadd.f32 %v10421_v3, %v5997_v27  ;;  %v6142_v58 = vadd.f32 %v10421_v3, %v6033_v59  ;;  %v6143_v29 = vadd.f32 %v10421_v3, %v6042_v4  ;;  %v6144_v50 = vadd.f32 %v10421_v3, %v6051_v6 }
 0xe78   :  { %v6055_v11 = vrot.slane %v6054_v12, 4  ;;  %v5620_v43 = vrot.slane %v5619_v9, 2  ;;  %v5845_v52 = vadd.f32 %v5844_v30, %v5843_v8  ;;  %6293 = vmatpush.msrb.mxu1 %v7826_v14  ;;  %v5624_v51 = vsel %vm192_vm1, %v10431_v36, -inf }
 0xe79   :  { %v10436_v61 = vpop.eup %7629  ;;  %v6185_v40 = vsel %vm1842_vm4, %v6184_v41, %v6138_v7  ;;  %v6188_v48 = vrot.slane %v6141_v24, 5  ;;  %v6190_v13 = vrot.slane %v6142_v58, 4  ;;  %v6192_v22 = vrot.slane %v6143_v29, 3 }
 0xe7a   :  { %v10438_v21 = vpop.eup %7631  ;;  %v6056_v37 = vadd.f32 %v6055_v11, %v6054_v12  ;;  %v5846_v62 = vsel %vm192_vm1, %v10436_v61, 0.0  ;;  %v5621_v39 = vmax.f32 %v5619_v9, %v5620_v43  ;;  %7633 = vrcp.f32 %v5845_v52  ;;  %6294 = vmatpush.msrb.mxu1 %v7827_v25  ;;  %v7828_v9 = vld [vmem:[%s7878_s13] sm:$0xff]  ;;  %s7850_s13 = smov 23  }
 0xe7b   :  { %v5847_v49 = vsel %vm192_vm1, %v10438_v21, 0.0  ;;  %v6187_v5 = vsel %vm1845_vm5, %v6186_v34, %v6185_v40  ;;  %v6194_v28 = vrot.slane %v6144_v50, 2  ;;  %s6736_s24 = sld [smem:[%s10765_s0 + %s7850_s13]]  }
 0xe7c   :  { %v6057_v33 = vrot.slane %v6056_v37, 2  ;;  %v5848_v1 = vadd.f32 %v5847_v49, %v5846_v62  ;;  %v5622_v2 = vrot.slane %v5621_v39, 1  ;;  %6295 = vmatpush.msrb.mxu1 %v7828_v9 }
 0xe7e   :  { %v5849_v18 = vrot.slane %v5848_v1, 4  ;;  %v5623_v35 = vmax.f32 %v5621_v39, %v5622_v2  ;;  %v6058_v42 = vadd.f32 %v6057_v33, %v6056_v37 }
 0xe7f   :  { %v10454_v32 = vpop.f32.mrf.mxu0 }
 0xe80   :  { %v5850_v20 = vadd.f32 %v5849_v18, %v5848_v1  ;;  %v5689_v45 = vsub.f32 %v10393_v54, %v5623_v35  ;;  %v5690_v47 = vsub.f32 %v10408_v16, %v5623_v35  ;;  %v5625_v19 = vsel %vm192_vm1, %v10454_v32, -inf  ;;  %v7634_v31 = vpop.eup %7633 }
 0xe81   :  { %v5626_v56 = vmax.f32 %v5624_v51, %v5625_v19  ;;  %v6059_v63 = vrot.slane %v6058_v42, 1  ;;  %v5941_v46 = vmul.f32 %v7634_v31, %v10395_v55  ;;  %v5942_v8 = vmul.f32 %v7634_v31, %v10400_v10 }
 0xe82   :  { %v5851_v0 = vrot.slane %v5850_v20, 2  ;;  %v5741_v12 = vmul.f32 1.442695, %v5689_v45  ;;  %v5743_v54 = vmul.f32 1.442695, %v5690_v47  ;;  %v6189_v10 = vsel %vm1848_vm6, %v6188_v48, %v6187_v5 }
 0xe83   :  { %v5627_v16 = vrot.slane %v5626_v56, 4  ;;  %v6060_v53 = vadd.f32 %v6059_v63, %v6058_v42  ;;  %v5973_v30 = vmul.f32 %v5941_v46, %v10067_v38  ;;  %v5974_v60 = vmul.f32 %v5942_v8, %v10073_v15 }
 0xe84   :  { %v5852_v27 = vadd.f32 %v5851_v0, %v5850_v20  ;;  %7635 = vpow2.f32 %v5741_v12  ;;  %v6191_v52 = vsel %vm1851_vm7, %v6190_v13, %v6189_v10 }
 0xe85   :  { %7637 = vpow2.f32 %v5743_v54  ;;  %v5628_v11 = vmax.f32 %v5626_v56, %v5627_v16  ;;  %v6145_v55 = vadd.f32 %v10421_v3, %v6060_v53  ;;  %v6061_v43 = vsel %vm192_vm1, %v5973_v30, 0.0 }
 0xe86   :  { %v6062_v44 = vsel %vm192_vm1, %v5974_v60, 0.0  ;;  %v5853_v41 = vrot.slane %v5852_v27, 1  ;;  %v6193_v62 = vsel %vm1854_vm9, %v6192_v22, %v6191_v52 }
 0xe87   :  { %v6063_v59 = vadd.f32 %v6062_v44, %v6061_v43  ;;  %v5629_v4 = vrot.slane %v5628_v11, 2  ;;  %v10473_v37 = vpop.f32.mrf.mxu0  ;;  %v6196_v39 = vrot.slane %v6145_v55, 1  ;;  %v6195_v17 = vsel %vm1857_vm10, %v6194_v28, %v6193_v62 }
 0xe88   :  { %v5854_v34 = vadd.f32 %v5853_v41, %v5852_v27  ;;  %v5633_v45 = vsel %vm192_vm1, %v10473_v37, -inf }
 0xe89   :  { %v5630_v49 = vmax.f32 %v5628_v11, %v5629_v4  ;;  %v6197_v6 = vsel %vm1860_vm11, %v6196_v39, %v6195_v17  ;;  %v6064_v2 = vrot.slane %v6063_v59, 4 }
 0xe8a   :  { %v10478_v24 = vpop.eup %7635  ;;  %7639 = vrcp.f32 %v5854_v34  ;;  %7174 = vmatmul.msk.f32.vlgmr.msra.gmra.mxu1 %vm192_vm1, %v6197_v6 }
 0xe8b   :  { %v10481_v7 = vpop.eup %7637  ;;  %v5855_v33 = vsel %vm192_vm1, %v10478_v24, 0.0  ;;  %v5631_v1 = vrot.slane %v5630_v49, 1  ;;  %v6065_v51 = vadd.f32 %v6064_v2, %v6063_v59 }
 0xe8c   :  { %v5856_v26 = vsel %vm192_vm1, %v10481_v7, 0.0 }
 0xe8d   :  { %v5857_v58 = vadd.f32 %v5856_v26, %v5855_v33  ;;  %v5632_v29 = vmax.f32 %v5630_v49, %v5631_v1  ;;  %v6066_v56 = vrot.slane %v6065_v51, 2 }
 0xe8f   :  { %v5858_v18 = vrot.slane %v5857_v58, 4  ;;  %v5691_v35 = vsub.f32 %v10431_v36, %v5632_v29  ;;  %v5692_v42 = vsub.f32 %v10454_v32, %v5632_v29  ;;  %v5504_v40 = vpop.f32.mrf.mxu0  ;;  %v6067_v54 = vadd.f32 %v6066_v56, %v6065_v51 }
 0xe90   :  { %v7640_v14 = vpop.eup %7639  ;;  %v5634_v50 = vsel %vm192_vm1, %v5504_v40, -inf }
 0xe91   :  { %v5943_v5 = vmul.f32 %v7640_v14, %v10436_v61  ;;  %v5944_v48 = vmul.f32 %v7640_v14, %v10438_v21  ;;  %v5859_v20 = vadd.f32 %v5858_v18, %v5857_v58  ;;  %v5745_v47 = vmul.f32 1.442695, %v5691_v35 }
 0xe92   :  { %v5747_v19 = vmul.f32 1.442695, %v5692_v42  ;;  %v5635_v25 = vmax.f32 %v5633_v45, %v5634_v50  ;;  %v6068_v43 = vrot.slane %v6067_v54, 1 }
 0xe93   :  { %v5975_v36 = vmul.f32 %v5943_v5, %v10067_v38  ;;  %v5976_v32 = vmul.f32 %v5944_v48, %v10073_v15  ;;  %v5860_v31 = vrot.slane %v5859_v20, 2  ;;  %7641 = vpow2.f32 %v5745_v47 }
 0xe94   :  { %v5636_v63 = vrot.slane %v5635_v25, 4  ;;  %7643 = vpow2.f32 %v5747_v19  ;;  %v6069_v33 = vadd.f32 %v6068_v43, %v6067_v54 }
 0xe95   :  { %v6070_v13 = vsel %vm192_vm1, %v5975_v36, 0.0  ;;  %v6071_v61 = vsel %vm192_vm1, %v5976_v32, 0.0  ;;  %v5861_v21 = vadd.f32 %v5860_v31, %v5859_v20 }
 0xe96   :  { %v6072_v22 = vadd.f32 %v6071_v61, %v6070_v13  ;;  %v5637_v46 = vmax.f32 %v5635_v25, %v5636_v63 }
 0xe97   :  { %v5862_v8 = vrot.slane %v5861_v21, 1  ;;  %v10498_v0 = vpop.f32.mrf.mxu0 }
 0xe98   :  { %v6073_v12 = vrot.slane %v6072_v22, 4  ;;  %v5638_v9 = vrot.slane %v5637_v46, 2  ;;  %v5642_v4 = vsel %vm192_vm1, %v10498_v0, -inf }
 0xe99   :  { %v5863_v16 = vadd.f32 %v5862_v8, %v5861_v21  ;;  %v10500_v53 = vpop.eup %7641 }
 0xe9a   :  { %v6074_v28 = vadd.f32 %v6073_v12, %v6072_v22  ;;  %v5639_v30 = vmax.f32 %v5637_v46, %v5638_v9  ;;  %v10502_v60 = vpop.eup %7643  ;;  %v5864_v27 = vsel %vm192_vm1, %v10500_v53, 0.0 }
 0xe9b   :  { %7645 = vrcp.f32 %v5863_v16  ;;  %v5865_v55 = vsel %vm192_vm1, %v10502_v60, 0.0 }
 0xe9c   :  { %v6075_v11 = vrot.slane %v6074_v28, 2  ;;  %v5640_v10 = vrot.slane %v5639_v30, 1  ;;  %v5866_v44 = vadd.f32 %v5865_v55, %v5864_v27 }
 0xe9e   :  { %v6076_v41 = vadd.f32 %v6075_v11, %v6074_v28  ;;  %v5641_v52 = vmax.f32 %v5639_v30, %v5640_v10  ;;  %v5867_v59 = vrot.slane %v5866_v44, 4 }
 0xe9f   :  { %v5510_v62 = vpop.f32.mrf.mxu0 }
 0xea0   :  { %v6077_v39 = vrot.slane %v6076_v41, 1  ;;  %v5693_v34 = vsub.f32 %v10473_v37, %v5641_v52  ;;  %v5694_v17 = vsub.f32 %v5504_v40, %v5641_v52  ;;  %v5643_v49 = vsel %vm192_vm1, %v5510_v62, -inf }
 0xea1   :  { %v7646_v6 = vpop.eup %7645  ;;  %v5868_v1 = vadd.f32 %v5867_v59, %v5866_v44  ;;  %v5644_v2 = vmax.f32 %v5642_v4, %v5643_v49 }
 0xea2   :  { %v6078_v26 = vadd.f32 %v6077_v39, %v6076_v41  ;;  %v5945_v58 = vmul.f32 %v7646_v6, %v10478_v24  ;;  %v5946_v29 = vmul.f32 %v7646_v6, %v10481_v7  ;;  %v5749_v18 = vmul.f32 1.442695, %v5693_v34 }
 0xea3   :  { %v5869_v35 = vrot.slane %v5868_v1, 2  ;;  %v5751_v42 = vmul.f32 1.442695, %v5694_v17  ;;  %v5645_v14 = vrot.slane %v5644_v2, 4  ;;  %v6146_v7 = vadd.f32 %v10421_v3, %v6069_v33 }
 0xea4   :  { %v5977_v51 = vmul.f32 %v5945_v58, %v10067_v38  ;;  %v5978_v37 = vmul.f32 %v5946_v29, %v10073_v15  ;;  %7647 = vpow2.f32 %v5749_v18  ;;  %v6147_v40 = vadd.f32 %v10421_v3, %v6078_v26 }
 0xea5   :  { %v5870_v50 = vadd.f32 %v5869_v35, %v5868_v1  ;;  %7649 = vpow2.f32 %v5751_v42  ;;  %v5646_v5 = vmax.f32 %v5644_v2, %v5645_v14 }
 0xea6   :  { %v6079_v48 = vsel %vm192_vm1, %v5977_v51, 0.0  ;;  %v6080_v24 = vsel %vm192_vm1, %v5978_v37, 0.0  ;;  %v6198_v20 = vrot.slane %v6147_v40, 7 }
 0xea7   :  { %v6081_v45 = vadd.f32 %v6080_v24, %v6079_v48  ;;  %v5871_v47 = vrot.slane %v5870_v50, 1  ;;  %v5647_v19 = vrot.slane %v5646_v5, 2  ;;  %v10520_v25 = vpop.f32.mrf.mxu0 }
 0xea8   :  { %v6199_v36 = vsel %vm1842_vm4, %v6198_v20, %v6146_v7  ;;  %v5651_v59 = vsel %vm192_vm1, %v10520_v25, -inf }
 0xea9   :  { %v6082_v32 = vrot.slane %v6081_v45, 4  ;;  %v5872_v31 = vadd.f32 %v5871_v47, %v5870_v50  ;;  %v5648_v56 = vmax.f32 %v5646_v5, %v5647_v19 }
 0xeaa   :  { %v10523_v63 = vpop.eup %7647 }
 0xeab   :  { %v10525_v13 = vpop.eup %7649  ;;  %v6083_v61 = vadd.f32 %v6082_v32, %v6081_v45  ;;  %7651 = vrcp.f32 %v5872_v31  ;;  %v5873_v21 = vsel %vm192_vm1, %v10523_v63, 0.0  ;;  %v5649_v22 = vrot.slane %v5648_v56, 1 }
 0xeac   :  { %v5874_v46 = vsel %vm192_vm1, %v10525_v13, 0.0 }
 0xead   :  { %v6084_v8 = vrot.slane %v6083_v61, 2  ;;  %v5875_v12 = vadd.f32 %v5874_v46, %v5873_v21  ;;  %v5650_v9 = vmax.f32 %v5648_v56, %v5649_v22 }
 0xeaf   :  { %v6085_v54 = vadd.f32 %v6084_v8, %v6083_v61  ;;  %v5876_v16 = vrot.slane %v5875_v12, 4  ;;  %v5695_v28 = vsub.f32 %v10498_v0, %v5650_v9  ;;  %v5696_v30 = vsub.f32 %v5510_v62, %v5650_v9  ;;  %v5516_v27 = vpop.f32.mrf.mxu0 }
 0xeb0   :  { %v5652_v4 = vsel %vm192_vm1, %v5516_v27, -inf }
 0xeb1   :  { %v7652_v11 = vpop.eup %7651  ;;  %v6086_v55 = vrot.slane %v6085_v54, 1  ;;  %v5877_v10 = vadd.f32 %v5876_v16, %v5875_v12  ;;  %v5753_v43 = vmul.f32 1.442695, %v5695_v28  ;;  %v5755_v44 = vmul.f32 1.442695, %v5696_v30 }
 0xeb2   :  { %v5947_v41 = vmul.f32 %v7652_v11, %v10500_v53  ;;  %v5948_v52 = vmul.f32 %v7652_v11, %v10502_v60  ;;  %v5653_v0 = vmax.f32 %v5651_v59, %v5652_v4 }
 0xeb3   :  { %v6087_v39 = vadd.f32 %v6086_v55, %v6085_v54  ;;  %v5878_v34 = vrot.slane %v5877_v10, 2  ;;  %7653 = vpow2.f32 %v5753_v43 }
 0xeb4   :  { %v5979_v62 = vmul.f32 %v5947_v41, %v10067_v38  ;;  %v5980_v17 = vmul.f32 %v5948_v52, %v10073_v15  ;;  %7655 = vpow2.f32 %v5755_v44  ;;  %v5654_v6 = vrot.slane %v5653_v0, 4 }
 0xeb5   :  { %v5879_v49 = vadd.f32 %v5878_v34, %v5877_v10  ;;  %v6148_v53 = vadd.f32 %v10421_v3, %v6087_v39 }
 0xeb6   :  { %v6088_v60 = vsel %vm192_vm1, %v5979_v62, 0.0  ;;  %v6089_v33 = vsel %vm192_vm1, %v5980_v17, 0.0  ;;  %v5655_v26 = vmax.f32 %v5653_v0, %v5654_v6 }
 0xeb7   :  { %v6090_v1 = vadd.f32 %v6089_v33, %v6088_v60  ;;  %v5880_v2 = vrot.slane %v5879_v49, 1  ;;  %v6200_v58 = vrot.slane %v6148_v53, 6  ;;  %v10542_v29 = vpop.f32.mrf.mxu0 }
 0xeb8   :  { %v5656_v14 = vrot.slane %v5655_v26, 2  ;;  %v5660_v31 = vsel %vm192_vm1, %v10542_v29, -inf }
 0xeb9   :  { %v10544_v18 = vpop.eup %7653  ;;  %v6091_v35 = vrot.slane %v6090_v1, 4  ;;  %v5881_v42 = vadd.f32 %v5880_v2, %v5879_v49  ;;  %v6201_v40 = vsel %vm1845_vm5, %v6200_v58, %v6199_v36 }
 0xeba   :  { %v10546_v51 = vpop.eup %7655  ;;  %v5882_v37 = vsel %vm192_vm1, %v10544_v18, 0.0  ;;  %v5657_v48 = vmax.f32 %v5655_v26, %v5656_v14 }
 0xebb   :  { %v6092_v50 = vadd.f32 %v6091_v35, %v6090_v1  ;;  %7657 = vrcp.f32 %v5881_v42  ;;  %v5883_v5 = vsel %vm192_vm1, %v10546_v51, 0.0 }
 0xebc   :  { %v5884_v24 = vadd.f32 %v5883_v5, %v5882_v37  ;;  %v5658_v20 = vrot.slane %v5657_v48, 1 }
 0xebd   :  { %v6093_v7 = vrot.slane %v6092_v50, 2 }
 0xebe   :  { %v5885_v45 = vrot.slane %v5884_v24, 4  ;;  %v5659_v19 = vmax.f32 %v5657_v48, %v5658_v20 }
 0xebf   :  { %v6094_v47 = vadd.f32 %v6093_v7, %v6092_v50  ;;  %v5522_v56 = vpop.f32.mrf.mxu0 }
 0xec0   :  { %v5886_v32 = vadd.f32 %v5885_v45, %v5884_v24  ;;  %v5697_v36 = vsub.f32 %v10520_v25, %v5659_v19  ;;  %v5698_v22 = vsub.f32 %v5516_v27, %v5659_v19  ;;  %v5661_v46 = vsel %vm192_vm1, %v5522_v56, -inf }
 0xec1   :  { %v7658_v61 = vpop.eup %7657  ;;  %v6095_v21 = vrot.slane %v6094_v47, 1  ;;  %v5662_v54 = vmax.f32 %v5660_v31, %v5661_v46 }
 0xec2   :  { %v5949_v8 = vmul.f32 %v7658_v61, %v10523_v63  ;;  %v5950_v12 = vmul.f32 %v7658_v61, %v10525_v13  ;;  %v5887_v9 = vrot.slane %v5886_v32, 2  ;;  %v5757_v16 = vmul.f32 1.442695, %v5697_v36 }
 0xec3   :  { %v5759_v28 = vmul.f32 1.442695, %v5698_v22  ;;  %v6096_v30 = vadd.f32 %v6095_v21, %v6094_v47  ;;  %v5663_v43 = vrot.slane %v5662_v54, 4 }
 0xec4   :  { %v5981_v11 = vmul.f32 %v5949_v8, %v10067_v38  ;;  %v5982_v55 = vmul.f32 %v5950_v12, %v10073_v15  ;;  %v5888_v10 = vadd.f32 %v5887_v9, %v5886_v32  ;;  %7659 = vpow2.f32 %v5757_v16 }
 0xec5   :  { %v6149_v25 = vadd.f32 %v10421_v3, %v6096_v30  ;;  %7661 = vpow2.f32 %v5759_v28  ;;  %v5664_v44 = vmax.f32 %v5662_v54, %v5663_v43 }
 0xec6   :  { %v6097_v27 = vsel %vm192_vm1, %v5981_v11, 0.0  ;;  %v6098_v63 = vsel %vm192_vm1, %v5982_v55, 0.0  ;;  %v5889_v52 = vrot.slane %v5888_v10, 1 }
 0xec7   :  { %v6099_v13 = vadd.f32 %v6098_v63, %v6097_v27  ;;  %v6202_v41 = vrot.slane %v6149_v25, 5  ;;  %v5665_v4 = vrot.slane %v5664_v44, 2 }
 0xec8   :  { %v5890_v49 = vadd.f32 %v5889_v52, %v5888_v10 }
 0xec9   :  { %v6100_v59 = vrot.slane %v6099_v13, 4  ;;  %v6203_v39 = vsel %vm1848_vm6, %v6202_v41, %v6201_v40  ;;  %v5666_v62 = vmax.f32 %v5664_v44, %v5665_v4 }
 0xeca   :  { %v7660_v34 = vpop.eup %7659  ;;  %7663 = vrcp.f32 %v5890_v49 }
 0xecb   :  { %v6101_v0 = vadd.f32 %v6100_v59, %v6099_v13  ;;  %v7662_v17 = vpop.eup %7661  ;;  %v5891_v6 = vsel %vm192_vm1, %v7660_v34, 0.0  ;;  %v5667_v33 = vrot.slane %v5666_v62, 1 }
 0xecc   :  { %v5892_v60 = vsel %vm192_vm1, %v7662_v17, 0.0 }
 0xecd   :  { %v6102_v53 = vrot.slane %v6101_v0, 2  ;;  %v5893_v1 = vadd.f32 %v5892_v60, %v5891_v6  ;;  %v5668_v26 = vmax.f32 %v5666_v62, %v5667_v33 }
 0xecf   :  { %v6103_v2 = vadd.f32 %v6102_v53, %v6101_v0  ;;  %v5894_v58 = vrot.slane %v5893_v1, 4  ;;  %v5699_v35 = vsub.f32 %v10542_v29, %v5668_v26  ;;  %v5700_v42 = vsub.f32 %v5522_v56, %v5668_v26 }
 0xed0   :  { %v7664_v24 = vpop.eup %7663 }
 0xed1   :  { %v5895_v14 = vadd.f32 %v5894_v58, %v5893_v1  ;;  %v6104_v37 = vrot.slane %v6103_v2, 1  ;;  %v5761_v40 = vmul.f32 1.442695, %v5699_v35  ;;  %v5763_v50 = vmul.f32 1.442695, %v5700_v42 }
 0xed2   :  { %v5951_v19 = vmul.f32 %v7664_v24, %v10544_v18  ;;  %v5952_v32 = vmul.f32 %v7664_v24, %v10546_v51 }
 0xed3   :  { %v5896_v5 = vrot.slane %v5895_v14, 2  ;;  %v6105_v48 = vadd.f32 %v6104_v37, %v6103_v2  ;;  %7665 = vpow2.f32 %v5761_v40 }
 0xed4   :  { %7667 = vpow2.f32 %v5763_v50  ;;  %v5983_v36 = vmul.f32 %v5951_v19, %v10067_v38  ;;  %v5984_v22 = vmul.f32 %v5952_v32, %v10073_v15 }
 0xed5   :  { %v5897_v7 = vadd.f32 %v5896_v5, %v5895_v14  ;;  %v6150_v20 = vadd.f32 %v10421_v3, %v6105_v48  ;;  %v7262_v48 = vld [vmem:[%s8555_s26 + $0x3] ss:$0 sm:$0xff] }
 0xed6   :  { %v6106_v18 = vsel %vm192_vm1, %v5983_v36, 0.0  ;;  %v6107_v51 = vsel %vm192_vm1, %v5984_v22, 0.0 }
 0xed7   :  { %v5898_v45 = vrot.slane %v5897_v7, 1  ;;  %v6204_v47 = vrot.slane %v6150_v20, 4  ;;  %v6108_v30 = vadd.f32 %v6107_v51, %v6106_v18  ;;  %v6352_v18 = vld [vmem:[%s6736_s24 + $0x28] sm:$0xff]  ;;  %v6351_v51 = vld [vmem:[%s6736_s24 + $0x20] sm:$0xff] }
 0xed9   :  { %v5899_v29 = vadd.f32 %v5898_v45, %v5897_v7  ;;  %v6205_v31 = vsel %vm1851_vm7, %v6204_v47, %v6203_v39  ;;  %v7666_v56 = vpop.eup %7665  ;;  %v6109_v63 = vrot.slane %v6108_v30, 4 }
 0xeda   :  { %v7668_v61 = vpop.eup %7667  ;;  %v5900_v21 = vsel %vm192_vm1, %v7666_v56, 0.0 }
 0xedb   :  { %7669 = vrcp.f32 %v5899_v29  ;;  %v5901_v46 = vsel %vm192_vm1, %v7668_v61, 0.0  ;;  %v6110_v59 = vadd.f32 %v6109_v63, %v6108_v30  ;;  %v6349_v30 = vld [vmem:[%s6736_s24 + $0x10] sm:$0xff] }
 0xedc   :  { %v5902_v8 = vadd.f32 %v5901_v46, %v5900_v21  ;;  %v6353_v46 = vld [vmem:[%s6736_s24 + $0x30] sm:$0xff] }
 0xedd   :  { %v6111_v39 = vrot.slane %v6110_v59, 2 }
 0xede   :  { %v5903_v12 = vrot.slane %v5902_v8, 4 }
 0xedf   :  { %v6112_v49 = vadd.f32 %v6111_v39, %v6110_v59 }
 0xee0   :  { %v5904_v54 = vadd.f32 %v5903_v12, %v5902_v8 }
 0xee1   :  { %v7670_v9 = vpop.eup %7669  ;;  %v6113_v26 = vrot.slane %v6112_v49, 1 }
 0xee2   :  { %v5953_v16 = vmul.f32 %v7670_v9, %v7660_v34  ;;  %v5954_v28 = vmul.f32 %v7670_v9, %v7662_v17  ;;  %v5905_v11 = vrot.slane %v5904_v54, 2 }
 0xee3   :  { %v6114_v42 = vadd.f32 %v6113_v26, %v6112_v49  ;;  %v6401_v49 = vld [vmem:[%s10624_s15 + $0x28] sm:$0xff]  ;;  %v6395_v26 = vld [vmem:[%s10640_s29 + $0x38] sm:$0xff] }
 0xee4   :  { %v5985_v55 = vmul.f32 %v5953_v16, %v10067_v38  ;;  %v5986_v10 = vmul.f32 %v5954_v28, %v10073_v15  ;;  %v5906_v43 = vadd.f32 %v5905_v11, %v5904_v54  ;;  %v6350_v16 = vld [vmem:[%s6736_s24 + $0x18] sm:$0xff]  ;;  %v6348_v11 = vld [vmem:[%s6736_s24 + $0x8] sm:$0xff] }
 0xee5   :  { %v6151_v5 = vadd.f32 %v10421_v3, %v6114_v42  ;;  %v6512_v42 = vld [vmem:[%s10629_s19 + $0x30] sm:$0xff] }
 0xee6   :  { %v6115_v25 = vsel %vm192_vm1, %v5985_v55, 0.0  ;;  %v6116_v27 = vsel %vm192_vm1, %v5986_v10, 0.0  ;;  %v5907_v44 = vrot.slane %v5906_v43, 1  ;;  %v6347_v55 = vld [vmem:[%s6736_s24] sm:$0xff] }
 0xee7   :  { %v6117_v13 = vadd.f32 %v6116_v27, %v6115_v25  ;;  %v6206_v7 = vrot.slane %v6151_v5, 3  ;;  %v6617_v5 = vld [vmem:[%s10634_s23 + $0x28] sm:$0xff] }
 0xee8   :  { %v5908_v52 = vadd.f32 %v5907_v44, %v5906_v43 }
 0xee9   :  { %v6118_v41 = vrot.slane %v6117_v13, 4  ;;  %v6207_v32 = vsel %vm1854_vm9, %v6206_v7, %v6205_v31  ;;  %v6354_v31 = vld [vmem:[%s6736_s24 + $0x38] sm:$0xff]  ;;  %v6616_v7 = vld [vmem:[%s10634_s23 + $0x20] sm:$0xff] }
 0xeea   :  { %7671 = vrcp.f32 %v5908_v52  ;;  %6373 = vmatpush.msrb.mxu3 %v6354_v31  ;;  %v6390_v31 = vld [vmem:[%s10640_s29 + $0x10] sm:$0xff] }
 0xeeb   :  { %v6119_v4 = vadd.f32 %v6118_v41, %v6117_v13  ;;  %v10607_v41 = vld [vmem:[%s8734_s1 + $0x3] ss:$0 sm:$0xff] }
 0xeec   :  { %6374 = vmatpush.msrb.mxu3 %v6353_v46  ;;  %v6507_v46 = vld [vmem:[%s10629_s19 + $0x8] sm:$0xff] }
 0xeed   :  { %v6120_v34 = vrot.slane %v6119_v4, 2 }
 0xeee   :  { %6375 = vmatpush.msrb.mxu3 %v6352_v18  ;;  %v6518_v18 = vld [vmem:[%s10653_s7 + $0x20] sm:$0xff] }
 0xeef   :  { %v6121_v60 = vadd.f32 %v6120_v34, %v6119_v4  ;;  %v10610_v4 = vld [vmem:[%s8739_s8 + $0x3] ss:$0 sm:$0xff] }
 0xef0   :  { %v7672_v0 = vpop.eup %7671  ;;  %6376 = vmatpush.msrb.mxu3 %v6351_v51  ;;  %v6506_v51 = vld [vmem:[%s10629_s19] sm:$0xff] }
 0xef1   :  { %v5955_v62 = vmul.f32 %v7672_v0, %v7666_v56  ;;  %v5956_v17 = vmul.f32 %v7672_v0, %v7668_v61  ;;  %v6122_v58 = vrot.slane %v6121_v60, 1 }
 0xef2   :  { %6377 = vmatpush.msrb.mxu3 %v6350_v16  ;;  %v6612_v16 = vld [vmem:[%s10634_s23] sm:$0xff] }
 0xef3   :  { %v5987_v6 = vmul.f32 %v5955_v62, %v10067_v38  ;;  %v5988_v53 = vmul.f32 %v5956_v17, %v10073_v15  ;;  %v6123_v37 = vadd.f32 %v6122_v58, %v6121_v60  ;;  %v6402_v17 = vld [vmem:[%s10624_s15 + $0x30] sm:$0xff]  ;;  %v6513_v60 = vld [vmem:[%s10629_s19 + $0x38] sm:$0xff] }
 0xef4   :  { %6378 = vmatpush.msrb.mxu3 %v6349_v30  ;;  %6553 = vmatpush.msrb.mxu2 %v6513_v60  ;;  %v6517_v30 = vld [vmem:[%s10653_s7 + $0x18] sm:$0xff] }
 0xef5   :  { %v6124_v33 = vsel %vm192_vm1, %v5987_v6, 0.0  ;;  %v6125_v1 = vsel %vm192_vm1, %v5988_v53, 0.0  ;;  %v6152_v38 = vadd.f32 %v10421_v3, %v6123_v37  ;;  %v6400_v6 = vld [vmem:[%s10624_s15 + $0x20] sm:$0xff]  ;;  %v6399_v53 = vld [vmem:[%s10624_s15 + $0x18] sm:$0xff] }
 0xef6   :  { %v6126_v2 = vadd.f32 %v6125_v1, %v6124_v33  ;;  %6379 = vmatpush.msrb.mxu3 %v6348_v11  ;;  %v6398_v1 = vld [vmem:[%s10624_s15 + $0x10] sm:$0xff]  ;;  %6554 = vmatpush.msrb.mxu2 %v6512_v42  ;;  %v6388_v11 = vld [vmem:[%s10640_s29] sm:$0xff] }
 0xef7   :  { %v6208_v20 = vrot.slane %v6152_v38, 2 }
 0xef8   :  { %v6127_v35 = vrot.slane %v6126_v2, 4  ;;  %6380 = vmatpush.msrb.mxu3 %v6347_v55 }
 0xef9   :  { %v6209_v56 = vsel %vm1857_vm10, %v6208_v20, %v6207_v32  ;;  %v6509_v32 = vld [vmem:[%s10629_s19 + $0x18] sm:$0xff] }
 0xefa   :  { %v6128_v14 = vadd.f32 %v6127_v35, %v6126_v2  ;;  %v6619_v2 = vld [vmem:[%s10634_s23 + $0x38] sm:$0xff]  ;;  %v6397_v35 = vld [vmem:[%s10624_s15 + $0x8] sm:$0xff] }
 0xefb   :  { %6667 = vmatpush.msra.mxu0 %v6619_v2 }
 0xefc   :  { %v6129_v40 = vrot.slane %v6128_v14, 2 }
 0xefe   :  { %v6130_v50 = vadd.f32 %v6129_v40, %v6128_v14  ;;  %v6618_v14 = vld [vmem:[%s10634_s23 + $0x30] sm:$0xff] }
 0xeff   :  { %v6394_v40 = vld [vmem:[%s10640_s29 + $0x30] sm:$0xff]  ;;  %6668 = vmatpush.msra.mxu0 %v6618_v14  ;;  %v6623_v14 = vld [vmem:[%s6745_s17 + $0x8] sm:$0xff] }
 0xf00   :  { %v6131_v15 = vrot.slane %v6130_v50, 1 }
 0xf01   :  { %6669 = vmatpush.msra.mxu0 %v6617_v5 }
 0xf02   :  { %v6132_v24 = vadd.f32 %v6131_v15, %v6130_v50  ;;  %v6511_v50 = vld [vmem:[%s10629_s19 + $0x28] sm:$0xff] }
 0xf03   :  { %v6393_v15 = vld [vmem:[%s10640_s29 + $0x28] sm:$0xff]  ;;  %6555 = vmatpush.msrb.mxu2 %v6511_v50  ;;  %6670 = vmatpush.msra.mxu0 %v6616_v7 }
 0xf04   :  { %v6153_v45 = vadd.f32 %v10421_v3, %v6132_v24  ;;  %v6510_v24 = vld [vmem:[%s10629_s19 + $0x20] sm:$0xff] }
 0xf05   :  { %6556 = vmatpush.msrb.mxu2 %v6510_v24 }
 0xf06   :  { %v6210_v29 = vrot.slane %v6153_v45, 1  ;;  %v10675_v45 = vld [vmem:[%s10647_s4] sm:$0xff] }
 0xf07   :  { %v6233_v47 = vpop.f32.mrf.mxu1  ;;  %6557 = vmatpush.msrb.mxu2 %v6509_v32 }
 0xf08   :  { %v6234_v19 = vadd.f32 %v7262_v48, %v6233_v47  ;;  %v6211_v61 = vsel %vm1860_vm11, %v6210_v29, %v6209_v56  ;;  %v6392_v47 = vld [vmem:[%s10640_s29 + $0x20] sm:$0xff]  ;;  %v6615_v29 = vld [vmem:[%s10634_s23 + $0x18] sm:$0xff] }
 0xf09   :  { %7175 = vmatmul.msk.f32.gmra.mxu1 %vm192_vm1, %v6211_v61  ;;  %v6391_v56 = vld [vmem:[%s10640_s29 + $0x18] sm:$0xff]  ;;  %v6520_v61 = vld [vmem:[%s10653_s7 + $0x30] sm:$0xff]  ;;  %6671 = vmatpush.msra.mxu0 %v6615_v29 }
 0xf0a   :  { %7178 = vmatmul.msk.f32.vlgmr.msra.gmra.mxu3 %vm192_vm1, %v6234_v19  ;;  %v6272_v21 = vmul.f32 %v6234_v19, %v6234_v19 }
 0xf0b   :  { %6447 = vmatpush.msra.mxu3 %v6395_v26  ;;  %v6625_v26 = vld [vmem:[%s6745_s17 + $0x18] sm:$0xff] }
 0xf0d   :  { %6448 = vmatpush.msra.mxu3 %v6394_v40 }
 0xf0f   :  { %6449 = vmatpush.msra.mxu3 %v6393_v15 }
 0xf11   :  { %7180 = vmatmul.msk.f32.vlgmr.msrb.gmra.mxu1 %vm192_vm1, %v6272_v21  ;;  %6450 = vmatpush.msra.mxu3 %v6392_v47  ;;  %v6508_v21 = vld [vmem:[%s10629_s19 + $0x10] sm:$0xff] }
 0xf12   :  { %6558 = vmatpush.msrb.mxu2 %v6508_v21 }
 0xf13   :  { %6451 = vmatpush.msra.mxu3 %v6391_v56 }
 0xf14   :  { %6559 = vmatpush.msrb.mxu2 %v6507_v46 }
 0xf15   :  { %6452 = vmatpush.msra.mxu3 %v6390_v31  ;;  %v7266_v31 = vld [vmem:[%s10727_s2] ss:$0 sm:$0xff] }
 0xf16   :  { %6560 = vmatpush.msrb.mxu2 %v6506_v51 }
 0xf86   :  { %v6236_v3 = vpop.f32.mrf.mxu1 }
 0xf87   :  { %v10599_v36 = vadd.f32 %v7262_v48, %v6236_v3  ;;  %v6396_v48 = vld [vmem:[%s10624_s15] sm:$0xff]  ;;  %v6614_v3 = vld [vmem:[%s10634_s23 + $0x10] sm:$0xff] }
 0xf88   :  { %6672 = vmatpush.msra.mxu0 %v6614_v3 }
 0xf89   :  { %v6273_v22 = vmul.f32 %v10599_v36, %v10599_v36  ;;  %7179 = vmatmul.msk.f32.gmra.mxu3 %vm192_vm1, %v10599_v36 }
 0xf8b   :  { %7181 = vmatmul.msk.f32.gmra.mxu1 %vm192_vm1, %v6273_v22  ;;  %v6519_v22 = vld [vmem:[%s10653_s7 + $0x28] sm:$0xff] }
 0xf8d   :  { %v6266_v8 = vpop.f32.mrf.mxu3 }
 0xf8e   :  { %v6303_v12 = vmul.f32 %v6266_v8, %v6266_v8  ;;  %v6297_v9 = vpop.f32.mrf.mxu1  ;;  %v6307_v44 = vsub.f32 %v6234_v19, %v6266_v8  ;;  %v6521_v19 = vld [vmem:[%s10653_s7 + $0x38] sm:$0xff]  ;;  %v6613_v8 = vld [vmem:[%s10634_s23 + $0x8] sm:$0xff]  ;;  %s7863_s23 = smov 34  }
 0xf8f   :  { %6673 = vmatpush.msra.mxu0 %v6613_v8  ;;  %s6747_s27 = sld [smem:[%s10765_s0 + %s7863_s23]]  }
 0xf90   :  { %v6305_v54 = vsub.f32 %v6297_v9, %v6303_v12  ;;  %v6389_v12 = vld [vmem:[%s10640_s29 + $0x8] sm:$0xff] }
 0xf91   :  { %6453 = vmatpush.msra.mxu3 %v6389_v12  ;;  %6674 = vmatpush.msra.mxu0 %v6612_v16 }
 0xf92   :  { %v6309_v28 = vadd.f32 1e-05, %v6305_v54  ;;  %v10695_v54 = vld [vmem:[%s10647_s4 + $0x8] sm:$0xff] }
 0xf93   :  { %6454 = vmatpush.msra.mxu3 %v6388_v11 }
 0xf94   :  { %7673 = vrsqrt.f32 %v6309_v28  ;;  %vm6317_vm5 = vweird.f32 %v6309_v28 }
 0xf9a   :  { %v7674_v10 = vpop.eup %7673 }
 0xf9b   :  { %v6312_v43 = vmul.f32 %v7674_v10, %v6309_v28  ;;  %vm6318_vm4 = vweird.f32 %v7674_v10 }
 0xf9c   :  { %vm6319_vm6 = vmor %vm6317_vm5, %vm6318_vm4 }
 0xf9d   :  { %v6313_v25 = vmul.f32 %v7674_v10, %v6312_v43 }
 0xf9f   :  { %v6314_v27 = vmul.f32 0.5, %v6313_v25  ;;  %v6515_v25 = vld [vmem:[%s10653_s7 + $0x8] sm:$0xff] }
 0xfa1   :  { %v6315_v63 = vsub.f32 1.5, %v6314_v27 }
 0xfa3   :  { %v6316_v13 = vmul.f32 %v7674_v10, %v6315_v63  ;;  %v6514_v63 = vld [vmem:[%s10653_s7] sm:$0xff] }
 0xfa5   :  { %v6320_v52 = vsel %vm6319_vm6, %v7674_v10, %v6316_v13  ;;  %v6516_v10 = vld [vmem:[%s10653_s7 + $0x10] sm:$0xff] }
 0xfa6   :  { %v6331_v59 = vmul.f32 %v6320_v52, %v6307_v44 }
 0xfa8   :  { %v6336_v39 = vmul.f32 %v10607_v41, %v6331_v59 }
 0xfaa   :  { %v6341_v34 = vadd.f32 %v10610_v4, %v6336_v39 }
 0xfac   :  { %v6343_v0 = vmax.f32 %v6341_v34, 0.0 }
 0xfae   :  { %v6345_v62 = vadd.f32 %v6343_v0, %v10002_v23  ;;  %v6403_v23 = vld [vmem:[%s10624_s15 + $0x38] sm:$0xff] }
 0xfaf   :  { %6418 = vmatpush.msra.mxu1 %v6403_v23 }
 0xfb0   :  { %7182 = vmatmul.msk.f32.vlgmr.msrb.gmra.mxu3 %vm192_vm1, %v6345_v62 }
 0xfb1   :  { %6419 = vmatpush.msra.mxu1 %v6402_v17 }
 0xfb3   :  { %6420 = vmatpush.msra.mxu1 %v6401_v49  ;;  %v6628_v49 = vld [vmem:[%s6745_s17 + $0x30] sm:$0xff] }
 0xfb5   :  { %6421 = vmatpush.msra.mxu1 %v6400_v6  ;;  %v6627_v6 = vld [vmem:[%s6745_s17 + $0x28] sm:$0xff] }
 0xfb7   :  { %6422 = vmatpush.msra.mxu1 %v6399_v53  ;;  %v7267_v53 = vld [vmem:[%s6740_s12] ss:$0 sm:$0xff] }
 0xfb9   :  { %6423 = vmatpush.msra.mxu1 %v6398_v1  ;;  %v6626_v1 = vld [vmem:[%s6745_s17 + $0x20] sm:$0xff] }
 0xfbb   :  { %6424 = vmatpush.msra.mxu1 %v6397_v35  ;;  %v6624_v35 = vld [vmem:[%s6745_s17 + $0x10] sm:$0xff] }
 0xfbd   :  { %6425 = vmatpush.msra.mxu1 %v6396_v48 }
 0xfbe   :  { %7184 = vmatmul.msk.f32.vlgmr.msra.gmra.mxu1 %vm192_vm1, %v10675_v45 }
 0xfbf   :  { %6530 = vmatpush.msrb.mxu1 %v6521_v19 }
 0xfc1   :  { %6531 = vmatpush.msrb.mxu1 %v6520_v61 }
 0xfc3   :  { %6532 = vmatpush.msrb.mxu1 %v6519_v22 }
 0xfc5   :  { %6533 = vmatpush.msrb.mxu1 %v6518_v18 }
 0xfc6   :  { %7185 = vmatmul.msk.f32.gmra.mxu1 %vm192_vm1, %v10695_v54 }
 0xfc7   :  { %6534 = vmatpush.msrb.mxu1 %v6517_v30 }
 0xfc9   :  { %6535 = vmatpush.msrb.mxu1 %v6516_v10 }
 0xfcb   :  { %6536 = vmatpush.msrb.mxu1 %v6515_v25 }
 0xfcd   :  { %6537 = vmatpush.msrb.mxu1 %v6514_v63 }
 0xfce   :  { %7190 = vmatmul.msk.f32.vlgmr.msrb.gmra.mxu1 %vm192_vm1, %v10675_v45 }
 0xfd6   :  { %7191 = vmatmul.msk.f32.gmra.mxu1 %vm192_vm1, %v10695_v54 }
0x1008   :  { %v6300_v37 = vpop.f32.mrf.mxu1 }
0x100c   :  { %v10657_v33 = vpop.f32.mrf.mxu3 }
0x100d   :  { %v6304_v58 = vmul.f32 %v10657_v33, %v10657_v33  ;;  %v6308_v44 = vsub.f32 %v10599_v36, %v10657_v33  ;;  %v7265_v36 = vld [vmem:[%s10619_s9] ss:$0 sm:$0xff] }
0x100f   :  { %v6306_v38 = vsub.f32 %v6300_v37, %v6304_v58  ;;  %v6622_v37 = vld [vmem:[%s6745_s17] sm:$0xff] }
0x1011   :  { %v6310_v20 = vadd.f32 1e-05, %v6306_v38 }
0x1013   :  { %7675 = vrsqrt.f32 %v6310_v20  ;;  %vm6327_vm9 = vweird.f32 %v6310_v20 }
0x1019   :  { %v7676_v9 = vpop.eup %7675 }
0x101a   :  { %v6322_v28 = vmul.f32 %v7676_v9, %v6310_v20  ;;  %vm6328_vm7 = vweird.f32 %v7676_v9 }
0x101b   :  { %vm6329_vm10 = vmor %vm6327_vm9, %vm6328_vm7 }
0x101c   :  { %v6323_v55 = vmul.f32 %v7676_v9, %v6322_v28 }
0x101e   :  { %v6324_v43 = vmul.f32 0.5, %v6323_v55 }
0x1020   :  { %v6325_v27 = vsub.f32 1.5, %v6324_v43 }
0x1022   :  { %v6326_v13 = vmul.f32 %v7676_v9, %v6325_v27 }
0x1024   :  { %v6330_v52 = vsel %vm6329_vm10, %v7676_v9, %v6326_v13 }
0x1025   :  { %v6332_v59 = vmul.f32 %v6330_v52, %v6308_v44 }
0x1027   :  { %v6337_v39 = vmul.f32 %v10607_v41, %v6332_v59 }
0x1029   :  { %v6342_v34 = vadd.f32 %v10610_v4, %v6337_v39  ;;  %v6629_v4 = vld [vmem:[%s6745_s17 + $0x38] sm:$0xff] }
0x102a   :  { %6644 = vmatpush.msrb.mxu3 %v6629_v4 }
0x102b   :  { %v6344_v0 = vmax.f32 %v6342_v34, 0.0 }
0x102c   :  { %6645 = vmatpush.msrb.mxu3 %v6628_v49 }
0x102d   :  { %v6346_v62 = vadd.f32 %v6344_v0, %v10014_v57 }
0x102e   :  { %6646 = vmatpush.msrb.mxu3 %v6627_v6 }
0x102f   :  { %7183 = vmatmul.msk.f32.gmra.mxu3 %vm192_vm1, %v6346_v62 }
0x1030   :  { %6647 = vmatpush.msrb.mxu3 %v6626_v1 }
0x1032   :  { %6648 = vmatpush.msrb.mxu3 %v6625_v26 }
0x1033   :  { %v6382_v23 = vpop.f32.mrf.mxu3 }
0x1034   :  { %v10716_v17 = vadd.f32 %v7265_v36, %v6382_v23  ;;  %6649 = vmatpush.msrb.mxu3 %v6624_v35 }
0x1036   :  { %7192 = vmatmul.msk.f32.vlgmr.msrb.gmra.mxu2 %vm192_vm1, %v10716_v17  ;;  %7198 = vmatmul.msk.f32.vlgmr.msra.gmra.mxu0 %vm192_vm1, %v10716_v17 }
0x1037   :  { %7186 = vmatmul.msk.f32.vlgmr.msra.gmra.mxu3 %vm192_vm1, %v10716_v17 }
0x1038   :  { %6650 = vmatpush.msrb.mxu3 %v6623_v14 }
0x103a   :  { %6651 = vmatpush.msrb.mxu3 %v6622_v37 }
0x103b   :  { %v6427_v60 = vpop.f32.mrf.mxu1 }
0x1043   :  { %v6430_v56 = vpop.f32.mrf.mxu1 }
0x104b   :  { %v6539_v61 = vpop.f32.mrf.mxu1 }
0x1053   :  { %v6542_v37 = vpop.f32.mrf.mxu1 }
0x10b2   :  { %v6385_v57 = vpop.f32.mrf.mxu3 }
0x10b3   :  { %v10735_v41 = vadd.f32 %v7265_v36, %v6385_v57  ;;  %v7268_v36 = vld [vmem:[%s10747_s21] ss:$0 sm:$0xff]  ;;  %v6676_v23 = vpop.f32.mrf.mxu0 }
0x10b5   :  { %7187 = vmatmul.msk.f32.gmra.mxu3 %vm192_vm1, %v10735_v41  ;;  %7193 = vmatmul.msk.f32.gmra.mxu2 %vm192_vm1, %v10735_v41 }
0x10b6   :  { %7199 = vmatmul.msk.f32.gmra.mxu0 %vm192_vm1, %v10735_v41 }
0x10b9   :  { %v6562_v21 = vpop.f32.mrf.mxu2 }
0x10ba   :  { %v6456_v33 = vpop.f32.mrf.mxu3  ;;  %v6563_v3 = vadd.f32 %v6562_v21, %v6539_v61 }
0x10bb   :  { %v6457_v2 = vadd.f32 %v6456_v33, %v6427_v60 }
0x10bc   :  { %v6572_v22 = vadd.f32 %v7266_v31, %v6563_v3 }
0x10bd   :  { %v6466_v58 = vadd.f32 %v7267_v53, %v6457_v2 }
0x10be   :  { %v7194_v12 = vmul.f32 -1.442695, %v6572_v22 }
0x10bf   :  { %v7188_v42 = vmul.f32 -1.442695, %v6466_v58 }
0x10c1   :  { %7677 = vpow2.f32 %v7188_v42 }
0x10c7   :  { %v7678_v40 = vpop.eup %7677 }
0x10c8   :  { %v6474_v50 = vadd.f32 1.0, %v7678_v40 }
0x10ca   :  { %7679 = vrcp.f32 %v6474_v50  ;;  %v6487_v48 = vand.u32 2147483648, %v6474_v50  ;;  %v6485_v7 = vand.u32 2147483647, %v6474_v50  ;;  %vm6481_vm8 = vweird.f32 %v6474_v50 }
0x10cb   :  { %7681 = vpow2.f32 %v7194_v12 }
0x10cc   :  { %v6488_v47 = vor.u32 1.1754944e-38, %v6487_v48  ;;  %vm6486_vm13 = vcmp.eq.f32.partialorder %v6485_v7, 8.507059e+37 }
0x10d0   :  { %v7680_v5 = vpop.eup %7679 }
0x10d1   :  { %v6477_v38 = vmul.f32 %v7680_v5, %v6474_v50  ;;  %vm6482_vm11 = vweird.f32 %v7680_v5  ;;  %v7682_v9 = vpop.eup %7681 }
0x10d2   :  { %vm6483_vm12 = vmor %vm6481_vm8, %vm6482_vm11  ;;  %v6580_v30 = vadd.f32 1.0, %v7682_v9 }
0x10d3   :  { %v6478_v15 = vsub.f32 1.0, %v6477_v38 }
0x10d4   :  { %v6593_v6 = vand.u32 2147483648, %v6580_v30  ;;  %vm6587_vm4 = vweird.f32 %v6580_v30 }
0x10d5   :  { %v6479_v24 = vmul.f32 %v7680_v5, %v6478_v15 }
0x10d6   :  { %v6594_v1 = vor.u32 1.1754944e-38, %v6593_v6 }
0x10d7   :  { %v6480_v20 = vadd.f32 %v7680_v5, %v6479_v24 }
0x10d9   :  { %v6484_v19 = vsel %vm6483_vm12, %v7680_v5, %v6480_v20 }
0x10da   :  { %v6489_v32 = vsel %vm6486_vm13, %v6488_v47, %v6484_v19 }
0x10db   :  { %v6620_v29 = vmul.f32 %v6489_v32, %v10675_v45 }
0x10dd   :  { %7196 = vmatmul.msk.f32.vlgmr.msrb.gmra.mxu3 %vm192_vm1, %v6620_v29 }
0x1138   :  { %v6459_v46 = vpop.f32.mrf.mxu3  ;;  %v6565_v40 = vpop.f32.mrf.mxu2 }
0x1139   :  { %v6460_v8 = vadd.f32 %v6459_v46, %v6430_v56  ;;  %v6566_v50 = vadd.f32 %v6565_v40, %v6542_v37 }
0x113b   :  { %v6467_v18 = vadd.f32 %v7267_v53, %v6460_v8  ;;  %v6591_v53 = vand.u32 2147483647, %v6580_v30  ;;  %v6573_v5 = vadd.f32 %v7266_v31, %v6566_v50 }
0x113d   :  { %v7189_v51 = vmul.f32 -1.442695, %v6467_v18  ;;  %vm6592_vm6 = vcmp.eq.f32.partialorder %v6591_v53, 8.507059e+37  ;;  %v7195_v38 = vmul.f32 -1.442695, %v6573_v5 }
0x113f   :  { %7683 = vpow2.f32 %v7189_v51 }
0x1145   :  { %v7684_v16 = vpop.eup %7683 }
0x1146   :  { %v6475_v28 = vadd.f32 1.0, %v7684_v16 }
0x1148   :  { %7685 = vrcp.f32 %v6475_v28  ;;  %v6502_v25 = vand.u32 2147483648, %v6475_v28  ;;  %v6500_v63 = vand.u32 2147483647, %v6475_v28  ;;  %vm6496_vm15 = vweird.f32 %v6475_v28 }
0x1149   :  { %7687 = vrcp.f32 %v6580_v30 }
0x114a   :  { %v6503_v52 = vor.u32 1.1754944e-38, %v6502_v25  ;;  %vm6501_vm2 = vcmp.eq.f32.partialorder %v6500_v63, 8.507059e+37 }
0x114e   :  { %v7686_v11 = vpop.eup %7685 }
0x114f   :  { %v6492_v55 = vmul.f32 %v7686_v11, %v6475_v28  ;;  %v7688_v10 = vpop.eup %7687  ;;  %vm6497_vm14 = vweird.f32 %v7686_v11 }
0x1150   :  { %v6583_v13 = vmul.f32 %v7688_v10, %v6580_v30  ;;  %vm6498_vm0 = vmor %vm6496_vm15, %vm6497_vm14  ;;  %vm6588_vm3 = vweird.f32 %v7688_v10 }
0x1151   :  { %v6493_v43 = vsub.f32 1.0, %v6492_v55  ;;  %vm6589_vm5 = vmor %vm6587_vm4, %vm6588_vm3 }
0x1152   :  { %v6584_v34 = vsub.f32 1.0, %v6583_v13 }
0x1153   :  { %v6494_v27 = vmul.f32 %v7686_v11, %v6493_v43 }
0x1154   :  { %v6585_v62 = vmul.f32 %v7688_v10, %v6584_v34 }
0x1155   :  { %v6495_v44 = vadd.f32 %v7686_v11, %v6494_v27 }
0x1156   :  { %v6586_v4 = vadd.f32 %v7688_v10, %v6585_v62 }
0x1157   :  { %v6499_v59 = vsel %vm6498_vm0, %v7686_v11, %v6495_v44 }
0x1158   :  { %v6504_v39 = vsel %vm6501_vm2, %v6503_v52, %v6499_v59  ;;  %v6590_v33 = vsel %vm6589_vm5, %v7688_v10, %v6586_v4 }
0x1159   :  { %v6621_v0 = vmul.f32 %v6504_v39, %v10695_v54  ;;  %v6595_v2 = vsel %vm6592_vm6, %v6594_v1, %v6590_v33 }
0x115a   :  { %v6692_v26 = vsub.f32 1.0, %v6595_v2  ;;  %v6690_v35 = vmul.f32 %v6595_v2, %v10675_v45  ;;  %v6679_v45 = vpop.f32.mrf.mxu0 }
0x115b   :  { %7197 = vmatmul.msk.f32.gmra.mxu3 %vm192_vm1, %v6621_v0 }
0x1160   :  { %v6653_v57 = vpop.f32.mrf.mxu3 }
0x1161   :  { %v6677_v49 = vadd.f32 %v6676_v23, %v6653_v57 }
0x1163   :  { %v6686_v60 = vadd.f32 %v7268_v36, %v6677_v49 }
0x1165   :  { %7689 = vtanh.f32 %v6686_v60 }
0x1166   :  { %7691 = vpow2.f32 %v7195_v38 }
0x116b   :  { %v7690_v58 = vpop.eup %7689 }
0x116c   :  { %v6694_v42 = vmul.f32 %v7690_v58, %v6692_v26  ;;  %v7692_v15 = vpop.eup %7691 }
0x116d   :  { %v6581_v48 = vadd.f32 1.0, %v7692_v15 }
0x116e   :  { %v6696_v14 = vadd.f32 %v6694_v42, %v6690_v35 }
0x116f   :  { %7693 = vrcp.f32 %v6581_v48  ;;  %v6608_v56 = vand.u32 2147483648, %v6581_v48  ;;  %vm6602_vm9 = vweird.f32 %v6581_v48  ;;  %v6606_v61 = vand.u32 2147483647, %v6581_v48 }
0x1170   :  { %6700 = vrot.lane.b32.xlu0 %v6696_v14, %s7862_s22 }
0x1171   :  { %v6609_v46 = vor.u32 1.1754944e-38, %v6608_v56  ;;  %vm6607_vm11 = vcmp.eq.f32.partialorder %v6606_v61, 8.507059e+37 }
0x1175   :  { %v7694_v24 = vpop.eup %7693 }
0x1176   :  { %v6598_v7 = vmul.f32 %v7694_v24, %v6581_v48  ;;  %vm6603_vm7 = vweird.f32 %v7694_v24 }
0x1177   :  { %vm6604_vm10 = vmor %vm6602_vm9, %vm6603_vm7 }
0x1178   :  { %v6599_v20 = vsub.f32 1.0, %v6598_v7 }
0x117a   :  { %v6600_v47 = vmul.f32 %v7694_v24, %v6599_v20 }
0x117c   :  { %v6601_v32 = vadd.f32 %v7694_v24, %v6600_v47 }
0x117e   :  { %v6605_v31 = vsel %vm6604_vm10, %v7694_v24, %v6601_v32 }
0x117f   :  { %v6610_v8 = vsel %vm6607_vm11, %v6609_v46, %v6605_v31 }
0x1180   :  { %v6693_v12 = vsub.f32 1.0, %v6610_v8  ;;  %v6691_v51 = vmul.f32 %v6610_v8, %v10695_v54 }
0x11de   :  { %v6656_v19 = vpop.f32.mrf.mxu3 }
0x11df   :  { %v6680_v29 = vadd.f32 %v6679_v45, %v6656_v19 }
0x11e1   :  { %v6687_v21 = vadd.f32 %v7268_v36, %v6680_v29 }
0x11e2   :  { %v6701_v3 = vpop.permute.xlu0 %6700 }
0x11e3   :  { %7695 = vtanh.f32 %v6687_v21  ;;  %v6706_v22 = vsel %vm192_vm1, %v10716_v17, %v6701_v3 }
0x11e4   :  { %6708 = vst [vmem:[%s6747_s27] sm:$0xff] %v6706_v22 }
0x11e9   :  { %v7696_v18 = vpop.eup %7695 }
0x11ea   :  { %v6695_v9 = vmul.f32 %v7696_v18, %v6693_v12 }
0x11ec   :  { %v6697_v16 = vadd.f32 %v6695_v9, %v6691_v51 }
0x11ee   :  { %6702 = vrot.lane.b32.xlu0 %v6697_v16, %s7862_s22 }
0x1260   :  { %v6703_v28 = vpop.permute.xlu0 %6702 }
0x1261   :  { %v6707_v30 = vsel %vm192_vm1, %v10735_v41, %v6703_v28 }
0x1262   :  { %6709 = vst [vmem:[%s6747_s27 + $0x8] sm:$0xff] %v6707_v30 }

</bundles_post_ra>
